<compile_context>
chip_gen: v7x
topology: tpu7x:2x2x1
jax: 0.10.0
libtpu: 0.0.40
codegen_flags: <defaults>
</compile_context>

<pallas_src>
import functools

import jax
import jax.numpy as jnp
from jax.experimental import pallas as pl
from jax.experimental.pallas import tpu as pltpu

LN_EPS = 1e-5  # DownSample passes norm_layer=nn.LayerNorm (default eps) to VSB / PatchMerging.


def _round_up(x, m):
    return ((x + m - 1) // m) * m


def _pick_tile(n, target, unit=8, max_tile=None):
    """Largest divisor of `n` that is a multiple of `unit` and <= target (and max_tile).

    Prefers a divisor giving an EVEN number of grid steps so the single 'parallel'
    grid axis splits evenly across v7x's two TensorCores (a 3-step grid idles one
    core ~33%).  Returns None when no such divisor exists (caller pads instead).
    """
    hi = min(n, target)
    if max_tile is not None:
        hi = min(hi, max_tile)
    best = best_even = None
    t = unit
    while t <= hi:
        if n % t == 0:
            best = t
            if (n // t) % 2 == 0:
                best_even = t
        t += unit
    if best is None:
        return None
    return best_even if best_even is not None else best


def _vmem_limit(need_bytes, mult):
    # Re-budgeted for v7x's 64 MiB physical VMEM: never ask for more than 40 MiB,
    # never less than the 16 MiB scoped default.  `mult` covers double-buffering /
    # (8,128) tile padding slack on top of the logical byte count.
    return int(min(40 * 1024 * 1024, max(16 * 1024 * 1024, mult * need_bytes)))


def _layernorm(x, gamma, beta, eps):
    mu = jnp.mean(x, axis=-1, keepdims=True)
    var = jnp.mean((x - mu) ** 2, axis=-1, keepdims=True)
    return (x - mu) * jax.lax.rsqrt(var + eps) * gamma + beta


# ------------------------------ Pallas kernels ------------------------------
def _vmrnn_cell_kernel(x_ref, hx_ref, cx_ref, g_ref, b_ref, wx_ref, wh_ref, lb_ref,
                       ht_ref, ct_ref, *, depth, eps):
    """Whole VMRNNCell on one (tile, C) slab of tokens, fully fused.

    VSB 0 (uses hx):  x + Linear(cat(LN(x), LN(hx)))  [concat-free: split weights]
    VSB d>0:          cur + LN(cur)
    Gate:             Ft=sigmoid(o), cell=tanh(o), Ct=Ft*(cx+cell), Ht=Ft*tanh(Ct)
    """
    x = x_ref[...]
    g0 = g_ref[0:1, :]
    b0 = b_ref[0:1, :]
    # The reference VSB applies the *same* ln_1 to x and hx before the concat.
    xn = _layernorm(x, g0, b0, eps)
    hn = _layernorm(hx_ref[...], g0, b0, eps)
    # Linear(cat(xn, hn)) without a lane-axis concat: two bf16 matmuls, f32 accumulate.
    y = (
        jnp.dot(xn.astype(jnp.bfloat16), wx_ref[...], preferred_element_type=jnp.float32)
        + jnp.dot(hn.astype(jnp.bfloat16), wh_ref[...], preferred_element_type=jnp.float32)
        + lb_ref[...]
    )
    # TODO(synk): VSSBlock.self_attention (VMamba SS2D selective scan) is not defined in
    # the reference source and has no clean drop-in here; treated as identity.
    cur = x + y
    for d in range(1, depth):  # remaining VSBs receive hx=None -> no Linear, just residual LN
        gd = g_ref[d:d + 1, :]
        bd = b_ref[d:d + 1, :]
        cur = cur + _layernorm(cur, gd, bd, eps)
    ft = jax.nn.sigmoid(cur)
    cell = jnp.tanh(cur)
    ct = ft * (cx_ref[...] + cell)
    ht_ref[...] = ft * jnp.tanh(ct)
    ct_ref[...] = ct


def _patch_merge_kernel(x_ref, g_ref, b_ref, w_ref, o_ref, *, c, wh, tb, eps, vectorized):
    """Swin PatchMerging with the 2x2 gather fused in VMEM.

    x_ref block: (tb, 2, wh, 2C) -- tb h-row-pairs, axis 1 = h parity,
    lane axis = [w-even C | w-odd C].  Output = Linear(LN(cat(x0,x1,x2,x3)), 4C->2C).
    """
    g = g_ref[...]              # (1, 4C) f32
    b = b_ref[...]              # (1, 4C) f32
    w = w_ref[...]              # (4C, 2C) bf16
    x = x_ref[...]              # (tb, 2, wh, 2C) f32
    if vectorized:
        # wh % 8 == 0: the (tb, wh, C) -> (tb*wh, C) collapse is layout-preserving,
        # so everything runs as one lane-dense 2-D slab + one MXU matmul.
        r = tb * wh
        x0 = x[:, 0, :, 0:c].reshape(r, c)          # (h even, w even)
        x1 = x[:, 1, :, 0:c].reshape(r, c)          # (h odd,  w even)
        x2 = x[:, 0, :, c:2 * c].reshape(r, c)      # (h even, w odd)
        x3 = x[:, 1, :, c:2 * c].reshape(r, c)      # (h odd,  w odd)
        xn = _layernorm(jnp.concatenate([x0, x1, x2, x3], axis=-1), g, b, eps)
        o_ref[...] = jnp.dot(xn.astype(jnp.bfloat16), w, preferred_element_type=jnp.float32)
    else:
        # Ragged wh: avoid sublane-repacking reshapes; unrolled loop over row-pairs
        # (tb is capped by the wrapper), all ops rank-2 with leading-axis indexing only.
        for t in range(tb):
            x0 = x[t, 0, :, 0:c]
            x1 = x[t, 1, :, 0:c]
            x2 = x[t, 0, :, c:2 * c]
            x3 = x[t, 1, :, c:2 * c]
            xn = _layernorm(jnp.concatenate([x0, x1, x2, x3], axis=-1), g, b, eps)
            o_ref[t] = jnp.dot(xn.astype(jnp.bfloat16), w, preferred_element_type=jnp.float32)


# ------------------------------ pallas_call wrappers ------------------------------
def vmrnn_cell(x2, hx2, cx2, ln_g, ln_b, w_x, w_h, lin_b, *, depth):
    """Fused VMRNNCell over (N, C) token rows. Returns (Ht, Ct) as (N, C) f32."""
    n, c = x2.shape
    # ~512-row tiles are near the HBM roofline for small C; shrink for large C so the
    # ~5 streamed f32 (tile, C) buffers (double-buffered) stay well inside v7x VMEM.
    target = 512 if c <= 256 else 256
    tile = _pick_tile(n, target, unit=8)
    n_pad = n
    if tile is None:  # ragged fallback (not hit for composite N = B*H*W)
        tile = min(_round_up(target, 8), _round_up(n, 8))
        n_pad = _round_up(n, tile)
        pad = ((0, n_pad - n), (0, 0))
        x2, hx2, cx2 = (jnp.pad(a, pad) for a in (x2, hx2, cx2))

    row = lambda i: (i, 0)
    const = lambda i: (0, 0)
    const_bytes = (2 * depth * c + c) * 4 + 2 * c * c * 2
    need = 2 * (5 * tile * c * 4) + 2 * const_bytes
    cparams = pltpu.CompilerParams(
        dimension_semantics=("parallel",),
        vmem_limit_bytes=_vmem_limit(need, 4),
    )
    cost = pl.CostEstimate(
        flops=int(4 * n_pad * c * c),               # two (tile,C)x(C,C) matmuls per row
        transcendentals=int(3 * n_pad * c),         # sigmoid + 2x tanh per element
        bytes_accessed=int(4 * 5 * n_pad * c + const_bytes),
    )
    ht, ct = pl.pallas_call(
        functools.partial(_vmrnn_cell_kernel, depth=depth, eps=LN_EPS),
        out_shape=(
            jax.ShapeDtypeStruct((n_pad, c), jnp.float32),
            jax.ShapeDtypeStruct((n_pad, c), jnp.float32),
        ),
        grid=(n_pad // tile,),
        in_specs=[
            pl.BlockSpec((tile, c), row),      # x
            pl.BlockSpec((tile, c), row),      # hx
            pl.BlockSpec((tile, c), row),      # cx
            pl.BlockSpec((depth, c), const),   # stacked LN gamma (row d = VSB d)
            pl.BlockSpec((depth, c), const),   # stacked LN beta
            pl.BlockSpec((c, c), const),       # W_x (bf16)
            pl.BlockSpec((c, c), const),       # W_h (bf16)
            pl.BlockSpec((1, c), const),       # linear bias (f32)
        ],
        out_specs=(pl.BlockSpec((tile, c), row), pl.BlockSpec((tile, c), row)),
        compiler_params=cparams,
        cost_estimate=cost,
    )(x2, hx2, cx2, ln_g, ln_b, w_x, w_h, lin_b)
    if n_pad != n:
        ht, ct = ht[:n], ct[:n]
    return ht, ct


def patch_merge(ht, H, W, gamma, beta, w_t):
    """PatchMerging: 2x2 spatial gather + LayerNorm(4C) + Linear(4C, 2C, bias=False).

    The gather is fused into the kernel: `ht` is only re-viewed (free contiguous
    reshape) as (B*H/2 row-pairs, 2, W/2, 2C); the (rows, 4C) slab is assembled in
    VMEM, eliminating the extra HBM pass the previous XLA slice+concat cost.
    """
    B, L, C = ht.shape
    assert L == H * W and H % 2 == 0 and W % 2 == 0, "Input feature has wrong size."
    Hh, Wh = H // 2, W // 2
    P = B * Hh                                           # number of h-row-pairs
    xv = ht.reshape(P, 2, Wh, 2 * C)                     # free view of contiguous (B,H,W,C)

    vectorized = (Wh % 8 == 0)
    # Tile over row-pairs; cap the in-kernel unrolled loop when Wh is ragged.
    tb = _pick_tile(P, max(1, 512 // max(Wh, 1)), unit=1,
                    max_tile=None if vectorized else 32)

    row4 = lambda i: (i, 0, 0, 0)
    const = lambda i: (0, 0)
    if vectorized:
        out_struct = jax.ShapeDtypeStruct((P * Wh, 2 * C), jnp.float32)
        out_spec = pl.BlockSpec((tb * Wh, 2 * C), lambda i: (i, 0))
    else:
        out_struct = jax.ShapeDtypeStruct((P, Wh, 2 * C), jnp.float32)
        out_spec = pl.BlockSpec((tb, Wh, 2 * C), lambda i: (i, 0, 0))

    n_tok = P * Wh
    const_bytes = 4 * C * 2 * C * 2 + 2 * 4 * C * 4
    in_block = tb * 2 * Wh * 2 * C * 4
    out_block = tb * Wh * 2 * C * 4
    need = 2 * (in_block + out_block) + 2 * const_bytes
    cparams = pltpu.CompilerParams(
        dimension_semantics=("parallel",),
        vmem_limit_bytes=_vmem_limit(need, 8),   # extra slack for (8,128) tile padding
    )
    cost = pl.CostEstimate(
        flops=int(2 * n_tok * (4 * C) * (2 * C)),
        transcendentals=int(n_tok),              # rsqrt per output token
        bytes_accessed=int(4 * (B * L * C + n_tok * 2 * C) + const_bytes),
    )
    out = pl.pallas_call(
        functools.partial(_patch_merge_kernel, c=C, wh=Wh, tb=tb, eps=LN_EPS,
                          vectorized=vectorized),
        out_shape=out_struct,
        grid=(P // tb,),
        in_specs=[
            pl.BlockSpec((tb, 2, Wh, 2 * C), row4),   # Ht row-pair view
            pl.BlockSpec((1, 4 * C), const),          # LN gamma
            pl.BlockSpec((1, 4 * C), const),          # LN beta
            pl.BlockSpec((4 * C, 2 * C), const),      # reduction weight (bf16)
        ],
        out_specs=out_spec,
        compiler_params=cparams,
        cost_estimate=cost,
    )(xv, gamma, beta, w_t)
    return out.reshape(B, Hh * Wh, 2 * C)


# ------------------------------ parameters & orchestration ------------------------------
def init_params(key, embed_dim, depths_downsample):
    """Random parameters matching the PyTorch module structure.

    Torch mapping:
      * VSB d: ln_1.weight/bias                -> cells[i]["ln_g"][d], ["ln_b"][d]
      * VSB 0: linear.weight (C, 2C)           -> w_x = weight[:, :C].T, w_h = weight[:, C:].T (bf16)
               linear.bias (C,)                -> lin_b (1, C)
        (later VSBs receive hx=None inside VMRNNCell, so their Linear is never used)
      * PatchMerging: norm.weight/bias (4C)    -> merge ln_g / ln_b
                      reduction.weight (2C,4C) -> w_t = weight.T (bf16)
    """
    params = {"cells": [], "merge": []}
    for i_layer, depth in enumerate(depths_downsample):
        c = embed_dim * 2 ** i_layer
        key, kwx, kwh, kb, km = jax.random.split(key, 5)
        params["cells"].append(
            {
                "ln_g": jnp.ones((depth, c), jnp.float32),
                "ln_b": jnp.zeros((depth, c), jnp.float32),
                "w_x": (0.02 * jax.random.normal(kwx, (c, c))).astype(jnp.bfloat16),
                "w_h": (0.02 * jax.random.normal(kwh, (c, c))).astype(jnp.bfloat16),
                "lin_b": 0.02 * jax.random.normal(kb, (1, c)),
            }
        )
        params["merge"].append(
            {
                "ln_g": jnp.ones((1, 4 * c), jnp.float32),
                "ln_b": jnp.zeros((1, 4 * c), jnp.float32),
                "w_t": (0.02 * jax.random.normal(km, (4 * c, 2 * c))).astype(jnp.bfloat16),
            }
        )
    return params


def downsample_forward(params, x, states_down, embed_dim, depths_downsample,
                       feature_resolution):
    H0, W0 = feature_resolution
    hidden_states_down = []
    for i_layer, depth in enumerate(depths_downsample):
        Hi, Wi = H0 // 2 ** i_layer, W0 // 2 ** i_layer
        C = embed_dim * 2 ** i_layer
        B, L, _ = x.shape
        assert L == Hi * Wi, "Input feature has wrong size."

        if states_down is not None:
            hx, cx = states_down[i_layer]
        else:
            hx = jnp.zeros((B, L, C), jnp.float32)
            cx = jnp.zeros((B, L, C), jnp.float32)

        cp = params["cells"][i_layer]
        ht, ct = vmrnn_cell(
            x.reshape(B * L, C).astype(jnp.float32),
            hx.reshape(B * L, C).astype(jnp.float32),
            cx.reshape(B * L, C).astype(jnp.float32),
            cp["ln_g"], cp["ln_b"], cp["w_x"], cp["w_h"], cp["lin_b"],
            depth=depth,
        )
        Ht = ht.reshape(B, L, C)
        Ct = ct.reshape(B, L, C)
        hidden_states_down.append((Ht, Ct))

        mp = params["merge"][i_layer]
        x = patch_merge(Ht, Hi, Wi, mp["ln_g"], mp["ln_b"], mp["w_t"])
    return hidden_states_down, x


# ------------------------------ main ------------------------------
if __name__ == "__main__":
    B = 2
    embed_dim = 32
    feature_resolution = (16, 16)
    depths_downsample = [2, 2]

    key = jax.random.PRNGKey(0)
    key, kx, kp = jax.random.split(key, 3)

    H, W = feature_resolution
    x = jax.random.normal(kx, (B, H * W, embed_dim), jnp.float32)

    # per-layer recurrent states (hx, cx), matching each stage's resolution / hidden dim
    states_down = []
    for i_layer in range(len(depths_downsample)):
        Li = (H // 2 ** i_layer) * (W // 2 ** i_layer)
        Ci = embed_dim * 2 ** i_layer
        key, kh, kc = jax.random.split(key, 3)
        states_down.append(
            (
                jax.random.normal(kh, (B, Li, Ci), jnp.float32),
                jax.random.normal(kc, (B, Li, Ci), jnp.float32),
            )
        )

    params = init_params(kp, embed_dim, depths_downsample)

    fwd = jax.jit(
        functools.partial(
            downsample_forward,
            embed_dim=embed_dim,
            depths_downsample=depths_downsample,
            feature_resolution=feature_resolution,
        )
    )
    hidden_states_down, out = fwd(params, x, states_down)

    out = jax.block_until_ready(out)
    for ht, ct in hidden_states_down:
        jax.block_until_ready(ht)
        jax.block_until_ready(ct)

    # sanity on shapes implied by the module
    assert out.shape == (B, (H // 4) * (W // 4), embed_dim * 4)
    assert hidden_states_down[0][0].shape == (B, H * W, embed_dim)
    assert hidden_states_down[1][0].shape == (B, (H // 2) * (W // 2), embed_dim * 2)
    assert bool(jnp.isfinite(out).all())
    assert all(bool(jnp.isfinite(h).all()) and bool(jnp.isfinite(c).all())
               for h, c in hidden_states_down)

    print("KERNEL_OK")
</pallas_src>

<mosaic_0001>
module attributes {stable_mosaic.version = 11 : i64} {
  func.func @_vmrnn_cell_kernel(%arg0: i32, %arg1: memref<256x32xf32, #tpu.memory_space<vmem>>, %arg2: memref<256x32xf32, #tpu.memory_space<vmem>>, %arg3: memref<256x32xf32, #tpu.memory_space<vmem>>, %arg4: memref<2x32xf32, #tpu.memory_space<vmem>>, %arg5: memref<2x32xf32, #tpu.memory_space<vmem>>, %arg6: memref<32x32xbf16, #tpu.memory_space<vmem>>, %arg7: memref<32x32xbf16, #tpu.memory_space<vmem>>, %arg8: memref<1x32xf32, #tpu.memory_space<vmem>>, %arg9: memref<256x32xf32, #tpu.memory_space<vmem>>, %arg10: memref<256x32xf32, #tpu.memory_space<vmem>>) attributes {dimension_semantics = [#tpu.dimension_semantics<parallel>], iteration_bounds = array<i64: 2>, scalar_prefetch = 0 : i64, scratch_operands = 0 : i64, tpu.core_type = #tpu.core_type<tc>, window_params = [{transform_indices = @transform_0, window_bounds = array<i64: 256, 32>}, {transform_indices = @transform_1, window_bounds = array<i64: 256, 32>}, {transform_indices = @transform_2, window_bounds = array<i64: 256, 32>}, {pipeline_mode = #tpu.pipeline_mode<synchronous>, transform_indices = @transform_3, window_bounds = array<i64: 2, 32>}, {pipeline_mode = #tpu.pipeline_mode<synchronous>, transform_indices = @transform_4, window_bounds = array<i64: 2, 32>}, {pipeline_mode = #tpu.pipeline_mode<synchronous>, transform_indices = @transform_5, window_bounds = array<i64: 32, 32>}, {pipeline_mode = #tpu.pipeline_mode<synchronous>, transform_indices = @transform_6, window_bounds = array<i64: 32, 32>}, {pipeline_mode = #tpu.pipeline_mode<synchronous>, transform_indices = @transform_7, window_bounds = array<i64: 1, 32>}, {transform_indices = @transform_8, window_bounds = array<i64: 256, 32>}, {transform_indices = @transform_9, window_bounds = array<i64: 256, 32>}]} {
    %c0 = arith.constant 0 : index
    %c0_0 = arith.constant 0 : index
    %0 = vector.load %arg1[%c0, %c0_0] : memref<256x32xf32, #tpu.memory_space<vmem>>, vector<256x32xf32>
    %c0_1 = arith.constant 0 : index
    %c0_2 = arith.constant 0 : index
    %1 = vector.load %arg4[%c0_1, %c0_2] : memref<2x32xf32, #tpu.memory_space<vmem>>, vector<1x32xf32>
    %c0_3 = arith.constant 0 : index
    %c0_4 = arith.constant 0 : index
    %2 = vector.load %arg5[%c0_3, %c0_4] : memref<2x32xf32, #tpu.memory_space<vmem>>, vector<1x32xf32>
    %cst = arith.constant dense<0.000000e+00> : vector<256xf32>
    %3 = vector.multi_reduction <add>, %0, %cst [1] : vector<256x32xf32> to vector<256xf32>
    %4 = vector.shape_cast %3 : vector<256xf32> to vector<256x1xf32>
    %cst_5 = arith.constant 3.200000e+01 : f32
    %5 = vector.broadcast %cst_5 : f32 to vector<256x1xf32>
    %6 = arith.divf %4, %5 : vector<256x1xf32>
    %7 = vector.broadcast %6 : vector<256x1xf32> to vector<256x32xf32>
    %8 = arith.subf %0, %7 : vector<256x32xf32>
    %9 = arith.mulf %8, %8 : vector<256x32xf32>
    %cst_6 = arith.constant dense<0.000000e+00> : vector<256xf32>
    %10 = vector.multi_reduction <add>, %9, %cst_6 [1] : vector<256x32xf32> to vector<256xf32>
    %11 = vector.shape_cast %10 : vector<256xf32> to vector<256x1xf32>
    %cst_7 = arith.constant 3.200000e+01 : f32
    %12 = vector.broadcast %cst_7 : f32 to vector<256x1xf32>
    %13 = arith.divf %11, %12 : vector<256x1xf32>
    %14 = vector.broadcast %6 : vector<256x1xf32> to vector<256x32xf32>
    %15 = arith.subf %0, %14 : vector<256x32xf32>
    %cst_8 = arith.constant 9.99999974E-6 : f32
    %16 = vector.broadcast %cst_8 : f32 to vector<256x1xf32>
    %17 = arith.addf %13, %16 : vector<256x1xf32>
    %18 = math.rsqrt %17 : vector<256x1xf32>
    %19 = vector.broadcast %18 : vector<256x1xf32> to vector<256x32xf32>
    %20 = arith.mulf %15, %19 : vector<256x32xf32>
    %21 = vector.broadcast %1 : vector<1x32xf32> to vector<256x32xf32>
    %22 = arith.mulf %20, %21 : vector<256x32xf32>
    %23 = vector.broadcast %2 : vector<1x32xf32> to vector<256x32xf32>
    %24 = arith.addf %22, %23 : vector<256x32xf32>
    %c0_9 = arith.constant 0 : index
    %c0_10 = arith.constant 0 : index
    %25 = vector.load %arg2[%c0_9, %c0_10] : memref<256x32xf32, #tpu.memory_space<vmem>>, vector<256x32xf32>
    %cst_11 = arith.constant dense<0.000000e+00> : vector<256xf32>
    %26 = vector.multi_reduction <add>, %25, %cst_11 [1] : vector<256x32xf32> to vector<256xf32>
    %27 = vector.shape_cast %26 : vector<256xf32> to vector<256x1xf32>
    %cst_12 = arith.constant 3.200000e+01 : f32
    %28 = vector.broadcast %cst_12 : f32 to vector<256x1xf32>
    %29 = arith.divf %27, %28 : vector<256x1xf32>
    %30 = vector.broadcast %29 : vector<256x1xf32> to vector<256x32xf32>
    %31 = arith.subf %25, %30 : vector<256x32xf32>
    %32 = arith.mulf %31, %31 : vector<256x32xf32>
    %cst_13 = arith.constant dense<0.000000e+00> : vector<256xf32>
    %33 = vector.multi_reduction <add>, %32, %cst_13 [1] : vector<256x32xf32> to vector<256xf32>
    %34 = vector.shape_cast %33 : vector<256xf32> to vector<256x1xf32>
    %cst_14 = arith.constant 3.200000e+01 : f32
    %35 = vector.broadcast %cst_14 : f32 to vector<256x1xf32>
    %36 = arith.divf %34, %35 : vector<256x1xf32>
    %37 = vector.broadcast %29 : vector<256x1xf32> to vector<256x32xf32>
    %38 = arith.subf %25, %37 : vector<256x32xf32>
    %cst_15 = arith.constant 9.99999974E-6 : f32
    %39 = vector.broadcast %cst_15 : f32 to vector<256x1xf32>
    %40 = arith.addf %36, %39 : vector<256x1xf32>
    %41 = math.rsqrt %40 : vector<256x1xf32>
    %42 = vector.broadcast %41 : vector<256x1xf32> to vector<256x32xf32>
    %43 = arith.mulf %38, %42 : vector<256x32xf32>
    %44 = vector.broadcast %1 : vector<1x32xf32> to vector<256x32xf32>
    %45 = arith.mulf %43, %44 : vector<256x32xf32>
    %46 = vector.broadcast %2 : vector<1x32xf32> to vector<256x32xf32>
    %47 = arith.addf %45, %46 : vector<256x32xf32>
    %48 = arith.truncf %24 : vector<256x32xf32> to vector<256x32xbf16>
    %c0_16 = arith.constant 0 : index
    %c0_17 = arith.constant 0 : index
    %49 = vector.load %arg6[%c0_16, %c0_17] : memref<32x32xbf16, #tpu.memory_space<vmem>>, vector<32x32xbf16>
    %cst_18 = arith.constant dense<0.000000e+00> : vector<256x32xf32>
    %50 = tpu.matmul %48, %49, %cst_18 {dimension_numbers = #tpu.dot_dimension_numbers<[1], [0], [0], [1], [0, 0, 1, 1], [], []>} : vector<256x32xbf16>, vector<32x32xbf16>, vector<256x32xf32> -> vector<256x32xf32>
    %51 = arith.truncf %47 : vector<256x32xf32> to vector<256x32xbf16>
    %c0_19 = arith.constant 0 : index
    %c0_20 = arith.constant 0 : index
    %52 = vector.load %arg7[%c0_19, %c0_20] : memref<32x32xbf16, #tpu.memory_space<vmem>>, vector<32x32xbf16>
    %cst_21 = arith.constant dense<0.000000e+00> : vector<256x32xf32>
    %53 = tpu.matmul %51, %52, %cst_21 {dimension_numbers = #tpu.dot_dimension_numbers<[1], [0], [0], [1], [0, 0, 1, 1], [], []>} : vector<256x32xbf16>, vector<32x32xbf16>, vector<256x32xf32> -> vector<256x32xf32>
    %54 = arith.addf %50, %53 : vector<256x32xf32>
    %c0_22 = arith.constant 0 : index
    %c0_23 = arith.constant 0 : index
    %55 = vector.load %arg8[%c0_22, %c0_23] : memref<1x32xf32, #tpu.memory_space<vmem>>, vector<1x32xf32>
    %56 = vector.broadcast %55 : vector<1x32xf32> to vector<256x32xf32>
    %57 = arith.addf %54, %56 : vector<256x32xf32>
    %58 = arith.addf %0, %57 : vector<256x32xf32>
    %c1 = arith.constant 1 : index
    %c0_24 = arith.constant 0 : index
    %59 = vector.load %arg4[%c1, %c0_24] : memref<2x32xf32, #tpu.memory_space<vmem>>, vector<1x32xf32>
    %c1_25 = arith.constant 1 : index
    %c0_26 = arith.constant 0 : index
    %60 = vector.load %arg5[%c1_25, %c0_26] : memref<2x32xf32, #tpu.memory_space<vmem>>, vector<1x32xf32>
    %cst_27 = arith.constant dense<0.000000e+00> : vector<256xf32>
    %61 = vector.multi_reduction <add>, %58, %cst_27 [1] : vector<256x32xf32> to vector<256xf32>
    %62 = vector.shape_cast %61 : vector<256xf32> to vector<256x1xf32>
    %cst_28 = arith.constant 3.200000e+01 : f32
    %63 = vector.broadcast %cst_28 : f32 to vector<256x1xf32>
    %64 = arith.divf %62, %63 : vector<256x1xf32>
    %65 = vector.broadcast %64 : vector<256x1xf32> to vector<256x32xf32>
    %66 = arith.subf %58, %65 : vector<256x32xf32>
    %67 = arith.mulf %66, %66 : vector<256x32xf32>
    %cst_29 = arith.constant dense<0.000000e+00> : vector<256xf32>
    %68 = vector.multi_reduction <add>, %67, %cst_29 [1] : vector<256x32xf32> to vector<256xf32>
    %69 = vector.shape_cast %68 : vector<256xf32> to vector<256x1xf32>
    %cst_30 = arith.constant 3.200000e+01 : f32
    %70 = vector.broadcast %cst_30 : f32 to vector<256x1xf32>
    %71 = arith.divf %69, %70 : vector<256x1xf32>
    %72 = vector.broadcast %64 : vector<256x1xf32> to vector<256x32xf32>
    %73 = arith.subf %58, %72 : vector<256x32xf32>
    %cst_31 = arith.constant 9.99999974E-6 : f32
    %74 = vector.broadcast %cst_31 : f32 to vector<256x1xf32>
    %75 = arith.addf %71, %74 : vector<256x1xf32>
    %76 = math.rsqrt %75 : vector<256x1xf32>
    %77 = vector.broadcast %76 : vector<256x1xf32> to vector<256x32xf32>
    %78 = arith.mulf %73, %77 : vector<256x32xf32>
    %79 = vector.broadcast %59 : vector<1x32xf32> to vector<256x32xf32>
    %80 = arith.mulf %78, %79 : vector<256x32xf32>
    %81 = vector.broadcast %60 : vector<1x32xf32> to vector<256x32xf32>
    %82 = arith.addf %80, %81 : vector<256x32xf32>
    %83 = arith.addf %58, %82 : vector<256x32xf32>
    %84 = arith.negf %83 : vector<256x32xf32>
    %85 = math.exp %84 : vector<256x32xf32>
    %cst_32 = arith.constant 1.000000e+00 : f32
    %86 = vector.broadcast %cst_32 : f32 to vector<256x32xf32>
    %87 = arith.addf %86, %85 : vector<256x32xf32>
    %88 = arith.divf %86, %87 : vector<256x32xf32>
    %89 = math.tanh %83 : vector<256x32xf32>
    %c0_33 = arith.constant 0 : index
    %c0_34 = arith.constant 0 : index
    %90 = vector.load %arg3[%c0_33, %c0_34] : memref<256x32xf32, #tpu.memory_space<vmem>>, vector<256x32xf32>
    %91 = arith.addf %90, %89 : vector<256x32xf32>
    %92 = arith.mulf %88, %91 : vector<256x32xf32>
    %93 = math.tanh %92 : vector<256x32xf32>
    %94 = arith.mulf %88, %93 : vector<256x32xf32>
    %c0_35 = arith.constant 0 : index
    %c0_36 = arith.constant 0 : index
    %95 = vector.load %arg9[%c0_35, %c0_36] : memref<256x32xf32, #tpu.memory_space<vmem>>, vector<256x32xf32>
    tpu.vector_store %arg9[%c0_35, %c0_36], %94 {strides = array<i32>} : memref<256x32xf32, #tpu.memory_space<vmem>>, vector<256x32xf32>,
    %c0_37 = arith.constant 0 : index
    %c0_38 = arith.constant 0 : index
    %96 = vector.load %arg10[%c0_37, %c0_38] : memref<256x32xf32, #tpu.memory_space<vmem>>, vector<256x32xf32>
    tpu.vector_store %arg10[%c0_37, %c0_38], %92 {strides = array<i32>} : memref<256x32xf32, #tpu.memory_space<vmem>>, vector<256x32xf32>,
    return
  }
  func.func @transform_0(%arg0: i32) -> (i32, i32) {
    %c0_i32 = arith.constant 0 : i32
    %c0_i32_0 = arith.constant 0 : i32
    return %arg0, %c0_i32 : i32, i32
  }
  func.func @transform_1(%arg0: i32) -> (i32, i32) {
    %c0_i32 = arith.constant 0 : i32
    %c0_i32_0 = arith.constant 0 : i32
    return %arg0, %c0_i32 : i32, i32
  }
  func.func @transform_2(%arg0: i32) -> (i32, i32) {
    %c0_i32 = arith.constant 0 : i32
    %c0_i32_0 = arith.constant 0 : i32
    return %arg0, %c0_i32 : i32, i32
  }
  func.func @transform_3(%arg0: i32) -> (i32, i32) {
    %c0_i32 = arith.constant 0 : i32
    %c0_i32_0 = arith.constant 0 : i32
    %c0_i32_1 = arith.constant 0 : i32
    return %c0_i32, %c0_i32_0 : i32, i32
  }
  func.func @transform_4(%arg0: i32) -> (i32, i32) {
    %c0_i32 = arith.constant 0 : i32
    %c0_i32_0 = arith.constant 0 : i32
    %c0_i32_1 = arith.constant 0 : i32
    return %c0_i32, %c0_i32_0 : i32, i32
  }
  func.func @transform_5(%arg0: i32) -> (i32, i32) {
    %c0_i32 = arith.constant 0 : i32
    %c0_i32_0 = arith.constant 0 : i32
    %c0_i32_1 = arith.constant 0 : i32
    return %c0_i32, %c0_i32_0 : i32, i32
  }
  func.func @transform_6(%arg0: i32) -> (i32, i32) {
    %c0_i32 = arith.constant 0 : i32
    %c0_i32_0 = arith.constant 0 : i32
    %c0_i32_1 = arith.constant 0 : i32
    return %c0_i32, %c0_i32_0 : i32, i32
  }
  func.func @transform_7(%arg0: i32) -> (i32, i32) {
    %c0_i32 = arith.constant 0 : i32
    %c0_i32_0 = arith.constant 0 : i32
    %c0_i32_1 = arith.constant 0 : i32
    return %c0_i32, %c0_i32_0 : i32, i32
  }
  func.func @transform_8(%arg0: i32) -> (i32, i32) {
    %c0_i32 = arith.constant 0 : i32
    %c0_i32_0 = arith.constant 0 : i32
    return %arg0, %c0_i32 : i32, i32
  }
  func.func @transform_9(%arg0: i32) -> (i32, i32) {
    %c0_i32 = arith.constant 0 : i32
    %c0_i32_0 = arith.constant 0 : i32
    return %arg0, %c0_i32 : i32, i32
  }
}

module attributes {stable_mosaic.version = 11 : i64} {
  func.func @_vmrnn_cell_kernel(%arg0: i32, %arg1: memref<64x64xf32, #tpu.memory_space<vmem>>, %arg2: memref<64x64xf32, #tpu.memory_space<vmem>>, %arg3: memref<64x64xf32, #tpu.memory_space<vmem>>, %arg4: memref<2x64xf32, #tpu.memory_space<vmem>>, %arg5: memref<2x64xf32, #tpu.memory_space<vmem>>, %arg6: memref<64x64xbf16, #tpu.memory_space<vmem>>, %arg7: memref<64x64xbf16, #tpu.memory_space<vmem>>, %arg8: memref<1x64xf32, #tpu.memory_space<vmem>>, %arg9: memref<64x64xf32, #tpu.memory_space<vmem>>, %arg10: memref<64x64xf32, #tpu.memory_space<vmem>>) attributes {dimension_semantics = [#tpu.dimension_semantics<parallel>], iteration_bounds = array<i64: 2>, scalar_prefetch = 0 : i64, scratch_operands = 0 : i64, tpu.core_type = #tpu.core_type<tc>, window_params = [{transform_indices = @transform_0, window_bounds = array<i64: 64, 64>}, {transform_indices = @transform_1, window_bounds = array<i64: 64, 64>}, {transform_indices = @transform_2, window_bounds = array<i64: 64, 64>}, {pipeline_mode = #tpu.pipeline_mode<synchronous>, transform_indices = @transform_3, window_bounds = array<i64: 2, 64>}, {pipeline_mode = #tpu.pipeline_mode<synchronous>, transform_indices = @transform_4, window_bounds = array<i64: 2, 64>}, {pipeline_mode = #tpu.pipeline_mode<synchronous>, transform_indices = @transform_5, window_bounds = array<i64: 64, 64>}, {pipeline_mode = #tpu.pipeline_mode<synchronous>, transform_indices = @transform_6, window_bounds = array<i64: 64, 64>}, {pipeline_mode = #tpu.pipeline_mode<synchronous>, transform_indices = @transform_7, window_bounds = array<i64: 1, 64>}, {transform_indices = @transform_8, window_bounds = array<i64: 64, 64>}, {transform_indices = @transform_9, window_bounds = array<i64: 64, 64>}]} {
    %c0 = arith.constant 0 : index
    %c0_0 = arith.constant 0 : index
    %0 = vector.load %arg1[%c0, %c0_0] : memref<64x64xf32, #tpu.memory_space<vmem>>, vector<64x64xf32>
    %c0_1 = arith.constant 0 : index
    %c0_2 = arith.constant 0 : index
    %1 = vector.load %arg4[%c0_1, %c0_2] : memref<2x64xf32, #tpu.memory_space<vmem>>, vector<1x64xf32>
    %c0_3 = arith.constant 0 : index
    %c0_4 = arith.constant 0 : index
    %2 = vector.load %arg5[%c0_3, %c0_4] : memref<2x64xf32, #tpu.memory_space<vmem>>, vector<1x64xf32>
    %cst = arith.constant dense<0.000000e+00> : vector<64xf32>
    %3 = vector.multi_reduction <add>, %0, %cst [1] : vector<64x64xf32> to vector<64xf32>
    %4 = vector.shape_cast %3 : vector<64xf32> to vector<64x1xf32>
    %cst_5 = arith.constant 6.400000e+01 : f32
    %5 = vector.broadcast %cst_5 : f32 to vector<64x1xf32>
    %6 = arith.divf %4, %5 : vector<64x1xf32>
    %7 = vector.broadcast %6 : vector<64x1xf32> to vector<64x64xf32>
    %8 = arith.subf %0, %7 : vector<64x64xf32>
    %9 = arith.mulf %8, %8 : vector<64x64xf32>
    %cst_6 = arith.constant dense<0.000000e+00> : vector<64xf32>
    %10 = vector.multi_reduction <add>, %9, %cst_6 [1] : vector<64x64xf32> to vector<64xf32>
    %11 = vector.shape_cast %10 : vector<64xf32> to vector<64x1xf32>
    %cst_7 = arith.constant 6.400000e+01 : f32
    %12 = vector.broadcast %cst_7 : f32 to vector<64x1xf32>
    %13 = arith.divf %11, %12 : vector<64x1xf32>
    %14 = vector.broadcast %6 : vector<64x1xf32> to vector<64x64xf32>
    %15 = arith.subf %0, %14 : vector<64x64xf32>
    %cst_8 = arith.constant 9.99999974E-6 : f32
    %16 = vector.broadcast %cst_8 : f32 to vector<64x1xf32>
    %17 = arith.addf %13, %16 : vector<64x1xf32>
    %18 = math.rsqrt %17 : vector<64x1xf32>
    %19 = vector.broadcast %18 : vector<64x1xf32> to vector<64x64xf32>
    %20 = arith.mulf %15, %19 : vector<64x64xf32>
    %21 = vector.broadcast %1 : vector<1x64xf32> to vector<64x64xf32>
    %22 = arith.mulf %20, %21 : vector<64x64xf32>
    %23 = vector.broadcast %2 : vector<1x64xf32> to vector<64x64xf32>
    %24 = arith.addf %22, %23 : vector<64x64xf32>
    %c0_9 = arith.constant 0 : index
    %c0_10 = arith.constant 0 : index
    %25 = vector.load %arg2[%c0_9, %c0_10] : memref<64x64xf32, #tpu.memory_space<vmem>>, vector<64x64xf32>
    %cst_11 = arith.constant dense<0.000000e+00> : vector<64xf32>
    %26 = vector.multi_reduction <add>, %25, %cst_11 [1] : vector<64x64xf32> to vector<64xf32>
    %27 = vector.shape_cast %26 : vector<64xf32> to vector<64x1xf32>
    %cst_12 = arith.constant 6.400000e+01 : f32
    %28 = vector.broadcast %cst_12 : f32 to vector<64x1xf32>
    %29 = arith.divf %27, %28 : vector<64x1xf32>
    %30 = vector.broadcast %29 : vector<64x1xf32> to vector<64x64xf32>
    %31 = arith.subf %25, %30 : vector<64x64xf32>
    %32 = arith.mulf %31, %31 : vector<64x64xf32>
    %cst_13 = arith.constant dense<0.000000e+00> : vector<64xf32>
    %33 = vector.multi_reduction <add>, %32, %cst_13 [1] : vector<64x64xf32> to vector<64xf32>
    %34 = vector.shape_cast %33 : vector<64xf32> to vector<64x1xf32>
    %cst_14 = arith.constant 6.400000e+01 : f32
    %35 = vector.broadcast %cst_14 : f32 to vector<64x1xf32>
    %36 = arith.divf %34, %35 : vector<64x1xf32>
    %37 = vector.broadcast %29 : vector<64x1xf32> to vector<64x64xf32>
    %38 = arith.subf %25, %37 : vector<64x64xf32>
    %cst_15 = arith.constant 9.99999974E-6 : f32
    %39 = vector.broadcast %cst_15 : f32 to vector<64x1xf32>
    %40 = arith.addf %36, %39 : vector<64x1xf32>
    %41 = math.rsqrt %40 : vector<64x1xf32>
    %42 = vector.broadcast %41 : vector<64x1xf32> to vector<64x64xf32>
    %43 = arith.mulf %38, %42 : vector<64x64xf32>
    %44 = vector.broadcast %1 : vector<1x64xf32> to vector<64x64xf32>
    %45 = arith.mulf %43, %44 : vector<64x64xf32>
    %46 = vector.broadcast %2 : vector<1x64xf32> to vector<64x64xf32>
    %47 = arith.addf %45, %46 : vector<64x64xf32>
    %48 = arith.truncf %24 : vector<64x64xf32> to vector<64x64xbf16>
    %c0_16 = arith.constant 0 : index
    %c0_17 = arith.constant 0 : index
    %49 = vector.load %arg6[%c0_16, %c0_17] : memref<64x64xbf16, #tpu.memory_space<vmem>>, vector<64x64xbf16>
    %cst_18 = arith.constant dense<0.000000e+00> : vector<64x64xf32>
    %50 = tpu.matmul %48, %49, %cst_18 {dimension_numbers = #tpu.dot_dimension_numbers<[1], [0], [0], [1], [0, 0, 1, 1], [], []>} : vector<64x64xbf16>, vector<64x64xbf16>, vector<64x64xf32> -> vector<64x64xf32>
    %51 = arith.truncf %47 : vector<64x64xf32> to vector<64x64xbf16>
    %c0_19 = arith.constant 0 : index
    %c0_20 = arith.constant 0 : index
    %52 = vector.load %arg7[%c0_19, %c0_20] : memref<64x64xbf16, #tpu.memory_space<vmem>>, vector<64x64xbf16>
    %cst_21 = arith.constant dense<0.000000e+00> : vector<64x64xf32>
    %53 = tpu.matmul %51, %52, %cst_21 {dimension_numbers = #tpu.dot_dimension_numbers<[1], [0], [0], [1], [0, 0, 1, 1], [], []>} : vector<64x64xbf16>, vector<64x64xbf16>, vector<64x64xf32> -> vector<64x64xf32>
    %54 = arith.addf %50, %53 : vector<64x64xf32>
    %c0_22 = arith.constant 0 : index
    %c0_23 = arith.constant 0 : index
    %55 = vector.load %arg8[%c0_22, %c0_23] : memref<1x64xf32, #tpu.memory_space<vmem>>, vector<1x64xf32>
    %56 = vector.broadcast %55 : vector<1x64xf32> to vector<64x64xf32>
    %57 = arith.addf %54, %56 : vector<64x64xf32>
    %58 = arith.addf %0, %57 : vector<64x64xf32>
    %c1 = arith.constant 1 : index
    %c0_24 = arith.constant 0 : index
    %59 = vector.load %arg4[%c1, %c0_24] : memref<2x64xf32, #tpu.memory_space<vmem>>, vector<1x64xf32>
    %c1_25 = arith.constant 1 : index
    %c0_26 = arith.constant 0 : index
    %60 = vector.load %arg5[%c1_25, %c0_26] : memref<2x64xf32, #tpu.memory_space<vmem>>, vector<1x64xf32>
    %cst_27 = arith.constant dense<0.000000e+00> : vector<64xf32>
    %61 = vector.multi_reduction <add>, %58, %cst_27 [1] : vector<64x64xf32> to vector<64xf32>
    %62 = vector.shape_cast %61 : vector<64xf32> to vector<64x1xf32>
    %cst_28 = arith.constant 6.400000e+01 : f32
    %63 = vector.broadcast %cst_28 : f32 to vector<64x1xf32>
    %64 = arith.divf %62, %63 : vector<64x1xf32>
    %65 = vector.broadcast %64 : vector<64x1xf32> to vector<64x64xf32>
    %66 = arith.subf %58, %65 : vector<64x64xf32>
    %67 = arith.mulf %66, %66 : vector<64x64xf32>
    %cst_29 = arith.constant dense<0.000000e+00> : vector<64xf32>
    %68 = vector.multi_reduction <add>, %67, %cst_29 [1] : vector<64x64xf32> to vector<64xf32>
    %69 = vector.shape_cast %68 : vector<64xf32> to vector<64x1xf32>
    %cst_30 = arith.constant 6.400000e+01 : f32
    %70 = vector.broadcast %cst_30 : f32 to vector<64x1xf32>
    %71 = arith.divf %69, %70 : vector<64x1xf32>
    %72 = vector.broadcast %64 : vector<64x1xf32> to vector<64x64xf32>
    %73 = arith.subf %58, %72 : vector<64x64xf32>
    %cst_31 = arith.constant 9.99999974E-6 : f32
    %74 = vector.broadcast %cst_31 : f32 to vector<64x1xf32>
    %75 = arith.addf %71, %74 : vector<64x1xf32>
    %76 = math.rsqrt %75 : vector<64x1xf32>
    %77 = vector.broadcast %76 : vector<64x1xf32> to vector<64x64xf32>
    %78 = arith.mulf %73, %77 : vector<64x64xf32>
    %79 = vector.broadcast %59 : vector<1x64xf32> to vector<64x64xf32>
    %80 = arith.mulf %78, %79 : vector<64x64xf32>
    %81 = vector.broadcast %60 : vector<1x64xf32> to vector<64x64xf32>
    %82 = arith.addf %80, %81 : vector<64x64xf32>
    %83 = arith.addf %58, %82 : vector<64x64xf32>
    %84 = arith.negf %83 : vector<64x64xf32>
    %85 = math.exp %84 : vector<64x64xf32>
    %cst_32 = arith.constant 1.000000e+00 : f32
    %86 = vector.broadcast %cst_32 : f32 to vector<64x64xf32>
    %87 = arith.addf %86, %85 : vector<64x64xf32>
    %88 = arith.divf %86, %87 : vector<64x64xf32>
    %89 = math.tanh %83 : vector<64x64xf32>
    %c0_33 = arith.constant 0 : index
    %c0_34 = arith.constant 0 : index
    %90 = vector.load %arg3[%c0_33, %c0_34] : memref<64x64xf32, #tpu.memory_space<vmem>>, vector<64x64xf32>
    %91 = arith.addf %90, %89 : vector<64x64xf32>
    %92 = arith.mulf %88, %91 : vector<64x64xf32>
    %93 = math.tanh %92 : vector<64x64xf32>
    %94 = arith.mulf %88, %93 : vector<64x64xf32>
    %c0_35 = arith.constant 0 : index
    %c0_36 = arith.constant 0 : index
    %95 = vector.load %arg9[%c0_35, %c0_36] : memref<64x64xf32, #tpu.memory_space<vmem>>, vector<64x64xf32>
    tpu.vector_store %arg9[%c0_35, %c0_36], %94 {strides = array<i32>} : memref<64x64xf32, #tpu.memory_space<vmem>>, vector<64x64xf32>,
    %c0_37 = arith.constant 0 : index
    %c0_38 = arith.constant 0 : index
    %96 = vector.load %arg10[%c0_37, %c0_38] : memref<64x64xf32, #tpu.memory_space<vmem>>, vector<64x64xf32>
    tpu.vector_store %arg10[%c0_37, %c0_38], %92 {strides = array<i32>} : memref<64x64xf32, #tpu.memory_space<vmem>>, vector<64x64xf32>,
    return
  }
  func.func @transform_0(%arg0: i32) -> (i32, i32) {
    %c0_i32 = arith.constant 0 : i32
    %c0_i32_0 = arith.constant 0 : i32
    return %arg0, %c0_i32 : i32, i32
  }
  func.func @transform_1(%arg0: i32) -> (i32, i32) {
    %c0_i32 = arith.constant 0 : i32
    %c0_i32_0 = arith.constant 0 : i32
    return %arg0, %c0_i32 : i32, i32
  }
  func.func @transform_2(%arg0: i32) -> (i32, i32) {
    %c0_i32 = arith.constant 0 : i32
    %c0_i32_0 = arith.constant 0 : i32
    return %arg0, %c0_i32 : i32, i32
  }
  func.func @transform_3(%arg0: i32) -> (i32, i32) {
    %c0_i32 = arith.constant 0 : i32
    %c0_i32_0 = arith.constant 0 : i32
    %c0_i32_1 = arith.constant 0 : i32
    return %c0_i32, %c0_i32_0 : i32, i32
  }
  func.func @transform_4(%arg0: i32) -> (i32, i32) {
    %c0_i32 = arith.constant 0 : i32
    %c0_i32_0 = arith.constant 0 : i32
    %c0_i32_1 = arith.constant 0 : i32
    return %c0_i32, %c0_i32_0 : i32, i32
  }
  func.func @transform_5(%arg0: i32) -> (i32, i32) {
    %c0_i32 = arith.constant 0 : i32
    %c0_i32_0 = arith.constant 0 : i32
    %c0_i32_1 = arith.constant 0 : i32
    return %c0_i32, %c0_i32_0 : i32, i32
  }
  func.func @transform_6(%arg0: i32) -> (i32, i32) {
    %c0_i32 = arith.constant 0 : i32
    %c0_i32_0 = arith.constant 0 : i32
    %c0_i32_1 = arith.constant 0 : i32
    return %c0_i32, %c0_i32_0 : i32, i32
  }
  func.func @transform_7(%arg0: i32) -> (i32, i32) {
    %c0_i32 = arith.constant 0 : i32
    %c0_i32_0 = arith.constant 0 : i32
    %c0_i32_1 = arith.constant 0 : i32
    return %c0_i32, %c0_i32_0 : i32, i32
  }
  func.func @transform_8(%arg0: i32) -> (i32, i32) {
    %c0_i32 = arith.constant 0 : i32
    %c0_i32_0 = arith.constant 0 : i32
    return %arg0, %c0_i32 : i32, i32
  }
  func.func @transform_9(%arg0: i32) -> (i32, i32) {
    %c0_i32 = arith.constant 0 : i32
    %c0_i32_0 = arith.constant 0 : i32
    return %arg0, %c0_i32 : i32, i32
  }
}

module attributes {stable_mosaic.version = 11 : i64} {
  func.func @_patch_merge_kernel(%arg0: i32, %arg1: memref<8x2x8x64xf32, #tpu.memory_space<vmem>>, %arg2: memref<1x128xf32, #tpu.memory_space<vmem>>, %arg3: memref<1x128xf32, #tpu.memory_space<vmem>>, %arg4: memref<128x64xbf16, #tpu.memory_space<vmem>>, %arg5: memref<64x64xf32, #tpu.memory_space<vmem>>) attributes {dimension_semantics = [#tpu.dimension_semantics<parallel>], iteration_bounds = array<i64: 2>, scalar_prefetch = 0 : i64, scratch_operands = 0 : i64, tpu.core_type = #tpu.core_type<tc>, window_params = [{transform_indices = @transform_0, window_bounds = array<i64: 8, 2, 8, 64>}, {pipeline_mode = #tpu.pipeline_mode<synchronous>, transform_indices = @transform_1, window_bounds = array<i64: 1, 128>}, {pipeline_mode = #tpu.pipeline_mode<synchronous>, transform_indices = @transform_2, window_bounds = array<i64: 1, 128>}, {pipeline_mode = #tpu.pipeline_mode<synchronous>, transform_indices = @transform_3, window_bounds = array<i64: 128, 64>}, {transform_indices = @transform_4, window_bounds = array<i64: 64, 64>}]} {
    %c0 = arith.constant 0 : index
    %c0_0 = arith.constant 0 : index
    %0 = vector.load %arg2[%c0, %c0_0] : memref<1x128xf32, #tpu.memory_space<vmem>>, vector<1x128xf32>
    %c0_1 = arith.constant 0 : index
    %c0_2 = arith.constant 0 : index
    %1 = vector.load %arg3[%c0_1, %c0_2] : memref<1x128xf32, #tpu.memory_space<vmem>>, vector<1x128xf32>
    %c0_3 = arith.constant 0 : index
    %c0_4 = arith.constant 0 : index
    %2 = vector.load %arg4[%c0_3, %c0_4] : memref<128x64xbf16, #tpu.memory_space<vmem>>, vector<128x64xbf16>
    %c0_5 = arith.constant 0 : index
    %c0_6 = arith.constant 0 : index
    %c0_7 = arith.constant 0 : index
    %c0_8 = arith.constant 0 : index
    %3 = vector.load %arg1[%c0_5, %c0_6, %c0_7, %c0_8] : memref<8x2x8x64xf32, #tpu.memory_space<vmem>>, vector<8x2x8x64xf32>
    %4 = vector.extract_strided_slice %3 {offsets = [0, 0, 0, 0], sizes = [8, 1, 8, 32], strides = [1, 1, 1, 1]} : vector<8x2x8x64xf32> to vector<8x1x8x32xf32>
    %5 = vector.shape_cast %4 : vector<8x1x8x32xf32> to vector<8x8x32xf32>
    %6 = vector.shape_cast %5 : vector<8x8x32xf32> to vector<64x32xf32>
    %7 = vector.extract_strided_slice %3 {offsets = [0, 1, 0, 0], sizes = [8, 1, 8, 32], strides = [1, 1, 1, 1]} : vector<8x2x8x64xf32> to vector<8x1x8x32xf32>
    %8 = vector.shape_cast %7 : vector<8x1x8x32xf32> to vector<8x8x32xf32>
    %9 = vector.shape_cast %8 : vector<8x8x32xf32> to vector<64x32xf32>
    %10 = vector.extract_strided_slice %3 {offsets = [0, 0, 0, 32], sizes = [8, 1, 8, 32], strides = [1, 1, 1, 1]} : vector<8x2x8x64xf32> to vector<8x1x8x32xf32>
    %11 = vector.shape_cast %10 : vector<8x1x8x32xf32> to vector<8x8x32xf32>
    %12 = vector.shape_cast %11 : vector<8x8x32xf32> to vector<64x32xf32>
    %13 = vector.extract_strided_slice %3 {offsets = [0, 1, 0, 32], sizes = [8, 1, 8, 32], strides = [1, 1, 1, 1]} : vector<8x2x8x64xf32> to vector<8x1x8x32xf32>
    %14 = vector.shape_cast %13 : vector<8x1x8x32xf32> to vector<8x8x32xf32>
    %15 = vector.shape_cast %14 : vector<8x8x32xf32> to vector<64x32xf32>
    %16 = tpu.concatenate %6, %9, %12, %15 in 1 : vector<64x32xf32>, vector<64x32xf32>, vector<64x32xf32>, vector<64x32xf32> -> vector<64x128xf32>
    %cst = arith.constant dense<0.000000e+00> : vector<64xf32>
    %17 = vector.multi_reduction <add>, %16, %cst [1] : vector<64x128xf32> to vector<64xf32>
    %18 = vector.shape_cast %17 : vector<64xf32> to vector<64x1xf32>
    %cst_9 = arith.constant 1.280000e+02 : f32
    %19 = vector.broadcast %cst_9 : f32 to vector<64x1xf32>
    %20 = arith.divf %18, %19 : vector<64x1xf32>
    %21 = vector.broadcast %20 : vector<64x1xf32> to vector<64x128xf32>
    %22 = arith.subf %16, %21 : vector<64x128xf32>
    %23 = arith.mulf %22, %22 : vector<64x128xf32>
    %cst_10 = arith.constant dense<0.000000e+00> : vector<64xf32>
    %24 = vector.multi_reduction <add>, %23, %cst_10 [1] : vector<64x128xf32> to vector<64xf32>
    %25 = vector.shape_cast %24 : vector<64xf32> to vector<64x1xf32>
    %cst_11 = arith.constant 1.280000e+02 : f32
    %26 = vector.broadcast %cst_11 : f32 to vector<64x1xf32>
    %27 = arith.divf %25, %26 : vector<64x1xf32>
    %28 = vector.broadcast %20 : vector<64x1xf32> to vector<64x128xf32>
    %29 = arith.subf %16, %28 : vector<64x128xf32>
    %cst_12 = arith.constant 9.99999974E-6 : f32
    %30 = vector.broadcast %cst_12 : f32 to vector<64x1xf32>
    %31 = arith.addf %27, %30 : vector<64x1xf32>
    %32 = math.rsqrt %31 : vector<64x1xf32>
    %33 = vector.broadcast %32 : vector<64x1xf32> to vector<64x128xf32>
    %34 = arith.mulf %29, %33 : vector<64x128xf32>
    %35 = vector.broadcast %0 : vector<1x128xf32> to vector<64x128xf32>
    %36 = arith.mulf %34, %35 : vector<64x128xf32>
    %37 = vector.broadcast %1 : vector<1x128xf32> to vector<64x128xf32>
    %38 = arith.addf %36, %37 : vector<64x128xf32>
    %39 = arith.truncf %38 : vector<64x128xf32> to vector<64x128xbf16>
    %cst_13 = arith.constant dense<0.000000e+00> : vector<64x64xf32>
    %40 = tpu.matmul %39, %2, %cst_13 {dimension_numbers = #tpu.dot_dimension_numbers<[1], [0], [0], [1], [0, 0, 1, 1], [], []>} : vector<64x128xbf16>, vector<128x64xbf16>, vector<64x64xf32> -> vector<64x64xf32>
    %c0_14 = arith.constant 0 : index
    %c0_15 = arith.constant 0 : index
    %41 = vector.load %arg5[%c0_14, %c0_15] : memref<64x64xf32, #tpu.memory_space<vmem>>, vector<64x64xf32>
    tpu.vector_store %arg5[%c0_14, %c0_15], %40 {strides = array<i32>} : memref<64x64xf32, #tpu.memory_space<vmem>>, vector<64x64xf32>,
    return
  }
  func.func @transform_0(%arg0: i32) -> (i32, i32, i32, i32) {
    %c0_i32 = arith.constant 0 : i32
    %c0_i32_0 = arith.constant 0 : i32
    %c0_i32_1 = arith.constant 0 : i32
    %c0_i32_2 = arith.constant 0 : i32
    return %arg0, %c0_i32, %c0_i32_0, %c0_i32_1 : i32, i32, i32, i32
  }
  func.func @transform_1(%arg0: i32) -> (i32, i32) {
    %c0_i32 = arith.constant 0 : i32
    %c0_i32_0 = arith.constant 0 : i32
    %c0_i32_1 = arith.constant 0 : i32
    return %c0_i32, %c0_i32_0 : i32, i32
  }
  func.func @transform_2(%arg0: i32) -> (i32, i32) {
    %c0_i32 = arith.constant 0 : i32
    %c0_i32_0 = arith.constant 0 : i32
    %c0_i32_1 = arith.constant 0 : i32
    return %c0_i32, %c0_i32_0 : i32, i32
  }
  func.func @transform_3(%arg0: i32) -> (i32, i32) {
    %c0_i32 = arith.constant 0 : i32
    %c0_i32_0 = arith.constant 0 : i32
    %c0_i32_1 = arith.constant 0 : i32
    return %c0_i32, %c0_i32_0 : i32, i32
  }
  func.func @transform_4(%arg0: i32) -> (i32, i32) {
    %c0_i32 = arith.constant 0 : i32
    %c0_i32_0 = arith.constant 0 : i32
    return %arg0, %c0_i32 : i32, i32
  }
}

module attributes {stable_mosaic.version = 11 : i64} {
  func.func @_patch_merge_kernel(%arg0: i32, %arg1: memref<4x2x4x128xf32, #tpu.memory_space<vmem>>, %arg2: memref<1x256xf32, #tpu.memory_space<vmem>>, %arg3: memref<1x256xf32, #tpu.memory_space<vmem>>, %arg4: memref<256x128xbf16, #tpu.memory_space<vmem>>, %arg5: memref<4x4x128xf32, #tpu.memory_space<vmem>>) attributes {dimension_semantics = [#tpu.dimension_semantics<parallel>], iteration_bounds = array<i64: 2>, scalar_prefetch = 0 : i64, scratch_operands = 0 : i64, tpu.core_type = #tpu.core_type<tc>, window_params = [{transform_indices = @transform_0, window_bounds = array<i64: 4, 2, 4, 128>}, {pipeline_mode = #tpu.pipeline_mode<synchronous>, transform_indices = @transform_1, window_bounds = array<i64: 1, 256>}, {pipeline_mode = #tpu.pipeline_mode<synchronous>, transform_indices = @transform_2, window_bounds = array<i64: 1, 256>}, {pipeline_mode = #tpu.pipeline_mode<synchronous>, transform_indices = @transform_3, window_bounds = array<i64: 256, 128>}, {transform_indices = @transform_4, window_bounds = array<i64: 4, 4, 128>}]} {
    %c0 = arith.constant 0 : index
    %c0_0 = arith.constant 0 : index
    %0 = vector.load %arg2[%c0, %c0_0] : memref<1x256xf32, #tpu.memory_space<vmem>>, vector<1x256xf32>
    %c0_1 = arith.constant 0 : index
    %c0_2 = arith.constant 0 : index
    %1 = vector.load %arg3[%c0_1, %c0_2] : memref<1x256xf32, #tpu.memory_space<vmem>>, vector<1x256xf32>
    %c0_3 = arith.constant 0 : index
    %c0_4 = arith.constant 0 : index
    %2 = vector.load %arg4[%c0_3, %c0_4] : memref<256x128xbf16, #tpu.memory_space<vmem>>, vector<256x128xbf16>
    %c0_5 = arith.constant 0 : index
    %c0_6 = arith.constant 0 : index
    %c0_7 = arith.constant 0 : index
    %c0_8 = arith.constant 0 : index
    %3 = vector.load %arg1[%c0_5, %c0_6, %c0_7, %c0_8] : memref<4x2x4x128xf32, #tpu.memory_space<vmem>>, vector<4x2x4x128xf32>
    %4 = vector.extract_strided_slice %3 {offsets = [0, 0, 0, 0], sizes = [1, 1, 4, 64], strides = [1, 1, 1, 1]} : vector<4x2x4x128xf32> to vector<1x1x4x64xf32>
    %5 = vector.shape_cast %4 : vector<1x1x4x64xf32> to vector<4x64xf32>
    %6 = vector.extract_strided_slice %3 {offsets = [0, 1, 0, 0], sizes = [1, 1, 4, 64], strides = [1, 1, 1, 1]} : vector<4x2x4x128xf32> to vector<1x1x4x64xf32>
    %7 = vector.shape_cast %6 : vector<1x1x4x64xf32> to vector<4x64xf32>
    %8 = vector.extract_strided_slice %3 {offsets = [0, 0, 0, 64], sizes = [1, 1, 4, 64], strides = [1, 1, 1, 1]} : vector<4x2x4x128xf32> to vector<1x1x4x64xf32>
    %9 = vector.shape_cast %8 : vector<1x1x4x64xf32> to vector<4x64xf32>
    %10 = vector.extract_strided_slice %3 {offsets = [0, 1, 0, 64], sizes = [1, 1, 4, 64], strides = [1, 1, 1, 1]} : vector<4x2x4x128xf32> to vector<1x1x4x64xf32>
    %11 = vector.shape_cast %10 : vector<1x1x4x64xf32> to vector<4x64xf32>
    %12 = tpu.concatenate %5, %7, %9, %11 in 1 : vector<4x64xf32>, vector<4x64xf32>, vector<4x64xf32>, vector<4x64xf32> -> vector<4x256xf32>
    %cst = arith.constant dense<0.000000e+00> : vector<4xf32>
    %13 = vector.multi_reduction <add>, %12, %cst [1] : vector<4x256xf32> to vector<4xf32>
    %14 = vector.shape_cast %13 : vector<4xf32> to vector<4x1xf32>
    %cst_9 = arith.constant 2.560000e+02 : f32
    %15 = vector.broadcast %cst_9 : f32 to vector<4x1xf32>
    %16 = arith.divf %14, %15 : vector<4x1xf32>
    %17 = vector.broadcast %16 : vector<4x1xf32> to vector<4x256xf32>
    %18 = arith.subf %12, %17 : vector<4x256xf32>
    %19 = arith.mulf %18, %18 : vector<4x256xf32>
    %cst_10 = arith.constant dense<0.000000e+00> : vector<4xf32>
    %20 = vector.multi_reduction <add>, %19, %cst_10 [1] : vector<4x256xf32> to vector<4xf32>
    %21 = vector.shape_cast %20 : vector<4xf32> to vector<4x1xf32>
    %cst_11 = arith.constant 2.560000e+02 : f32
    %22 = vector.broadcast %cst_11 : f32 to vector<4x1xf32>
    %23 = arith.divf %21, %22 : vector<4x1xf32>
    %24 = vector.broadcast %16 : vector<4x1xf32> to vector<4x256xf32>
    %25 = arith.subf %12, %24 : vector<4x256xf32>
    %cst_12 = arith.constant 9.99999974E-6 : f32
    %26 = vector.broadcast %cst_12 : f32 to vector<4x1xf32>
    %27 = arith.addf %23, %26 : vector<4x1xf32>
    %28 = math.rsqrt %27 : vector<4x1xf32>
    %29 = vector.broadcast %28 : vector<4x1xf32> to vector<4x256xf32>
    %30 = arith.mulf %25, %29 : vector<4x256xf32>
    %31 = vector.broadcast %0 : vector<1x256xf32> to vector<4x256xf32>
    %32 = arith.mulf %30, %31 : vector<4x256xf32>
    %33 = vector.broadcast %1 : vector<1x256xf32> to vector<4x256xf32>
    %34 = arith.addf %32, %33 : vector<4x256xf32>
    %35 = arith.truncf %34 : vector<4x256xf32> to vector<4x256xbf16>
    %cst_13 = arith.constant dense<0.000000e+00> : vector<4x128xf32>
    %36 = tpu.matmul %35, %2, %cst_13 {dimension_numbers = #tpu.dot_dimension_numbers<[1], [0], [0], [1], [0, 0, 1, 1], [], []>} : vector<4x256xbf16>, vector<256x128xbf16>, vector<4x128xf32> -> vector<4x128xf32>
    %c0_14 = arith.constant 0 : index
    %c0_15 = arith.constant 0 : index
    %c0_16 = arith.constant 0 : index
    %37 = vector.load %arg5[%c0_14, %c0_15, %c0_16] : memref<4x4x128xf32, #tpu.memory_space<vmem>>, vector<1x4x128xf32>
    %38 = vector.shape_cast %37 : vector<1x4x128xf32> to vector<4x128xf32>
    %39 = vector.shape_cast %36 : vector<4x128xf32> to vector<1x4x128xf32>
    tpu.vector_store %arg5[%c0_14, %c0_15, %c0_16], %39 {strides = array<i32>} : memref<4x4x128xf32, #tpu.memory_space<vmem>>, vector<1x4x128xf32>,
    %40 = vector.extract_strided_slice %3 {offsets = [1, 0, 0, 0], sizes = [1, 1, 4, 64], strides = [1, 1, 1, 1]} : vector<4x2x4x128xf32> to vector<1x1x4x64xf32>
    %41 = vector.shape_cast %40 : vector<1x1x4x64xf32> to vector<4x64xf32>
    %42 = vector.extract_strided_slice %3 {offsets = [1, 1, 0, 0], sizes = [1, 1, 4, 64], strides = [1, 1, 1, 1]} : vector<4x2x4x128xf32> to vector<1x1x4x64xf32>
    %43 = vector.shape_cast %42 : vector<1x1x4x64xf32> to vector<4x64xf32>
    %44 = vector.extract_strided_slice %3 {offsets = [1, 0, 0, 64], sizes = [1, 1, 4, 64], strides = [1, 1, 1, 1]} : vector<4x2x4x128xf32> to vector<1x1x4x64xf32>
    %45 = vector.shape_cast %44 : vector<1x1x4x64xf32> to vector<4x64xf32>
    %46 = vector.extract_strided_slice %3 {offsets = [1, 1, 0, 64], sizes = [1, 1, 4, 64], strides = [1, 1, 1, 1]} : vector<4x2x4x128xf32> to vector<1x1x4x64xf32>
    %47 = vector.shape_cast %46 : vector<1x1x4x64xf32> to vector<4x64xf32>
    %48 = tpu.concatenate %41, %43, %45, %47 in 1 : vector<4x64xf32>, vector<4x64xf32>, vector<4x64xf32>, vector<4x64xf32> -> vector<4x256xf32>
    %cst_17 = arith.constant dense<0.000000e+00> : vector<4xf32>
    %49 = vector.multi_reduction <add>, %48, %cst_17 [1] : vector<4x256xf32> to vector<4xf32>
    %50 = vector.shape_cast %49 : vector<4xf32> to vector<4x1xf32>
    %cst_18 = arith.constant 2.560000e+02 : f32
    %51 = vector.broadcast %cst_18 : f32 to vector<4x1xf32>
    %52 = arith.divf %50, %51 : vector<4x1xf32>
    %53 = vector.broadcast %52 : vector<4x1xf32> to vector<4x256xf32>
    %54 = arith.subf %48, %53 : vector<4x256xf32>
    %55 = arith.mulf %54, %54 : vector<4x256xf32>
    %cst_19 = arith.constant dense<0.000000e+00> : vector<4xf32>
    %56 = vector.multi_reduction <add>, %55, %cst_19 [1] : vector<4x256xf32> to vector<4xf32>
    %57 = vector.shape_cast %56 : vector<4xf32> to vector<4x1xf32>
    %cst_20 = arith.constant 2.560000e+02 : f32
    %58 = vector.broadcast %cst_20 : f32 to vector<4x1xf32>
    %59 = arith.divf %57, %58 : vector<4x1xf32>
    %60 = vector.broadcast %52 : vector<4x1xf32> to vector<4x256xf32>
    %61 = arith.subf %48, %60 : vector<4x256xf32>
    %cst_21 = arith.constant 9.99999974E-6 : f32
    %62 = vector.broadcast %cst_21 : f32 to vector<4x1xf32>
    %63 = arith.addf %59, %62 : vector<4x1xf32>
    %64 = math.rsqrt %63 : vector<4x1xf32>
    %65 = vector.broadcast %64 : vector<4x1xf32> to vector<4x256xf32>
    %66 = arith.mulf %61, %65 : vector<4x256xf32>
    %67 = vector.broadcast %0 : vector<1x256xf32> to vector<4x256xf32>
    %68 = arith.mulf %66, %67 : vector<4x256xf32>
    %69 = vector.broadcast %1 : vector<1x256xf32> to vector<4x256xf32>
    %70 = arith.addf %68, %69 : vector<4x256xf32>
    %71 = arith.truncf %70 : vector<4x256xf32> to vector<4x256xbf16>
    %cst_22 = arith.constant dense<0.000000e+00> : vector<4x128xf32>
    %72 = tpu.matmul %71, %2, %cst_22 {dimension_numbers = #tpu.dot_dimension_numbers<[1], [0], [0], [1], [0, 0, 1, 1], [], []>} : vector<4x256xbf16>, vector<256x128xbf16>, vector<4x128xf32> -> vector<4x128xf32>
    %c1 = arith.constant 1 : index
    %c0_23 = arith.constant 0 : index
    %c0_24 = arith.constant 0 : index
    %73 = vector.load %arg5[%c1, %c0_23, %c0_24] : memref<4x4x128xf32, #tpu.memory_space<vmem>>, vector<1x4x128xf32>
    %74 = vector.shape_cast %73 : vector<1x4x128xf32> to vector<4x128xf32>
    %75 = vector.shape_cast %72 : vector<4x128xf32> to vector<1x4x128xf32>
    tpu.vector_store %arg5[%c1, %c0_23, %c0_24], %75 {strides = array<i32>} : memref<4x4x128xf32, #tpu.memory_space<vmem>>, vector<1x4x128xf32>,
    %76 = vector.extract_strided_slice %3 {offsets = [2, 0, 0, 0], sizes = [1, 1, 4, 64], strides = [1, 1, 1, 1]} : vector<4x2x4x128xf32> to vector<1x1x4x64xf32>
    %77 = vector.shape_cast %76 : vector<1x1x4x64xf32> to vector<4x64xf32>
    %78 = vector.extract_strided_slice %3 {offsets = [2, 1, 0, 0], sizes = [1, 1, 4, 64], strides = [1, 1, 1, 1]} : vector<4x2x4x128xf32> to vector<1x1x4x64xf32>
    %79 = vector.shape_cast %78 : vector<1x1x4x64xf32> to vector<4x64xf32>
    %80 = vector.extract_strided_slice %3 {offsets = [2, 0, 0, 64], sizes = [1, 1, 4, 64], strides = [1, 1, 1, 1]} : vector<4x2x4x128xf32> to vector<1x1x4x64xf32>
    %81 = vector.shape_cast %80 : vector<1x1x4x64xf32> to vector<4x64xf32>
    %82 = vector.extract_strided_slice %3 {offsets = [2, 1, 0, 64], sizes = [1, 1, 4, 64], strides = [1, 1, 1, 1]} : vector<4x2x4x128xf32> to vector<1x1x4x64xf32>
    %83 = vector.shape_cast %82 : vector<1x1x4x64xf32> to vector<4x64xf32>
    %84 = tpu.concatenate %77, %79, %81, %83 in 1 : vector<4x64xf32>, vector<4x64xf32>, vector<4x64xf32>, vector<4x64xf32> -> vector<4x256xf32>
    %cst_25 = arith.constant dense<0.000000e+00> : vector<4xf32>
    %85 = vector.multi_reduction <add>, %84, %cst_25 [1] : vector<4x256xf32> to vector<4xf32>
    %86 = vector.shape_cast %85 : vector<4xf32> to vector<4x1xf32>
    %cst_26 = arith.constant 2.560000e+02 : f32
    %87 = vector.broadcast %cst_26 : f32 to vector<4x1xf32>
    %88 = arith.divf %86, %87 : vector<4x1xf32>
    %89 = vector.broadcast %88 : vector<4x1xf32> to vector<4x256xf32>
    %90 = arith.subf %84, %89 : vector<4x256xf32>
    %91 = arith.mulf %90, %90 : vector<4x256xf32>
    %cst_27 = arith.constant dense<0.000000e+00> : vector<4xf32>
    %92 = vector.multi_reduction <add>, %91, %cst_27 [1] : vector<4x256xf32> to vector<4xf32>
    %93 = vector.shape_cast %92 : vector<4xf32> to vector<4x1xf32>
    %cst_28 = arith.constant 2.560000e+02 : f32
    %94 = vector.broadcast %cst_28 : f32 to vector<4x1xf32>
    %95 = arith.divf %93, %94 : vector<4x1xf32>
    %96 = vector.broadcast %88 : vector<4x1xf32> to vector<4x256xf32>
    %97 = arith.subf %84, %96 : vector<4x256xf32>
    %cst_29 = arith.constant 9.99999974E-6 : f32
    %98 = vector.broadcast %cst_29 : f32 to vector<4x1xf32>
    %99 = arith.addf %95, %98 : vector<4x1xf32>
    %100 = math.rsqrt %99 : vector<4x1xf32>
    %101 = vector.broadcast %100 : vector<4x1xf32> to vector<4x256xf32>
    %102 = arith.mulf %97, %101 : vector<4x256xf32>
    %103 = vector.broadcast %0 : vector<1x256xf32> to vector<4x256xf32>
    %104 = arith.mulf %102, %103 : vector<4x256xf32>
    %105 = vector.broadcast %1 : vector<1x256xf32> to vector<4x256xf32>
    %106 = arith.addf %104, %105 : vector<4x256xf32>
    %107 = arith.truncf %106 : vector<4x256xf32> to vector<4x256xbf16>
    %cst_30 = arith.constant dense<0.000000e+00> : vector<4x128xf32>
    %108 = tpu.matmul %107, %2, %cst_30 {dimension_numbers = #tpu.dot_dimension_numbers<[1], [0], [0], [1], [0, 0, 1, 1], [], []>} : vector<4x256xbf16>, vector<256x128xbf16>, vector<4x128xf32> -> vector<4x128xf32>
    %c2 = arith.constant 2 : index
    %c0_31 = arith.constant 0 : index
    %c0_32 = arith.constant 0 : index
    %109 = vector.load %arg5[%c2, %c0_31, %c0_32] : memref<4x4x128xf32, #tpu.memory_space<vmem>>, vector<1x4x128xf32>
    %110 = vector.shape_cast %109 : vector<1x4x128xf32> to vector<4x128xf32>
    %111 = vector.shape_cast %108 : vector<4x128xf32> to vector<1x4x128xf32>
    tpu.vector_store %arg5[%c2, %c0_31, %c0_32], %111 {strides = array<i32>} : memref<4x4x128xf32, #tpu.memory_space<vmem>>, vector<1x4x128xf32>,
    %112 = vector.extract_strided_slice %3 {offsets = [3, 0, 0, 0], sizes = [1, 1, 4, 64], strides = [1, 1, 1, 1]} : vector<4x2x4x128xf32> to vector<1x1x4x64xf32>
    %113 = vector.shape_cast %112 : vector<1x1x4x64xf32> to vector<4x64xf32>
    %114 = vector.extract_strided_slice %3 {offsets = [3, 1, 0, 0], sizes = [1, 1, 4, 64], strides = [1, 1, 1, 1]} : vector<4x2x4x128xf32> to vector<1x1x4x64xf32>
    %115 = vector.shape_cast %114 : vector<1x1x4x64xf32> to vector<4x64xf32>
    %116 = vector.extract_strided_slice %3 {offsets = [3, 0, 0, 64], sizes = [1, 1, 4, 64], strides = [1, 1, 1, 1]} : vector<4x2x4x128xf32> to vector<1x1x4x64xf32>
    %117 = vector.shape_cast %116 : vector<1x1x4x64xf32> to vector<4x64xf32>
    %118 = vector.extract_strided_slice %3 {offsets = [3, 1, 0, 64], sizes = [1, 1, 4, 64], strides = [1, 1, 1, 1]} : vector<4x2x4x128xf32> to vector<1x1x4x64xf32>
    %119 = vector.shape_cast %118 : vector<1x1x4x64xf32> to vector<4x64xf32>
    %120 = tpu.concatenate %113, %115, %117, %119 in 1 : vector<4x64xf32>, vector<4x64xf32>, vector<4x64xf32>, vector<4x64xf32> -> vector<4x256xf32>
    %cst_33 = arith.constant dense<0.000000e+00> : vector<4xf32>
    %121 = vector.multi_reduction <add>, %120, %cst_33 [1] : vector<4x256xf32> to vector<4xf32>
    %122 = vector.shape_cast %121 : vector<4xf32> to vector<4x1xf32>
    %cst_34 = arith.constant 2.560000e+02 : f32
    %123 = vector.broadcast %cst_34 : f32 to vector<4x1xf32>
    %124 = arith.divf %122, %123 : vector<4x1xf32>
    %125 = vector.broadcast %124 : vector<4x1xf32> to vector<4x256xf32>
    %126 = arith.subf %120, %125 : vector<4x256xf32>
    %127 = arith.mulf %126, %126 : vector<4x256xf32>
    %cst_35 = arith.constant dense<0.000000e+00> : vector<4xf32>
    %128 = vector.multi_reduction <add>, %127, %cst_35 [1] : vector<4x256xf32> to vector<4xf32>
    %129 = vector.shape_cast %128 : vector<4xf32> to vector<4x1xf32>
    %cst_36 = arith.constant 2.560000e+02 : f32
    %130 = vector.broadcast %cst_36 : f32 to vector<4x1xf32>
    %131 = arith.divf %129, %130 : vector<4x1xf32>
    %132 = vector.broadcast %124 : vector<4x1xf32> to vector<4x256xf32>
    %133 = arith.subf %120, %132 : vector<4x256xf32>
    %cst_37 = arith.constant 9.99999974E-6 : f32
    %134 = vector.broadcast %cst_37 : f32 to vector<4x1xf32>
    %135 = arith.addf %131, %134 : vector<4x1xf32>
    %136 = math.rsqrt %135 : vector<4x1xf32>
    %137 = vector.broadcast %136 : vector<4x1xf32> to vector<4x256xf32>
    %138 = arith.mulf %133, %137 : vector<4x256xf32>
    %139 = vector.broadcast %0 : vector<1x256xf32> to vector<4x256xf32>
    %140 = arith.mulf %138, %139 : vector<4x256xf32>
    %141 = vector.broadcast %1 : vector<1x256xf32> to vector<4x256xf32>
    %142 = arith.addf %140, %141 : vector<4x256xf32>
    %143 = arith.truncf %142 : vector<4x256xf32> to vector<4x256xbf16>
    %cst_38 = arith.constant dense<0.000000e+00> : vector<4x128xf32>
    %144 = tpu.matmul %143, %2, %cst_38 {dimension_numbers = #tpu.dot_dimension_numbers<[1], [0], [0], [1], [0, 0, 1, 1], [], []>} : vector<4x256xbf16>, vector<256x128xbf16>, vector<4x128xf32> -> vector<4x128xf32>
    %c3 = arith.constant 3 : index
    %c0_39 = arith.constant 0 : index
    %c0_40 = arith.constant 0 : index
    %145 = vector.load %arg5[%c3, %c0_39, %c0_40] : memref<4x4x128xf32, #tpu.memory_space<vmem>>, vector<1x4x128xf32>
    %146 = vector.shape_cast %145 : vector<1x4x128xf32> to vector<4x128xf32>
    %147 = vector.shape_cast %144 : vector<4x128xf32> to vector<1x4x128xf32>
    tpu.vector_store %arg5[%c3, %c0_39, %c0_40], %147 {strides = array<i32>} : memref<4x4x128xf32, #tpu.memory_space<vmem>>, vector<1x4x128xf32>,
    return
  }
  func.func @transform_0(%arg0: i32) -> (i32, i32, i32, i32) {
    %c0_i32 = arith.constant 0 : i32
    %c0_i32_0 = arith.constant 0 : i32
    %c0_i32_1 = arith.constant 0 : i32
    %c0_i32_2 = arith.constant 0 : i32
    return %arg0, %c0_i32, %c0_i32_0, %c0_i32_1 : i32, i32, i32, i32
  }
  func.func @transform_1(%arg0: i32) -> (i32, i32) {
    %c0_i32 = arith.constant 0 : i32
    %c0_i32_0 = arith.constant 0 : i32
    %c0_i32_1 = arith.constant 0 : i32
    return %c0_i32, %c0_i32_0 : i32, i32
  }
  func.func @transform_2(%arg0: i32) -> (i32, i32) {
    %c0_i32 = arith.constant 0 : i32
    %c0_i32_0 = arith.constant 0 : i32
    %c0_i32_1 = arith.constant 0 : i32
    return %c0_i32, %c0_i32_0 : i32, i32
  }
  func.func @transform_3(%arg0: i32) -> (i32, i32) {
    %c0_i32 = arith.constant 0 : i32
    %c0_i32_0 = arith.constant 0 : i32
    %c0_i32_1 = arith.constant 0 : i32
    return %c0_i32, %c0_i32_0 : i32, i32
  }
  func.func @transform_4(%arg0: i32) -> (i32, i32, i32) {
    %c0_i32 = arith.constant 0 : i32
    %c0_i32_0 = arith.constant 0 : i32
    %c0_i32_1 = arith.constant 0 : i32
    return %arg0, %c0_i32, %c0_i32_0 : i32, i32, i32
  }
}

</mosaic_0001>

<bundles_post_ra>
// kernel: downsample_forward.6
= control target key start
LH: loop header
LB: loop body
LE: loop exit
PB: predicated region body
PF: predicated region fallthrough
CT: control target
= control target key end

     0   :  { %15 = vsyncpa [#allocation3], 0  ;;  %s2239_s0 = inlined_call_operand.vmem [shape: f32[128,64], index: 0, kind: input, shape index: {}]   ;;  %s2240_s1 = inlined_call_operand.vmem [shape: f32[128,64], index: 1, kind: input, shape index: {}]   ;;  %s2241_s2 = inlined_call_operand.vmem [shape: f32[128,64], index: 2, kind: input, shape index: {}]   ;;  %s2242_s3 = inlined_call_operand.vmem [shape: f32[2,64], index: 3, kind: input, shape index: {}]   ;;  %s2243_s4 = inlined_call_operand.vmem [shape: f32[2,64], index: 4, kind: input, shape index: {}]   ;;  %s2244_s5 = inlined_call_operand.vmem [shape: bf16[64,64], index: 5, kind: input, shape index: {}]   ;;  %s2245_s6 = inlined_call_operand.vmem [shape: bf16[64,64], index: 6, kind: input, shape index: {}]   ;;  %s2246_s7 = inlined_call_operand.vmem [shape: f32[1,64], index: 7, kind: input, shape index: {}]   ;;  %s2247_s8 = inlined_call_operand.vmem [shape: f32[128,64], index: 8, kind: output, shape index: {0}]   ;;  %s2248_s9 = inlined_call_operand.hbm [shape: f32[128,64], index: 9, kind: output, shape index: {1}]  }
   0x1   :  { %17 = vsyncpa [#allocation3 + $0x1], 0  ;;  %s1676_s30 = smov 0   ;;  %s1678_s10 = smov 0  }
   0x2   :  { %s1680_s11 = smov 0   ;;  %s1682_s12 = smov 0  }
   0x3 LB: > { %s1697_s13 = sadd.s32 4294967295, %s1621_s12   ;;  %s1294_s14 = sadd.s32 4294967294, %s1621_s12   ;;  %s1621_s12 = sphi %s1682_s12, %s2254_s12   ;;  %s1617_s11 = sphi %s1680_s11, %s2253_s11   ;;  %s1613_s10 = sphi %s1678_s10, %s2252_s10   ;;  %s1609_s30 = sphi %s1676_s30, %s2251_s30  }
   0x4   : > { %s1701_s15 = sadd.s32 1, %s1621_s12   ;;  %s239_s16 = sadd.s32 1, %s1617_s11 }
   0x5   : > { %s236_s17 = ssub.s32 %s1621_s12, %s1701_s15  ;;  %p249_p0 = scmp.ne.s32.totalorder %s1617_s11, %s1613_s10 }
   0x6   : > { %p237_p1 = scmp.eq.s32.totalorder %s236_s17, 0  ;;  %p250_p2 = scmp.eq.s32.totalorder %s1697_s13, 1 }
   0x7   : > { %p255_p3 = scmp.ne.s32.totalorder %s1613_s10, %s1609_s30  ;;  %p256_p4 = scmp.eq.s32.totalorder %s1294_s14, 1 }
   0x8   : > { %s1712_s18 = scalar_select %p237_p1, %s1617_s11, %s239_s16  }
   0x9   : > { %p1714_p5 = por %p250_p2, %p249_p0  ;;  %p1718_p6 = por %p256_p4, %p255_p3 }
   0xa   : > { %p1297_p7 = scmp.ge.s32.totalorder %s1621_s12, 1  ;;  %p316_p8 = scmp.lt.s32.totalorder %s1621_s12, 3 }
   0xc   : > { %p317_p9 = pnand %p1297_p7, %p316_p8 }
   0xd   : > { %s1299_s21 = sshll.u32 (!%p317_p9), %s1697_s13, 3  ;;  %vm403_vm0 = vcmask (!%p317_p9), 523264  }
   0xe   : > { %320 = sbr.rel (%p317_p9) target bundleno = 965 (0x3c5), region = 52  ;;  %p368_p10 = scmp.lt.s32.totalorder (!%p317_p9), %s1299_s21, 15 }
  0x15   : > { %s2256_s21 = smov (!%p368_p10, %s1299_s21), 15 }
  0x16   : > { %s1725_s22 = sshll.u32 %s2256_s21, 3 }
  0x17   : > { %s1731_s25 = scalar_lea.vmem %s2239_s0, %s1725_s22  ;;  %s1740_s28 = scalar_lea.vmem %s2240_s1, %s1725_s22 }
  0x18   : > { %v1734_v0 = vld [vmem:[%s1731_s25] sm:$0xff]  ;;  %v1743_v1 = vld [vmem:[%s1731_s25 + $0x8] sm:$0xff]  ;;  %v1754_v8 = vld [vmem:[%s1731_s25 + $0x10] sm:$0xff]  ;;  %s2125_s24 = scalar_lea.vmem %s2241_s2, %s1725_s22  ;;  %s2157_s14 = scalar_lea.vmem %s2247_s8, %s1725_s22 }
  0x19   : > { %v404_v2 = vsel %vm403_vm0, %v1734_v0, 0.0  ;;  %v533_v3 = vld [vmem:[%s1740_s28] sm:$0xff]  ;;  %v534_v4 = vld [vmem:[%s1740_s28 + $0x8] sm:$0xff]  ;;  %v407_v6 = vsel %vm403_vm0, %v1743_v1, 0.0  ;;  %v1757_v9 = vld [vmem:[%s1731_s25 + $0x18] sm:$0xff]  ;;  %v410_v10 = vsel %vm403_vm0, %v1754_v8, 0.0 }
  0x1a   : > { %405 = vadd.xlane.f32.xlu0 %v404_v2  ;;  %v541_v5 = vsel %vm403_vm0, %v533_v3, 0.0  ;;  %v544_v7 = vsel %vm403_vm0, %v534_v4, 0.0  ;;  %v413_v11 = vsel %vm403_vm0, %v1757_v9, 0.0  ;;  %v1764_v12 = vld [vmem:[%s1740_s28 + $0x10] sm:$0xff]  ;;  %v1767_v13 = vld [vmem:[%s1740_s28 + $0x18] sm:$0xff]  ;;  %v1774_v16 = vld [vmem:[%s1731_s25 + $0x20] sm:$0xff] }
  0x1b   : > { %542 = vadd.xlane.f32.xlu1 %v541_v5  ;;  %v547_v14 = vsel %vm403_vm0, %v1764_v12, 0.0  ;;  %v550_v15 = vsel %vm403_vm0, %v1767_v13, 0.0  ;;  %v1777_v17 = vld [vmem:[%s1731_s25 + $0x28] sm:$0xff]  ;;  %v416_v18 = vsel %vm403_vm0, %v1774_v16, 0.0  ;;  %v1784_v20 = vld [vmem:[%s1740_s28 + $0x20] sm:$0xff]  ;;  %v1794_v24 = vld [vmem:[%s1731_s25 + $0x30] sm:$0xff] }
  0x1c   : > { %v419_v19 = vsel %vm403_vm0, %v1777_v17, 0.0  ;;  %v1787_v21 = vld [vmem:[%s1740_s28 + $0x28] sm:$0xff]  ;;  %v553_v22 = vsel %vm403_vm0, %v1784_v20, 0.0  ;;  %v1797_v25 = vld [vmem:[%s1731_s25 + $0x38] sm:$0xff]  ;;  %v422_v26 = vsel %vm403_vm0, %v1794_v24, 0.0  ;;  %v1804_v28 = vld [vmem:[%s1740_s28 + $0x30] sm:$0xff] }
  0x1d   : > { %v556_v23 = vsel %vm403_vm0, %v1787_v21, 0.0  ;;  %v425_v27 = vsel %vm403_vm0, %v1797_v25, 0.0  ;;  %v1807_v29 = vld [vmem:[%s1740_s28 + $0x38] sm:$0xff]  ;;  %v559_v30 = vsel %vm403_vm0, %v1804_v28, 0.0  ;;  %s364_s25 = sand.u32 1, %s1613_s10   ;;  %s1341_s22 = sshll.u32 %s1697_s13, 10 }
  0x1e   : > { %408 = vadd.xlane.f32.xlu0 %v407_v6  ;;  %v562_v31 = vsel %vm403_vm0, %v1807_v29, 0.0  ;;  %s1298_s26 = sshll.u32 %s364_s25, 6  ;;  %s2180_s23 = scalar_lea.hbm %s2248_s9, %s1341_s22 }
  0x1f   : > { %545 = vadd.xlane.f32.xlu1 %v544_v7  ;;  %s2142_s27 = scalar_lea.vmem [#allocation2], %s1298_s26  ;;  %s2190_s13 = scalar_lea.sflag [#allocation3], %s364_s25 }
  0x20   : > { %s1183_s16 = sshll.u32 %s2142_s27, 4  ;;  %s1623_s26 = smov [#allocation2]   ;;  %s2182_s16 = int_to_ptr.vmem [resolvable:$true] %s1183_s16 }
  0x21   : > { %s1563_s28 = sshll.u32 %s1623_s26, 4  ;;  %s1564_s28 = int_to_ptr.vmem [resolvable:$false] %s1563_s28 }
  0x22   : > { %411 = vadd.xlane.f32.xlu0 %v410_v10  ;;  %s1565_s29 = scalar_lea.vmem %s1564_s28, 2048  ;;  %p1566_p0 = scmp.lt.s32.totalorder %s2182_s16, %s1564_s28 }
  0x23   : > { %414 = vadd.xlane.f32.xlu1 %v413_v11 }
  0x26   : > { %548 = vadd.xlane.f32.xlu0 %v547_v14 }
  0x27   : > { %551 = vadd.xlane.f32.xlu1 %v550_v15 }
  0x2a   : > { %417 = vadd.xlane.f32.xlu0 %v416_v18 }
  0x2b   : > { %420 = vadd.xlane.f32.xlu1 %v419_v19 }
  0x2e   : > { %554 = vadd.xlane.f32.xlu0 %v553_v22 }
  0x2f   : > { %557 = vadd.xlane.f32.xlu1 %v556_v23 }
  0x32   : > { %423 = vadd.xlane.f32.xlu0 %v422_v26 }
  0x33   : > { %426 = vadd.xlane.f32.xlu1 %v425_v27 }
  0x36   : > { %560 = vadd.xlane.f32.xlu0 %v559_v30 }
  0x37   : > { %563 = vadd.xlane.f32.xlu1 %v562_v31 }
  0xa7   : > { %v406_v32 = vpop.xlane.xlu0 %405 }
  0xa8   : > { %v429_v33 = vmul.f32 0.015625, %v406_v32  ;;  %v543_v34 = vpop.xlane.xlu1 %542 }
  0xa9   : > { %v565_v35 = vmul.f32 0.015625, %v543_v34 }
  0xaa   : > { %v1814_v36 = vsub.f32 %v1734_v0, %v429_v33 }
  0xab   : > { %v1816_v37 = vsub.f32 %v533_v3, %v565_v35  ;;  %v409_v38 = vpop.xlane.xlu0 %408 }
  0xac   : > { %v430_v39 = vmul.f32 0.015625, %v409_v38  ;;  %v546_v40 = vpop.xlane.xlu1 %545  ;;  %v445_v41 = vmul.f32 %v1814_v36, %v1814_v36 }
  0xad   : > { %v566_v42 = vmul.f32 0.015625, %v546_v40  ;;  %v581_v43 = vmul.f32 %v1816_v37, %v1816_v37 }
  0xae   : > { %v1823_v44 = vsub.f32 %v1743_v1, %v430_v39  ;;  %v453_v45 = vsel %vm403_vm0, %v445_v41, 0.0 }
  0xaf   : > { %v1826_v46 = vsub.f32 %v534_v4, %v566_v42  ;;  %454 = vadd.xlane.f32.xlu0 %v453_v45  ;;  %v412_v47 = vpop.xlane.xlu0 %411  ;;  %v589_v50 = vsel %vm403_vm0, %v581_v43, 0.0 }
  0xb0   : > { %v431_v48 = vmul.f32 0.015625, %v412_v47  ;;  %v415_v49 = vpop.xlane.xlu1 %414  ;;  %v446_v51 = vmul.f32 %v1823_v44, %v1823_v44 }
  0xb1   : > { %v432_v52 = vmul.f32 0.015625, %v415_v49  ;;  %v582_v53 = vmul.f32 %v1826_v46, %v1826_v46 }
  0xb2   : > { %v1834_v54 = vsub.f32 %v1754_v8, %v431_v48  ;;  %v456_v55 = vsel %vm403_vm0, %v446_v51, 0.0 }
  0xb3   : > { %v1838_v56 = vsub.f32 %v1757_v9, %v432_v52  ;;  %590 = vadd.xlane.f32.xlu0 %v589_v50  ;;  %457 = vadd.xlane.f32.xlu1 %v456_v55  ;;  %v549_v57 = vpop.xlane.xlu0 %548  ;;  %v592_v60 = vsel %vm403_vm0, %v582_v53, 0.0 }
  0xb4   : > { %v567_v58 = vmul.f32 0.015625, %v549_v57  ;;  %v552_v59 = vpop.xlane.xlu1 %551  ;;  %v447_v61 = vmul.f32 %v1834_v54, %v1834_v54 }
  0xb5   : > { %v568_v62 = vmul.f32 0.015625, %v552_v59  ;;  %v448_v63 = vmul.f32 %v1838_v56, %v1838_v56 }
  0xb6   : > { %v1846_v2 = vsub.f32 %v1764_v12, %v567_v58  ;;  %v459_v3 = vsel %vm403_vm0, %v447_v61, 0.0 }
  0xb7   : > { %v1850_v4 = vsub.f32 %v1767_v13, %v568_v62  ;;  %593 = vadd.xlane.f32.xlu1 %v592_v60  ;;  %460 = vadd.xlane.f32.xlu0 %v459_v3  ;;  %v418_v5 = vpop.xlane.xlu0 %417  ;;  %v462_v10 = vsel %vm403_vm0, %v448_v63, 0.0  ;;  %v1440_v63 = vld [vmem:[%s2245_s6] sm:$0xff]   ;;  %v1441_v3 = vld [vmem:[%s2244_s5 + $0x8] sm:$0xff]  }
  0xb8   : > { %v433_v6 = vmul.f32 0.015625, %v418_v5  ;;  %v421_v7 = vpop.xlane.xlu1 %420  ;;  %v583_v11 = vmul.f32 %v1846_v2, %v1846_v2  ;;  %1358 = vmatprep.subr.bf16.mxu1 %v1440_v63  ;;  %v1442_v5 = vld [vmem:[%s2245_s6 + $0x8] sm:$0xff]  }
  0xb9   : > { %v434_v14 = vmul.f32 0.015625, %v421_v7  ;;  %v584_v12 = vmul.f32 %v1850_v4, %v1850_v4  ;;  %1359 = vmatpush3.bf16.msra.mxu1 %v1440_v63  ;;  %v1444_v7 = vld [vmem:[%s2245_s6 + $0x10] sm:$0xff]  }
  0xba   : > { %v1858_v15 = vsub.f32 %v1774_v16, %v433_v6  ;;  %v595_v13 = vsel %vm403_vm0, %v583_v11, 0.0  ;;  %v1443_v6 = vld [vmem:[%s2244_s5 + $0x10] sm:$0xff]   ;;  %1360 = vmatprep.subr.bf16.mxu1 %v1442_v5  ;;  %v1446_v11 = vld [vmem:[%s2245_s6 + $0x18] sm:$0xff]  }
  0xbb   : > { %v1862_v18 = vsub.f32 %v1777_v17, %v434_v14  ;;  %463 = vadd.xlane.f32.xlu1 %v462_v10  ;;  %596 = vadd.xlane.f32.xlu0 %v595_v13  ;;  %v555_v19 = vpop.xlane.xlu0 %554  ;;  %v598_v26 = vsel %vm403_vm0, %v584_v12, 0.0  ;;  %v1445_v10 = vld [vmem:[%s2244_s5 + $0x18] sm:$0xff]  }
  0xbc   : > { %v569_v22 = vmul.f32 0.015625, %v555_v19  ;;  %v558_v23 = vpop.xlane.xlu1 %557  ;;  %v449_v27 = vmul.f32 %v1858_v15, %v1858_v15 }
  0xbd   : > { %v570_v30 = vmul.f32 0.015625, %v558_v23  ;;  %v450_v31 = vmul.f32 %v1862_v18, %v1862_v18  ;;  %1361 = vmatpush3.bf16.msra.mxu1 %v1442_v5 }
  0xbe   : > { %v1870_v32 = vsub.f32 %v1784_v20, %v569_v22  ;;  %v465_v33 = vsel %vm403_vm0, %v449_v27, 0.0  ;;  %1362 = vmatprep.subr.bf16.mxu1 %v1444_v7 }
  0xbf   : > { %v1874_v34 = vsub.f32 %v1787_v21, %v570_v30  ;;  %599 = vadd.xlane.f32.xlu1 %v598_v26  ;;  %466 = vadd.xlane.f32.xlu0 %v465_v33  ;;  %v424_v35 = vpop.xlane.xlu0 %423  ;;  %v468_v40 = vsel %vm403_vm0, %v450_v31, 0.0 }
  0xc0   : > { %v435_v38 = vmul.f32 0.015625, %v424_v35  ;;  %v427_v39 = vpop.xlane.xlu1 %426  ;;  %v585_v41 = vmul.f32 %v1870_v32, %v1870_v32 }
  0xc1   : > { %v436_v42 = vmul.f32 0.015625, %v427_v39  ;;  %v586_v20 = vmul.f32 %v1874_v34, %v1874_v34  ;;  %1363 = vmatpush3.bf16.msra.mxu1 %v1444_v7  ;;  %v1942_v7 = vld [vmem:[%s2243_s4] ss:$0 sm:$0xff] }
  0xc2   : > { %v1882_v43 = vsub.f32 %v1794_v24, %v435_v38  ;;  %v601_v21 = vsel %vm403_vm0, %v585_v41, 0.0  ;;  %1364 = vmatprep.subr.bf16.mxu1 %v1446_v11 }
  0xc3   : > { %v1886_v45 = vsub.f32 %v1797_v25, %v436_v42  ;;  %469 = vadd.xlane.f32.xlu1 %v468_v40  ;;  %602 = vadd.xlane.f32.xlu0 %v601_v21  ;;  %v561_v47 = vpop.xlane.xlu0 %560  ;;  %v604_v50 = vsel %vm403_vm0, %v586_v20, 0.0 }
  0xc4   : > { %v571_v48 = vmul.f32 0.015625, %v561_v47  ;;  %v564_v49 = vpop.xlane.xlu1 %563  ;;  %v451_v51 = vmul.f32 %v1882_v43, %v1882_v43 }
  0xc5   : > { %v572_v52 = vmul.f32 0.015625, %v564_v49  ;;  %v452_v53 = vmul.f32 %v1886_v45, %v1886_v45  ;;  %1365 = vmatpush3.bf16.msra.mxu1 %v1446_v11 }
  0xc6   : > { %v1894_v55 = vsub.f32 %v1804_v28, %v571_v48  ;;  %v471_v57 = vsel %vm403_vm0, %v451_v51, 0.0 }
  0xc7   : > { %v1898_v58 = vsub.f32 %v1807_v29, %v572_v52  ;;  %605 = vadd.xlane.f32.xlu1 %v604_v50  ;;  %472 = vadd.xlane.f32.xlu0 %v471_v57  ;;  %v474_v59 = vsel %vm403_vm0, %v452_v53, 0.0  ;;  %v1439_v29 = vld [vmem:[%s2244_s5] sm:$0xff]  }
  0xc8   : > { %v587_v60 = vmul.f32 %v1894_v55, %v1894_v55  ;;  %1374 = vmatprep.subr.bf16.mxu0 %v1439_v29 }
  0xc9   : > { %v588_v61 = vmul.f32 %v1898_v58, %v1898_v58  ;;  %1375 = vmatpush3.bf16.msra.mxu0 %v1439_v29 }
  0xca   : > { %v607_v62 = vsel %vm403_vm0, %v587_v60, 0.0  ;;  %1376 = vmatprep.subr.bf16.mxu0 %v1441_v3 }
  0xcb   : > { %475 = vadd.xlane.f32.xlu1 %v474_v59  ;;  %608 = vadd.xlane.f32.xlu0 %v607_v62  ;;  %v610_v28 = vsel %vm403_vm0, %v588_v61, 0.0  ;;  %v1935_v59 = vld [vmem:[%s2242_s3] ss:$0 sm:$0xff] }
  0xcd   : > { %1377 = vmatpush3.bf16.msra.mxu0 %v1441_v3 }
  0xce   : > { %1378 = vmatprep.subr.bf16.mxu0 %v1443_v6 }
  0xcf   : > { %611 = vadd.xlane.f32.xlu1 %v610_v28 }
  0xd1   : > { %1379 = vmatpush3.bf16.msra.mxu0 %v1443_v6 }
  0xd2   : > { %1380 = vmatprep.subr.bf16.mxu0 %v1445_v10 }
  0xd5   : > { %1381 = vmatpush3.bf16.msra.mxu0 %v1445_v10 }
 0x13c   : > { %v455_v14 = vpop.xlane.xlu0 %454 }
 0x13d   : > { %v477_v12 = vmul.f32 0.015625, %v455_v14 }
 0x13f   : > { %v485_v13 = vadd.f32 1e-05, %v477_v12 }
 0x140   : > { %v458_v19 = vpop.xlane.xlu1 %457  ;;  %v591_v22 = vpop.xlane.xlu0 %590 }
 0x141   : > { %1447 = vrsqrt.f32 %v485_v13  ;;  %v478_v23 = vmul.f32 0.015625, %v458_v19  ;;  %v613_v26 = vmul.f32 0.015625, %v591_v22 }
 0x143   : > { %v486_v27 = vadd.f32 1e-05, %v478_v23  ;;  %v621_v30 = vadd.f32 1e-05, %v613_v26 }
 0x144   : > { %v594_v31 = vpop.xlane.xlu1 %593  ;;  %v461_v33 = vpop.xlane.xlu0 %460 }
 0x145   : > { %1449 = vrsqrt.f32 %v486_v27  ;;  %v614_v35 = vmul.f32 0.015625, %v594_v31  ;;  %v479_v38 = vmul.f32 0.015625, %v461_v33 }
 0x146   : > { %1451 = vrsqrt.f32 %v621_v30 }
 0x147   : > { %v622_v39 = vadd.f32 1e-05, %v614_v35  ;;  %v487_v40 = vadd.f32 1e-05, %v479_v38 }
 0x148   : > { %v464_v41 = vpop.xlane.xlu1 %463  ;;  %v597_v42 = vpop.xlane.xlu0 %596 }
 0x149   : > { %1453 = vrsqrt.f32 %v622_v39  ;;  %v480_v20 = vmul.f32 0.015625, %v464_v41  ;;  %v615_v21 = vmul.f32 0.015625, %v597_v42 }
 0x14a   : > { %1455 = vrsqrt.f32 %v487_v40 }
 0x14b   : > { %v1448_v47 = vpop.eup %1447  ;;  %v488_v48 = vadd.f32 1e-05, %v480_v20  ;;  %v623_v49 = vadd.f32 1e-05, %v615_v21 }
 0x14c   : > { %v600_v50 = vpop.xlane.xlu1 %599  ;;  %v467_v51 = vpop.xlane.xlu0 %466  ;;  %v501_v52 = vmul.f32 %v1448_v47, %v1814_v36 }
 0x14d   : > { %1457 = vrsqrt.f32 %v488_v48  ;;  %v616_v53 = vmul.f32 0.015625, %v600_v50  ;;  %v481_v57 = vmul.f32 0.015625, %v467_v51 }
 0x14e   : > { %1459 = vrsqrt.f32 %v623_v49  ;;  %v513_v5 = vmul.f32 %v1935_v59, %v501_v52 }
 0x14f   : > { %v1450_v60 = vpop.eup %1449  ;;  %v624_v61 = vadd.f32 1e-05, %v616_v53  ;;  %v489_v62 = vadd.f32 1e-05, %v481_v57 }
 0x150   : > { %v1452_v28 = vpop.eup %1451  ;;  %v470_v29 = vpop.xlane.xlu1 %469  ;;  %v502_v3 = vmul.f32 %v1450_v60, %v1823_v44  ;;  %v525_v23 = vadd.f32 %v1942_v7, %v513_v5 }
 0x151   : > { %v603_v63 = vpop.xlane.xlu0 %602  ;;  %1461 = vrsqrt.f32 %v624_v61  ;;  %v482_v36 = vmul.f32 0.015625, %v470_v29  ;;  %v637_v10 = vmul.f32 %v1452_v28, %v1816_v37 }
 0x152   : > { %v617_v6 = vmul.f32 0.015625, %v603_v63  ;;  %1463 = vrsqrt.f32 %v489_v62  ;;  %v514_v11 = vmul.f32 %v1935_v59, %v502_v3 }
 0x153   : > { %v1454_v14 = vpop.eup %1453  ;;  %v490_v12 = vadd.f32 1e-05, %v482_v36  ;;  %v645_v30 = vmul.f32 %v1935_v59, %v637_v10 }
 0x154   : > { %v625_v13 = vadd.f32 1e-05, %v617_v6  ;;  %v1456_v19 = vpop.eup %1455  ;;  %v606_v44 = vpop.xlane.xlu1 %605  ;;  %v526_v26 = vadd.f32 %v1942_v7, %v514_v11  ;;  %v638_v27 = vmul.f32 %v1454_v14, %v1826_v46 }
 0x155   : > { %v473_v22 = vpop.xlane.xlu0 %472  ;;  %v503_v31 = vmul.f32 %v1456_v19, %v1834_v54  ;;  %1465 = vrsqrt.f32 %v490_v12  ;;  %v618_v37 = vmul.f32 0.015625, %v606_v44  ;;  %v653_v47 = vadd.f32 %v1942_v7, %v645_v30 }
 0x156   : > { %v483_v33 = vmul.f32 0.015625, %v473_v22  ;;  %1467 = vrsqrt.f32 %v625_v13  ;;  %v661_v35 = vpack.c.bf16 %v526_v26, %v525_v23  ;;  %v646_v38 = vmul.f32 %v1935_v59, %v638_v27 }
 0x157   : > { %v1458_v39 = vpop.eup %1457  ;;  %v626_v40 = vadd.f32 1e-05, %v618_v37  ;;  %v515_v48 = vmul.f32 %v1935_v59, %v503_v31 }
 0x158   : > { %v491_v41 = vadd.f32 1e-05, %v483_v33  ;;  %v1460_v42 = vpop.eup %1459  ;;  %v504_v20 = vmul.f32 %v1458_v39, %v1838_v56  ;;  %v476_v21 = vpop.xlane.xlu1 %475  ;;  %1382 = vmatprep.mubr.msk.bf16.mxu0 %vm403_vm0, %v661_v35  ;;  %v654_v54 = vadd.f32 %v1942_v7, %v646_v38 }
 0x159   : > { %v609_v46 = vpop.xlane.xlu0 %608  ;;  %v639_v49 = vmul.f32 %v1460_v42, %v1846_v2  ;;  %1469 = vrsqrt.f32 %v626_v40  ;;  %v484_v50 = vmul.f32 0.015625, %v476_v21  ;;  %v527_v29 = vadd.f32 %v1942_v7, %v515_v48 }
 0x15a   : > { %v619_v51 = vmul.f32 0.015625, %v609_v46  ;;  %1471 = vrsqrt.f32 %v491_v41  ;;  %v673_v52 = vpack.c.bf16 %v654_v54, %v653_v47  ;;  %v516_v53 = vmul.f32 %v1935_v59, %v504_v20 }
 0x15b   : > { %v1462_v56 = vpop.eup %1461  ;;  %v492_v57 = vadd.f32 1e-05, %v484_v50  ;;  %v647_v63 = vmul.f32 %v1935_v59, %v639_v49 }
 0x15c   : > { %v627_v60 = vadd.f32 1e-05, %v619_v51  ;;  %v1464_v61 = vpop.eup %1463  ;;  %v640_v62 = vmul.f32 %v1462_v56, %v1850_v4  ;;  %v612_v28 = vpop.xlane.xlu1 %611  ;;  %1366 = vmatprep.mubr.msk.bf16.mxu1 %vm403_vm0, %v673_v52  ;;  %v528_v2 = vadd.f32 %v1942_v7, %v516_v53 }
 0x15d   : > { %v505_v3 = vmul.f32 %v1464_v61, %v1858_v15  ;;  %1473 = vrsqrt.f32 %v492_v57  ;;  %v620_v5 = vmul.f32 0.015625, %v612_v28  ;;  %v655_v12 = vadd.f32 %v1942_v7, %v647_v63 }
 0x15e   : > { %1475 = vrsqrt.f32 %v627_v60  ;;  %v662_v36 = vpack.c.bf16 %v528_v2, %v527_v29  ;;  %v648_v6 = vmul.f32 %v1935_v59, %v640_v62  ;;  %v1325_v60 = vld [vmem:[%s2246_s7] ss:$0 sm:$0xff] }
 0x15f   : > { %v1466_v10 = vpop.eup %1465  ;;  %v628_v11 = vadd.f32 1e-05, %v620_v5  ;;  %v517_v19 = vmul.f32 %v1935_v59, %v505_v3 }
 0x160   : > { %v1468_v4 = vpop.eup %1467  ;;  %v506_v14 = vmul.f32 %v1466_v10, %v1862_v18  ;;  %1383 = vmatmul.mubr.msk.bf16.vlgmr.msra.gmra.mrb[0].mxu0 %vm403_vm0, %v662_v36  ;;  %v656_v13 = vadd.f32 %v1942_v7, %v648_v6 }
 0x161   : > { %v641_v15 = vmul.f32 %v1468_v4, %v1870_v32  ;;  %1477 = vrsqrt.f32 %v628_v11  ;;  %v529_v18 = vadd.f32 %v1942_v7, %v517_v19 }
 0x162   : > { %v674_v44 = vpack.c.bf16 %v656_v13, %v655_v12  ;;  %v518_v22 = vmul.f32 %v1935_v59, %v506_v14 }
 0x163   : > { %v1470_v23 = vpop.eup %1469  ;;  %v649_v31 = vmul.f32 %v1935_v59, %v641_v15 }
 0x164   : > { %v1472_v26 = vpop.eup %1471  ;;  %v642_v27 = vmul.f32 %v1470_v23, %v1874_v34  ;;  %1367 = vmatmul.mubr.msk.bf16.vlgmr.msra.gmra.mrb[0].mxu1 %vm403_vm0, %v674_v44  ;;  %v530_v30 = vadd.f32 %v1942_v7, %v518_v22 }
 0x165   : > { %v507_v37 = vmul.f32 %v1472_v26, %v1882_v43  ;;  %v657_v34 = vadd.f32 %v1942_v7, %v649_v31 }
 0x166   : > { %v663_v33 = vpack.c.bf16 %v530_v30, %v529_v18  ;;  %v650_v32 = vmul.f32 %v1935_v59, %v642_v27 }
 0x167   : > { %v1474_v35 = vpop.eup %1473  ;;  %v519_v41 = vmul.f32 %v1935_v59, %v507_v37 }
 0x168   : > { %v1476_v38 = vpop.eup %1475  ;;  %v508_v39 = vmul.f32 %v1474_v35, %v1886_v45  ;;  %1386 = vmatprep.mubr.msk.bf16.mxu0 %vm403_vm0, %v663_v33  ;;  %v658_v40 = vadd.f32 %v1942_v7, %v650_v32 }
 0x169   : > { %v643_v42 = vmul.f32 %v1476_v38, %v1894_v55  ;;  %v531_v45 = vadd.f32 %v1942_v7, %v519_v41 }
 0x16a   : > { %v675_v20 = vpack.c.bf16 %v658_v40, %v657_v34  ;;  %v520_v43 = vmul.f32 %v1935_v59, %v508_v39 }
 0x16b   : > { %v1478_v21 = vpop.eup %1477  ;;  %v651_v54 = vmul.f32 %v1935_v59, %v643_v42 }
 0x16c   : > { %v644_v46 = vmul.f32 %v1478_v21, %v1898_v58  ;;  %1370 = vmatprep.mubr.msk.bf16.mxu1 %vm403_vm0, %v675_v20  ;;  %v532_v47 = vadd.f32 %v1942_v7, %v520_v43 }
 0x16d   : > { %v659_v55 = vadd.f32 %v1942_v7, %v651_v54 }
 0x16e   : > { %v664_v48 = vpack.c.bf16 %v532_v47, %v531_v45  ;;  %v652_v49 = vmul.f32 %v1935_v59, %v644_v46 }
 0x170   : > { %1387 = vmatmul.mubr.msk.bf16.gmra.mrb[4].mxu0 %vm403_vm0, %v664_v48  ;;  %v660_v50 = vadd.f32 %v1942_v7, %v652_v49 }
 0x172   : > { %v676_v51 = vpack.c.bf16 %v660_v50, %v659_v55 }
 0x174   : > { %1371 = vmatmul.mubr.msk.bf16.gmra.mrb[4].mxu1 %vm403_vm0, %v676_v51 }
 0x233   : > { %v1384_v58 = vpop.f32.mrb[0].mxu0 }
 0x234   : > { %v856_v52 = vpop.f32.mrb[1].mxu0 }
 0x235   : > { %v1385_v53 = vpop.f32.mrb[2].mxu0 }
 0x236   : > { %v859_v56 = vpop.f32.mrb[3].mxu0 }
 0x237   : > { %v1368_v57 = vpop.f32.mrb[0].mxu1 }
 0x238   : > { %v865_v61 = vadd.f32 %v1384_v58, %v1368_v57  ;;  %v755_v59 = vpop.f32.mrb[1].mxu1 }
 0x239   : > { %v857_v62 = vadd.f32 %v856_v52, %v755_v59  ;;  %v1369_v28 = vpop.f32.mrb[2].mxu1 }
 0x23a   : > { %v896_v29 = vadd.f32 %v1325_v60, %v865_v61  ;;  %v868_v2 = vadd.f32 %v1385_v53, %v1369_v28  ;;  %v758_v63 = vpop.f32.mrb[3].mxu1 }
 0x23b   : > { %v894_v7 = vadd.f32 %v1325_v60, %v857_v62  ;;  %v860_v3 = vadd.f32 %v859_v56, %v758_v63 }
 0x23c   : > { %v2001_v5 = vadd.f32 %v896_v29, %v1754_v8  ;;  %v897_v36 = vadd.f32 %v1325_v60, %v868_v2 }
 0x23d   : > { %v895_v6 = vadd.f32 %v1325_v60, %v860_v3  ;;  %v2004_v10 = vadd.f32 %v894_v7, %v1734_v0 }
 0x23e   : > { %v2007_v11 = vadd.f32 %v897_v36, %v1757_v9  ;;  %v918_v4 = vsel %vm403_vm0, %v2001_v5, 0.0 }
 0x23f   : > { %919 = vadd.xlane.f32.xlu0 %v918_v4  ;;  %v2012_v14 = vadd.f32 %v895_v6, %v1743_v1  ;;  %v912_v8 = vsel %vm403_vm0, %v2004_v10, 0.0 }
 0x240   : > { %v921_v12 = vsel %vm403_vm0, %v2007_v11, 0.0 }
 0x241   : > { %922 = vadd.xlane.f32.xlu1 %v921_v12  ;;  %v915_v9 = vsel %vm403_vm0, %v2012_v14, 0.0 }
 0x243   : > { %913 = vadd.xlane.f32.xlu0 %v912_v8  ;;  %v1388_v0 = vpop.f32.mrb[4].mxu0 }
 0x244   : > { %v872_v13 = vpop.f32.mrb[5].mxu0 }
 0x245   : > { %916 = vadd.xlane.f32.xlu1 %v915_v9  ;;  %v1389_v19 = vpop.f32.mrb[6].mxu0 }
 0x246   : > { %v875_v15 = vpop.f32.mrb[7].mxu0 }
 0x247   : > { %v1372_v44 = vpop.f32.mrb[4].mxu1 }
 0x248   : > { %v881_v22 = vadd.f32 %v1388_v0, %v1372_v44  ;;  %v771_v1 = vpop.f32.mrb[5].mxu1 }
 0x249   : > { %v873_v23 = vadd.f32 %v872_v13, %v771_v1  ;;  %v1373_v26 = vpop.f32.mrb[6].mxu1 }
 0x24a   : > { %v884_v27 = vadd.f32 %v1389_v19, %v1373_v26  ;;  %v774_v18 = vpop.f32.mrb[7].mxu1  ;;  %v900_v30 = vadd.f32 %v1325_v60, %v881_v22 }
 0x24b   : > { %v898_v31 = vadd.f32 %v1325_v60, %v873_v23  ;;  %v876_v37 = vadd.f32 %v875_v15, %v774_v18 }
 0x24c   : > { %v901_v32 = vadd.f32 %v1325_v60, %v884_v27  ;;  %v2024_v38 = vadd.f32 %v900_v30, %v1794_v24 }
 0x24d   : > { %v2021_v33 = vadd.f32 %v898_v31, %v1774_v16  ;;  %v899_v35 = vadd.f32 %v1325_v60, %v876_v37 }
 0x24e   : > { %v2032_v40 = vadd.f32 %v901_v32, %v1797_v25  ;;  %v930_v16 = vsel %vm403_vm0, %v2024_v38, 0.0 }
 0x24f   : > { %v2027_v39 = vadd.f32 %v899_v35, %v1777_v17  ;;  %v924_v34 = vsel %vm403_vm0, %v2021_v33, 0.0 }
 0x250   : > { %925 = vadd.xlane.f32.xlu0 %v924_v34  ;;  %v933_v24 = vsel %vm403_vm0, %v2032_v40, 0.0 }
 0x251   : > { %v927_v41 = vsel %vm403_vm0, %v2027_v39, 0.0 }
 0x252   : > { %928 = vadd.xlane.f32.xlu1 %v927_v41  ;;  %v2091_v41 = vld [vmem:[%s2242_s3 + $0x1] ss:$0 sm:$0xff] }
 0x254   : > { %931 = vadd.xlane.f32.xlu0 %v930_v16 }
 0x256   : > { %934 = vadd.xlane.f32.xlu1 %v933_v24 }
 0x2cc   : > { %v920_v17 = vpop.xlane.xlu0 %919 }
 0x2cd   : > { %v938_v42 = vmul.f32 0.015625, %v920_v17  ;;  %v2097_v17 = vld [vmem:[%s2243_s4 + $0x1] ss:$0 sm:$0xff] }
 0x2ce   : > { %v923_v20 = vpop.xlane.xlu1 %922 }
 0x2cf   : > { %v2041_v43 = vsub.f32 %v2001_v5, %v938_v42  ;;  %v939_v25 = vmul.f32 0.015625, %v923_v20 }
 0x2d0   : > { %v914_v21 = vpop.xlane.xlu0 %913 }
 0x2d1   : > { %v2044_v46 = vsub.f32 %v2007_v11, %v939_v25  ;;  %v936_v45 = vmul.f32 0.015625, %v914_v21  ;;  %v954_v47 = vmul.f32 %v2041_v43, %v2041_v43 }
 0x2d2   : > { %v917_v54 = vpop.xlane.xlu1 %916 }
 0x2d3   : > { %v2049_v48 = vsub.f32 %v2004_v10, %v936_v45  ;;  %v937_v49 = vmul.f32 0.015625, %v917_v54  ;;  %v966_v55 = vsel %vm403_vm0, %v954_v47, 0.0  ;;  %v955_v50 = vmul.f32 %v2044_v46, %v2044_v46 }
 0x2d4   : > { %967 = vadd.xlane.f32.xlu0 %v966_v55 }
 0x2d5   : > { %v2055_v51 = vsub.f32 %v2012_v14, %v937_v49  ;;  %v969_v58 = vsel %vm403_vm0, %v955_v50, 0.0  ;;  %v952_v52 = vmul.f32 %v2049_v48, %v2049_v48 }
 0x2d6   : > { %970 = vadd.xlane.f32.xlu1 %v969_v58 }
 0x2d7   : > { %v960_v53 = vsel %vm403_vm0, %v952_v52, 0.0  ;;  %v953_v56 = vmul.f32 %v2055_v51, %v2055_v51 }
 0x2d8   : > { %961 = vadd.xlane.f32.xlu0 %v960_v53 }
 0x2d9   : > { %v963_v57 = vsel %vm403_vm0, %v953_v56, 0.0 }
 0x2da   : > { %964 = vadd.xlane.f32.xlu1 %v963_v57 }
 0x2dd   : > { %v926_v60 = vpop.xlane.xlu0 %925 }
 0x2de   : > { %v940_v61 = vmul.f32 0.015625, %v926_v60 }
 0x2df   : > { %v929_v59 = vpop.xlane.xlu1 %928 }
 0x2e0   : > { %v2065_v62 = vsub.f32 %v2021_v33, %v940_v61  ;;  %v941_v28 = vmul.f32 0.015625, %v929_v59 }
 0x2e1   : > { %v932_v29 = vpop.xlane.xlu0 %931 }
 0x2e2   : > { %v2068_v2 = vsub.f32 %v2027_v39, %v941_v28  ;;  %v942_v63 = vmul.f32 0.015625, %v932_v29  ;;  %v956_v7 = vmul.f32 %v2065_v62, %v2065_v62 }
 0x2e3   : > { %v935_v3 = vpop.xlane.xlu1 %934 }
 0x2e4   : > { %v2073_v36 = vsub.f32 %v2024_v38, %v942_v63  ;;  %v943_v6 = vmul.f32 0.015625, %v935_v3  ;;  %v972_v4 = vsel %vm403_vm0, %v956_v7, 0.0  ;;  %v957_v12 = vmul.f32 %v2068_v2, %v2068_v2 }
 0x2e5   : > { %973 = vadd.xlane.f32.xlu0 %v972_v4 }
 0x2e6   : > { %v2079_v8 = vsub.f32 %v2032_v40, %v943_v6  ;;  %v975_v0 = vsel %vm403_vm0, %v957_v12, 0.0  ;;  %v958_v13 = vmul.f32 %v2073_v36, %v2073_v36 }
 0x2e7   : > { %976 = vadd.xlane.f32.xlu1 %v975_v0 }
 0x2e8   : > { %v978_v9 = vsel %vm403_vm0, %v958_v13, 0.0  ;;  %v959_v19 = vmul.f32 %v2079_v8, %v2079_v8 }
 0x2e9   : > { %979 = vadd.xlane.f32.xlu0 %v978_v9 }
 0x2ea   : > { %v981_v15 = vsel %vm403_vm0, %v959_v19, 0.0 }
 0x2eb   : > { %982 = vadd.xlane.f32.xlu1 %v981_v15 }
 0x361   : > { %v968_v44 = vpop.xlane.xlu0 %967 }
 0x362   : > { %v986_v22 = vmul.f32 0.015625, %v968_v44 }
 0x363   : > { %v971_v1 = vpop.xlane.xlu1 %970 }
 0x364   : > { %v994_v23 = vadd.f32 1e-05, %v986_v22  ;;  %v987_v26 = vmul.f32 0.015625, %v971_v1 }
 0x365   : > { %v962_v27 = vpop.xlane.xlu0 %961 }
 0x366   : > { %1479 = vrsqrt.f32 %v994_v23  ;;  %v995_v18 = vadd.f32 1e-05, %v987_v26  ;;  %v984_v30 = vmul.f32 0.015625, %v962_v27 }
 0x367   : > { %v965_v31 = vpop.xlane.xlu1 %964 }
 0x368   : > { %1481 = vrsqrt.f32 %v995_v18  ;;  %v992_v37 = vadd.f32 1e-05, %v984_v30  ;;  %v985_v32 = vmul.f32 0.015625, %v965_v31 }
 0x36a   : > { %1483 = vrsqrt.f32 %v992_v37  ;;  %v993_v35 = vadd.f32 1e-05, %v985_v32 }
 0x36c   : > { %1485 = vrsqrt.f32 %v993_v35 }
 0x370   : > { %v1480_v34 = vpop.eup %1479 }
 0x371   : > { %v1010_v16 = vmul.f32 %v1480_v34, %v2041_v43 }
 0x372   : > { %v1482_v24 = vpop.eup %1481  ;;  %v974_v42 = vpop.xlane.xlu0 %973 }
 0x373   : > { %v1022_v20 = vmul.f32 %v2091_v41, %v1010_v16  ;;  %v1011_v25 = vmul.f32 %v1482_v24, %v2044_v46  ;;  %v988_v21 = vmul.f32 0.015625, %v974_v42  ;;  %v1106_v42 = vld [vmem:[%s2125_s24 + $0x10] sm:$0xff] }
 0x374   : > { %v1484_v45 = vpop.eup %1483  ;;  %v977_v47 = vpop.xlane.xlu1 %976 }
 0x375   : > { %v1034_v54 = vadd.f32 %v2097_v17, %v1022_v20  ;;  %v1023_v49 = vmul.f32 %v2091_v41, %v1011_v25  ;;  %v1008_v43 = vmul.f32 %v1484_v45, %v2049_v48  ;;  %v996_v55 = vadd.f32 1e-05, %v988_v21  ;;  %v1107_v21 = vld [vmem:[%s2125_s24 + $0x18] sm:$0xff] }
 0x376   : > { %v1486_v50 = vpop.eup %1485  ;;  %v989_v58 = vmul.f32 0.015625, %v977_v47  ;;  %v980_v52 = vpop.xlane.xlu0 %979 }
 0x377   : > { %v1042_v53 = vadd.f32 %v1034_v54, %v2001_v5  ;;  %v1035_v56 = vadd.f32 %v2097_v17, %v1023_v49  ;;  %v1020_v57 = vmul.f32 %v2091_v41, %v1008_v43  ;;  %v1009_v46 = vmul.f32 %v1486_v50, %v2055_v51  ;;  %v1104_v43 = vld [vmem:[%s2125_s24] sm:$0xff] }
 0x378   : > { %1487 = vrsqrt.f32 %v996_v55  ;;  %v997_v60 = vadd.f32 1e-05, %v989_v58  ;;  %v983_v61 = vpop.xlane.xlu1 %982  ;;  %v990_v29 = vmul.f32 0.015625, %v980_v52 }
 0x379   : > { %v1330_v59 = vmul.f32 -1.442695, %v1042_v53  ;;  %v1043_v28 = vadd.f32 %v1035_v56, %v2007_v11  ;;  %v1032_v48 = vadd.f32 %v2097_v17, %v1020_v57  ;;  %v1021_v63 = vmul.f32 %v2091_v41, %v1009_v46 }
 0x37a   : > { %1489 = vrsqrt.f32 %v997_v60  ;;  %v991_v3 = vmul.f32 0.015625, %v983_v61  ;;  %v998_v4 = vadd.f32 1e-05, %v990_v29 }
 0x37b   : > { %1491 = vpow2.f32 %v1330_v59  ;;  %v1331_v5 = vmul.f32 -1.442695, %v1043_v28  ;;  %v1040_v7 = vadd.f32 %v1032_v48, %v2004_v10  ;;  %v1033_v6 = vadd.f32 %v2097_v17, %v1021_v63 }
 0x37c   : > { %v999_v11 = vadd.f32 1e-05, %v991_v3 }
 0x37d   : > { %1493 = vpow2.f32 %v1331_v5  ;;  %v1328_v51 = vmul.f32 -1.442695, %v1040_v7  ;;  %v1041_v12 = vadd.f32 %v1033_v6, %v2012_v14 }
 0x37f   : > { %1495 = vpow2.f32 %v1328_v51  ;;  %v1329_v0 = vmul.f32 -1.442695, %v1041_v12 }
 0x380   : > { %1497 = vrsqrt.f32 %v998_v4 }
 0x381   : > { %1499 = vpow2.f32 %v1329_v0 }
 0x382   : > { %v1488_v13 = vpop.eup %1487  ;;  %1501 = vrsqrt.f32 %v999_v11 }
 0x383   : > { %v1012_v9 = vmul.f32 %v1488_v13, %v2065_v62  ;;  %1503 = vtanh.f32 %v1042_v53 }
 0x384   : > { %v1490_v19 = vpop.eup %1489  ;;  %1505 = vtanh.f32 %v1043_v28 }
 0x385   : > { %v1492_v10 = vpop.eup %1491  ;;  %v1024_v15 = vmul.f32 %v2091_v41, %v1012_v9  ;;  %v1013_v44 = vmul.f32 %v1490_v19, %v2068_v2  ;;  %1507 = vtanh.f32 %v1040_v7 }
 0x386   : > { %v1074_v22 = vadd.f32 1.0, %v1492_v10 }
 0x387   : > { %v1494_v14 = vpop.eup %1493  ;;  %v1036_v1 = vadd.f32 %v2097_v17, %v1024_v15  ;;  %v1025_v23 = vmul.f32 %v2091_v41, %v1013_v44  ;;  %v1109_v15 = vld [vmem:[%s2125_s24 + $0x28] sm:$0xff] }
 0x388   : > { %1509 = vrcp.f32 %v1074_v22  ;;  %v1075_v62 = vadd.f32 1.0, %v1494_v14 }
 0x389   : > { %v1496_v26 = vpop.eup %1495  ;;  %v1044_v27 = vadd.f32 %v1036_v1, %v2021_v33  ;;  %v1037_v18 = vadd.f32 %v2097_v17, %v1025_v23 }
 0x38a   : > { %1511 = vrcp.f32 %v1075_v62  ;;  %v1072_v30 = vadd.f32 1.0, %v1496_v26  ;;  %v1498_v31 = vpop.eup %1497 }
 0x38b   : > { %1513 = vtanh.f32 %v1041_v12  ;;  %v1332_v2 = vmul.f32 -1.442695, %v1044_v27  ;;  %v1045_v37 = vadd.f32 %v1037_v18, %v2027_v39  ;;  %v1500_v32 = vpop.eup %1499  ;;  %v1014_v33 = vmul.f32 %v1498_v31, %v2073_v36  ;;  %v1108_v12 = vld [vmem:[%s2125_s24 + $0x20] sm:$0xff]  ;;  %v1110_v31 = vld [vmem:[%s2125_s24 + $0x30] sm:$0xff] }
 0x38c   : > { %1515 = vrcp.f32 %v1072_v30  ;;  %v1502_v35 = vpop.eup %1501  ;;  %v1073_v34 = vadd.f32 1.0, %v1500_v32 }
 0x38d   : > { %1517 = vpow2.f32 %v1332_v2  ;;  %v1333_v16 = vmul.f32 -1.442695, %v1045_v37  ;;  %v1504_v24 = vpop.eup %1503  ;;  %v1026_v20 = vmul.f32 %v2091_v41, %v1014_v33  ;;  %v1015_v25 = vmul.f32 %v1502_v35, %v2079_v8 }
 0x38e   : > { %1519 = vrcp.f32 %v1073_v34  ;;  %v1506_v39 = vpop.eup %1505  ;;  %v1114_v54 = vadd.f32 %v1504_v24, %v1106_v42 }
 0x38f   : > { %1521 = vpow2.f32 %v1333_v16  ;;  %v1038_v45 = vadd.f32 %v2097_v17, %v1026_v20  ;;  %v1027_v36 = vmul.f32 %v2091_v41, %v1015_v25  ;;  %v1508_v47 = vpop.eup %1507  ;;  %v1115_v58 = vadd.f32 %v1506_v39, %v1107_v21 }
 0x390   : > { %1523 = vtanh.f32 %v1044_v27  ;;  %v1112_v41 = vadd.f32 %v1508_v47, %v1104_v43 }
 0x391   : > { %v1046_v55 = vadd.f32 %v1038_v45, %v2024_v38  ;;  %v1039_v50 = vadd.f32 %v2097_v17, %v1027_v36  ;;  %1525 = vtanh.f32 %v1045_v37  ;;  %v1105_v17 = vld [vmem:[%s2125_s24 + $0x8] sm:$0xff]  ;;  %v1111_v37 = vld [vmem:[%s2125_s24 + $0x38] sm:$0xff]  ;;  %s1559_s24 = scalar_lea.vmem %s2182_s16, 1024 }
 0x392   : > { %v1510_v49 = vpop.eup %1509  ;;  %p1560_p11 = scmp.ne.s32.totalorder %s2182_s16, %s1559_s24  ;;  %p1567_p1 = scmp.lt.s32.totalorder %s1565_s29, %s1559_s24 }
 0x393   : > { %v1122_v8 = vmul.f32 %v1510_v49, %v1114_v54  ;;  %v1334_v53 = vmul.f32 -1.442695, %v1046_v55  ;;  %v1047_v56 = vadd.f32 %v1039_v50, %v2032_v40 }
 0x394   : > { %v1512_v52 = vpop.eup %1511  ;;  %p1561_p12 = pnand %p1560_p11, %p1714_p5  ;;  %p1568_p2 = por %p1567_p1, %p1566_p0 }
 0x395   : > { %v1514_v57 = vpop.eup %1513  ;;  %1527 = vtanh.f32 %v1122_v8  ;;  %1154 = vst.msk [vmem:[%s2142_s27 + $0x10] sm:$0xff] %vm403_vm0, %v1122_v8  ;;  %v1123_v38 = vmul.f32 %v1512_v52, %v1115_v58  ;;  %v1335_v60 = vmul.f32 -1.442695, %v1047_v56 }
 0x396   : > { %v1516_v46 = vpop.eup %1515  ;;  %1529 = vpow2.f32 %v1334_v53  ;;  %v1113_v59 = vadd.f32 %v1514_v57, %v1105_v17  ;;  %p1562_p13 = pneg %p1561_p12 }
 0x397   : > { %v1518_v61 = vpop.eup %1517  ;;  %1531 = vtanh.f32 %v1123_v38  ;;  %1155 = vst.msk [vmem:[%s2142_s27 + $0x18] sm:$0xff] %vm403_vm0, %v1123_v38  ;;  %v1120_v40 = vmul.f32 %v1516_v46, %v1112_v41 }
 0x398   : > { %v1076_v28 = vadd.f32 1.0, %v1518_v61  ;;  %1533 = vpow2.f32 %v1335_v60  ;;  %v1520_v48 = vpop.eup %1519  ;;  %p1569_p3 = pnand %p1568_p2, %p1562_p13 }
 0x399   : > { %1535 = vtanh.f32 %v1120_v40  ;;  %1152 = vst.msk [vmem:[%s2142_s27] sm:$0xff] %vm403_vm0, %v1120_v40  ;;  %v1522_v29 = vpop.eup %1521  ;;  %v1121_v63 = vmul.f32 %v1520_v48, %v1113_v59 }
 0x39a   : > { %1537 = vrcp.f32 %v1076_v28  ;;  %v1077_v5 = vadd.f32 1.0, %v1522_v29  ;;  %v1524_v7 = vpop.eup %1523 }
 0x39b   : > { %1539 = vtanh.f32 %v1121_v63  ;;  %1153 = vst.msk [vmem:[%s2142_s27 + $0x8] sm:$0xff] %vm403_vm0, %v1121_v63  ;;  %v1526_v3 = vpop.eup %1525  ;;  %v1116_v10 = vadd.f32 %v1524_v7, %v1108_v12 }
 0x39c   : > { %1541 = vrcp.f32 %v1077_v5  ;;  %v1117_v62 = vadd.f32 %v1526_v3, %v1109_v15 }
 0x39d   : > { %1543 = vtanh.f32 %v1046_v55 }
 0x39e   : > { %1545 = vtanh.f32 %v1047_v56 }
 0x39f   : > { %v1528_v6 = vpop.eup %1527 }
 0x3a0   : > { %v1530_v51 = vpop.eup %1529  ;;  %v1138_v4 = vmul.f32 %v1528_v6, %v1510_v49 }
 0x3a1   : > { %v1532_v11 = vpop.eup %1531  ;;  %v1078_v0 = vadd.f32 1.0, %v1530_v51 }
 0x3a2   : > { %v1534_v13 = vpop.eup %1533  ;;  %1146 = vst.msk [vmem:[%s2157_s14 + $0x10] sm:$0xff] %vm403_vm0, %v1138_v4  ;;  %v1139_v9 = vmul.f32 %v1532_v11, %v1512_v52 }
 0x3a3   : > { %v1536_v19 = vpop.eup %1535  ;;  %1547 = vrcp.f32 %v1078_v0  ;;  %v1079_v44 = vadd.f32 1.0, %v1534_v13 }
 0x3a4   : > { %v1538_v22 = vpop.eup %1537  ;;  %1147 = vst.msk [vmem:[%s2157_s14 + $0x18] sm:$0xff] %vm403_vm0, %v1139_v9  ;;  %v1136_v14 = vmul.f32 %v1536_v19, %v1516_v46 }
 0x3a5   : > { %v1124_v1 = vmul.f32 %v1538_v22, %v1116_v10  ;;  %1549 = vrcp.f32 %v1079_v44  ;;  %v1540_v23 = vpop.eup %1539 }
 0x3a6   : > { %1144 = vst.msk [vmem:[%s2157_s14] sm:$0xff] %vm403_vm0, %v1136_v14  ;;  %v1542_v26 = vpop.eup %1541  ;;  %v1137_v27 = vmul.f32 %v1540_v23, %v1520_v48 }
 0x3a7   : > { %1551 = vtanh.f32 %v1124_v1  ;;  %1156 = vst.msk [vmem:[%s2142_s27 + $0x20] sm:$0xff] %vm403_vm0, %v1124_v1  ;;  %v1125_v18 = vmul.f32 %v1542_v26, %v1117_v62  ;;  %v1544_v30 = vpop.eup %1543 }
 0x3a8   : > { %1145 = vst.msk [vmem:[%s2157_s14 + $0x8] sm:$0xff] %vm403_vm0, %v1137_v27  ;;  %v1546_v2 = vpop.eup %1545  ;;  %v1118_v32 = vadd.f32 %v1544_v30, %v1110_v31 }
 0x3a9   : > { %1553 = vtanh.f32 %v1125_v18  ;;  %1157 = vst.msk [vmem:[%s2142_s27 + $0x28] sm:$0xff] %vm403_vm0, %v1125_v18  ;;  %v1119_v34 = vadd.f32 %v1546_v2, %v1111_v37 }
 0x3ad   : > { %v1548_v33 = vpop.eup %1547 }
 0x3ae   : > { %v1126_v35 = vmul.f32 %v1548_v33, %v1118_v32 }
 0x3af   : > { %v1550_v16 = vpop.eup %1549 }
 0x3b0   : > { %1555 = vtanh.f32 %v1126_v35  ;;  %1158 = vst.msk [vmem:[%s2142_s27 + $0x30] sm:$0xff] %vm403_vm0, %v1126_v35  ;;  %v1127_v24 = vmul.f32 %v1550_v16, %v1119_v34 }
 0x3b1   : > { %v1552_v42 = vpop.eup %1551 }
 0x3b2   : > { %v1140_v20 = vmul.f32 %v1552_v42, %v1538_v22  ;;  %1557 = vtanh.f32 %v1127_v24  ;;  %1159 = vst.msk [vmem:[%s2142_s27 + $0x38] sm:$0xff] %vm403_vm0, %v1127_v24 }
 0x3b3   : > { %1572 = shalt.err (!%p1569_p3)
}
 0x3b4   : > { %s1573_s25 = scalar_lea.hbm %s2180_s23, 1024  ;;  %s1577_s17 = scalar_lea.hbm %s2248_s9, 2048 }
 0x3b5   : > { %p1574_p4 = scmp.ne.s32.totalorder %s2180_s23, %s1573_s25  ;;  %p1578_p9 = scmp.lt.u32.totalorder %s2180_s23, %s2248_s9 }
 0x3b6   : > { %p1579_p10 = scmp.lt.u32.totalorder %s1577_s17, %s1573_s25  ;;  %p1581_p12 = scmp.lt.u32.totalorder %s1573_s25, %s2180_s23 }
 0x3b7   : > { %p1575_p7 = pnand %p1574_p4, %p1714_p5 }
 0x3b8   : > { %p1580_p11 = por %p1579_p10, %p1578_p9 }
 0x3b9   : > { %p1576_p8 = pneg %p1575_p7 }
 0x3ba   : > { %p1582_p13 = por %p1581_p12, %p1580_p11 }
 0x3bc   : > { %p1583_p0 = pnand %p1582_p13, %p1576_p8 }
 0x3be   : > { %1586 = shalt.err (!%p1583_p0)
}
 0x3bf   : > { %s1624_s24 = smov 128   ;;  %s1625_s28 = smov 8   ;;  %v1554_v25 = vpop.eup %1553  ;;  %1148 = vst.msk [vmem:[%s2157_s14 + $0x20] sm:$0xff] %vm403_vm0, %v1140_v20 }
 0x3c0   : > { %1398 = dma.vmem_to_hbm [thread:$0]  (%p1714_p5), %s2182_s16, 1024, %s2180_s23, %s2190_s13, %s1624_s24, %s1624_s24, %s1625_s28   ;;  %v1141_v39 = vmul.f32 %v1554_v25, %v1542_v26  ;;  %v1556_v21 = vpop.eup %1555 }
 0x3c1   : > { %v1142_v45 = vmul.f32 %v1556_v21, %v1548_v33  ;;  %v1558_v36 = vpop.eup %1557 }
 0x3c2   : > { %1149 = vst.msk [vmem:[%s2157_s14 + $0x28] sm:$0xff] %vm403_vm0, %v1141_v39  ;;  %v1143_v47 = vmul.f32 %v1558_v36, %v1550_v16 }
 0x3c3   : > { %1150 = vst.msk [vmem:[%s2157_s14 + $0x30] sm:$0xff] %vm403_vm0, %v1142_v45 }
 0x3c4   : > { %1151 = vst.msk [vmem:[%s2157_s14 + $0x38] sm:$0xff] %vm403_vm0, %v1143_v47 }
 0x3c5 PF: > { %p1404_p1 = scmp.ge.s32.totalorder %s1621_s12, 2  ;;  %s1206_s19 = sand.u32 1, %s1609_s30  }
 0x3c6   : > { %s1207_s16 = scalar_lea.sflag [#allocation3], %s1206_s19 }
 0x3c7   : > { %p1401_p5 = pnand %p1404_p1, %p1718_p6 }
 0x3c9   : > { %1604 = dma.done.wait (!%p1401_p5), %s1207_s16, 1024  }
 0x3ca   : > { %1606 = vsyncadd (!%p1401_p5), %s1207_s16, 4294966272  ;;  %p20_p2 = scmp.ge.s32.totalorder %s1701_s15, 4   ;;  %s2251_s30 = smov %s1613_s10 }
 0x3cb   : > { %s2252_s10 = smov %s1617_s11  ;;  %s2253_s11 = smov %s1712_s18 }
 0x3cc   : > { %s2254_s12 = smov %s1701_s15  ;;  %22 = sbr.rel (!%p20_p2) target bundleno = 3 (0x3), region = 105 }
 0x3d3   :  { %1212 = vsyncpa [#allocation3], 1 }
 0x3d4   :  { %1214 = vsyncpa [#allocation3 + $0x1], 1 }

// kernel: downsample_forward.4
= control target key start
LH: loop header
LB: loop body
LE: loop exit
PB: predicated region body
PF: predicated region fallthrough
CT: control target
= control target key end

     0   :  { %s3852_s30 = smov 0   ;;  %s5635_s0 = inlined_call_operand.vmem [shape: f32[512,32], index: 0, kind: input, shape index: {}]   ;;  %s5636_s1 = inlined_call_operand.vmem [shape: f32[512,32], index: 1, kind: input, shape index: {}]   ;;  %s5637_s2 = inlined_call_operand.vmem [shape: f32[512,32], index: 2, kind: input, shape index: {}]   ;;  %s5638_s3 = inlined_call_operand.vmem [shape: f32[2,32], index: 3, kind: input, shape index: {}]   ;;  %s5639_s4 = inlined_call_operand.vmem [shape: f32[2,32], index: 4, kind: input, shape index: {}]   ;;  %s5640_s5 = inlined_call_operand.vmem [shape: bf16[32,32], index: 5, kind: input, shape index: {}]   ;;  %s5641_s6 = inlined_call_operand.vmem [shape: bf16[32,32], index: 6, kind: input, shape index: {}]   ;;  %s5642_s7 = inlined_call_operand.vmem [shape: f32[1,32], index: 7, kind: input, shape index: {}]   ;;  %s5643_s8 = inlined_call_operand.vmem [shape: f32[512,32], index: 8, kind: output, shape index: {0}]   ;;  %s5644_s9 = inlined_call_operand.vmem [shape: f32[512,32], index: 9, kind: output, shape index: {1}]  }
   0x1 LB: > { %s3068_s10 = sadd.s32 4294967295, %s3800_s30   ;;  %p3072_p0 = scmp.ge.s32.totalorder %s3800_s30, 1  ;;  %s3800_s30 = sphi %s3852_s30, %s20_s30  }
   0x2   : > { %p313_p1 = scmp.lt.s32.totalorder %s3800_s30, 3 }
   0x4   : > { %p314_p2 = pnand %p3072_p0, %p313_p1 }
   0x6   : > { %317 = sbr.rel (%p314_p2) target bundleno = 1072 (0x430), region = 52 }
   0xd   : > { %s3073_s11 = sshll.u32 %s3068_s10, 5  ;;  %vm429_vm0 = vcmask 261120  }
   0xe   : > { %p365_p3 = scmp.lt.s32.totalorder %s3073_s11, 63 }
  0x10   : > { %s5805_s11 = smov (!%p365_p3, %s3073_s11), 63 }
  0x11   : > { %s3860_s12 = sshll.u32 %s5805_s11, 3 }
  0x12   : > { %s3866_s15 = scalar_lea.vmem %s5635_s0, %s3860_s12  ;;  %s3872_s18 = scalar_lea.vmem %s5636_s1, %s3860_s12 }
  0x13   : > { %v3875_v0 = vld [vmem:[%s3866_s15] sm:$0xff]  ;;  %v3881_v2 = vld [vmem:[%s3866_s15 + $0x8] sm:$0xff]  ;;  %v3895_v8 = vld [vmem:[%s3866_s15 + $0x10] sm:$0xff]  ;;  %s5248_s24 = scalar_lea.vmem %s5637_s2, %s3860_s12  ;;  %s5263_s27 = scalar_lea.vmem %s5644_s9, %s3860_s12 }
  0x14   : > { %v3878_v1 = vld [vmem:[%s3872_s18] sm:$0xff]  ;;  %v430_v3 = vsel %vm429_vm0, %v3875_v0, 0.0  ;;  %v3888_v5 = vld [vmem:[%s3872_s18 + $0x8] sm:$0xff]  ;;  %v433_v6 = vsel %vm429_vm0, %v3881_v2, 0.0  ;;  %v3898_v9 = vld [vmem:[%s3866_s15 + $0x18] sm:$0xff]  ;;  %v436_v10 = vsel %vm429_vm0, %v3895_v8, 0.0  ;;  %s5300_s10 = scalar_lea.vmem %s5643_s8, %s3860_s12 }
  0x15   : > { %v951_v4 = vsel %vm429_vm0, %v3878_v1, 0.0  ;;  %431 = vadd.xlane.f32.xlu0 %v430_v3  ;;  %v954_v7 = vsel %vm429_vm0, %v3888_v5, 0.0  ;;  %v439_v11 = vsel %vm429_vm0, %v3898_v9, 0.0  ;;  %v3905_v12 = vld [vmem:[%s3872_s18 + $0x10] sm:$0xff]  ;;  %v3908_v13 = vld [vmem:[%s3872_s18 + $0x18] sm:$0xff]  ;;  %v3915_v16 = vld [vmem:[%s3866_s15 + $0x20] sm:$0xff] }
  0x16   : > { %952 = vadd.xlane.f32.xlu1 %v951_v4  ;;  %v957_v14 = vsel %vm429_vm0, %v3905_v12, 0.0  ;;  %v960_v15 = vsel %vm429_vm0, %v3908_v13, 0.0  ;;  %v3918_v17 = vld [vmem:[%s3866_s15 + $0x28] sm:$0xff]  ;;  %v442_v18 = vsel %vm429_vm0, %v3915_v16, 0.0  ;;  %v3925_v20 = vld [vmem:[%s3872_s18 + $0x20] sm:$0xff]  ;;  %v3935_v24 = vld [vmem:[%s3866_s15 + $0x30] sm:$0xff] }
  0x17   : > { %v445_v19 = vsel %vm429_vm0, %v3918_v17, 0.0  ;;  %v3928_v21 = vld [vmem:[%s3872_s18 + $0x28] sm:$0xff]  ;;  %v963_v22 = vsel %vm429_vm0, %v3925_v20, 0.0  ;;  %v3938_v25 = vld [vmem:[%s3866_s15 + $0x38] sm:$0xff]  ;;  %v448_v26 = vsel %vm429_vm0, %v3935_v24, 0.0  ;;  %v3945_v28 = vld [vmem:[%s3872_s18 + $0x30] sm:$0xff] }
  0x18   : > { %v966_v23 = vsel %vm429_vm0, %v3928_v21, 0.0  ;;  %v451_v27 = vsel %vm429_vm0, %v3938_v25, 0.0  ;;  %v3948_v29 = vld [vmem:[%s3872_s18 + $0x38] sm:$0xff]  ;;  %v969_v30 = vsel %vm429_vm0, %v3945_v28, 0.0  ;;  %v3955_v32 = vld [vmem:[%s3866_s15 + $0x40] sm:$0xff]  ;;  %v3958_v33 = vld [vmem:[%s3866_s15 + $0x48] sm:$0xff] }
  0x19   : > { %434 = vadd.xlane.f32.xlu0 %v433_v6  ;;  %v972_v31 = vsel %vm429_vm0, %v3948_v29, 0.0  ;;  %v454_v34 = vsel %vm429_vm0, %v3955_v32, 0.0  ;;  %v457_v35 = vsel %vm429_vm0, %v3958_v33, 0.0  ;;  %v3965_v36 = vld [vmem:[%s3872_s18 + $0x40] sm:$0xff]  ;;  %v3968_v37 = vld [vmem:[%s3872_s18 + $0x48] sm:$0xff]  ;;  %v3975_v40 = vld [vmem:[%s3866_s15 + $0x50] sm:$0xff] }
  0x1a   : > { %955 = vadd.xlane.f32.xlu1 %v954_v7  ;;  %v975_v38 = vsel %vm429_vm0, %v3965_v36, 0.0  ;;  %v978_v39 = vsel %vm429_vm0, %v3968_v37, 0.0  ;;  %v3978_v41 = vld [vmem:[%s3866_s15 + $0x58] sm:$0xff]  ;;  %v460_v42 = vsel %vm429_vm0, %v3975_v40, 0.0  ;;  %v3985_v44 = vld [vmem:[%s3872_s18 + $0x50] sm:$0xff]  ;;  %v3995_v48 = vld [vmem:[%s3866_s15 + $0x60] sm:$0xff] }
  0x1b   : > { %v463_v43 = vsel %vm429_vm0, %v3978_v41, 0.0  ;;  %v3988_v45 = vld [vmem:[%s3872_s18 + $0x58] sm:$0xff]  ;;  %v981_v46 = vsel %vm429_vm0, %v3985_v44, 0.0  ;;  %v3998_v49 = vld [vmem:[%s3866_s15 + $0x68] sm:$0xff]  ;;  %v466_v50 = vsel %vm429_vm0, %v3995_v48, 0.0  ;;  %v4005_v52 = vld [vmem:[%s3872_s18 + $0x60] sm:$0xff] }
  0x1c   : > { %v984_v47 = vsel %vm429_vm0, %v3988_v45, 0.0  ;;  %v469_v51 = vsel %vm429_vm0, %v3998_v49, 0.0  ;;  %v4008_v53 = vld [vmem:[%s3872_s18 + $0x68] sm:$0xff]  ;;  %v987_v54 = vsel %vm429_vm0, %v4005_v52, 0.0  ;;  %v4015_v56 = vld [vmem:[%s3866_s15 + $0x70] sm:$0xff]  ;;  %v4018_v57 = vld [vmem:[%s3866_s15 + $0x78] sm:$0xff] }
  0x1d   : > { %437 = vadd.xlane.f32.xlu0 %v436_v10  ;;  %v990_v55 = vsel %vm429_vm0, %v4008_v53, 0.0  ;;  %v472_v58 = vsel %vm429_vm0, %v4015_v56, 0.0  ;;  %v475_v59 = vsel %vm429_vm0, %v4018_v57, 0.0  ;;  %v4025_v60 = vld [vmem:[%s3872_s18 + $0x70] sm:$0xff]  ;;  %v4028_v61 = vld [vmem:[%s3872_s18 + $0x78] sm:$0xff]  ;;  %v4035_v3 = vld [vmem:[%s3866_s15 + $0x80] sm:$0xff] }
  0x1e   : > { %440 = vadd.xlane.f32.xlu1 %v439_v11  ;;  %v993_v62 = vsel %vm429_vm0, %v4025_v60, 0.0  ;;  %v996_v63 = vsel %vm429_vm0, %v4028_v61, 0.0  ;;  %v4038_v4 = vld [vmem:[%s3866_s15 + $0x88] sm:$0xff]  ;;  %v478_v6 = vsel %vm429_vm0, %v4035_v3, 0.0  ;;  %v4045_v10 = vld [vmem:[%s3872_s18 + $0x80] sm:$0xff] }
  0x1f   : > { %v481_v7 = vsel %vm429_vm0, %v4038_v4, 0.0  ;;  %v4048_v11 = vld [vmem:[%s3872_s18 + $0x88] sm:$0xff] }
  0x21   : > { %958 = vadd.xlane.f32.xlu0 %v957_v14  ;;  %v999_v14 = vsel %vm429_vm0, %v4045_v10, 0.0 }
  0x22   : > { %961 = vadd.xlane.f32.xlu1 %v960_v15  ;;  %v1002_v15 = vsel %vm429_vm0, %v4048_v11, 0.0 }
  0x25   : > { %443 = vadd.xlane.f32.xlu0 %v442_v18  ;;  %v4055_v18 = vld [vmem:[%s3866_s15 + $0x90] sm:$0xff] }
  0x26   : > { %446 = vadd.xlane.f32.xlu1 %v445_v19  ;;  %v4058_v19 = vld [vmem:[%s3866_s15 + $0x98] sm:$0xff] }
  0x29   : > { %964 = vadd.xlane.f32.xlu0 %v963_v22  ;;  %v484_v22 = vsel %vm429_vm0, %v4055_v18, 0.0 }
  0x2a   : > { %967 = vadd.xlane.f32.xlu1 %v966_v23  ;;  %v487_v23 = vsel %vm429_vm0, %v4058_v19, 0.0 }
  0x2d   : > { %449 = vadd.xlane.f32.xlu0 %v448_v26  ;;  %v4065_v26 = vld [vmem:[%s3872_s18 + $0x90] sm:$0xff] }
  0x2e   : > { %452 = vadd.xlane.f32.xlu1 %v451_v27  ;;  %v4068_v27 = vld [vmem:[%s3872_s18 + $0x98] sm:$0xff] }
  0x31   : > { %970 = vadd.xlane.f32.xlu0 %v969_v30  ;;  %v1005_v30 = vsel %vm429_vm0, %v4065_v26, 0.0 }
  0x32   : > { %973 = vadd.xlane.f32.xlu1 %v972_v31  ;;  %v1008_v31 = vsel %vm429_vm0, %v4068_v27, 0.0 }
  0x35   : > { %455 = vadd.xlane.f32.xlu0 %v454_v34  ;;  %v4075_v34 = vld [vmem:[%s3866_s15 + $0xa0] sm:$0xff] }
  0x36   : > { %458 = vadd.xlane.f32.xlu1 %v457_v35  ;;  %v4078_v35 = vld [vmem:[%s3866_s15 + $0xa8] sm:$0xff] }
  0x39   : > { %976 = vadd.xlane.f32.xlu0 %v975_v38  ;;  %v490_v38 = vsel %vm429_vm0, %v4075_v34, 0.0 }
  0x3a   : > { %979 = vadd.xlane.f32.xlu1 %v978_v39  ;;  %v493_v39 = vsel %vm429_vm0, %v4078_v35, 0.0 }
  0x3d   : > { %461 = vadd.xlane.f32.xlu0 %v460_v42  ;;  %v4085_v42 = vld [vmem:[%s3872_s18 + $0xa0] sm:$0xff] }
  0x3e   : > { %464 = vadd.xlane.f32.xlu1 %v463_v43  ;;  %v4088_v43 = vld [vmem:[%s3872_s18 + $0xa8] sm:$0xff] }
  0x41   : > { %982 = vadd.xlane.f32.xlu0 %v981_v46  ;;  %v1011_v46 = vsel %vm429_vm0, %v4085_v42, 0.0 }
  0x42   : > { %985 = vadd.xlane.f32.xlu1 %v984_v47  ;;  %v1014_v47 = vsel %vm429_vm0, %v4088_v43, 0.0 }
  0x45   : > { %467 = vadd.xlane.f32.xlu0 %v466_v50  ;;  %v4095_v50 = vld [vmem:[%s3866_s15 + $0xb0] sm:$0xff] }
  0x46   : > { %470 = vadd.xlane.f32.xlu1 %v469_v51  ;;  %v4098_v51 = vld [vmem:[%s3866_s15 + $0xb8] sm:$0xff] }
  0x49   : > { %988 = vadd.xlane.f32.xlu0 %v987_v54  ;;  %v496_v54 = vsel %vm429_vm0, %v4095_v50, 0.0 }
  0x4a   : > { %991 = vadd.xlane.f32.xlu1 %v990_v55  ;;  %v499_v55 = vsel %vm429_vm0, %v4098_v51, 0.0 }
  0x4d   : > { %473 = vadd.xlane.f32.xlu0 %v472_v58  ;;  %v4105_v58 = vld [vmem:[%s3872_s18 + $0xb0] sm:$0xff] }
  0x4e   : > { %476 = vadd.xlane.f32.xlu1 %v475_v59  ;;  %v4108_v59 = vld [vmem:[%s3872_s18 + $0xb8] sm:$0xff] }
  0x51   : > { %994 = vadd.xlane.f32.xlu0 %v993_v62  ;;  %v1017_v62 = vsel %vm429_vm0, %v4105_v58, 0.0 }
  0x52   : > { %997 = vadd.xlane.f32.xlu1 %v996_v63  ;;  %v1020_v63 = vsel %vm429_vm0, %v4108_v59, 0.0 }
  0x55   : > { %479 = vadd.xlane.f32.xlu0 %v478_v6  ;;  %v4115_v6 = vld [vmem:[%s3866_s15 + $0xc0] sm:$0xff] }
  0x56   : > { %482 = vadd.xlane.f32.xlu1 %v481_v7  ;;  %v4118_v7 = vld [vmem:[%s3866_s15 + $0xc8] sm:$0xff] }
  0x59   : > { %1000 = vadd.xlane.f32.xlu0 %v999_v14  ;;  %v502_v14 = vsel %vm429_vm0, %v4115_v6, 0.0 }
  0x5a   : > { %1003 = vadd.xlane.f32.xlu1 %v1002_v15  ;;  %v505_v15 = vsel %vm429_vm0, %v4118_v7, 0.0 }
  0x5d   : > { %485 = vadd.xlane.f32.xlu0 %v484_v22  ;;  %v4125_v22 = vld [vmem:[%s3872_s18 + $0xc0] sm:$0xff] }
  0x5e   : > { %488 = vadd.xlane.f32.xlu1 %v487_v23  ;;  %5698 = vst [vmem:[#allocation2_spill] sm:$0xff] %v4125_v22  ;;  %v4128_v23 = vld [vmem:[%s3872_s18 + $0xc8] sm:$0xff] }
  0x5f   : > { %5699 = vst [vmem:[#allocation3_spill] sm:$0xff] %v4128_v23 }
  0x61   : > { %1006 = vadd.xlane.f32.xlu0 %v1005_v30  ;;  %v1023_v30 = vsel %vm429_vm0, %v4125_v22, 0.0 }
  0x62   : > { %1009 = vadd.xlane.f32.xlu1 %v1008_v31  ;;  %v1026_v31 = vsel %vm429_vm0, %v4128_v23, 0.0 }
  0x65   : > { %491 = vadd.xlane.f32.xlu0 %v490_v38  ;;  %v4135_v38 = vld [vmem:[%s3866_s15 + $0xd0] sm:$0xff] }
  0x66   : > { %494 = vadd.xlane.f32.xlu1 %v493_v39  ;;  %5700 = vst [vmem:[#allocation4_spill] sm:$0xff] %v4135_v38  ;;  %v4138_v39 = vld [vmem:[%s3866_s15 + $0xd8] sm:$0xff] }
  0x67   : > { %5701 = vst [vmem:[#allocation5_spill] sm:$0xff] %v4138_v39 }
  0x69   : > { %1012 = vadd.xlane.f32.xlu0 %v1011_v46  ;;  %v508_v46 = vsel %vm429_vm0, %v4135_v38, 0.0 }
  0x6a   : > { %1015 = vadd.xlane.f32.xlu1 %v1014_v47  ;;  %v511_v47 = vsel %vm429_vm0, %v4138_v39, 0.0 }
  0x6d   : > { %497 = vadd.xlane.f32.xlu0 %v496_v54  ;;  %v4145_v54 = vld [vmem:[%s3872_s18 + $0xd0] sm:$0xff] }
  0x6e   : > { %500 = vadd.xlane.f32.xlu1 %v499_v55  ;;  %5702 = vst [vmem:[#allocation6_spill] sm:$0xff] %v4145_v54  ;;  %v4148_v55 = vld [vmem:[%s3872_s18 + $0xd8] sm:$0xff] }
  0x6f   : > { %5703 = vst [vmem:[#allocation7_spill] sm:$0xff] %v4148_v55 }
  0x71   : > { %1018 = vadd.xlane.f32.xlu0 %v1017_v62  ;;  %v1029_v62 = vsel %vm429_vm0, %v4145_v54, 0.0  ;;  %v4178_v54 = vld [vmem:[%s3866_s15 + $0xf8] sm:$0xff] }
  0x72   : > { %1021 = vadd.xlane.f32.xlu1 %v1020_v63  ;;  %v1032_v63 = vsel %vm429_vm0, %v4148_v55, 0.0  ;;  %5709 = vst [vmem:[#allocation13_spill] sm:$0xff] %v4178_v54 }
  0x75   : > { %503 = vadd.xlane.f32.xlu0 %v502_v14  ;;  %v4155_v14 = vld [vmem:[%s3866_s15 + $0xe0] sm:$0xff] }
  0x76   : > { %506 = vadd.xlane.f32.xlu1 %v505_v15  ;;  %5704 = vst [vmem:[#allocation8_spill] sm:$0xff] %v4155_v14  ;;  %v4158_v15 = vld [vmem:[%s3866_s15 + $0xe8] sm:$0xff] }
  0x77   : > { %5705 = vst [vmem:[#allocation9_spill] sm:$0xff] %v4158_v15 }
  0x79   : > { %1024 = vadd.xlane.f32.xlu0 %v1023_v30  ;;  %v514_v30 = vsel %vm429_vm0, %v4155_v14, 0.0  ;;  %v523_v14 = vsel %vm429_vm0, %v4178_v54, 0.0 }
  0x7a   : > { %1027 = vadd.xlane.f32.xlu1 %v1026_v31  ;;  %v517_v31 = vsel %vm429_vm0, %v4158_v15, 0.0 }
  0x7d   : > { %509 = vadd.xlane.f32.xlu0 %v508_v46  ;;  %v4165_v46 = vld [vmem:[%s3872_s18 + $0xe0] sm:$0xff] }
  0x7e   : > { %512 = vadd.xlane.f32.xlu1 %v511_v47  ;;  %5706 = vst [vmem:[#allocation10_spill] sm:$0xff] %v4165_v46  ;;  %v4168_v47 = vld [vmem:[%s3872_s18 + $0xe8] sm:$0xff]  ;;  %v1035_v55 = vsel %vm429_vm0, %v4165_v46, 0.0 }
  0x7f   : > { %5707 = vst [vmem:[#allocation11_spill] sm:$0xff] %v4168_v47 }
  0x81   : > { %1030 = vadd.xlane.f32.xlu0 %v1029_v62  ;;  %v1038_v62 = vsel %vm429_vm0, %v4168_v47, 0.0 }
  0x82   : > { %1033 = vadd.xlane.f32.xlu1 %v1032_v63  ;;  %v4175_v63 = vld [vmem:[%s3866_s15 + $0xf0] sm:$0xff] }
  0x83   : > { %5708 = vst [vmem:[#allocation12_spill] sm:$0xff] %v4175_v63  ;;  %v520_v15 = vsel %vm429_vm0, %v4175_v63, 0.0 }
  0x85   : > { %515 = vadd.xlane.f32.xlu0 %v514_v30  ;;  %v4185_v30 = vld [vmem:[%s3872_s18 + $0xf0] sm:$0xff] }
  0x86   : > { %518 = vadd.xlane.f32.xlu1 %v517_v31  ;;  %5710 = vst [vmem:[#allocation14_spill] sm:$0xff] %v4185_v30  ;;  %v4188_v31 = vld [vmem:[%s3872_s18 + $0xf8] sm:$0xff]  ;;  %v1041_v47 = vsel %vm429_vm0, %v4185_v30, 0.0 }
  0x87   : > { %v1044_v46 = vsel %vm429_vm0, %v4188_v31, 0.0 }
  0x89   : > { %1036 = vadd.xlane.f32.xlu0 %v1035_v55 }
  0x8a   : > { %1039 = vadd.xlane.f32.xlu1 %v1038_v62 }
  0x8d   : > { %521 = vadd.xlane.f32.xlu0 %v520_v15 }
  0x8e   : > { %524 = vadd.xlane.f32.xlu1 %v523_v14 }
  0x91   : > { %1042 = vadd.xlane.f32.xlu0 %v1041_v47 }
  0x92   : > { %1045 = vadd.xlane.f32.xlu1 %v1044_v46 }
  0xa2   : > { %v432_v55 = vpop.xlane.xlu0 %431 }
  0xa3   : > { %v953_v62 = vpop.xlane.xlu1 %952  ;;  %v527_v63 = vmul.f32 0.03125, %v432_v55 }
  0xa4   : > { %v1047_v39 = vmul.f32 0.03125, %v953_v62 }
  0xa5   : > { %v4195_v54 = vsub.f32 %v3875_v0, %v527_v63 }
  0xa6   : > { %v4198_v38 = vsub.f32 %v3878_v1, %v1047_v39  ;;  %v435_v15 = vpop.xlane.xlu0 %434 }
  0xa7   : > { %v956_v14 = vpop.xlane.xlu1 %955  ;;  %v528_v23 = vmul.f32 0.03125, %v435_v15  ;;  %v591_v30 = vmul.f32 %v4195_v54, %v4195_v54 }
  0xa8   : > { %5711 = vst [vmem:[#allocation15_spill] sm:$0xff] %v4198_v38  ;;  %v1048_v22 = vmul.f32 0.03125, %v956_v14  ;;  %v1111_v46 = vmul.f32 %v4198_v38, %v4198_v38 }
  0xa9   : > { %v4205_v47 = vsub.f32 %v3881_v2, %v528_v23  ;;  %v623_v0 = vsel %vm429_vm0, %v591_v30, 0.0 }
  0xaa   : > { %v4208_v55 = vsub.f32 %v3888_v5, %v1048_v22  ;;  %624 = vadd.xlane.f32.xlu0 %v623_v0  ;;  %v438_v1 = vpop.xlane.xlu0 %437  ;;  %v1143_v63 = vsel %vm429_vm0, %v1111_v46, 0.0 }
  0xab   : > { %v441_v39 = vpop.xlane.xlu1 %440  ;;  %v529_v62 = vmul.f32 0.03125, %v438_v1  ;;  %v592_v14 = vmul.f32 %v4205_v47, %v4205_v47 }
  0xac   : > { %v530_v15 = vmul.f32 0.03125, %v441_v39  ;;  %v1112_v38 = vmul.f32 %v4208_v55, %v4208_v55 }
  0xad   : > { %v4217_v2 = vsub.f32 %v3895_v8, %v529_v62  ;;  %v626_v22 = vsel %vm429_vm0, %v592_v14, 0.0 }
  0xae   : > { %v4220_v5 = vsub.f32 %v3898_v9, %v530_v15  ;;  %1144 = vadd.xlane.f32.xlu0 %v1143_v63  ;;  %627 = vadd.xlane.f32.xlu1 %v626_v22  ;;  %v959_v23 = vpop.xlane.xlu0 %958  ;;  %v1146_v46 = vsel %vm429_vm0, %v1112_v38, 0.0 }
  0xaf   : > { %v962_v30 = vpop.xlane.xlu1 %961  ;;  %v1049_v0 = vmul.f32 0.03125, %v959_v23  ;;  %v593_v39 = vmul.f32 %v4217_v2, %v4217_v2 }
  0xb0   : > { %v1050_v1 = vmul.f32 0.03125, %v962_v30  ;;  %v594_v8 = vmul.f32 %v4220_v5, %v4220_v5 }
  0xb1   : > { %v4229_v62 = vsub.f32 %v3905_v12, %v1049_v0  ;;  %v629_v63 = vsel %vm429_vm0, %v593_v39, 0.0 }
  0xb2   : > { %v4232_v9 = vsub.f32 %v3908_v13, %v1050_v1  ;;  %1147 = vadd.xlane.f32.xlu1 %v1146_v46  ;;  %630 = vadd.xlane.f32.xlu0 %v629_v63  ;;  %v444_v15 = vpop.xlane.xlu0 %443  ;;  %v632_v14 = vsel %vm429_vm0, %v594_v8, 0.0 }
  0xb3   : > { %v447_v38 = vpop.xlane.xlu1 %446  ;;  %v531_v22 = vmul.f32 0.03125, %v444_v15  ;;  %v1113_v30 = vmul.f32 %v4229_v62, %v4229_v62 }
  0xb4   : > { %v532_v23 = vmul.f32 0.03125, %v447_v38  ;;  %v1114_v12 = vmul.f32 %v4232_v9, %v4232_v9 }
  0xb5   : > { %v4241_v0 = vsub.f32 %v3915_v16, %v531_v22  ;;  %v1149_v46 = vsel %vm429_vm0, %v1113_v30, 0.0 }
  0xb6   : > { %v4244_v13 = vsub.f32 %v3918_v17, %v532_v23  ;;  %633 = vadd.xlane.f32.xlu1 %v632_v14  ;;  %1150 = vadd.xlane.f32.xlu0 %v1149_v46  ;;  %v965_v1 = vpop.xlane.xlu0 %964  ;;  %v1152_v8 = vsel %vm429_vm0, %v1114_v12, 0.0 }
  0xb7   : > { %v968_v39 = vpop.xlane.xlu1 %967  ;;  %v1051_v63 = vmul.f32 0.03125, %v965_v1  ;;  %v595_v38 = vmul.f32 %v4241_v0, %v4241_v0 }
  0xb8   : > { %v1052_v15 = vmul.f32 0.03125, %v968_v39  ;;  %v596_v16 = vmul.f32 %v4244_v13, %v4244_v13 }
  0xb9   : > { %v4253_v22 = vsub.f32 %v3925_v20, %v1051_v63  ;;  %v635_v14 = vsel %vm429_vm0, %v595_v38, 0.0 }
  0xba   : > { %v4256_v17 = vsub.f32 %v3928_v21, %v1052_v15  ;;  %1153 = vadd.xlane.f32.xlu1 %v1152_v8  ;;  %636 = vadd.xlane.f32.xlu0 %v635_v14  ;;  %v450_v23 = vpop.xlane.xlu0 %449  ;;  %v638_v12 = vsel %vm429_vm0, %v596_v16, 0.0 }
  0xbb   : > { %v453_v30 = vpop.xlane.xlu1 %452  ;;  %v533_v46 = vmul.f32 0.03125, %v450_v23  ;;  %v1115_v39 = vmul.f32 %v4253_v22, %v4253_v22 }
  0xbc   : > { %v534_v1 = vmul.f32 0.03125, %v453_v30  ;;  %v1116_v20 = vmul.f32 %v4256_v17, %v4256_v17 }
  0xbd   : > { %v4265_v63 = vsub.f32 %v3935_v24, %v533_v46  ;;  %v1155_v8 = vsel %vm429_vm0, %v1115_v39, 0.0 }
  0xbe   : > { %v4268_v21 = vsub.f32 %v3938_v25, %v534_v1  ;;  %639 = vadd.xlane.f32.xlu1 %v638_v12  ;;  %1156 = vadd.xlane.f32.xlu0 %v1155_v8  ;;  %v971_v15 = vpop.xlane.xlu0 %970  ;;  %v1158_v16 = vsel %vm429_vm0, %v1116_v20, 0.0 }
  0xbf   : > { %v974_v38 = vpop.xlane.xlu1 %973  ;;  %v1053_v14 = vmul.f32 0.03125, %v971_v15  ;;  %v597_v30 = vmul.f32 %v4265_v63, %v4265_v63 }
  0xc0   : > { %v1054_v23 = vmul.f32 0.03125, %v974_v38  ;;  %v598_v24 = vmul.f32 %v4268_v21, %v4268_v21 }
  0xc1   : > { %v4277_v46 = vsub.f32 %v3945_v28, %v1053_v14  ;;  %v641_v12 = vsel %vm429_vm0, %v597_v30, 0.0 }
  0xc2   : > { %v4280_v25 = vsub.f32 %v3948_v29, %v1054_v23  ;;  %1159 = vadd.xlane.f32.xlu1 %v1158_v16  ;;  %642 = vadd.xlane.f32.xlu0 %v641_v12  ;;  %v456_v1 = vpop.xlane.xlu0 %455  ;;  %v644_v20 = vsel %vm429_vm0, %v598_v24, 0.0 }
  0xc3   : > { %v459_v39 = vpop.xlane.xlu1 %458  ;;  %v535_v8 = vmul.f32 0.03125, %v456_v1  ;;  %v1117_v38 = vmul.f32 %v4277_v46, %v4277_v46 }
  0xc4   : > { %v536_v15 = vmul.f32 0.03125, %v459_v39  ;;  %v1118_v28 = vmul.f32 %v4280_v25, %v4280_v25 }
  0xc5   : > { %v4289_v14 = vsub.f32 %v3955_v32, %v535_v8  ;;  %v1161_v16 = vsel %vm429_vm0, %v1117_v38, 0.0 }
  0xc6   : > { %v4292_v29 = vsub.f32 %v3958_v33, %v536_v15  ;;  %645 = vadd.xlane.f32.xlu1 %v644_v20  ;;  %1162 = vadd.xlane.f32.xlu0 %v1161_v16  ;;  %v977_v23 = vpop.xlane.xlu0 %976  ;;  %v1164_v24 = vsel %vm429_vm0, %v1118_v28, 0.0 }
  0xc7   : > { %v980_v30 = vpop.xlane.xlu1 %979  ;;  %v1055_v12 = vmul.f32 0.03125, %v977_v23  ;;  %v599_v39 = vmul.f32 %v4289_v14, %v4289_v14 }
  0xc8   : > { %v1056_v1 = vmul.f32 0.03125, %v980_v30  ;;  %v600_v32 = vmul.f32 %v4292_v29, %v4292_v29 }
  0xc9   : > { %v4301_v8 = vsub.f32 %v3965_v36, %v1055_v12  ;;  %v647_v20 = vsel %vm429_vm0, %v599_v39, 0.0 }
  0xca   : > { %v4304_v33 = vsub.f32 %v3968_v37, %v1056_v1  ;;  %1165 = vadd.xlane.f32.xlu1 %v1164_v24  ;;  %648 = vadd.xlane.f32.xlu0 %v647_v20  ;;  %v462_v15 = vpop.xlane.xlu0 %461  ;;  %v650_v28 = vsel %vm429_vm0, %v600_v32, 0.0 }
  0xcb   : > { %v465_v38 = vpop.xlane.xlu1 %464  ;;  %v537_v16 = vmul.f32 0.03125, %v462_v15  ;;  %v1119_v30 = vmul.f32 %v4301_v8, %v4301_v8 }
  0xcc   : > { %v538_v23 = vmul.f32 0.03125, %v465_v38  ;;  %v1120_v36 = vmul.f32 %v4304_v33, %v4304_v33 }
  0xcd   : > { %v4313_v12 = vsub.f32 %v3975_v40, %v537_v16  ;;  %v1167_v24 = vsel %vm429_vm0, %v1119_v30, 0.0 }
  0xce   : > { %v4316_v37 = vsub.f32 %v3978_v41, %v538_v23  ;;  %651 = vadd.xlane.f32.xlu1 %v650_v28  ;;  %1168 = vadd.xlane.f32.xlu0 %v1167_v24  ;;  %v983_v1 = vpop.xlane.xlu0 %982  ;;  %v1170_v32 = vsel %vm429_vm0, %v1120_v36, 0.0  ;;  %v3306_v24 = vld [vmem:[%s5640_s5] sm:$0xff]  }
  0xcf   : > { %v986_v39 = vpop.xlane.xlu1 %985  ;;  %v1057_v20 = vmul.f32 0.03125, %v983_v1  ;;  %v601_v38 = vmul.f32 %v4313_v12, %v4313_v12  ;;  %3230 = vmatprep.subr.bf16.mxu0 %v3306_v24 }
  0xd0   : > { %v1058_v15 = vmul.f32 0.03125, %v986_v39  ;;  %v602_v40 = vmul.f32 %v4316_v37, %v4316_v37  ;;  %3231 = vmatpush3.bf16.msra.mxu0 %v3306_v24 }
  0xd1   : > { %v4325_v16 = vsub.f32 %v3985_v44, %v1057_v20  ;;  %v653_v28 = vsel %vm429_vm0, %v601_v38, 0.0 }
  0xd2   : > { %v4328_v41 = vsub.f32 %v3988_v45, %v1058_v15  ;;  %1171 = vadd.xlane.f32.xlu1 %v1170_v32  ;;  %654 = vadd.xlane.f32.xlu0 %v653_v28  ;;  %v468_v23 = vpop.xlane.xlu0 %467  ;;  %v656_v36 = vsel %vm429_vm0, %v602_v40, 0.0 }
  0xd3   : > { %v471_v30 = vpop.xlane.xlu1 %470  ;;  %v539_v1 = vmul.f32 0.03125, %v468_v23  ;;  %v1121_v44 = vmul.f32 %v4325_v16, %v4325_v16  ;;  %v3307_v23 = vld [vmem:[%s5641_s6] sm:$0xff]  }
  0xd4   : > { %v540_v39 = vmul.f32 0.03125, %v471_v30  ;;  %v1122_v45 = vmul.f32 %v4328_v41, %v4328_v41  ;;  %3194 = vmatprep.subr.bf16.mxu1 %v3307_v23 }
  0xd5   : > { %v4340_v32 = vsub.f32 %v3995_v48, %v539_v1  ;;  %v1173_v15 = vsel %vm429_vm0, %v1121_v44, 0.0  ;;  %v3308_v48 = vld [vmem:[%s5640_s5 + $0x8] sm:$0xff]   ;;  %3195 = vmatpush3.bf16.msra.mxu1 %v3307_v23 }
  0xd6   : > { %v4343_v20 = vsub.f32 %v3998_v49, %v540_v39  ;;  %657 = vadd.xlane.f32.xlu1 %v656_v36  ;;  %1174 = vadd.xlane.f32.xlu0 %v1173_v15  ;;  %v989_v38 = vpop.xlane.xlu0 %988  ;;  %v1176_v28 = vsel %vm429_vm0, %v1122_v45, 0.0 }
  0xd7   : > { %v992_v40 = vpop.xlane.xlu1 %991  ;;  %v1059_v30 = vmul.f32 0.03125, %v989_v38  ;;  %v603_v1 = vmul.f32 %v4340_v32, %v4340_v32  ;;  %3232 = vmatprep.subr.bf16.mxu0 %v3308_v48 }
  0xd8   : > { %5712 = vst [vmem:[#allocation16_spill] sm:$0xff] %v4343_v20  ;;  %v1060_v49 = vmul.f32 0.03125, %v992_v40  ;;  %v604_v36 = vmul.f32 %v4343_v20, %v4343_v20  ;;  %3233 = vmatpush3.bf16.msra.mxu0 %v3308_v48  ;;  %v3309_v40 = vld [vmem:[%s5641_s6 + $0x8] sm:$0xff]  }
  0xd9   : > { %v4358_v24 = vsub.f32 %v4005_v52, %v1059_v30  ;;  %v659_v44 = vsel %vm429_vm0, %v603_v1, 0.0  ;;  %3196 = vmatprep.subr.bf16.mxu1 %v3309_v40 }
  0xda   : > { %v4361_v39 = vsub.f32 %v4008_v53, %v1060_v49  ;;  %1177 = vadd.xlane.f32.xlu1 %v1176_v28  ;;  %660 = vadd.xlane.f32.xlu0 %v659_v44  ;;  %v474_v45 = vpop.xlane.xlu0 %473  ;;  %v662_v38 = vsel %vm429_vm0, %v604_v36, 0.0 }
  0xdb   : > { %v477_v15 = vpop.xlane.xlu1 %476  ;;  %v541_v20 = vmul.f32 0.03125, %v474_v45  ;;  %v1123_v53 = vmul.f32 %v4358_v24, %v4358_v24  ;;  %3197 = vmatpush3.bf16.msra.mxu1 %v3309_v40 }
  0xdc   : > { %v542_v52 = vmul.f32 0.03125, %v477_v15  ;;  %v1124_v30 = vmul.f32 %v4361_v39, %v4361_v39 }
  0xdd   : > { %v4373_v28 = vsub.f32 %v4015_v56, %v541_v20  ;;  %v1179_v48 = vsel %vm429_vm0, %v1123_v53, 0.0 }
  0xde   : > { %v4376_v23 = vsub.f32 %v4018_v57, %v542_v52  ;;  %663 = vadd.xlane.f32.xlu1 %v662_v38  ;;  %1180 = vadd.xlane.f32.xlu0 %v1179_v48  ;;  %v995_v49 = vpop.xlane.xlu0 %994  ;;  %v1182_v36 = vsel %vm429_vm0, %v1124_v30, 0.0 }
  0xdf   : > { %v998_v1 = vpop.xlane.xlu1 %997  ;;  %v1061_v44 = vmul.f32 0.03125, %v995_v49  ;;  %v605_v15 = vmul.f32 %v4373_v28, %v4373_v28 }
  0xe0   : > { %v1062_v45 = vmul.f32 0.03125, %v998_v1  ;;  %v606_v56 = vmul.f32 %v4376_v23, %v4376_v23 }
  0xe1   : > { %v4385_v57 = vsub.f32 %v4025_v60, %v1061_v44  ;;  %v665_v38 = vsel %vm429_vm0, %v605_v15, 0.0 }
  0xe2   : > { %v4388_v20 = vsub.f32 %v4028_v61, %v1062_v45  ;;  %1183 = vadd.xlane.f32.xlu1 %v1182_v36  ;;  %666 = vadd.xlane.f32.xlu0 %v665_v38  ;;  %v480_v40 = vpop.xlane.xlu0 %479  ;;  %v668_v53 = vsel %vm429_vm0, %v606_v56, 0.0 }
  0xe3   : > { %v483_v52 = vpop.xlane.xlu1 %482  ;;  %v543_v30 = vmul.f32 0.03125, %v480_v40  ;;  %v1125_v49 = vmul.f32 %v4385_v57, %v4385_v57 }
  0xe4   : > { %v544_v48 = vmul.f32 0.03125, %v483_v52  ;;  %v1126_v60 = vmul.f32 %v4388_v20, %v4388_v20 }
  0xe5   : > { %v4397_v1 = vsub.f32 %v4035_v3, %v543_v30  ;;  %v1185_v36 = vsel %vm429_vm0, %v1125_v49, 0.0 }
  0xe6   : > { %v4400_v61 = vsub.f32 %v4038_v4, %v544_v48  ;;  %669 = vadd.xlane.f32.xlu1 %v668_v53  ;;  %1186 = vadd.xlane.f32.xlu0 %v1185_v36  ;;  %v1001_v44 = vpop.xlane.xlu0 %1000  ;;  %v1188_v15 = vsel %vm429_vm0, %v1126_v60, 0.0 }
  0xe7   : > { %v1004_v45 = vpop.xlane.xlu1 %1003  ;;  %v1063_v56 = vmul.f32 0.03125, %v1001_v44  ;;  %v607_v40 = vmul.f32 %v4397_v1, %v4397_v1 }
  0xe8   : > { %v1064_v38 = vmul.f32 0.03125, %v1004_v45  ;;  %v608_v3 = vmul.f32 %v4400_v61, %v4400_v61 }
  0xe9   : > { %v4409_v52 = vsub.f32 %v4045_v10, %v1063_v56  ;;  %v671_v53 = vsel %vm429_vm0, %v607_v40, 0.0 }
  0xea   : > { %v4412_v4 = vsub.f32 %v4048_v11, %v1064_v38  ;;  %1189 = vadd.xlane.f32.xlu1 %v1188_v15  ;;  %672 = vadd.xlane.f32.xlu0 %v671_v53  ;;  %v486_v30 = vpop.xlane.xlu0 %485  ;;  %v674_v49 = vsel %vm429_vm0, %v608_v3, 0.0 }
  0xeb   : > { %v489_v48 = vpop.xlane.xlu1 %488  ;;  %v545_v60 = vmul.f32 0.03125, %v486_v30  ;;  %v1127_v44 = vmul.f32 %v4409_v52, %v4409_v52 }
  0xec   : > { %v546_v36 = vmul.f32 0.03125, %v489_v48  ;;  %v1128_v10 = vmul.f32 %v4412_v4, %v4412_v4 }
  0xed   : > { %v4421_v45 = vsub.f32 %v4055_v18, %v545_v60  ;;  %v1191_v15 = vsel %vm429_vm0, %v1127_v44, 0.0 }
  0xee   : > { %v4424_v11 = vsub.f32 %v4058_v19, %v546_v36  ;;  %675 = vadd.xlane.f32.xlu1 %v674_v49  ;;  %1192 = vadd.xlane.f32.xlu0 %v1191_v15  ;;  %v1007_v56 = vpop.xlane.xlu0 %1006  ;;  %v1194_v40 = vsel %vm429_vm0, %v1128_v10, 0.0 }
  0xef   : > { %v1010_v38 = vpop.xlane.xlu1 %1009  ;;  %v1065_v3 = vmul.f32 0.03125, %v1007_v56  ;;  %v609_v30 = vmul.f32 %v4421_v45, %v4421_v45 }
  0xf0   : > { %v1066_v53 = vmul.f32 0.03125, %v1010_v38  ;;  %v610_v18 = vmul.f32 %v4424_v11, %v4424_v11 }
  0xf1   : > { %v4433_v48 = vsub.f32 %v4065_v26, %v1065_v3  ;;  %v677_v49 = vsel %vm429_vm0, %v609_v30, 0.0 }
  0xf2   : > { %v4436_v19 = vsub.f32 %v4068_v27, %v1066_v53  ;;  %1195 = vadd.xlane.f32.xlu1 %v1194_v40  ;;  %678 = vadd.xlane.f32.xlu0 %v677_v49  ;;  %v492_v60 = vpop.xlane.xlu0 %491  ;;  %v680_v44 = vsel %vm429_vm0, %v610_v18, 0.0 }
  0xf3   : > { %v495_v36 = vpop.xlane.xlu1 %494  ;;  %v547_v10 = vmul.f32 0.03125, %v492_v60  ;;  %v1129_v56 = vmul.f32 %v4433_v48, %v4433_v48 }
  0xf4   : > { %v548_v15 = vmul.f32 0.03125, %v495_v36  ;;  %v1130_v26 = vmul.f32 %v4436_v19, %v4436_v19 }
  0xf5   : > { %v4445_v38 = vsub.f32 %v4075_v34, %v547_v10  ;;  %v1197_v40 = vsel %vm429_vm0, %v1129_v56, 0.0 }
  0xf6   : > { %v4448_v27 = vsub.f32 %v4078_v35, %v548_v15  ;;  %681 = vadd.xlane.f32.xlu1 %v680_v44  ;;  %1198 = vadd.xlane.f32.xlu0 %v1197_v40  ;;  %v1013_v3 = vpop.xlane.xlu0 %1012  ;;  %v1200_v30 = vsel %vm429_vm0, %v1130_v26, 0.0 }
  0xf7   : > { %v1016_v53 = vpop.xlane.xlu1 %1015  ;;  %v1067_v18 = vmul.f32 0.03125, %v1013_v3  ;;  %v611_v60 = vmul.f32 %v4445_v38, %v4445_v38 }
  0xf8   : > { %v1068_v49 = vmul.f32 0.03125, %v1016_v53  ;;  %v612_v34 = vmul.f32 %v4448_v27, %v4448_v27 }
  0xf9   : > { %v4457_v36 = vsub.f32 %v4085_v42, %v1067_v18  ;;  %v683_v44 = vsel %vm429_vm0, %v611_v60, 0.0 }
  0xfa   : > { %v4460_v35 = vsub.f32 %v4088_v43, %v1068_v49  ;;  %1201 = vadd.xlane.f32.xlu1 %v1200_v30  ;;  %684 = vadd.xlane.f32.xlu0 %v683_v44  ;;  %v498_v10 = vpop.xlane.xlu0 %497  ;;  %v686_v56 = vsel %vm429_vm0, %v612_v34, 0.0 }
  0xfb   : > { %v501_v15 = vpop.xlane.xlu1 %500  ;;  %v549_v26 = vmul.f32 0.03125, %v498_v10  ;;  %v1131_v3 = vmul.f32 %v4457_v36, %v4457_v36 }
  0xfc   : > { %v550_v40 = vmul.f32 0.03125, %v501_v15  ;;  %v1132_v42 = vmul.f32 %v4460_v35, %v4460_v35 }
  0xfd   : > { %v4469_v53 = vsub.f32 %v4095_v50, %v549_v26  ;;  %v1203_v30 = vsel %vm429_vm0, %v1131_v3, 0.0 }
  0xfe   : > { %v4472_v43 = vsub.f32 %v4098_v51, %v550_v40  ;;  %687 = vadd.xlane.f32.xlu1 %v686_v56  ;;  %1204 = vadd.xlane.f32.xlu0 %v1203_v30  ;;  %v1019_v18 = vpop.xlane.xlu0 %1018  ;;  %v1206_v60 = vsel %vm429_vm0, %v1132_v42, 0.0 }
  0xff   : > { %5713 = vst [vmem:[#allocation17_spill] sm:$0xff] %v4469_v53  ;;  %v1022_v49 = vpop.xlane.xlu1 %1021  ;;  %v1069_v34 = vmul.f32 0.03125, %v1019_v18  ;;  %v613_v10 = vmul.f32 %v4469_v53, %v4469_v53 }
 0x100   : > { %5714 = vst [vmem:[#allocation18_spill] sm:$0xff] %v4472_v43  ;;  %v1070_v44 = vmul.f32 0.03125, %v1022_v49  ;;  %v614_v50 = vmul.f32 %v4472_v43, %v4472_v43 }
 0x101   : > { %v4481_v15 = vsub.f32 %v4105_v58, %v1069_v34  ;;  %v689_v56 = vsel %vm429_vm0, %v613_v10, 0.0 }
 0x102   : > { %v4484_v51 = vsub.f32 %v4108_v59, %v1070_v44  ;;  %1207 = vadd.xlane.f32.xlu1 %v1206_v60  ;;  %690 = vadd.xlane.f32.xlu0 %v689_v56  ;;  %v504_v26 = vpop.xlane.xlu0 %503  ;;  %v692_v3 = vsel %vm429_vm0, %v614_v50, 0.0 }
 0x103   : > { %5715 = vst [vmem:[#allocation19_spill] sm:$0xff] %v4481_v15  ;;  %v507_v40 = vpop.xlane.xlu1 %506  ;;  %v551_v42 = vmul.f32 0.03125, %v504_v26  ;;  %v1133_v18 = vmul.f32 %v4481_v15, %v4481_v15 }
 0x104   : > { %5716 = vst [vmem:[#allocation20_spill] sm:$0xff] %v4484_v51  ;;  %v552_v30 = vmul.f32 0.03125, %v507_v40  ;;  %v1134_v58 = vmul.f32 %v4484_v51, %v4484_v51  ;;  %v5719_v40 = vld [vmem:[#allocation2_spill] sm:$0xff] }
 0x105   : > { %v4493_v49 = vsub.f32 %v4115_v6, %v551_v42  ;;  %v1209_v60 = vsel %vm429_vm0, %v1133_v18, 0.0 }
 0x106   : > { %v4496_v59 = vsub.f32 %v4118_v7, %v552_v30  ;;  %693 = vadd.xlane.f32.xlu1 %v692_v3  ;;  %1210 = vadd.xlane.f32.xlu0 %v1209_v60  ;;  %v1025_v34 = vpop.xlane.xlu0 %1024  ;;  %v1212_v10 = vsel %vm429_vm0, %v1134_v58, 0.0  ;;  %v5721_v7 = vld [vmem:[#allocation3_spill] sm:$0xff] }
 0x107   : > { %5717 = vst [vmem:[#allocation21_spill] sm:$0xff] %v4493_v49  ;;  %v1028_v44 = vpop.xlane.xlu1 %1027  ;;  %v1071_v50 = vmul.f32 0.03125, %v1025_v34  ;;  %v615_v26 = vmul.f32 %v4493_v49, %v4493_v49 }
 0x108   : > { %5718 = vst [vmem:[#allocation22_spill] sm:$0xff] %v4496_v59  ;;  %v1072_v56 = vmul.f32 0.03125, %v1028_v44  ;;  %v616_v6 = vmul.f32 %v4496_v59, %v4496_v59 }
 0x109   : > { %v4505_v42 = vsub.f32 %v5719_v40, %v1071_v50  ;;  %v695_v3 = vsel %vm429_vm0, %v615_v26, 0.0  ;;  %v5723_v40 = vld [vmem:[#allocation4_spill] sm:$0xff] }
 0x10a   : > { %v4508_v30 = vsub.f32 %v5721_v7, %v1072_v56  ;;  %1213 = vadd.xlane.f32.xlu1 %v1212_v10  ;;  %696 = vadd.xlane.f32.xlu0 %v695_v3  ;;  %v510_v18 = vpop.xlane.xlu0 %509  ;;  %v698_v60 = vsel %vm429_vm0, %v616_v6, 0.0  ;;  %v5725_v56 = vld [vmem:[#allocation5_spill] sm:$0xff] }
 0x10b   : > { %5720 = vst [vmem:[#allocation2_spill] sm:$0xff] %v4505_v42  ;;  %v513_v58 = vpop.xlane.xlu1 %512  ;;  %v553_v34 = vmul.f32 0.03125, %v510_v18  ;;  %v1135_v49 = vmul.f32 %v4505_v42, %v4505_v42 }
 0x10c   : > { %5722 = vst [vmem:[#allocation3_spill] sm:$0xff] %v4508_v30  ;;  %v554_v44 = vmul.f32 0.03125, %v513_v58  ;;  %v1136_v50 = vmul.f32 %v4508_v30, %v4508_v30 }
 0x10d   : > { %v4517_v59 = vsub.f32 %v5723_v40, %v553_v34  ;;  %v1215_v10 = vsel %vm429_vm0, %v1135_v49, 0.0  ;;  %v5727_v40 = vld [vmem:[#allocation6_spill] sm:$0xff] }
 0x10e   : > { %v4520_v7 = vsub.f32 %v5725_v56, %v554_v44  ;;  %699 = vadd.xlane.f32.xlu1 %v698_v60  ;;  %1216 = vadd.xlane.f32.xlu0 %v1215_v10  ;;  %v1031_v26 = vpop.xlane.xlu0 %1030  ;;  %v1218_v3 = vsel %vm429_vm0, %v1136_v50, 0.0  ;;  %v5729_v44 = vld [vmem:[#allocation7_spill] sm:$0xff] }
 0x10f   : > { %5724 = vst [vmem:[#allocation4_spill] sm:$0xff] %v4517_v59  ;;  %v1034_v6 = vpop.xlane.xlu1 %1033  ;;  %v1073_v18 = vmul.f32 0.03125, %v1031_v26  ;;  %v617_v42 = vmul.f32 %v4517_v59, %v4517_v59 }
 0x110   : > { %5726 = vst [vmem:[#allocation5_spill] sm:$0xff] %v4520_v7  ;;  %v1074_v58 = vmul.f32 0.03125, %v1034_v6  ;;  %v618_v34 = vmul.f32 %v4520_v7, %v4520_v7 }
 0x111   : > { %v4529_v30 = vsub.f32 %v5727_v40, %v1073_v18  ;;  %v701_v49 = vsel %vm429_vm0, %v617_v42, 0.0  ;;  %v5731_v40 = vld [vmem:[#allocation8_spill] sm:$0xff] }
 0x112   : > { %v4532_v56 = vsub.f32 %v5729_v44, %v1074_v58  ;;  %1219 = vadd.xlane.f32.xlu1 %v1218_v3  ;;  %702 = vadd.xlane.f32.xlu0 %v701_v49  ;;  %v516_v60 = vpop.xlane.xlu0 %515  ;;  %v704_v10 = vsel %vm429_vm0, %v618_v34, 0.0  ;;  %v5733_v58 = vld [vmem:[#allocation9_spill] sm:$0xff] }
 0x113   : > { %5728 = vst [vmem:[#allocation6_spill] sm:$0xff] %v4529_v30  ;;  %v519_v50 = vpop.xlane.xlu1 %518  ;;  %v555_v26 = vmul.f32 0.03125, %v516_v60  ;;  %v1137_v59 = vmul.f32 %v4529_v30, %v4529_v30 }
 0x114   : > { %5730 = vst [vmem:[#allocation7_spill] sm:$0xff] %v4532_v56  ;;  %v556_v6 = vmul.f32 0.03125, %v519_v50  ;;  %v1138_v18 = vmul.f32 %v4532_v56, %v4532_v56 }
 0x115   : > { %v4541_v7 = vsub.f32 %v5731_v40, %v555_v26  ;;  %v1221_v42 = vsel %vm429_vm0, %v1137_v59, 0.0  ;;  %v5735_v40 = vld [vmem:[#allocation10_spill] sm:$0xff] }
 0x116   : > { %v4544_v44 = vsub.f32 %v5733_v58, %v556_v6  ;;  %705 = vadd.xlane.f32.xlu1 %v704_v10  ;;  %1222 = vadd.xlane.f32.xlu0 %v1221_v42  ;;  %v1037_v3 = vpop.xlane.xlu0 %1036  ;;  %v1224_v49 = vsel %vm429_vm0, %v1138_v18, 0.0  ;;  %v5737_v6 = vld [vmem:[#allocation11_spill] sm:$0xff] }
 0x117   : > { %5732 = vst [vmem:[#allocation8_spill] sm:$0xff] %v4541_v7  ;;  %v1040_v34 = vpop.xlane.xlu1 %1039  ;;  %v1075_v60 = vmul.f32 0.03125, %v1037_v3  ;;  %v619_v30 = vmul.f32 %v4541_v7, %v4541_v7 }
 0x118   : > { %5734 = vst [vmem:[#allocation9_spill] sm:$0xff] %v4544_v44  ;;  %v1076_v50 = vmul.f32 0.03125, %v1040_v34  ;;  %v620_v26 = vmul.f32 %v4544_v44, %v4544_v44 }
 0x119   : > { %v4553_v56 = vsub.f32 %v5735_v40, %v1075_v60  ;;  %v707_v59 = vsel %vm429_vm0, %v619_v30, 0.0  ;;  %v5739_v40 = vld [vmem:[#allocation12_spill] sm:$0xff] }
 0x11a   : > { %v4556_v58 = vsub.f32 %v5737_v6, %v1076_v50  ;;  %1225 = vadd.xlane.f32.xlu1 %v1224_v49  ;;  %708 = vadd.xlane.f32.xlu0 %v707_v59  ;;  %v522_v10 = vpop.xlane.xlu0 %521  ;;  %v710_v42 = vsel %vm429_vm0, %v620_v26, 0.0  ;;  %v5741_v50 = vld [vmem:[#allocation13_spill] sm:$0xff] }
 0x11b   : > { %5736 = vst [vmem:[#allocation10_spill] sm:$0xff] %v4553_v56  ;;  %v525_v18 = vpop.xlane.xlu1 %524  ;;  %v557_v3 = vmul.f32 0.03125, %v522_v10  ;;  %v1139_v7 = vmul.f32 %v4553_v56, %v4553_v56 }
 0x11c   : > { %5738 = vst [vmem:[#allocation11_spill] sm:$0xff] %v4556_v58  ;;  %v558_v34 = vmul.f32 0.03125, %v525_v18  ;;  %v1140_v60 = vmul.f32 %v4556_v58, %v4556_v58 }
 0x11d   : > { %v4565_v44 = vsub.f32 %v5739_v40, %v557_v3  ;;  %v1227_v30 = vsel %vm429_vm0, %v1139_v7, 0.0  ;;  %v5743_v40 = vld [vmem:[#allocation14_spill] sm:$0xff] }
 0x11e   : > { %v4568_v6 = vsub.f32 %v5741_v50, %v558_v34  ;;  %711 = vadd.xlane.f32.xlu1 %v710_v42  ;;  %1228 = vadd.xlane.f32.xlu0 %v1227_v30  ;;  %v1043_v49 = vpop.xlane.xlu0 %1042  ;;  %v1230_v59 = vsel %vm429_vm0, %v1140_v60, 0.0 }
 0x11f   : > { %5740 = vst [vmem:[#allocation12_spill] sm:$0xff] %v4565_v44  ;;  %v1046_v26 = vpop.xlane.xlu1 %1045  ;;  %v1077_v10 = vmul.f32 0.03125, %v1043_v49  ;;  %v621_v56 = vmul.f32 %v4565_v44, %v4565_v44 }
 0x120   : > { %5742 = vst [vmem:[#allocation13_spill] sm:$0xff] %v4568_v6  ;;  %v1078_v18 = vmul.f32 0.03125, %v1046_v26  ;;  %v622_v3 = vmul.f32 %v4568_v6, %v4568_v6 }
 0x121   : > { %v4577_v58 = vsub.f32 %v5743_v40, %v1077_v10  ;;  %v713_v7 = vsel %vm429_vm0, %v621_v56, 0.0 }
 0x122   : > { %v4580_v34 = vsub.f32 %v4188_v31, %v1078_v18  ;;  %1231 = vadd.xlane.f32.xlu1 %v1230_v59  ;;  %714 = vadd.xlane.f32.xlu0 %v713_v7  ;;  %v716_v42 = vsel %vm429_vm0, %v622_v3, 0.0 }
 0x123   : > { %5744 = vst [vmem:[#allocation14_spill] sm:$0xff] %v4577_v58  ;;  %v1141_v60 = vmul.f32 %v4577_v58, %v4577_v58 }
 0x124   : > { %5745 = vst [vmem:[#allocation23_spill] sm:$0xff] %v4580_v34  ;;  %v1142_v50 = vmul.f32 %v4580_v34, %v4580_v34 }
 0x125   : > { %v1233_v30 = vsel %vm429_vm0, %v1141_v60, 0.0 }
 0x126   : > { %717 = vadd.xlane.f32.xlu1 %v716_v42  ;;  %1234 = vadd.xlane.f32.xlu0 %v1233_v30  ;;  %v1236_v49 = vsel %vm429_vm0, %v1142_v50, 0.0 }
 0x12a   : > { %1237 = vadd.xlane.f32.xlu1 %v1236_v49 }
 0x137   : > { %v625_v31 = vpop.xlane.xlu0 %624 }
 0x138   : > { %v719_v26 = vmul.f32 0.03125, %v625_v31 }
 0x13a   : > { %v751_v56 = vadd.f32 1e-05, %v719_v26 }
 0x13b   : > { %v628_v59 = vpop.xlane.xlu1 %627  ;;  %v1145_v10 = vpop.xlane.xlu0 %1144 }
 0x13c   : > { %3310 = vrsqrt.f32 %v751_v56  ;;  %v720_v18 = vmul.f32 0.03125, %v628_v59  ;;  %v1239_v3 = vmul.f32 0.03125, %v1145_v10 }
 0x13e   : > { %v752_v40 = vadd.f32 1e-05, %v720_v18  ;;  %v1271_v7 = vadd.f32 1e-05, %v1239_v3 }
 0x13f   : > { %v1148_v58 = vpop.xlane.xlu1 %1147  ;;  %v631_v6 = vpop.xlane.xlu0 %630 }
 0x140   : > { %3312 = vrsqrt.f32 %v752_v40  ;;  %v1240_v34 = vmul.f32 0.03125, %v1148_v58  ;;  %v721_v60 = vmul.f32 0.03125, %v631_v6  ;;  %v4594_v6 = vld [vmem:[%s5638_s3] ss:$0 sm:$0xff] }
 0x141   : > { %3314 = vrsqrt.f32 %v1271_v7 }
 0x142   : > { %v1272_v42 = vadd.f32 1e-05, %v1240_v34  ;;  %v753_v30 = vadd.f32 1e-05, %v721_v60 }
 0x143   : > { %v634_v50 = vpop.xlane.xlu1 %633  ;;  %v1151_v49 = vpop.xlane.xlu0 %1150 }
 0x144   : > { %3316 = vrsqrt.f32 %v1272_v42  ;;  %v722_v31 = vmul.f32 0.03125, %v634_v50  ;;  %v1241_v26 = vmul.f32 0.03125, %v1151_v49 }
 0x145   : > { %3318 = vrsqrt.f32 %v753_v30 }
 0x146   : > { %v3311_v44 = vpop.eup %3310  ;;  %v754_v56 = vadd.f32 1e-05, %v722_v31  ;;  %v1273_v59 = vadd.f32 1e-05, %v1241_v26  ;;  %v4601_v26 = vld [vmem:[%s5639_s4] ss:$0 sm:$0xff] }
 0x147   : > { %v1154_v10 = vpop.xlane.xlu1 %1153  ;;  %v637_v18 = vpop.xlane.xlu0 %636  ;;  %v815_v3 = vmul.f32 %v3311_v44, %v4195_v54 }
 0x148   : > { %3320 = vrsqrt.f32 %v754_v56  ;;  %v1242_v40 = vmul.f32 0.03125, %v1154_v10  ;;  %v723_v58 = vmul.f32 0.03125, %v637_v18  ;;  %v5746_v56 = vld [vmem:[#allocation15_spill] sm:$0xff] }
 0x149   : > { %3322 = vrsqrt.f32 %v1273_v59  ;;  %v851_v31 = vmul.f32 %v4594_v6, %v815_v3 }
 0x14a   : > { %v3313_v34 = vpop.eup %3312  ;;  %v1274_v7 = vadd.f32 1e-05, %v1242_v40  ;;  %v755_v60 = vadd.f32 1e-05, %v723_v58 }
 0x14b   : > { %v3315_v42 = vpop.eup %3314  ;;  %v640_v30 = vpop.xlane.xlu1 %639  ;;  %v816_v49 = vmul.f32 %v3313_v34, %v4205_v47  ;;  %v887_v3 = vadd.f32 %v4601_v26, %v851_v31 }
 0x14c   : > { %v1157_v50 = vpop.xlane.xlu0 %1156  ;;  %3324 = vrsqrt.f32 %v1274_v7  ;;  %v724_v54 = vmul.f32 0.03125, %v640_v30  ;;  %v1335_v59 = vmul.f32 %v3315_v42, %v5746_v56 }
 0x14d   : > { %v1243_v44 = vmul.f32 0.03125, %v1157_v50  ;;  %3326 = vrsqrt.f32 %v755_v60  ;;  %v852_v10 = vmul.f32 %v4594_v6, %v816_v49 }
 0x14e   : > { %v3317_v18 = vpop.eup %3316  ;;  %v756_v40 = vadd.f32 1e-05, %v724_v54  ;;  %v1367_v50 = vmul.f32 %v4594_v6, %v1335_v59 }
 0x14f   : > { %v1275_v58 = vadd.f32 1e-05, %v1243_v44  ;;  %v3319_v51 = vpop.eup %3318  ;;  %v1160_v47 = vpop.xlane.xlu1 %1159  ;;  %v888_v7 = vadd.f32 %v4601_v26, %v852_v10  ;;  %v1336_v30 = vmul.f32 %v3317_v18, %v4208_v55 }
 0x150   : > { %v643_v34 = vpop.xlane.xlu0 %642  ;;  %3328 = vrsqrt.f32 %v756_v40  ;;  %v1244_v15 = vmul.f32 0.03125, %v1160_v47  ;;  %v817_v54 = vmul.f32 %v3319_v51, %v4217_v2  ;;  %v1399_v55 = vadd.f32 %v4601_v26, %v1367_v50 }
 0x151   : > { %v725_v42 = vmul.f32 0.03125, %v643_v34  ;;  %3330 = vrsqrt.f32 %v1275_v58  ;;  %v1431_v60 = vpack.c.bf16 %v888_v7, %v887_v3  ;;  %v1368_v49 = vmul.f32 %v4594_v6, %v1336_v30 }
 0x152   : > { %v3321_v44 = vpop.eup %3320  ;;  %v1276_v56 = vadd.f32 1e-05, %v1244_v15  ;;  %v853_v40 = vmul.f32 %v4594_v6, %v817_v54 }
 0x153   : > { %v757_v43 = vadd.f32 1e-05, %v725_v42  ;;  %v3323_v53 = vpop.eup %3322  ;;  %v646_v31 = vpop.xlane.xlu1 %645  ;;  %3234 = vmatprep.mubr.msk.bf16.mxu0 %vm429_vm0, %v1431_v60  ;;  %v1400_v59 = vadd.f32 %v4601_v26, %v1368_v49  ;;  %v818_v18 = vmul.f32 %v3321_v44, %v4220_v5 }
 0x154   : > { %v1163_v10 = vpop.xlane.xlu0 %1162  ;;  %3332 = vrsqrt.f32 %v1276_v56  ;;  %v726_v58 = vmul.f32 0.03125, %v646_v31  ;;  %v1337_v2 = vmul.f32 %v3323_v53, %v4229_v62  ;;  %v889_v5 = vadd.f32 %v4601_v26, %v853_v40 }
 0x155   : > { %v1245_v47 = vmul.f32 0.03125, %v1163_v10  ;;  %3334 = vrsqrt.f32 %v757_v43  ;;  %v1451_v15 = vpack.c.bf16 %v1400_v59, %v1399_v55  ;;  %v854_v51 = vmul.f32 %v4594_v6, %v818_v18 }
 0x156   : > { %v3325_v34 = vpop.eup %3324  ;;  %v758_v3 = vadd.f32 1e-05, %v726_v58  ;;  %v1369_v62 = vmul.f32 %v4594_v6, %v1337_v2 }
 0x157   : > { %v1277_v7 = vadd.f32 1e-05, %v1245_v47  ;;  %v3327_v30 = vpop.eup %3326  ;;  %v1166_v50 = vpop.xlane.xlu1 %1165  ;;  %3198 = vmatprep.mubr.msk.bf16.mxu1 %vm429_vm0, %v1451_v15  ;;  %v890_v60 = vadd.f32 %v4601_v26, %v854_v51  ;;  %v1338_v49 = vmul.f32 %v3325_v34, %v4232_v9 }
 0x158   : > { %v649_v42 = vpop.xlane.xlu0 %648  ;;  %3336 = vrsqrt.f32 %v758_v3  ;;  %v1246_v53 = vmul.f32 0.03125, %v1166_v50  ;;  %v819_v56 = vmul.f32 %v3327_v30, %v4241_v0  ;;  %v1401_v9 = vadd.f32 %v4601_v26, %v1369_v62 }
 0x159   : > { %v727_v43 = vmul.f32 0.03125, %v649_v42  ;;  %3338 = vrsqrt.f32 %v1277_v7  ;;  %v1432_v54 = vpack.c.bf16 %v890_v60, %v889_v5  ;;  %v1370_v44 = vmul.f32 %v4594_v6, %v1338_v49 }
 0x15a   : > { %v3329_v31 = vpop.eup %3328  ;;  %v1278_v10 = vadd.f32 1e-05, %v1246_v53  ;;  %v855_v2 = vmul.f32 %v4594_v6, %v819_v56 }
 0x15b   : > { %v759_v55 = vadd.f32 1e-05, %v727_v43  ;;  %v3331_v59 = vpop.eup %3330  ;;  %v652_v18 = vpop.xlane.xlu1 %651  ;;  %3235 = vmatmul.mubr.msk.bf16.vlgmr.msra.gmra.mrb[0].mxu0 %vm429_vm0, %v1432_v54  ;;  %v1402_v58 = vadd.f32 %v4601_v26, %v1370_v44  ;;  %v820_v47 = vmul.f32 %v3329_v31, %v4244_v13 }
 0x15c   : > { %v1169_v40 = vpop.xlane.xlu0 %1168  ;;  %3340 = vrsqrt.f32 %v1278_v10  ;;  %v728_v15 = vmul.f32 0.03125, %v652_v18  ;;  %v1339_v0 = vmul.f32 %v3331_v59, %v4253_v22  ;;  %v891_v13 = vadd.f32 %v4601_v26, %v855_v2 }
 0x15d   : > { %v1247_v51 = vmul.f32 0.03125, %v1169_v40  ;;  %3342 = vrsqrt.f32 %v759_v55  ;;  %v1452_v34 = vpack.c.bf16 %v1402_v58, %v1401_v9  ;;  %v856_v3 = vmul.f32 %v4594_v6, %v820_v47 }
 0x15e   : > { %v3333_v7 = vpop.eup %3332  ;;  %v760_v30 = vadd.f32 1e-05, %v728_v15  ;;  %v1371_v22 = vmul.f32 %v4594_v6, %v1339_v0 }
 0x15f   : > { %v1279_v50 = vadd.f32 1e-05, %v1247_v51  ;;  %v3335_v42 = vpop.eup %3334  ;;  %v1172_v5 = vpop.xlane.xlu1 %1171  ;;  %3199 = vmatmul.mubr.msk.bf16.vlgmr.msra.gmra.mrb[0].mxu1 %vm429_vm0, %v1452_v34  ;;  %v892_v49 = vadd.f32 %v4601_v26, %v856_v3  ;;  %v1340_v62 = vmul.f32 %v3333_v7, %v4256_v17 }
 0x160   : > { %v655_v60 = vpop.xlane.xlu0 %654  ;;  %3344 = vrsqrt.f32 %v760_v30  ;;  %v1248_v53 = vmul.f32 0.03125, %v1172_v5  ;;  %v821_v56 = vmul.f32 %v3335_v42, %v4265_v63  ;;  %v1403_v17 = vadd.f32 %v4601_v26, %v1371_v22 }
 0x161   : > { %v729_v43 = vmul.f32 0.03125, %v655_v60  ;;  %3346 = vrsqrt.f32 %v1279_v50  ;;  %v1433_v54 = vpack.c.bf16 %v892_v49, %v891_v13  ;;  %v1372_v44 = vmul.f32 %v4594_v6, %v1340_v62 }
 0x162   : > { %v3337_v31 = vpop.eup %3336  ;;  %v1280_v10 = vadd.f32 1e-05, %v1248_v53  ;;  %v857_v47 = vmul.f32 %v4594_v6, %v821_v56 }
 0x163   : > { %v761_v55 = vadd.f32 1e-05, %v729_v43  ;;  %v3339_v59 = vpop.eup %3338  ;;  %v658_v18 = vpop.xlane.xlu1 %657  ;;  %3238 = vmatprep.mubr.msk.bf16.mxu0 %vm429_vm0, %v1433_v54  ;;  %v1404_v9 = vadd.f32 %v4601_v26, %v1372_v44  ;;  %v822_v58 = vmul.f32 %v3337_v31, %v4268_v21 }
 0x164   : > { %v1175_v40 = vpop.xlane.xlu0 %1174  ;;  %3348 = vrsqrt.f32 %v1280_v10  ;;  %v730_v2 = vmul.f32 0.03125, %v658_v18  ;;  %v1341_v63 = vmul.f32 %v3339_v59, %v4277_v46  ;;  %v893_v21 = vadd.f32 %v4601_v26, %v857_v47 }
 0x165   : > { %v1249_v15 = vmul.f32 0.03125, %v1175_v40  ;;  %3350 = vrsqrt.f32 %v761_v55  ;;  %v1453_v51 = vpack.c.bf16 %v1404_v9, %v1403_v17  ;;  %v858_v0 = vmul.f32 %v4594_v6, %v822_v58 }
 0x166   : > { %v3341_v34 = vpop.eup %3340  ;;  %v762_v3 = vadd.f32 1e-05, %v730_v2  ;;  %v1373_v46 = vmul.f32 %v4594_v6, %v1341_v63 }
 0x167   : > { %v1281_v7 = vadd.f32 1e-05, %v1249_v15  ;;  %v3343_v30 = vpop.eup %3342  ;;  %v1178_v50 = vpop.xlane.xlu1 %1177  ;;  %3202 = vmatprep.mubr.msk.bf16.mxu1 %vm429_vm0, %v1453_v51  ;;  %v894_v5 = vadd.f32 %v4601_v26, %v858_v0  ;;  %v1342_v60 = vmul.f32 %v3341_v34, %v4280_v25 }
 0x168   : > { %v661_v42 = vpop.xlane.xlu0 %660  ;;  %3352 = vrsqrt.f32 %v762_v3  ;;  %v1250_v13 = vmul.f32 0.03125, %v1178_v50  ;;  %v823_v53 = vmul.f32 %v3343_v30, %v4289_v14  ;;  %v1405_v25 = vadd.f32 %v4601_v26, %v1373_v46 }
 0x169   : > { %v731_v49 = vmul.f32 0.03125, %v661_v42  ;;  %3354 = vrsqrt.f32 %v1281_v7  ;;  %v1434_v62 = vpack.c.bf16 %v894_v5, %v893_v21  ;;  %v1374_v22 = vmul.f32 %v4594_v6, %v1342_v60 }
 0x16a   : > { %v3345_v43 = vpop.eup %3344  ;;  %v1282_v54 = vadd.f32 1e-05, %v1250_v13  ;;  %v859_v18 = vmul.f32 %v4594_v6, %v823_v53 }
 0x16b   : > { %v763_v44 = vadd.f32 1e-05, %v731_v49  ;;  %v3347_v56 = vpop.eup %3346  ;;  %v664_v31 = vpop.xlane.xlu1 %663  ;;  %3239 = vmatmul.mubr.msk.bf16.gmra.mrb[4].mxu0 %vm429_vm0, %v1434_v62  ;;  %v1406_v55 = vadd.f32 %v4601_v26, %v1374_v22  ;;  %v824_v59 = vmul.f32 %v3345_v43, %v4292_v29 }
 0x16c   : > { %v1181_v10 = vpop.xlane.xlu0 %1180  ;;  %3356 = vrsqrt.f32 %v1282_v54  ;;  %v732_v40 = vmul.f32 0.03125, %v664_v31  ;;  %v1343_v14 = vmul.f32 %v3347_v56, %v4301_v8  ;;  %v895_v29 = vadd.f32 %v4601_v26, %v859_v18 }
 0x16d   : > { %v1251_v17 = vmul.f32 0.03125, %v1181_v10  ;;  %3358 = vrsqrt.f32 %v763_v44  ;;  %v1454_v9 = vpack.c.bf16 %v1406_v55, %v1405_v25  ;;  %v860_v58 = vmul.f32 %v4594_v6, %v824_v59 }
 0x16e   : > { %v3349_v47 = vpop.eup %3348  ;;  %v764_v2 = vadd.f32 1e-05, %v732_v40  ;;  %v1375_v8 = vmul.f32 %v4594_v6, %v1343_v14 }
 0x16f   : > { %v1283_v15 = vadd.f32 1e-05, %v1251_v17  ;;  %v3351_v63 = vpop.eup %3350  ;;  %v1184_v51 = vpop.xlane.xlu1 %1183  ;;  %3203 = vmatmul.mubr.msk.bf16.gmra.mrb[4].mxu1 %vm429_vm0, %v1454_v9  ;;  %v896_v34 = vadd.f32 %v4601_v26, %v860_v58  ;;  %v1344_v3 = vmul.f32 %v3349_v47, %v4304_v33 }
 0x170   : > { %v667_v0 = vpop.xlane.xlu0 %666  ;;  %3360 = vrsqrt.f32 %v764_v2  ;;  %v1252_v7 = vmul.f32 0.03125, %v1184_v51  ;;  %v825_v21 = vmul.f32 %v3351_v63, %v4313_v12  ;;  %v1407_v33 = vadd.f32 %v4601_v26, %v1375_v8 }
 0x171   : > { %v733_v30 = vmul.f32 0.03125, %v667_v0  ;;  %3362 = vrsqrt.f32 %v1283_v15  ;;  %v1435_v50 = vpack.c.bf16 %v896_v34, %v895_v29  ;;  %v1376_v42 = vmul.f32 %v4594_v6, %v1344_v3 }
 0x172   : > { %v3353_v5 = vpop.eup %3352  ;;  %v1284_v60 = vadd.f32 1e-05, %v1252_v7  ;;  %v861_v43 = vmul.f32 %v4594_v6, %v825_v21  ;;  %v5747_v7 = vld [vmem:[#allocation16_spill] sm:$0xff] }
 0x173   : > { %v765_v46 = vadd.f32 1e-05, %v733_v30  ;;  %v3355_v13 = vpop.eup %3354  ;;  %v670_v49 = vpop.xlane.xlu1 %669  ;;  %3242 = vmatprep.mubr.msk.bf16.mxu0 %vm429_vm0, %v1435_v50  ;;  %v1408_v22 = vadd.f32 %v4601_v26, %v1376_v42  ;;  %v826_v53 = vmul.f32 %v3353_v5, %v4316_v37 }
 0x174   : > { %v1187_v62 = vpop.xlane.xlu0 %1186  ;;  %3364 = vrsqrt.f32 %v1284_v60  ;;  %v734_v54 = vmul.f32 0.03125, %v670_v49  ;;  %v1345_v12 = vmul.f32 %v3355_v13, %v4325_v16  ;;  %v897_v37 = vadd.f32 %v4601_v26, %v861_v43 }
 0x175   : > { %v1253_v44 = vmul.f32 0.03125, %v1187_v62  ;;  %3366 = vrsqrt.f32 %v765_v46  ;;  %v1455_v56 = vpack.c.bf16 %v1408_v22, %v1407_v33  ;;  %v862_v31 = vmul.f32 %v4594_v6, %v826_v53 }
 0x176   : > { %v3357_v10 = vpop.eup %3356  ;;  %v766_v25 = vadd.f32 1e-05, %v734_v54  ;;  %v1377_v16 = vmul.f32 %v4594_v6, %v1345_v12 }
 0x177   : > { %v1285_v55 = vadd.f32 1e-05, %v1253_v44  ;;  %v3359_v59 = vpop.eup %3358  ;;  %v1190_v18 = vpop.xlane.xlu1 %1189  ;;  %3206 = vmatprep.mubr.msk.bf16.mxu1 %vm429_vm0, %v1455_v56  ;;  %v898_v17 = vadd.f32 %v4601_v26, %v862_v31  ;;  %v1346_v14 = vmul.f32 %v3357_v10, %v4328_v41 }
 0x178   : > { %v673_v40 = vpop.xlane.xlu0 %672  ;;  %3368 = vrsqrt.f32 %v766_v25  ;;  %v1254_v9 = vmul.f32 0.03125, %v1190_v18  ;;  %v827_v15 = vmul.f32 %v3359_v59, %v4340_v32  ;;  %v1409_v41 = vadd.f32 %v4601_v26, %v1377_v16 }
 0x179   : > { %v735_v58 = vmul.f32 0.03125, %v673_v40  ;;  %3370 = vrsqrt.f32 %v1285_v55  ;;  %v1436_v47 = vpack.c.bf16 %v898_v17, %v897_v37  ;;  %v1378_v2 = vmul.f32 %v4594_v6, %v1346_v14 }
 0x17a   : > { %v3361_v63 = vpop.eup %3360  ;;  %v1286_v51 = vadd.f32 1e-05, %v1254_v9  ;;  %v863_v50 = vmul.f32 %v4594_v6, %v827_v15 }
 0x17b   : > { %v767_v0 = vadd.f32 1e-05, %v735_v58  ;;  %v3363_v29 = vpop.eup %3362  ;;  %v676_v34 = vpop.xlane.xlu1 %675  ;;  %3243 = vmatmul.mubr.msk.bf16.gmra.mrb[8].mxu0 %vm429_vm0, %v1436_v47  ;;  %v1410_v8 = vadd.f32 %v4601_v26, %v1378_v2  ;;  %v828_v30 = vmul.f32 %v3361_v63, %v5747_v7 }
 0x17c   : > { %v1193_v3 = vpop.xlane.xlu0 %1192  ;;  %3372 = vrsqrt.f32 %v1286_v51  ;;  %v736_v42 = vmul.f32 0.03125, %v676_v34  ;;  %v1347_v32 = vmul.f32 %v3363_v29, %v4358_v24  ;;  %v899_v53 = vadd.f32 %v4601_v26, %v863_v50 }
 0x17d   : > { %v1255_v21 = vmul.f32 0.03125, %v1193_v3  ;;  %3374 = vrsqrt.f32 %v767_v0  ;;  %v1456_v5 = vpack.c.bf16 %v1410_v8, %v1409_v41  ;;  %v864_v60 = vmul.f32 %v4594_v6, %v828_v30 }
 0x17e   : > { %v3365_v46 = vpop.eup %3364  ;;  %v768_v13 = vadd.f32 1e-05, %v736_v42  ;;  %v1379_v24 = vmul.f32 %v4594_v6, %v1347_v32 }
 0x17f   : > { %v1287_v49 = vadd.f32 1e-05, %v1255_v21  ;;  %v3367_v62 = vpop.eup %3366  ;;  %v1196_v33 = vpop.xlane.xlu1 %1195  ;;  %3207 = vmatmul.mubr.msk.bf16.gmra.mrb[8].mxu1 %vm429_vm0, %v1456_v5  ;;  %v900_v43 = vadd.f32 %v4601_v26, %v864_v60  ;;  %v1348_v54 = vmul.f32 %v3365_v46, %v4361_v39 }
 0x180   : > { %v679_v22 = vpop.xlane.xlu0 %678  ;;  %3376 = vrsqrt.f32 %v768_v13  ;;  %v1256_v44 = vmul.f32 0.03125, %v1196_v33  ;;  %v829_v10 = vmul.f32 %v3367_v62, %v4373_v28  ;;  %v1411_v39 = vadd.f32 %v4601_v26, %v1379_v24 }
 0x181   : > { %v737_v12 = vmul.f32 0.03125, %v679_v22  ;;  %3378 = vrsqrt.f32 %v1287_v49  ;;  %v1437_v56 = vpack.c.bf16 %v900_v43, %v899_v53  ;;  %v1380_v31 = vmul.f32 %v4594_v6, %v1348_v54 }
 0x182   : > { %v3369_v25 = vpop.eup %3368  ;;  %v1288_v55 = vadd.f32 1e-05, %v1256_v44  ;;  %v865_v16 = vmul.f32 %v4594_v6, %v829_v10 }
 0x183   : > { %v769_v59 = vadd.f32 1e-05, %v737_v12  ;;  %v3371_v18 = vpop.eup %3370  ;;  %v682_v40 = vpop.xlane.xlu1 %681  ;;  %3246 = vmatprep.mubr.msk.bf16.mxu0 %vm429_vm0, %v1437_v56  ;;  %v1412_v17 = vadd.f32 %v4601_v26, %v1380_v31  ;;  %v830_v14 = vmul.f32 %v3369_v25, %v4376_v23 }
 0x184   : > { %v1199_v37 = vpop.xlane.xlu0 %1198  ;;  %v1349_v9 = vmul.f32 %v3371_v18, %v4385_v57  ;;  %3380 = vrsqrt.f32 %v1288_v55  ;;  %v738_v28 = vmul.f32 0.03125, %v682_v40  ;;  %v901_v3 = vadd.f32 %v4601_v26, %v865_v16 }
 0x185   : > { %v1257_v58 = vmul.f32 0.03125, %v1199_v37  ;;  %3382 = vrsqrt.f32 %v769_v59  ;;  %v1457_v47 = vpack.c.bf16 %v1412_v17, %v1411_v39  ;;  %v866_v2 = vmul.f32 %v4594_v6, %v830_v14 }
 0x186   : > { %v3373_v15 = vpop.eup %3372  ;;  %v770_v63 = vadd.f32 1e-05, %v738_v28  ;;  %v1381_v41 = vmul.f32 %v4594_v6, %v1349_v9 }
 0x187   : > { %v1289_v51 = vadd.f32 1e-05, %v1257_v58  ;;  %v3375_v0 = vpop.eup %3374  ;;  %v1350_v29 = vmul.f32 %v3373_v15, %v4388_v20  ;;  %v1202_v34 = vpop.xlane.xlu1 %1201  ;;  %3210 = vmatprep.mubr.msk.bf16.mxu1 %vm429_vm0, %v1457_v47  ;;  %v902_v57 = vadd.f32 %v4601_v26, %v866_v2 }
 0x188   : > { %v685_v23 = vpop.xlane.xlu0 %684  ;;  %v831_v8 = vmul.f32 %v3375_v0, %v4397_v1  ;;  %3384 = vrsqrt.f32 %v770_v63  ;;  %v1258_v7 = vmul.f32 0.03125, %v1202_v34  ;;  %v1413_v49 = vadd.f32 %v4601_v26, %v1381_v41 }
 0x189   : > { %v739_v30 = vmul.f32 0.03125, %v685_v23  ;;  %3386 = vrsqrt.f32 %v1289_v51  ;;  %v1438_v50 = vpack.c.bf16 %v902_v57, %v901_v3  ;;  %v1382_v42 = vmul.f32 %v4594_v6, %v1350_v29 }
 0x18a   : > { %v3377_v20 = vpop.eup %3376  ;;  %v1290_v21 = vadd.f32 1e-05, %v1258_v7  ;;  %v867_v62 = vmul.f32 %v4594_v6, %v831_v8 }
 0x18b   : > { %v771_v32 = vadd.f32 1e-05, %v739_v30  ;;  %v3379_v5 = vpop.eup %3378  ;;  %v832_v60 = vmul.f32 %v3377_v20, %v4400_v61  ;;  %v688_v46 = vpop.xlane.xlu1 %687  ;;  %3247 = vmatmul.mubr.msk.bf16.gmra.mrb[12].mxu0 %vm429_vm0, %v1438_v50  ;;  %v1414_v1 = vadd.f32 %v4601_v26, %v1382_v42 }
 0x18c   : > { %v1205_v13 = vpop.xlane.xlu0 %1204  ;;  %v1351_v33 = vmul.f32 %v3379_v5, %v4409_v52  ;;  %3388 = vrsqrt.f32 %v1290_v21  ;;  %v740_v22 = vmul.f32 0.03125, %v688_v46  ;;  %v903_v25 = vadd.f32 %v4601_v26, %v867_v62 }
 0x18d   : > { %v1259_v53 = vmul.f32 0.03125, %v1205_v13  ;;  %3390 = vrsqrt.f32 %v771_v32  ;;  %v1458_v43 = vpack.c.bf16 %v1414_v1, %v1413_v49  ;;  %v868_v54 = vmul.f32 %v4594_v6, %v832_v60 }
 0x18e   : > { %v3381_v61 = vpop.eup %3380  ;;  %v772_v24 = vadd.f32 1e-05, %v740_v22  ;;  %v1383_v55 = vmul.f32 %v4594_v6, %v1351_v33 }
 0x18f   : > { %v1291_v44 = vadd.f32 1e-05, %v1259_v53  ;;  %v3383_v12 = vpop.eup %3382  ;;  %v1352_v56 = vmul.f32 %v3381_v61, %v4412_v4  ;;  %v1208_v31 = vpop.xlane.xlu1 %1207  ;;  %3211 = vmatmul.mubr.msk.bf16.gmra.mrb[12].mxu1 %vm429_vm0, %v1458_v43  ;;  %v904_v52 = vadd.f32 %v4601_v26, %v868_v54 }
 0x190   : > { %v691_v10 = vpop.xlane.xlu0 %690  ;;  %v833_v59 = vmul.f32 %v3383_v12, %v4421_v45  ;;  %3392 = vrsqrt.f32 %v772_v24  ;;  %v1260_v18 = vmul.f32 0.03125, %v1208_v31  ;;  %v1415_v47 = vadd.f32 %v4601_v26, %v1383_v55  ;;  %v5748_v55 = vld [vmem:[#allocation17_spill] sm:$0xff] }
 0x191   : > { %v741_v40 = vmul.f32 0.03125, %v691_v10  ;;  %3394 = vrsqrt.f32 %v1291_v44  ;;  %v1439_v37 = vpack.c.bf16 %v904_v52, %v903_v25  ;;  %v1384_v39 = vmul.f32 %v4594_v6, %v1352_v56 }
 0x192   : > { %v3385_v4 = vpop.eup %3384  ;;  %v1292_v17 = vadd.f32 1e-05, %v1260_v18  ;;  %v869_v2 = vmul.f32 %v4594_v6, %v833_v59 }
 0x193   : > { %v773_v14 = vadd.f32 1e-05, %v741_v40  ;;  %v3387_v16 = vpop.eup %3386  ;;  %v834_v9 = vmul.f32 %v3385_v4, %v4424_v11  ;;  %v694_v28 = vpop.xlane.xlu1 %693  ;;  %3250 = vmatprep.mubr.msk.bf16.mxu0 %vm429_vm0, %v1439_v37  ;;  %v1416_v45 = vadd.f32 %v4601_v26, %v1384_v39 }
 0x194   : > { %v1211_v58 = vpop.xlane.xlu0 %1210  ;;  %v1353_v15 = vmul.f32 %v3387_v16, %v4433_v48  ;;  %3396 = vrsqrt.f32 %v1292_v17  ;;  %v742_v63 = vmul.f32 0.03125, %v694_v28  ;;  %v905_v7 = vadd.f32 %v4601_v26, %v869_v2  ;;  %v5749_v16 = vld [vmem:[#allocation18_spill] sm:$0xff] }
 0x195   : > { %v1261_v51 = vmul.f32 0.03125, %v1211_v58  ;;  %3398 = vrsqrt.f32 %v773_v14  ;;  %v1459_v0 = vpack.c.bf16 %v1416_v45, %v1415_v47  ;;  %v870_v29 = vmul.f32 %v4594_v6, %v834_v9 }
 0x196   : > { %v3389_v11 = vpop.eup %3388  ;;  %v774_v34 = vadd.f32 1e-05, %v742_v63  ;;  %v1385_v30 = vmul.f32 %v4594_v6, %v1353_v15  ;;  %v5750_v15 = vld [vmem:[#allocation19_spill] sm:$0xff] }
 0x197   : > { %v1293_v23 = vadd.f32 1e-05, %v1261_v51  ;;  %v3391_v3 = vpop.eup %3390  ;;  %v1354_v57 = vmul.f32 %v3389_v11, %v4436_v19  ;;  %v1214_v41 = vpop.xlane.xlu1 %1213  ;;  %3214 = vmatprep.mubr.msk.bf16.mxu1 %vm429_vm0, %v1459_v0  ;;  %v906_v48 = vadd.f32 %v4601_v26, %v870_v29 }
 0x198   : > { %v697_v8 = vpop.xlane.xlu0 %696  ;;  %v835_v50 = vmul.f32 %v3391_v3, %v4445_v38  ;;  %3400 = vrsqrt.f32 %v774_v34  ;;  %v1262_v42 = vmul.f32 0.03125, %v1214_v41  ;;  %v1417_v62 = vadd.f32 %v4601_v26, %v1385_v30  ;;  %v5751_v41 = vld [vmem:[#allocation20_spill] sm:$0xff] }
 0x199   : > { %v743_v20 = vmul.f32 0.03125, %v697_v8  ;;  %3402 = vrsqrt.f32 %v1293_v23  ;;  %v1440_v21 = vpack.c.bf16 %v906_v48, %v905_v7  ;;  %v1386_v32 = vmul.f32 %v4594_v6, %v1354_v57 }
 0x19a   : > { %v3393_v19 = vpop.eup %3392  ;;  %v1294_v5 = vadd.f32 1e-05, %v1262_v42  ;;  %v871_v33 = vmul.f32 %v4594_v6, %v835_v50 }
 0x19b   : > { %v775_v60 = vadd.f32 1e-05, %v743_v20  ;;  %v3395_v46 = vpop.eup %3394  ;;  %v836_v13 = vmul.f32 %v3393_v19, %v4448_v27  ;;  %v700_v49 = vpop.xlane.xlu1 %699  ;;  %3251 = vmatmul.mubr.msk.bf16.gmra.mrb[16].mxu0 %vm429_vm0, %v1440_v21  ;;  %v1418_v38 = vadd.f32 %v4601_v26, %v1386_v32  ;;  %v5752_v20 = vld [vmem:[#allocation21_spill] sm:$0xff] }
 0x19c   : > { %v1217_v1 = vpop.xlane.xlu0 %1216  ;;  %v1355_v22 = vmul.f32 %v3395_v46, %v4457_v36  ;;  %3404 = vrsqrt.f32 %v1294_v5  ;;  %v744_v53 = vmul.f32 0.03125, %v700_v49  ;;  %v907_v25 = vadd.f32 %v4601_v26, %v871_v33 }
 0x19d   : > { %v1263_v43 = vmul.f32 0.03125, %v1217_v1  ;;  %3406 = vrsqrt.f32 %v775_v60  ;;  %v1460_v54 = vpack.c.bf16 %v1418_v38, %v1417_v62  ;;  %v872_v61 = vmul.f32 %v4594_v6, %v836_v13  ;;  %v5753_v62 = vld [vmem:[#allocation22_spill] sm:$0xff] }
 0x19e   : > { %v3397_v27 = vpop.eup %3396  ;;  %v776_v24 = vadd.f32 1e-05, %v744_v53  ;;  %v1387_v52 = vmul.f32 %v4594_v6, %v1355_v22 }
 0x19f   : > { %v1295_v44 = vadd.f32 1e-05, %v1263_v43  ;;  %v3399_v12 = vpop.eup %3398  ;;  %v1356_v56 = vmul.f32 %v3397_v27, %v4460_v35  ;;  %v1220_v31 = vpop.xlane.xlu1 %1219  ;;  %3215 = vmatmul.mubr.msk.bf16.gmra.mrb[16].mxu1 %vm429_vm0, %v1460_v54  ;;  %v908_v36 = vadd.f32 %v4601_v26, %v872_v61  ;;  %v5754_v61 = vld [vmem:[#allocation2_spill] sm:$0xff] }
 0x1a0   : > { %v703_v10 = vpop.xlane.xlu0 %702  ;;  %v837_v59 = vmul.f32 %v3399_v12, %v5748_v55  ;;  %3408 = vrsqrt.f32 %v776_v24  ;;  %v1264_v18 = vmul.f32 0.03125, %v1220_v31  ;;  %v1419_v47 = vadd.f32 %v4601_v26, %v1387_v52  ;;  %v5755_v52 = vld [vmem:[#allocation3_spill] sm:$0xff] }
 0x1a1   : > { %v745_v40 = vmul.f32 0.03125, %v703_v10  ;;  %3410 = vrsqrt.f32 %v1295_v44  ;;  %v1441_v37 = vpack.c.bf16 %v908_v36, %v907_v25  ;;  %v1388_v39 = vmul.f32 %v4594_v6, %v1356_v56 }
 0x1a2   : > { %v3401_v35 = vpop.eup %3400  ;;  %v1296_v4 = vadd.f32 1e-05, %v1264_v18  ;;  %v873_v2 = vmul.f32 %v4594_v6, %v837_v59 }
 0x1a3   : > { %v777_v17 = vadd.f32 1e-05, %v745_v40  ;;  %v3403_v14 = vpop.eup %3402  ;;  %v838_v9 = vmul.f32 %v3401_v35, %v5749_v16  ;;  %v706_v28 = vpop.xlane.xlu1 %705  ;;  %3254 = vmatprep.mubr.msk.bf16.mxu0 %vm429_vm0, %v1441_v37  ;;  %v1420_v45 = vadd.f32 %v4601_v26, %v1388_v39  ;;  %v5756_v35 = vld [vmem:[#allocation4_spill] sm:$0xff] }
 0x1a4   : > { %v1223_v58 = vpop.xlane.xlu0 %1222  ;;  %v1357_v63 = vmul.f32 %v3403_v14, %v5750_v15  ;;  %3412 = vrsqrt.f32 %v1296_v4  ;;  %v746_v51 = vmul.f32 0.03125, %v706_v28  ;;  %v909_v30 = vadd.f32 %v4601_v26, %v873_v2  ;;  %v5757_v2 = vld [vmem:[#allocation5_spill] sm:$0xff] }
 0x1a5   : > { %v1265_v0 = vmul.f32 0.03125, %v1223_v58  ;;  %3414 = vrsqrt.f32 %v777_v17  ;;  %v1461_v29 = vpack.c.bf16 %v1420_v45, %v1419_v47  ;;  %v874_v11 = vmul.f32 %v4594_v6, %v838_v9 }
 0x1a6   : > { %v3405_v34 = vpop.eup %3404  ;;  %v778_v23 = vadd.f32 1e-05, %v746_v51  ;;  %v1389_v42 = vmul.f32 %v4594_v6, %v1357_v63 }
 0x1a7   : > { %v1297_v3 = vadd.f32 1e-05, %v1265_v0  ;;  %v3407_v57 = vpop.eup %3406  ;;  %v1358_v8 = vmul.f32 %v3405_v34, %v5751_v41  ;;  %v1226_v7 = vpop.xlane.xlu1 %1225  ;;  %3218 = vmatprep.mubr.msk.bf16.mxu1 %vm429_vm0, %v1461_v29  ;;  %v910_v50 = vadd.f32 %v4601_v26, %v874_v11  ;;  %v5758_v34 = vld [vmem:[#allocation6_spill] sm:$0xff] }
 0x1a8   : > { %v709_v48 = vpop.xlane.xlu0 %708  ;;  %v839_v21 = vmul.f32 %v3407_v57, %v5752_v20  ;;  %3416 = vrsqrt.f32 %v778_v23  ;;  %v1266_v32 = vmul.f32 0.03125, %v1226_v7  ;;  %v1421_v53 = vadd.f32 %v4601_v26, %v1389_v42  ;;  %v5759_v42 = vld [vmem:[#allocation7_spill] sm:$0xff] }
 0x1a9   : > { %v747_v19 = vmul.f32 0.03125, %v709_v48  ;;  %3418 = vrsqrt.f32 %v1297_v3  ;;  %v1442_v5 = vpack.c.bf16 %v910_v50, %v909_v30  ;;  %v1390_v60 = vmul.f32 %v4594_v6, %v1358_v8 }
 0x1aa   : > { %v3409_v46 = vpop.eup %3408  ;;  %v1298_v13 = vadd.f32 1e-05, %v1266_v32  ;;  %v875_v54 = vmul.f32 %v4594_v6, %v839_v21 }
 0x1ab   : > { %v779_v49 = vadd.f32 1e-05, %v747_v19  ;;  %v3411_v1 = vpop.eup %3410  ;;  %v840_v38 = vmul.f32 %v3409_v46, %v5753_v62  ;;  %v712_v33 = vpop.xlane.xlu1 %711  ;;  %3255 = vmatmul.mubr.msk.bf16.gmra.mrb[20].mxu0 %vm429_vm0, %v1442_v5  ;;  %v1422_v43 = vadd.f32 %v4601_v26, %v1390_v60  ;;  %v5760_v60 = vld [vmem:[#allocation8_spill] sm:$0xff] }
 0x1ac   : > { %v1229_v22 = vpop.xlane.xlu0 %1228  ;;  %v1359_v27 = vmul.f32 %v3411_v1, %v5754_v61  ;;  %3420 = vrsqrt.f32 %v1298_v13  ;;  %v748_v24 = vmul.f32 0.03125, %v712_v33  ;;  %v911_v40 = vadd.f32 %v4601_v26, %v875_v54 }
 0x1ad   : > { %v1267_v44 = vmul.f32 0.03125, %v1229_v22  ;;  %3422 = vrsqrt.f32 %v779_v49  ;;  %v1462_v12 = vpack.c.bf16 %v1422_v43, %v1421_v53  ;;  %v876_v56 = vmul.f32 %v4594_v6, %v840_v38  ;;  %v5761_v22 = vld [vmem:[#allocation9_spill] sm:$0xff] }
 0x1ae   : > { %v3413_v31 = vpop.eup %3412  ;;  %v780_v10 = vadd.f32 1e-05, %v748_v24  ;;  %v1391_v39 = vmul.f32 %v4594_v6, %v1359_v27  ;;  %v5762_v27 = vld [vmem:[#allocation10_spill] sm:$0xff] }
 0x1af   : > { %v1299_v25 = vadd.f32 1e-05, %v1267_v44  ;;  %v3415_v36 = vpop.eup %3414  ;;  %v1360_v55 = vmul.f32 %v3413_v31, %v5755_v52  ;;  %v1232_v59 = vpop.xlane.xlu1 %1231  ;;  %3219 = vmatmul.mubr.msk.bf16.gmra.mrb[20].mxu1 %vm429_vm0, %v1462_v12  ;;  %v912_v37 = vadd.f32 %v4601_v26, %v876_v56 }
 0x1b0   : > { %v715_v18 = vpop.xlane.xlu0 %714  ;;  %v841_v4 = vmul.f32 %v3415_v36, %v5756_v35  ;;  %3424 = vrsqrt.f32 %v780_v10  ;;  %v1268_v17 = vmul.f32 0.03125, %v1232_v59  ;;  %v1423_v0 = vadd.f32 %v4601_v26, %v1391_v39  ;;  %v5763_v10 = vld [vmem:[#allocation11_spill] sm:$0xff] }
 0x1b1   : > { %v749_v14 = vmul.f32 0.03125, %v715_v18  ;;  %3426 = vrsqrt.f32 %v1299_v25  ;;  %v1443_v16 = vpack.c.bf16 %v912_v37, %v911_v40  ;;  %v1392_v9 = vmul.f32 %v4594_v6, %v1360_v55  ;;  %v3758_v55 = vld [vmem:[%s5638_s3] ss:$0 sm:$0xff]  ;;  %v5764_v18 = vld [vmem:[#allocation12_spill] sm:$0xff] }
 0x1b2   : > { %v3417_v28 = vpop.eup %3416  ;;  %v1300_v58 = vadd.f32 1e-05, %v1268_v17  ;;  %v877_v11 = vmul.f32 %v4594_v6, %v841_v4  ;;  %v5765_v4 = vld [vmem:[#allocation13_spill] sm:$0xff] }
 0x1b3   : > { %v781_v47 = vadd.f32 1e-05, %v749_v14  ;;  %v3419_v45 = vpop.eup %3418  ;;  %v842_v15 = vmul.f32 %v3417_v28, %v5757_v2  ;;  %v718_v63 = vpop.xlane.xlu1 %717  ;;  %3258 = vmatprep.mubr.msk.bf16.mxu0 %vm429_vm0, %v1443_v16  ;;  %v1424_v29 = vadd.f32 %v4601_v26, %v1392_v9  ;;  %v3759_v14 = vld [vmem:[%s5639_s4] ss:$0 sm:$0xff] }
 0x1b4   : > { %v1235_v51 = vpop.xlane.xlu0 %1234  ;;  %v1361_v23 = vmul.f32 %v3419_v45, %v5758_v34  ;;  %3428 = vrsqrt.f32 %v1300_v58  ;;  %v750_v3 = vmul.f32 0.03125, %v718_v63  ;;  %v913_v32 = vadd.f32 %v4601_v26, %v877_v11  ;;  %v5766_v28 = vld [vmem:[#allocation14_spill] sm:$0xff] }
 0x1b5   : > { %v1269_v57 = vmul.f32 0.03125, %v1235_v51  ;;  %3430 = vrsqrt.f32 %v781_v47  ;;  %v1463_v41 = vpack.c.bf16 %v1424_v29, %v1423_v0  ;;  %v878_v8 = vmul.f32 %v4594_v6, %v842_v15  ;;  %v5767_v15 = vld [vmem:[#allocation23_spill] sm:$0xff] }
 0x1b6   : > { %v3421_v7 = vpop.eup %3420  ;;  %v782_v48 = vadd.f32 1e-05, %v750_v3  ;;  %v1393_v5 = vmul.f32 %v4594_v6, %v1361_v23 }
 0x1b7   : > { %v1301_v30 = vadd.f32 1e-05, %v1269_v57  ;;  %v3423_v50 = vpop.eup %3422  ;;  %v1362_v20 = vmul.f32 %v3421_v7, %v5759_v42  ;;  %v1238_v21 = vpop.xlane.xlu1 %1237  ;;  %3222 = vmatprep.mubr.msk.bf16.mxu1 %vm429_vm0, %v1463_v41  ;;  %v914_v19 = vadd.f32 %v4601_v26, %v878_v8 }
 0x1b8   : > { %v843_v46 = vmul.f32 %v3423_v50, %v5760_v60  ;;  %3432 = vrsqrt.f32 %v782_v48  ;;  %v1270_v13 = vmul.f32 0.03125, %v1238_v21  ;;  %v1425_v43 = vadd.f32 %v4601_v26, %v1393_v5  ;;  %v4821_v50 = vld [vmem:[%s5642_s7] ss:$0 sm:$0xff] }
 0x1b9   : > { %3434 = vrsqrt.f32 %v1301_v30  ;;  %v1444_v49 = vpack.c.bf16 %v914_v19, %v913_v32  ;;  %v1394_v1 = vmul.f32 %v4594_v6, %v1362_v20 }
 0x1ba   : > { %v3425_v62 = vpop.eup %3424  ;;  %v1302_v38 = vadd.f32 1e-05, %v1270_v13  ;;  %v879_v61 = vmul.f32 %v4594_v6, %v843_v46 }
 0x1bb   : > { %v3427_v33 = vpop.eup %3426  ;;  %v844_v53 = vmul.f32 %v3425_v62, %v5761_v22  ;;  %3259 = vmatmul.mubr.msk.bf16.gmra.mrb[24].mxu0 %vm429_vm0, %v1444_v49  ;;  %v1426_v54 = vadd.f32 %v4601_v26, %v1394_v1  ;;  %v3760_v49 = vld [vmem:[%s3866_s15 + $0x10] sm:$0xff] }
 0x1bc   : > { %v1363_v24 = vmul.f32 %v3427_v33, %v5762_v27  ;;  %3436 = vrsqrt.f32 %v1302_v38  ;;  %v915_v36 = vadd.f32 %v4601_v26, %v879_v61  ;;  %v3761_v33 = vld [vmem:[%s3866_s15] sm:$0xff]  ;;  %v3763_v61 = vld [vmem:[%s3866_s15 + $0x8] sm:$0xff] }
 0x1bd   : > { %v1464_v44 = vpack.c.bf16 %v1426_v54, %v1425_v43  ;;  %v880_v12 = vmul.f32 %v4594_v6, %v844_v53  ;;  %v3762_v53 = vld [vmem:[%s3866_s15 + $0x18] sm:$0xff] }
 0x1be   : > { %v3429_v56 = vpop.eup %3428  ;;  %v1395_v59 = vmul.f32 %v3758_v55, %v1363_v24 }
 0x1bf   : > { %v3431_v31 = vpop.eup %3430  ;;  %v1364_v25 = vmul.f32 %v3429_v56, %v5763_v10  ;;  %3223 = vmatmul.mubr.msk.bf16.gmra.mrb[24].mxu1 %vm429_vm0, %v1464_v44  ;;  %v916_v52 = vadd.f32 %v4601_v26, %v880_v12 }
 0x1c0   : > { %v845_v40 = vmul.f32 %v3431_v31, %v5764_v18  ;;  %v1427_v26 = vadd.f32 %v3759_v14, %v1395_v59 }
 0x1c1   : > { %v1445_v37 = vpack.c.bf16 %v916_v52, %v915_v36  ;;  %v1396_v39 = vmul.f32 %v3758_v55, %v1364_v25 }
 0x1c2   : > { %v3433_v6 = vpop.eup %3432  ;;  %v881_v9 = vmul.f32 %v3758_v55, %v845_v40 }
 0x1c3   : > { %v3435_v35 = vpop.eup %3434  ;;  %v846_v17 = vmul.f32 %v3433_v6, %v5765_v4  ;;  %3262 = vmatprep.mubr.msk.bf16.mxu0 %vm429_vm0, %v1445_v37  ;;  %v1428_v16 = vadd.f32 %v3759_v14, %v1396_v39  ;;  %v3764_v4 = vld [vmem:[%s3866_s15 + $0x30] sm:$0xff] }
 0x1c4   : > { %v1365_v58 = vmul.f32 %v3435_v35, %v5766_v28  ;;  %v917_v51 = vadd.f32 %v3759_v14, %v881_v9  ;;  %v3766_v28 = vld [vmem:[%s3866_s15 + $0x38] sm:$0xff] }
 0x1c5   : > { %v1465_v47 = vpack.c.bf16 %v1428_v16, %v1427_v26  ;;  %v882_v45 = vmul.f32 %v3758_v55, %v846_v17  ;;  %v3765_v16 = vld [vmem:[%s3866_s15 + $0x20] sm:$0xff] }
 0x1c6   : > { %v3437_v2 = vpop.eup %3436  ;;  %v1397_v29 = vmul.f32 %v3758_v55, %v1365_v58 }
 0x1c7   : > { %v1366_v63 = vmul.f32 %v3437_v2, %v5767_v15  ;;  %3226 = vmatprep.mubr.msk.bf16.mxu1 %vm429_vm0, %v1465_v47  ;;  %v918_v0 = vadd.f32 %v3759_v14, %v882_v45  ;;  %v3767_v45 = vld [vmem:[%s3866_s15 + $0x28] sm:$0xff] }
 0x1c8   : > { %v1429_v23 = vadd.f32 %v3759_v14, %v1397_v29 }
 0x1c9   : > { %v1446_v11 = vpack.c.bf16 %v918_v0, %v917_v51  ;;  %v1398_v34 = vmul.f32 %v3758_v55, %v1366_v63 }
 0x1cb   : > { %3263 = vmatmul.mubr.msk.bf16.gmra.mrb[28].mxu0 %vm429_vm0, %v1446_v11  ;;  %v1430_v3 = vadd.f32 %v3759_v14, %v1398_v34 }
 0x1cd   : > { %v1466_v57 = vpack.c.bf16 %v1430_v3, %v1429_v23 }
 0x1cf   : > { %3227 = vmatmul.mubr.msk.bf16.gmra.mrb[28].mxu1 %vm429_vm0, %v1466_v57 }
 0x22e   : > { %v3236_v41 = vpop.f32.mrb[0].mxu0 }
 0x22f   : > { %v1786_v8 = vpop.f32.mrb[1].mxu0 }
 0x230   : > { %v3237_v7 = vpop.f32.mrb[2].mxu0 }
 0x231   : > { %v1789_v48 = vpop.f32.mrb[3].mxu0 }
 0x232   : > { %v3200_v30 = vpop.f32.mrb[0].mxu1 }
 0x233   : > { %v1795_v42 = vadd.f32 %v3236_v41, %v3200_v30  ;;  %v1565_v20 = vpop.f32.mrb[1].mxu1 }
 0x234   : > { %v1787_v21 = vadd.f32 %v1786_v8, %v1565_v20  ;;  %v3201_v32 = vpop.f32.mrb[2].mxu1 }
 0x235   : > { %v1922_v19 = vadd.f32 %v4821_v50, %v1795_v42  ;;  %v1798_v5 = vadd.f32 %v3237_v7, %v3201_v32  ;;  %v1568_v60 = vpop.f32.mrb[3].mxu1 }
 0x236   : > { %v1920_v46 = vadd.f32 %v4821_v50, %v1787_v21  ;;  %v1790_v13 = vadd.f32 %v1789_v48, %v1568_v60  ;;  %v3768_v21 = vld [vmem:[%s3866_s15 + $0x50] sm:$0xff]  ;;  %v3769_v60 = vld [vmem:[%s3866_s15 + $0x40] sm:$0xff] }
 0x237   : > { %v4826_v1 = vadd.f32 %v3760_v49, %v1922_v19  ;;  %v1923_v62 = vadd.f32 %v4821_v50, %v1798_v5 }
 0x238   : > { %v1921_v38 = vadd.f32 %v4821_v50, %v1790_v13  ;;  %v4831_v22 = vadd.f32 %v3761_v33, %v1920_v46  ;;  %v3770_v13 = vld [vmem:[%s3866_s15 + $0x58] sm:$0xff] }
 0x239   : > { %v4834_v43 = vadd.f32 %v3762_v53, %v1923_v62  ;;  %v1992_v54 = vsel %vm429_vm0, %v4826_v1, 0.0 }
 0x23a   : > { %1993 = vadd.xlane.f32.xlu0 %v1992_v54  ;;  %v4839_v27 = vadd.f32 %v3763_v61, %v1921_v38  ;;  %v1986_v44 = vsel %vm429_vm0, %v4831_v22, 0.0  ;;  %v3771_v38 = vld [vmem:[%s3866_s15 + $0x48] sm:$0xff] }
 0x23b   : > { %v1995_v24 = vsel %vm429_vm0, %v4834_v43, 0.0 }
 0x23c   : > { %1996 = vadd.xlane.f32.xlu1 %v1995_v24  ;;  %v1989_v31 = vsel %vm429_vm0, %v4839_v27, 0.0 }
 0x23e   : > { %1987 = vadd.xlane.f32.xlu0 %v1986_v44  ;;  %v3240_v12 = vpop.f32.mrb[4].mxu0 }
 0x23f   : > { %v1802_v56 = vpop.f32.mrb[5].mxu0 }
 0x240   : > { %1990 = vadd.xlane.f32.xlu1 %v1989_v31  ;;  %v3241_v10 = vpop.f32.mrb[6].mxu0 }
 0x241   : > { %v1805_v25 = vpop.f32.mrb[7].mxu0 }
 0x242   : > { %v3204_v36 = vpop.f32.mrb[4].mxu1 }
 0x243   : > { %v1811_v52 = vadd.f32 %v3240_v12, %v3204_v36  ;;  %v1581_v55 = vpop.f32.mrb[5].mxu1 }
 0x244   : > { %v1803_v59 = vadd.f32 %v1802_v56, %v1581_v55  ;;  %v3205_v18 = vpop.f32.mrb[6].mxu1 }
 0x245   : > { %v1926_v40 = vadd.f32 %v4821_v50, %v1811_v52  ;;  %v1814_v37 = vadd.f32 %v3241_v10, %v3205_v18  ;;  %v1584_v39 = vpop.f32.mrb[7].mxu1 }
 0x246   : > { %v1924_v6 = vadd.f32 %v4821_v50, %v1803_v59  ;;  %v1806_v35 = vadd.f32 %v1805_v25, %v1584_v39  ;;  %v3772_v39 = vld [vmem:[%s3866_s15 + $0x70] sm:$0xff] }
 0x247   : > { %v4850_v17 = vadd.f32 %v3764_v4, %v1926_v40  ;;  %v1927_v14 = vadd.f32 %v4821_v50, %v1814_v37 }
 0x248   : > { %v1925_v26 = vadd.f32 %v4821_v50, %v1806_v35  ;;  %v4855_v9 = vadd.f32 %v3765_v16, %v1924_v6  ;;  %v3774_v16 = vld [vmem:[%s3866_s15 + $0x78] sm:$0xff] }
 0x249   : > { %v4858_v58 = vadd.f32 %v3766_v28, %v1927_v14  ;;  %v2004_v47 = vsel %vm429_vm0, %v4850_v17, 0.0  ;;  %v3773_v14 = vld [vmem:[%s3866_s15 + $0x60] sm:$0xff] }
 0x24a   : > { %2005 = vadd.xlane.f32.xlu0 %v2004_v47  ;;  %v4863_v2 = vadd.f32 %v3767_v45, %v1925_v26  ;;  %v1998_v63 = vsel %vm429_vm0, %v4855_v9, 0.0  ;;  %v3775_v45 = vld [vmem:[%s3866_s15 + $0x68] sm:$0xff] }
 0x24b   : > { %v2007_v15 = vsel %vm429_vm0, %v4858_v58, 0.0 }
 0x24c   : > { %2008 = vadd.xlane.f32.xlu1 %v2007_v15  ;;  %v2001_v29 = vsel %vm429_vm0, %v4863_v2, 0.0 }
 0x24e   : > { %1999 = vadd.xlane.f32.xlu0 %v1998_v63  ;;  %v3244_v51 = vpop.f32.mrb[8].mxu0 }
 0x24f   : > { %v1818_v0 = vpop.f32.mrb[9].mxu0 }
 0x250   : > { %2002 = vadd.xlane.f32.xlu1 %v2001_v29  ;;  %v3245_v11 = vpop.f32.mrb[10].mxu0 }
 0x251   : > { %v1821_v34 = vpop.f32.mrb[11].mxu0 }
 0x252   : > { %v3208_v23 = vpop.f32.mrb[8].mxu1 }
 0x253   : > { %v1827_v3 = vadd.f32 %v3244_v51, %v3208_v23  ;;  %v1597_v57 = vpop.f32.mrb[9].mxu1 }
 0x254   : > { %v1819_v41 = vadd.f32 %v1818_v0, %v1597_v57  ;;  %v3209_v8 = vpop.f32.mrb[10].mxu1 }
 0x255   : > { %v1930_v7 = vadd.f32 %v4821_v50, %v1827_v3  ;;  %v1830_v48 = vadd.f32 %v3245_v11, %v3209_v8  ;;  %v1600_v30 = vpop.f32.mrb[11].mxu1 }
 0x256   : > { %v1928_v42 = vadd.f32 %v4821_v50, %v1819_v41  ;;  %v1822_v20 = vadd.f32 %v1821_v34, %v1600_v30 }
 0x257   : > { %v4874_v32 = vadd.f32 %v3768_v21, %v1930_v7  ;;  %v1931_v19 = vadd.f32 %v4821_v50, %v1830_v48 }
 0x258   : > { %v1929_v5 = vadd.f32 %v4821_v50, %v1822_v20  ;;  %v4879_v46 = vadd.f32 %v3769_v60, %v1928_v42 }
 0x259   : > { %v4882_v49 = vadd.f32 %v3770_v13, %v1931_v19  ;;  %v2016_v62 = vsel %vm429_vm0, %v4874_v32, 0.0  ;;  %v3776_v19 = vld [vmem:[%s3866_s15 + $0x90] sm:$0xff] }
 0x25a   : > { %2017 = vadd.xlane.f32.xlu0 %v2016_v62  ;;  %v4887_v33 = vadd.f32 %v3771_v38, %v1929_v5  ;;  %v2010_v54 = vsel %vm429_vm0, %v4879_v46, 0.0  ;;  %v3777_v62 = vld [vmem:[%s3866_s15 + $0x80] sm:$0xff] }
 0x25b   : > { %v2019_v53 = vsel %vm429_vm0, %v4882_v49, 0.0 }
 0x25c   : > { %2020 = vadd.xlane.f32.xlu1 %v2019_v53  ;;  %v2013_v44 = vsel %vm429_vm0, %v4887_v33, 0.0  ;;  %v3778_v53 = vld [vmem:[%s3866_s15 + $0x98] sm:$0xff] }
 0x25e   : > { %2011 = vadd.xlane.f32.xlu0 %v2010_v54  ;;  %v3248_v61 = vpop.f32.mrb[12].mxu0 }
 0x25f   : > { %v1834_v24 = vpop.f32.mrb[13].mxu0 }
 0x260   : > { %2014 = vadd.xlane.f32.xlu1 %v2013_v44  ;;  %v3249_v12 = vpop.f32.mrb[14].mxu0 }
 0x261   : > { %v1837_v56 = vpop.f32.mrb[15].mxu0 }
 0x262   : > { %v3212_v31 = vpop.f32.mrb[12].mxu1 }
 0x263   : > { %v1843_v10 = vadd.f32 %v3248_v61, %v3212_v31  ;;  %v1613_v25 = vpop.f32.mrb[13].mxu1 }
 0x264   : > { %v1835_v36 = vadd.f32 %v1834_v24, %v1613_v25  ;;  %v3213_v52 = vpop.f32.mrb[14].mxu1  ;;  %v3779_v24 = vld [vmem:[%s3866_s15 + $0x88] sm:$0xff] }
 0x265   : > { %v1934_v55 = vadd.f32 %v4821_v50, %v1843_v10  ;;  %v1846_v59 = vadd.f32 %v3249_v12, %v3213_v52  ;;  %v1616_v18 = vpop.f32.mrb[15].mxu1 }
 0x266   : > { %v1932_v40 = vadd.f32 %v4821_v50, %v1835_v36  ;;  %v1838_v37 = vadd.f32 %v1837_v56, %v1616_v18 }
 0x267   : > { %v4898_v6 = vadd.f32 %v3772_v39, %v1934_v55  ;;  %v1935_v35 = vadd.f32 %v4821_v50, %v1846_v59 }
 0x268   : > { %v1933_v4 = vadd.f32 %v4821_v50, %v1838_v37  ;;  %v4903_v26 = vadd.f32 %v3773_v14, %v1932_v40 }
 0x269   : > { %v4906_v28 = vadd.f32 %v3774_v16, %v1935_v35  ;;  %v2028_v47 = vsel %vm429_vm0, %v4898_v6, 0.0 }
 0x26a   : > { %2029 = vadd.xlane.f32.xlu0 %v2028_v47  ;;  %v4911_v15 = vadd.f32 %v3775_v45, %v1933_v4  ;;  %v2022_v51 = vsel %vm429_vm0, %v4903_v26, 0.0  ;;  %v3780_v47 = vld [vmem:[%s3866_s15 + $0xb0] sm:$0xff] }
 0x26b   : > { %v2031_v63 = vsel %vm429_vm0, %v4906_v28, 0.0 }
 0x26c   : > { %2032 = vadd.xlane.f32.xlu1 %v2031_v63  ;;  %v2025_v11 = vsel %vm429_vm0, %v4911_v15, 0.0 }
 0x26e   : > { %2023 = vadd.xlane.f32.xlu0 %v2022_v51  ;;  %v3252_v0 = vpop.f32.mrb[16].mxu0 }
 0x26f   : > { %v1850_v29 = vpop.f32.mrb[17].mxu0 }
 0x270   : > { %2026 = vadd.xlane.f32.xlu1 %v2025_v11  ;;  %v3253_v34 = vpop.f32.mrb[18].mxu0  ;;  %v3782_v11 = vld [vmem:[%s3866_s15 + $0xb8] sm:$0xff] }
 0x271   : > { %v1853_v23 = vpop.f32.mrb[19].mxu0 }
 0x272   : > { %v3216_v3 = vpop.f32.mrb[16].mxu1 }
 0x273   : > { %v1859_v57 = vadd.f32 %v3252_v0, %v3216_v3  ;;  %v1629_v41 = vpop.f32.mrb[17].mxu1  ;;  %v3781_v0 = vld [vmem:[%s3866_s15 + $0xa0] sm:$0xff]  ;;  %v3783_v3 = vld [vmem:[%s3866_s15 + $0xa8] sm:$0xff] }
 0x274   : > { %v1851_v8 = vadd.f32 %v1850_v29, %v1629_v41  ;;  %v3217_v7 = vpop.f32.mrb[18].mxu1 }
 0x275   : > { %v1938_v48 = vadd.f32 %v4821_v50, %v1859_v57  ;;  %v1862_v30 = vadd.f32 %v3253_v34, %v3217_v7  ;;  %v1632_v42 = vpop.f32.mrb[19].mxu1 }
 0x276   : > { %v1936_v20 = vadd.f32 %v4821_v50, %v1851_v8  ;;  %v1854_v21 = vadd.f32 %v1853_v23, %v1632_v42 }
 0x277   : > { %v4922_v5 = vadd.f32 %v3776_v19, %v1938_v48  ;;  %v1939_v60 = vadd.f32 %v4821_v50, %v1862_v30 }
 0x278   : > { %v1937_v13 = vadd.f32 %v4821_v50, %v1854_v21  ;;  %v4927_v38 = vadd.f32 %v3777_v62, %v1936_v20 }
 0x279   : > { %v4930_v54 = vadd.f32 %v3778_v53, %v1939_v60  ;;  %v2040_v61 = vsel %vm429_vm0, %v4922_v5, 0.0 }
 0x27a   : > { %2041 = vadd.xlane.f32.xlu0 %v2040_v61  ;;  %v4935_v44 = vadd.f32 %v3779_v24, %v1937_v13  ;;  %v2034_v56 = vsel %vm429_vm0, %v4927_v38, 0.0 }
 0x27b   : > { %v2043_v12 = vsel %vm429_vm0, %v4930_v54, 0.0 }
 0x27c   : > { %5768 = vst [vmem:[#allocation15_spill] sm:$0xff] %v4935_v44  ;;  %2044 = vadd.xlane.f32.xlu1 %v2043_v12  ;;  %v2037_v25 = vsel %vm429_vm0, %v4935_v44, 0.0 }
 0x27e   : > { %2035 = vadd.xlane.f32.xlu0 %v2034_v56  ;;  %v3256_v31 = vpop.f32.mrb[20].mxu0 }
 0x27f   : > { %v1866_v10 = vpop.f32.mrb[21].mxu0 }
 0x280   : > { %2038 = vadd.xlane.f32.xlu1 %v2037_v25  ;;  %v3257_v36 = vpop.f32.mrb[22].mxu0 }
 0x281   : > { %v1869_v52 = vpop.f32.mrb[23].mxu0 }
 0x282   : > { %v3220_v55 = vpop.f32.mrb[20].mxu1 }
 0x283   : > { %v1875_v59 = vadd.f32 %v3256_v31, %v3220_v55  ;;  %v1645_v18 = vpop.f32.mrb[21].mxu1  ;;  %v3784_v31 = vld [vmem:[%s3866_s15 + $0xd0] sm:$0xff] }
 0x284   : > { %v1867_v40 = vadd.f32 %v1866_v10, %v1645_v18  ;;  %v3221_v37 = vpop.f32.mrb[22].mxu1 }
 0x285   : > { %v1942_v39 = vadd.f32 %v4821_v50, %v1875_v59  ;;  %v1878_v35 = vadd.f32 %v3257_v36, %v3221_v37  ;;  %v1648_v4 = vpop.f32.mrb[23].mxu1  ;;  %v3786_v59 = vld [vmem:[%s3866_s15 + $0xd8] sm:$0xff]  ;;  %v3787_v37 = vld [vmem:[%s3866_s15 + $0xc8] sm:$0xff] }
 0x286   : > { %v1940_v14 = vadd.f32 %v4821_v50, %v1867_v40  ;;  %v1870_v16 = vadd.f32 %v1869_v52, %v1648_v4  ;;  %v3785_v52 = vld [vmem:[%s3866_s15 + $0xc0] sm:$0xff] }
 0x287   : > { %v4946_v45 = vadd.f32 %v3780_v47, %v1942_v39  ;;  %v1943_v63 = vadd.f32 %v4821_v50, %v1878_v35 }
 0x288   : > { %v1941_v51 = vadd.f32 %v4821_v50, %v1870_v16  ;;  %v4951_v29 = vadd.f32 %v3781_v0, %v1940_v14 }
 0x289   : > { %v4954_v34 = vadd.f32 %v3782_v11, %v1943_v63  ;;  %v2052_v23 = vsel %vm429_vm0, %v4946_v45, 0.0 }
 0x28a   : > { %5769 = vst [vmem:[#allocation16_spill] sm:$0xff] %v4951_v29  ;;  %2053 = vadd.xlane.f32.xlu0 %v2052_v23  ;;  %v4959_v57 = vadd.f32 %v3783_v3, %v1941_v51  ;;  %v2046_v8 = vsel %vm429_vm0, %v4951_v29, 0.0 }
 0x28b   : > { %v2055_v41 = vsel %vm429_vm0, %v4954_v34, 0.0 }
 0x28c   : > { %5770 = vst [vmem:[#allocation17_spill] sm:$0xff] %v4959_v57  ;;  %2056 = vadd.xlane.f32.xlu1 %v2055_v41  ;;  %v2049_v30 = vsel %vm429_vm0, %v4959_v57, 0.0 }
 0x28e   : > { %2047 = vadd.xlane.f32.xlu0 %v2046_v8  ;;  %v3260_v7 = vpop.f32.mrb[24].mxu0 }
 0x28f   : > { %v1882_v48 = vpop.f32.mrb[25].mxu0 }
 0x290   : > { %2050 = vadd.xlane.f32.xlu1 %v2049_v30  ;;  %v3261_v42 = vpop.f32.mrb[26].mxu0 }
 0x291   : > { %v1885_v20 = vpop.f32.mrb[27].mxu0 }
 0x292   : > { %v3224_v21 = vpop.f32.mrb[24].mxu1 }
 0x293   : > { %v1891_v19 = vadd.f32 %v3260_v7, %v3224_v21  ;;  %v1661_v60 = vpop.f32.mrb[25].mxu1 }
 0x294   : > { %v1883_v13 = vadd.f32 %v1882_v48, %v1661_v60  ;;  %v3225_v62 = vpop.f32.mrb[26].mxu1 }
 0x295   : > { %v1946_v53 = vadd.f32 %v4821_v50, %v1891_v19  ;;  %v1894_v61 = vadd.f32 %v3261_v42, %v3225_v62  ;;  %v1664_v24 = vpop.f32.mrb[27].mxu1 }
 0x296   : > { %v1944_v12 = vadd.f32 %v4821_v50, %v1883_v13  ;;  %v1886_v56 = vadd.f32 %v1885_v20, %v1664_v24  ;;  %v3788_v20 = vld [vmem:[%s3866_s15 + $0xe0] sm:$0xff]  ;;  %v3789_v13 = vld [vmem:[%s3866_s15 + $0xf0] sm:$0xff] }
 0x297   : > { %v4970_v10 = vadd.f32 %v3784_v31, %v1946_v53  ;;  %v1947_v25 = vadd.f32 %v4821_v50, %v1894_v61  ;;  %v3790_v53 = vld [vmem:[%s3866_s15 + $0xe8] sm:$0xff] }
 0x298   : > { %v1945_v36 = vadd.f32 %v4821_v50, %v1886_v56  ;;  %v4975_v55 = vadd.f32 %v3785_v52, %v1944_v12  ;;  %v3791_v12 = vld [vmem:[%s3866_s15 + $0xf8] sm:$0xff] }
 0x299   : > { %5771 = vst [vmem:[#allocation18_spill] sm:$0xff] %v4970_v10  ;;  %v4978_v18 = vadd.f32 %v3786_v59, %v1947_v25  ;;  %v2064_v40 = vsel %vm429_vm0, %v4970_v10, 0.0 }
 0x29a   : > { %5772 = vst [vmem:[#allocation19_spill] sm:$0xff] %v4975_v55  ;;  %2065 = vadd.xlane.f32.xlu0 %v2064_v40  ;;  %v4983_v39 = vadd.f32 %v3787_v37, %v1945_v36  ;;  %v2058_v4 = vsel %vm429_vm0, %v4975_v55, 0.0 }
 0x29b   : > { %5773 = vst [vmem:[#allocation20_spill] sm:$0xff] %v4978_v18  ;;  %v2067_v35 = vsel %vm429_vm0, %v4978_v18, 0.0 }
 0x29c   : > { %5774 = vst [vmem:[#allocation21_spill] sm:$0xff] %v4983_v39  ;;  %2068 = vadd.xlane.f32.xlu1 %v2067_v35  ;;  %v2061_v47 = vsel %vm429_vm0, %v4983_v39, 0.0 }
 0x29e   : > { %2059 = vadd.xlane.f32.xlu0 %v2058_v4  ;;  %v3264_v14 = vpop.f32.mrb[28].mxu0 }
 0x29f   : > { %v1898_v16 = vpop.f32.mrb[29].mxu0 }
 0x2a0   : > { %2062 = vadd.xlane.f32.xlu1 %v2061_v47  ;;  %v3265_v63 = vpop.f32.mrb[30].mxu0 }
 0x2a1   : > { %v1901_v51 = vpop.f32.mrb[31].mxu0 }
 0x2a2   : > { %v3228_v0 = vpop.f32.mrb[28].mxu1 }
 0x2a3   : > { %v1907_v11 = vadd.f32 %v3264_v14, %v3228_v0  ;;  %v1677_v23 = vpop.f32.mrb[29].mxu1 }
 0x2a4   : > { %v1899_v3 = vadd.f32 %v1898_v16, %v1677_v23  ;;  %v3229_v41 = vpop.f32.mrb[30].mxu1 }
 0x2a5   : > { %v1910_v8 = vadd.f32 %v3265_v63, %v3229_v41  ;;  %v1680_v7 = vpop.f32.mrb[31].mxu1  ;;  %v1950_v48 = vadd.f32 %v4821_v50, %v1907_v11 }
 0x2a6   : > { %v1948_v30 = vadd.f32 %v4821_v50, %v1899_v3  ;;  %v1902_v42 = vadd.f32 %v1901_v51, %v1680_v7 }
 0x2a7   : > { %v1951_v19 = vadd.f32 %v4821_v50, %v1910_v8  ;;  %v4999_v62 = vadd.f32 %v3789_v13, %v1950_v48 }
 0x2a8   : > { %v4994_v21 = vadd.f32 %v3788_v20, %v1948_v30  ;;  %v1949_v60 = vadd.f32 %v4821_v50, %v1902_v42 }
 0x2a9   : > { %5776 = vst [vmem:[#allocation2_spill] sm:$0xff] %v4999_v62  ;;  %v5007_v56 = vadd.f32 %v3791_v12, %v1951_v19  ;;  %v2076_v50 = vsel %vm429_vm0, %v4999_v62, 0.0 }
 0x2aa   : > { %5775 = vst [vmem:[#allocation22_spill] sm:$0xff] %v4994_v21  ;;  %v5002_v61 = vadd.f32 %v3790_v53, %v1949_v60  ;;  %v2070_v24 = vsel %vm429_vm0, %v4994_v21, 0.0 }
 0x2ab   : > { %2071 = vadd.xlane.f32.xlu0 %v2070_v24  ;;  %5778 = vst [vmem:[#allocation4_spill] sm:$0xff] %v5007_v56  ;;  %v2079_v25 = vsel %vm429_vm0, %v5007_v56, 0.0 }
 0x2ac   : > { %5777 = vst [vmem:[#allocation3_spill] sm:$0xff] %v5002_v61  ;;  %v2073_v31 = vsel %vm429_vm0, %v5002_v61, 0.0 }
 0x2ad   : > { %2074 = vadd.xlane.f32.xlu1 %v2073_v31 }
 0x2af   : > { %2077 = vadd.xlane.f32.xlu0 %v2076_v50 }
 0x2b1   : > { %2080 = vadd.xlane.f32.xlu1 %v2079_v25 }
 0x2c7   : > { %v1994_v36 = vpop.xlane.xlu0 %1993 }
 0x2c8   : > { %v2084_v52 = vmul.f32 0.03125, %v1994_v36 }
 0x2c9   : > { %v1997_v59 = vpop.xlane.xlu1 %1996 }
 0x2ca   : > { %v5016_v40 = vsub.f32 %v4826_v1, %v2084_v52  ;;  %v2085_v37 = vmul.f32 0.03125, %v1997_v59 }
 0x2cb   : > { %v1988_v35 = vpop.xlane.xlu0 %1987 }
 0x2cc   : > { %v5019_v4 = vsub.f32 %v4834_v43, %v2085_v37  ;;  %v2082_v14 = vmul.f32 0.03125, %v1988_v35  ;;  %v2148_v16 = vmul.f32 %v5016_v40, %v5016_v40 }
 0x2cd   : > { %v1991_v47 = vpop.xlane.xlu1 %1990 }
 0x2ce   : > { %v5024_v63 = vsub.f32 %v4831_v22, %v2082_v14  ;;  %v2083_v51 = vmul.f32 0.03125, %v1991_v47  ;;  %v2184_v0 = vsel %vm429_vm0, %v2148_v16, 0.0  ;;  %v2149_v11 = vmul.f32 %v5019_v4, %v5019_v4 }
 0x2cf   : > { %2185 = vadd.xlane.f32.xlu0 %v2184_v0 }
 0x2d0   : > { %v5030_v23 = vsub.f32 %v4839_v27, %v2083_v51  ;;  %v2187_v3 = vsel %vm429_vm0, %v2149_v11, 0.0  ;;  %v2146_v41 = vmul.f32 %v5024_v63, %v5024_v63 }
 0x2d1   : > { %2188 = vadd.xlane.f32.xlu1 %v2187_v3 }
 0x2d2   : > { %v2178_v8 = vsel %vm429_vm0, %v2146_v41, 0.0  ;;  %v2147_v7 = vmul.f32 %v5030_v23, %v5030_v23 }
 0x2d3   : > { %2179 = vadd.xlane.f32.xlu0 %v2178_v8 }
 0x2d4   : > { %v2181_v48 = vsel %vm429_vm0, %v2147_v7, 0.0 }
 0x2d5   : > { %2182 = vadd.xlane.f32.xlu1 %v2181_v48 }
 0x2d7   : > { %v2006_v30 = vpop.xlane.xlu0 %2005 }
 0x2d8   : > { %v2088_v42 = vmul.f32 0.03125, %v2006_v30 }
 0x2d9   : > { %v2009_v20 = vpop.xlane.xlu1 %2008 }
 0x2da   : > { %v5040_v19 = vsub.f32 %v4850_v17, %v2088_v42  ;;  %v2089_v60 = vmul.f32 0.03125, %v2009_v20 }
 0x2db   : > { %v2000_v13 = vpop.xlane.xlu0 %1999 }
 0x2dc   : > { %v5043_v53 = vsub.f32 %v4858_v58, %v2089_v60  ;;  %v2086_v24 = vmul.f32 0.03125, %v2000_v13  ;;  %v2152_v12 = vmul.f32 %v5040_v19, %v5040_v19 }
 0x2dd   : > { %v2003_v31 = vpop.xlane.xlu1 %2002 }
 0x2de   : > { %v5048_v50 = vsub.f32 %v4855_v9, %v2086_v24  ;;  %v2087_v25 = vmul.f32 0.03125, %v2003_v31  ;;  %v2196_v36 = vsel %vm429_vm0, %v2152_v12, 0.0  ;;  %v2153_v52 = vmul.f32 %v5043_v53, %v5043_v53 }
 0x2df   : > { %2197 = vadd.xlane.f32.xlu0 %v2196_v36 }
 0x2e0   : > { %v5054_v59 = vsub.f32 %v4863_v2, %v2087_v25  ;;  %v2199_v37 = vsel %vm429_vm0, %v2153_v52, 0.0  ;;  %v2150_v35 = vmul.f32 %v5048_v50, %v5048_v50 }
 0x2e1   : > { %2200 = vadd.xlane.f32.xlu1 %v2199_v37 }
 0x2e2   : > { %v2190_v14 = vsel %vm429_vm0, %v2150_v35, 0.0  ;;  %v2151_v16 = vmul.f32 %v5054_v59, %v5054_v59 }
 0x2e3   : > { %2191 = vadd.xlane.f32.xlu0 %v2190_v14 }
 0x2e4   : > { %v2193_v47 = vsel %vm429_vm0, %v2151_v16, 0.0 }
 0x2e5   : > { %2194 = vadd.xlane.f32.xlu1 %v2193_v47 }
 0x2e7   : > { %v2018_v51 = vpop.xlane.xlu0 %2017 }
 0x2e8   : > { %v2092_v0 = vmul.f32 0.03125, %v2018_v51 }
 0x2e9   : > { %v2021_v11 = vpop.xlane.xlu1 %2020 }
 0x2ea   : > { %v5064_v3 = vsub.f32 %v4874_v32, %v2092_v0  ;;  %v2093_v41 = vmul.f32 0.03125, %v2021_v11 }
 0x2eb   : > { %v2012_v8 = vpop.xlane.xlu0 %2011 }
 0x2ec   : > { %v5067_v7 = vsub.f32 %v4882_v49, %v2093_v41  ;;  %v2090_v48 = vmul.f32 0.03125, %v2012_v8  ;;  %v2156_v30 = vmul.f32 %v5064_v3, %v5064_v3 }
 0x2ed   : > { %v2015_v42 = vpop.xlane.xlu1 %2014 }
 0x2ee   : > { %v5072_v20 = vsub.f32 %v4879_v46, %v2090_v48  ;;  %v2091_v60 = vmul.f32 0.03125, %v2015_v42  ;;  %v2208_v13 = vsel %vm429_vm0, %v2156_v30, 0.0  ;;  %v2157_v24 = vmul.f32 %v5067_v7, %v5067_v7 }
 0x2ef   : > { %2209 = vadd.xlane.f32.xlu0 %v2208_v13 }
 0x2f0   : > { %v5078_v12 = vsub.f32 %v4887_v33, %v2091_v60  ;;  %v2211_v31 = vsel %vm429_vm0, %v2157_v24, 0.0  ;;  %v2154_v25 = vmul.f32 %v5072_v20, %v5072_v20 }
 0x2f1   : > { %2212 = vadd.xlane.f32.xlu1 %v2211_v31 }
 0x2f2   : > { %v2202_v36 = vsel %vm429_vm0, %v2154_v25, 0.0  ;;  %v2155_v52 = vmul.f32 %v5078_v12, %v5078_v12 }
 0x2f3   : > { %2203 = vadd.xlane.f32.xlu0 %v2202_v36 }
 0x2f4   : > { %v2205_v37 = vsel %vm429_vm0, %v2155_v52, 0.0 }
 0x2f5   : > { %2206 = vadd.xlane.f32.xlu1 %v2205_v37 }
 0x2f7   : > { %v2030_v35 = vpop.xlane.xlu0 %2029 }
 0x2f8   : > { %v2096_v14 = vmul.f32 0.03125, %v2030_v35 }
 0x2f9   : > { %v2033_v16 = vpop.xlane.xlu1 %2032 }
 0x2fa   : > { %v5088_v47 = vsub.f32 %v4898_v6, %v2096_v14  ;;  %v2097_v51 = vmul.f32 0.03125, %v2033_v16 }
 0x2fb   : > { %v2024_v0 = vpop.xlane.xlu0 %2023 }
 0x2fc   : > { %v5091_v11 = vsub.f32 %v4906_v28, %v2097_v51  ;;  %v2094_v41 = vmul.f32 0.03125, %v2024_v0  ;;  %v2160_v8 = vmul.f32 %v5088_v47, %v5088_v47 }
 0x2fd   : > { %v2027_v48 = vpop.xlane.xlu1 %2026 }
 0x2fe   : > { %v5096_v30 = vsub.f32 %v4903_v26, %v2094_v41  ;;  %v2095_v42 = vmul.f32 0.03125, %v2027_v48  ;;  %v2220_v60 = vsel %vm429_vm0, %v2160_v8, 0.0  ;;  %v2161_v13 = vmul.f32 %v5091_v11, %v5091_v11 }
 0x2ff   : > { %2221 = vadd.xlane.f32.xlu0 %v2220_v60 }
 0x300   : > { %v5102_v24 = vsub.f32 %v4911_v15, %v2095_v42  ;;  %v2223_v31 = vsel %vm429_vm0, %v2161_v13, 0.0  ;;  %v2158_v25 = vmul.f32 %v5096_v30, %v5096_v30 }
 0x301   : > { %2224 = vadd.xlane.f32.xlu1 %v2223_v31 }
 0x302   : > { %v2214_v36 = vsel %vm429_vm0, %v2158_v25, 0.0  ;;  %v2159_v52 = vmul.f32 %v5102_v24, %v5102_v24 }
 0x303   : > { %2215 = vadd.xlane.f32.xlu0 %v2214_v36 }
 0x304   : > { %v2217_v37 = vsel %vm429_vm0, %v2159_v52, 0.0 }
 0x305   : > { %2218 = vadd.xlane.f32.xlu1 %v2217_v37 }
 0x307   : > { %v2042_v35 = vpop.xlane.xlu0 %2041 }
 0x308   : > { %v2100_v14 = vmul.f32 0.03125, %v2042_v35 }
 0x309   : > { %v2045_v16 = vpop.xlane.xlu1 %2044 }
 0x30a   : > { %v5112_v51 = vsub.f32 %v4922_v5, %v2100_v14  ;;  %v2101_v0 = vmul.f32 0.03125, %v2045_v16 }
 0x30b   : > { %v2036_v41 = vpop.xlane.xlu0 %2035 }
 0x30c   : > { %v5115_v8 = vsub.f32 %v4930_v54, %v2101_v0  ;;  %v2098_v48 = vmul.f32 0.03125, %v2036_v41  ;;  %v2164_v42 = vmul.f32 %v5112_v51, %v5112_v51 }
 0x30d   : > { %v2039_v60 = vpop.xlane.xlu1 %2038 }
 0x30e   : > { %v5120_v13 = vsub.f32 %v4927_v38, %v2098_v48  ;;  %v2099_v31 = vmul.f32 0.03125, %v2039_v60  ;;  %v2232_v25 = vsel %vm429_vm0, %v2164_v42, 0.0  ;;  %v2165_v36 = vmul.f32 %v5115_v8, %v5115_v8 }
 0x30f   : > { %2233 = vadd.xlane.f32.xlu0 %v2232_v25 }
 0x310   : > { %v5126_v52 = vsub.f32 %v4935_v44, %v2099_v31  ;;  %v2235_v37 = vsel %vm429_vm0, %v2165_v36, 0.0  ;;  %v2162_v35 = vmul.f32 %v5120_v13, %v5120_v13 }
 0x311   : > { %2236 = vadd.xlane.f32.xlu1 %v2235_v37 }
 0x312   : > { %v2226_v14 = vsel %vm429_vm0, %v2162_v35, 0.0  ;;  %v2163_v16 = vmul.f32 %v5126_v52, %v5126_v52 }
 0x313   : > { %2227 = vadd.xlane.f32.xlu0 %v2226_v14 }
 0x314   : > { %v2229_v0 = vsel %vm429_vm0, %v2163_v16, 0.0 }
 0x315   : > { %2230 = vadd.xlane.f32.xlu1 %v2229_v0 }
 0x317   : > { %v2054_v41 = vpop.xlane.xlu0 %2053 }
 0x318   : > { %v2104_v48 = vmul.f32 0.03125, %v2054_v41 }
 0x319   : > { %v2057_v42 = vpop.xlane.xlu1 %2056 }
 0x31a   : > { %v5136_v60 = vsub.f32 %v4946_v45, %v2104_v48  ;;  %v2105_v31 = vmul.f32 0.03125, %v2057_v42 }
 0x31b   : > { %v2048_v25 = vpop.xlane.xlu0 %2047 }
 0x31c   : > { %v5139_v36 = vsub.f32 %v4954_v34, %v2105_v31  ;;  %v2102_v37 = vmul.f32 0.03125, %v2048_v25  ;;  %v2168_v35 = vmul.f32 %v5136_v60, %v5136_v60 }
 0x31d   : > { %v2051_v44 = vpop.xlane.xlu1 %2050 }
 0x31e   : > { %v5144_v14 = vsub.f32 %v4951_v29, %v2102_v37  ;;  %v2103_v16 = vmul.f32 0.03125, %v2051_v44  ;;  %v2244_v0 = vsel %vm429_vm0, %v2168_v35, 0.0  ;;  %v2169_v41 = vmul.f32 %v5139_v36, %v5139_v36 }
 0x31f   : > { %2245 = vadd.xlane.f32.xlu0 %v2244_v0 }
 0x320   : > { %5779 = vst [vmem:[#allocation5_spill] sm:$0xff] %v5144_v14  ;;  %v5150_v48 = vsub.f32 %v4959_v57, %v2103_v16  ;;  %v2247_v42 = vsel %vm429_vm0, %v2169_v41, 0.0  ;;  %v2166_v31 = vmul.f32 %v5144_v14, %v5144_v14 }
 0x321   : > { %2248 = vadd.xlane.f32.xlu1 %v2247_v42 }
 0x322   : > { %5780 = vst [vmem:[#allocation6_spill] sm:$0xff] %v5150_v48  ;;  %v2238_v25 = vsel %vm429_vm0, %v2166_v31, 0.0  ;;  %v2167_v44 = vmul.f32 %v5150_v48, %v5150_v48 }
 0x323   : > { %2239 = vadd.xlane.f32.xlu0 %v2238_v25 }
 0x324   : > { %v2241_v37 = vsel %vm429_vm0, %v2167_v44, 0.0 }
 0x325   : > { %2242 = vadd.xlane.f32.xlu1 %v2241_v37 }
 0x327   : > { %v2066_v35 = vpop.xlane.xlu0 %2065 }
 0x328   : > { %v2108_v0 = vmul.f32 0.03125, %v2066_v35 }
 0x329   : > { %v2069_v29 = vpop.xlane.xlu1 %2068 }
 0x32a   : > { %v5160_v16 = vsub.f32 %v4970_v10, %v2108_v0  ;;  %v2109_v41 = vmul.f32 0.03125, %v2069_v29 }
 0x32b   : > { %v2060_v57 = vpop.xlane.xlu0 %2059 }
 0x32c   : > { %v5163_v14 = vsub.f32 %v4978_v18, %v2109_v41  ;;  %v2106_v42 = vmul.f32 0.03125, %v2060_v57  ;;  %v2172_v31 = vmul.f32 %v5160_v16, %v5160_v16 }
 0x32d   : > { %v2063_v48 = vpop.xlane.xlu1 %2062 }
 0x32e   : > { %v5168_v25 = vsub.f32 %v4975_v55, %v2106_v42  ;;  %v2107_v44 = vmul.f32 0.03125, %v2063_v48  ;;  %v2256_v37 = vsel %vm429_vm0, %v2172_v31, 0.0  ;;  %v2173_v35 = vmul.f32 %v5163_v14, %v5163_v14 }
 0x32f   : > { %2257 = vadd.xlane.f32.xlu0 %v2256_v37 }
 0x330   : > { %v5174_v29 = vsub.f32 %v4983_v39, %v2107_v44  ;;  %v2259_v0 = vsel %vm429_vm0, %v2173_v35, 0.0  ;;  %v2170_v57 = vmul.f32 %v5168_v25, %v5168_v25 }
 0x331   : > { %2260 = vadd.xlane.f32.xlu1 %v2259_v0 }
 0x332   : > { %5781 = vst [vmem:[#allocation7_spill] sm:$0xff] %v5174_v29  ;;  %v2250_v41 = vsel %vm429_vm0, %v2170_v57, 0.0  ;;  %v2171_v48 = vmul.f32 %v5174_v29, %v5174_v29 }
 0x333   : > { %2251 = vadd.xlane.f32.xlu0 %v2250_v41 }
 0x334   : > { %v2253_v42 = vsel %vm429_vm0, %v2171_v48, 0.0 }
 0x335   : > { %2254 = vadd.xlane.f32.xlu1 %v2253_v42 }
 0x338   : > { %v2072_v31 = vpop.xlane.xlu0 %2071 }
 0x339   : > { %v2110_v37 = vmul.f32 0.03125, %v2072_v31 }
 0x33a   : > { %v2075_v55 = vpop.xlane.xlu1 %2074 }
 0x33b   : > { %v5184_v44 = vsub.f32 %v4994_v21, %v2110_v37  ;;  %v2111_v35 = vmul.f32 0.03125, %v2075_v55 }
 0x33c   : > { %v2078_v39 = vpop.xlane.xlu0 %2077 }
 0x33d   : > { %5782 = vst [vmem:[#allocation8_spill] sm:$0xff] %v5184_v44  ;;  %v5187_v18 = vsub.f32 %v5002_v61, %v2111_v35  ;;  %v2112_v0 = vmul.f32 0.03125, %v2078_v39  ;;  %v2174_v57 = vmul.f32 %v5184_v44, %v5184_v44 }
 0x33e   : > { %v2081_v10 = vpop.xlane.xlu1 %2080 }
 0x33f   : > { %5783 = vst [vmem:[#allocation9_spill] sm:$0xff] %v5187_v18  ;;  %v5192_v41 = vsub.f32 %v4999_v62, %v2112_v0  ;;  %v2113_v48 = vmul.f32 0.03125, %v2081_v10  ;;  %v2262_v42 = vsel %vm429_vm0, %v2174_v57, 0.0  ;;  %v2175_v31 = vmul.f32 %v5187_v18, %v5187_v18 }
 0x340   : > { %2263 = vadd.xlane.f32.xlu0 %v2262_v42 }
 0x341   : > { %5784 = vst [vmem:[#allocation10_spill] sm:$0xff] %v5192_v41  ;;  %v5198_v55 = vsub.f32 %v5007_v56, %v2113_v48  ;;  %v2265_v37 = vsel %vm429_vm0, %v2175_v31, 0.0  ;;  %v2176_v39 = vmul.f32 %v5192_v41, %v5192_v41 }
 0x342   : > { %2266 = vadd.xlane.f32.xlu1 %v2265_v37 }
 0x343   : > { %5785 = vst [vmem:[#allocation11_spill] sm:$0xff] %v5198_v55  ;;  %v2268_v35 = vsel %vm429_vm0, %v2176_v39, 0.0  ;;  %v2177_v10 = vmul.f32 %v5198_v55, %v5198_v55 }
 0x344   : > { %2269 = vadd.xlane.f32.xlu0 %v2268_v35 }
 0x345   : > { %v2271_v0 = vsel %vm429_vm0, %v2177_v10, 0.0  ;;  %v5210_v10 = vld [vmem:[%s5638_s3 + $0x1] ss:$0 sm:$0xff] }
 0x346   : > { %2272 = vadd.xlane.f32.xlu1 %v2271_v0 }
 0x35c   : > { %v2186_v57 = vpop.xlane.xlu0 %2185 }
 0x35d   : > { %v2276_v42 = vmul.f32 0.03125, %v2186_v57 }
 0x35e   : > { %v2189_v62 = vpop.xlane.xlu1 %2188 }
 0x35f   : > { %v2308_v48 = vadd.f32 1e-05, %v2276_v42  ;;  %v2277_v56 = vmul.f32 0.03125, %v2189_v62 }
 0x360   : > { %v2180_v61 = vpop.xlane.xlu0 %2179 }
 0x361   : > { %3438 = vrsqrt.f32 %v2308_v48  ;;  %v2309_v31 = vadd.f32 1e-05, %v2277_v56  ;;  %v2274_v21 = vmul.f32 0.03125, %v2180_v61  ;;  %v5216_v61 = vld [vmem:[%s5639_s4 + $0x1] ss:$0 sm:$0xff] }
 0x362   : > { %v2183_v41 = vpop.xlane.xlu1 %2182 }
 0x363   : > { %3440 = vrsqrt.f32 %v2309_v31  ;;  %v2306_v37 = vadd.f32 1e-05, %v2274_v21  ;;  %v2275_v39 = vmul.f32 0.03125, %v2183_v41 }
 0x365   : > { %3442 = vrsqrt.f32 %v2306_v37  ;;  %v2307_v18 = vadd.f32 1e-05, %v2275_v39 }
 0x367   : > { %3444 = vrsqrt.f32 %v2307_v18 }
 0x36b   : > { %v3439_v35 = vpop.eup %3438 }
 0x36c   : > { %v2372_v0 = vmul.f32 %v3439_v35, %v5016_v40  ;;  %v2198_v62 = vpop.xlane.xlu0 %2197 }
 0x36d   : > { %v3441_v57 = vpop.eup %3440  ;;  %v2280_v21 = vmul.f32 0.03125, %v2198_v62 }
 0x36e   : > { %v2408_v56 = vmul.f32 %v5210_v10, %v2372_v0  ;;  %v2373_v18 = vmul.f32 %v3441_v57, %v5019_v4  ;;  %v2201_v41 = vpop.xlane.xlu1 %2200 }
 0x36f   : > { %v3443_v42 = vpop.eup %3442  ;;  %v2312_v48 = vadd.f32 1e-05, %v2280_v21  ;;  %v2281_v31 = vmul.f32 0.03125, %v2201_v41 }
 0x370   : > { %v2444_v37 = vadd.f32 %v5216_v61, %v2408_v56  ;;  %v2409_v40 = vmul.f32 %v5210_v10, %v2373_v18  ;;  %v2370_v39 = vmul.f32 %v3443_v42, %v5024_v63  ;;  %v2192_v35 = vpop.xlane.xlu0 %2191 }
 0x371   : > { %v3445_v55 = vpop.eup %3444  ;;  %3446 = vrsqrt.f32 %v2312_v48  ;;  %v2313_v44 = vadd.f32 1e-05, %v2281_v31  ;;  %v2278_v29 = vmul.f32 0.03125, %v2192_v35 }
 0x372   : > { %v2476_v62 = vadd.f32 %v2444_v37, %v4826_v1  ;;  %v2445_v0 = vadd.f32 %v5216_v61, %v2409_v40  ;;  %v2406_v4 = vmul.f32 %v5210_v10, %v2370_v39  ;;  %v2371_v57 = vmul.f32 %v3445_v55, %v5030_v23  ;;  %v2195_v21 = vpop.xlane.xlu1 %2194 }
 0x373   : > { %3448 = vrsqrt.f32 %v2313_v44  ;;  %v2310_v56 = vadd.f32 1e-05, %v2278_v29  ;;  %v2279_v42 = vmul.f32 0.03125, %v2195_v21 }
 0x374   : > { %v3126_v41 = vmul.f32 -1.442695, %v2476_v62  ;;  %v2477_v18 = vadd.f32 %v2445_v0, %v4834_v43  ;;  %v2442_v63 = vadd.f32 %v5216_v61, %v2406_v4  ;;  %v2407_v48 = vmul.f32 %v5210_v10, %v2371_v57 }
 0x375   : > { %3450 = vrsqrt.f32 %v2310_v56  ;;  %v2311_v55 = vadd.f32 1e-05, %v2279_v42 }
 0x376   : > { %3452 = vpow2.f32 %v3126_v41  ;;  %v3127_v1 = vmul.f32 -1.442695, %v2477_v18  ;;  %v2474_v31 = vadd.f32 %v2442_v63, %v4831_v22  ;;  %v2443_v37 = vadd.f32 %v5216_v61, %v2407_v48 }
 0x378   : > { %3454 = vpow2.f32 %v3127_v1  ;;  %v3124_v23 = vmul.f32 -1.442695, %v2474_v31  ;;  %v2475_v29 = vadd.f32 %v2443_v37, %v4839_v27 }
 0x37a   : > { %3456 = vpow2.f32 %v3124_v23  ;;  %v3125_v43 = vmul.f32 -1.442695, %v2475_v29 }
 0x37b   : > { %v3447_v44 = vpop.eup %3446  ;;  %3458 = vrsqrt.f32 %v2311_v55 }
 0x37c   : > { %v2376_v40 = vmul.f32 %v3447_v44, %v5040_v19  ;;  %v2210_v39 = vpop.xlane.xlu0 %2209  ;;  %3460 = vpow2.f32 %v3125_v43 }
 0x37d   : > { %v3449_v35 = vpop.eup %3448  ;;  %v2284_v0 = vmul.f32 0.03125, %v2210_v39  ;;  %3462 = vtanh.f32 %v2476_v62 }
 0x37e   : > { %v2412_v22 = vmul.f32 %v5210_v10, %v2376_v40  ;;  %v2377_v4 = vmul.f32 %v3449_v35, %v5043_v53  ;;  %3464 = vtanh.f32 %v2477_v18  ;;  %v2213_v48 = vpop.xlane.xlu1 %2212 }
 0x37f   : > { %v3451_v57 = vpop.eup %3450  ;;  %v2316_v21 = vadd.f32 1e-05, %v2284_v0  ;;  %3466 = vtanh.f32 %v2474_v31  ;;  %v2285_v44 = vmul.f32 0.03125, %v2213_v48 }
 0x380   : > { %v3453_v56 = vpop.eup %3452  ;;  %v2448_v27 = vadd.f32 %v5216_v61, %v2412_v22  ;;  %v2413_v41 = vmul.f32 %v5210_v10, %v2377_v4  ;;  %v2374_v19 = vmul.f32 %v3451_v57, %v5048_v50  ;;  %v2204_v31 = vpop.xlane.xlu0 %2203  ;;  %v2732_v57 = vld [vmem:[%s5248_s24 + $0x10] sm:$0xff] }
 0x381   : > { %v2604_v63 = vadd.f32 1.0, %v3453_v56  ;;  %3468 = vrsqrt.f32 %v2316_v21  ;;  %v2282_v40 = vmul.f32 0.03125, %v2204_v31  ;;  %v2730_v31 = vld [vmem:[%s5248_s24] sm:$0xff] }
 0x382   : > { %v3455_v42 = vpop.eup %3454  ;;  %3470 = vtanh.f32 %v2475_v29  ;;  %v2480_v62 = vadd.f32 %v2448_v27, %v4850_v17  ;;  %v2449_v53 = vadd.f32 %v5216_v61, %v2413_v41  ;;  %v2410_v18 = vmul.f32 %v5210_v10, %v2374_v19 }
 0x383   : > { %3472 = vrcp.f32 %v2604_v63  ;;  %v2605_v1 = vadd.f32 1.0, %v3455_v42  ;;  %v2317_v27 = vadd.f32 1e-05, %v2285_v44  ;;  %v2314_v19 = vadd.f32 1e-05, %v2282_v40  ;;  %v2207_v63 = vpop.xlane.xlu1 %2206  ;;  %v2733_v42 = vld [vmem:[%s5248_s24 + $0x18] sm:$0xff] }
 0x384   : > { %v3457_v37 = vpop.eup %3456  ;;  %v3130_v23 = vmul.f32 -1.442695, %v2480_v62  ;;  %3474 = vtanh.f32 %v2480_v62  ;;  %v2481_v50 = vadd.f32 %v2449_v53, %v4858_v58  ;;  %v2446_v29 = vadd.f32 %v5216_v61, %v2410_v18 }
 0x385   : > { %3476 = vrcp.f32 %v2605_v1  ;;  %v2602_v55 = vadd.f32 1.0, %v3457_v37  ;;  %v3459_v17 = vpop.eup %3458 }
 0x386   : > { %3478 = vpow2.f32 %v3130_v23  ;;  %v3131_v43 = vmul.f32 -1.442695, %v2481_v50  ;;  %v3461_v39 = vpop.eup %3460  ;;  %v2478_v35 = vadd.f32 %v2446_v29, %v4855_v9  ;;  %v2375_v58 = vmul.f32 %v3459_v17, %v5054_v59 }
 0x387   : > { %3480 = vrcp.f32 %v2602_v55  ;;  %v3463_v0 = vpop.eup %3462  ;;  %v2603_v22 = vadd.f32 1.0, %v3461_v39  ;;  %v2731_v39 = vld [vmem:[%s5248_s24 + $0x8] sm:$0xff] }
 0x388   : > { %3482 = vpow2.f32 %v3131_v43  ;;  %v3465_v4 = vpop.eup %3464  ;;  %v3128_v21 = vmul.f32 -1.442695, %v2478_v35  ;;  %v2411_v56 = vmul.f32 %v5210_v10, %v2375_v58  ;;  %v2764_v53 = vadd.f32 %v3463_v0, %v2732_v57 }
 0x389   : > { %3484 = vtanh.f32 %v2481_v50  ;;  %v3467_v41 = vpop.eup %3466  ;;  %v2765_v55 = vadd.f32 %v3465_v4, %v2733_v42 }
 0x38a   : > { %3486 = vrcp.f32 %v2603_v22  ;;  %v2447_v59 = vadd.f32 %v5216_v61, %v2411_v56  ;;  %v2762_v40 = vadd.f32 %v3467_v41, %v2730_v31 }
 0x38b   : > { %v3469_v9 = vpop.eup %3468  ;;  %3488 = vpow2.f32 %v3128_v21  ;;  %v2283_v21 = vmul.f32 0.03125, %v2207_v63 }
 0x38c   : > { %v3471_v62 = vpop.eup %3470  ;;  %3490 = vtanh.f32 %v2478_v35  ;;  %v2380_v18 = vmul.f32 %v3469_v9, %v5064_v3  ;;  %v2222_v48 = vpop.xlane.xlu0 %2221  ;;  %v2479_v37 = vadd.f32 %v2447_v59, %v4863_v2 }
 0x38d   : > { %v5257_v1 = vpop.eup %3472  ;;  %3492 = vrsqrt.f32 %v2317_v27  ;;  %v2763_v41 = vadd.f32 %v3471_v62, %v2731_v39  ;;  %v2288_v9 = vmul.f32 0.03125, %v2222_v48 }
 0x38e   : > { %v5267_v23 = vpop.eup %3474  ;;  %v2796_v50 = vmul.f32 %v5257_v1, %v2764_v53  ;;  %v2416_v3 = vmul.f32 %v5210_v10, %v2380_v18  ;;  %3494 = vrsqrt.f32 %v2314_v19  ;;  %v2225_v29 = vpop.xlane.xlu1 %2224  ;;  %v3129_v17 = vmul.f32 -1.442695, %v2479_v37 }
 0x38f   : > { %v5271_v44 = vpop.eup %3476  ;;  %3496 = vtanh.f32 %v2479_v37  ;;  %v2289_v53 = vmul.f32 0.03125, %v2225_v29 }
 0x390   : > { %v3479_v43 = vpop.eup %3478  ;;  %3498 = vtanh.f32 %v2796_v50  ;;  %2924 = vst.msk [vmem:[%s5263_s27 + $0x10] sm:$0xff] %vm429_vm0, %v2796_v50  ;;  %v2797_v2 = vmul.f32 %v5271_v44, %v2765_v55  ;;  %v2452_v35 = vadd.f32 %v5216_v61, %v2416_v3  ;;  %v2216_v56 = vpop.xlane.xlu0 %2215  ;;  %v2315_v50 = vadd.f32 1e-05, %v2283_v21  ;;  %v2737_v21 = vld [vmem:[%s5248_s24 + $0x38] sm:$0xff] }
 0x391   : > { %v5278_v58 = vpop.eup %3480  ;;  %v2608_v0 = vadd.f32 1.0, %v3479_v43  ;;  %3500 = vpow2.f32 %v3129_v17  ;;  %v2320_v55 = vadd.f32 1e-05, %v2288_v9  ;;  %v2321_v43 = vadd.f32 1e-05, %v2289_v53 }
 0x392   : > { %v3483_v22 = vpop.eup %3482  ;;  %3502 = vtanh.f32 %v2797_v2  ;;  %2925 = vst.msk [vmem:[%s5263_s27 + $0x18] sm:$0xff] %vm429_vm0, %v2797_v2  ;;  %v2794_v4 = vmul.f32 %v5278_v58, %v2762_v40  ;;  %v2484_v57 = vadd.f32 %v2452_v35, %v4874_v32  ;;  %v2219_v18 = vpop.xlane.xlu1 %2218  ;;  %v2286_v32 = vmul.f32 0.03125, %v2216_v56  ;;  %v2736_v40 = vld [vmem:[%s5248_s24 + $0x30] sm:$0xff] }
 0x393   : > { %v3485_v27 = vpop.eup %3484  ;;  %3504 = vrcp.f32 %v2608_v0  ;;  %v2609_v19 = vadd.f32 1.0, %v3483_v22  ;;  %v2287_v3 = vmul.f32 0.03125, %v2219_v18 }
 0x394   : > { %v5284_v42 = vpop.eup %3486  ;;  %3506 = vtanh.f32 %v2794_v4  ;;  %2922 = vst.msk [vmem:[%s5263_s27] sm:$0xff] %vm429_vm0, %v2794_v4  ;;  %v3134_v59 = vmul.f32 -1.442695, %v2484_v57  ;;  %v2318_v35 = vadd.f32 1e-05, %v2286_v32  ;;  %v2734_v32 = vld [vmem:[%s5248_s24 + $0x20] sm:$0xff] }
 0x395   : > { %v3489_v31 = vpop.eup %3488  ;;  %v2795_v37 = vmul.f32 %v5284_v42, %v2763_v41  ;;  %3508 = vrcp.f32 %v2609_v19  ;;  %v2768_v41 = vadd.f32 %v5267_v23, %v2736_v40  ;;  %v2769_v23 = vadd.f32 %v3485_v27, %v2737_v21 }
 0x396   : > { %v3491_v63 = vpop.eup %3490  ;;  %v2606_v62 = vadd.f32 1.0, %v3489_v31  ;;  %3510 = vpow2.f32 %v3134_v59 }
 0x397   : > { %v3493_v48 = vpop.eup %3492  ;;  %3512 = vtanh.f32 %v2795_v37  ;;  %2923 = vst.msk [vmem:[%s5263_s27 + $0x8] sm:$0xff] %vm429_vm0, %v2795_v37 }
 0x398   : > { %v3495_v29 = vpop.eup %3494  ;;  %3514 = vrcp.f32 %v2606_v62  ;;  %v2381_v17 = vmul.f32 %v3493_v48, %v5067_v7 }
 0x399   : > { %v5292_v2 = vpop.eup %3496  ;;  %3516 = vtanh.f32 %v2484_v57  ;;  %v2378_v39 = vmul.f32 %v3495_v29, %v5072_v20  ;;  %v2319_v20 = vadd.f32 1e-05, %v2287_v3 }
 0x39a   : > { %v3499_v0 = vpop.eup %3498  ;;  %v2417_v22 = vmul.f32 %v5210_v10, %v2381_v17  ;;  %3518 = vrsqrt.f32 %v2315_v50 }
 0x39b   : > { %v3501_v4 = vpop.eup %3500  ;;  %v2860_v7 = vmul.f32 %v3499_v0, %v5257_v1  ;;  %v2414_v56 = vmul.f32 %v5210_v10, %v2378_v39  ;;  %3520 = vrsqrt.f32 %v2320_v55 }
 0x39c   : > { %v3503_v57 = vpop.eup %3502  ;;  %v2607_v19 = vadd.f32 1.0, %v3501_v4  ;;  %v2453_v9 = vadd.f32 %v5216_v61, %v2417_v22  ;;  %3522 = vrsqrt.f32 %v2321_v43  ;;  %v2234_v59 = vpop.xlane.xlu0 %2233 }
 0x39d   : > { %v5308_v53 = vpop.eup %3504  ;;  %2892 = vst.msk [vmem:[%s5300_s10 + $0x10] sm:$0xff] %vm429_vm0, %v2860_v7  ;;  %v2861_v1 = vmul.f32 %v3503_v57, %v5271_v44  ;;  %v2450_v18 = vadd.f32 %v5216_v61, %v2414_v56  ;;  %3524 = vrsqrt.f32 %v2318_v35 }
 0x39e   : > { %v3507_v31 = vpop.eup %3506  ;;  %v2800_v37 = vmul.f32 %v5308_v53, %v2768_v41  ;;  %3526 = vrcp.f32 %v2607_v19  ;;  %v2485_v62 = vadd.f32 %v2453_v9, %v4882_v49  ;;  %v2237_v50 = vpop.xlane.xlu1 %2236  ;;  %v2292_v49 = vmul.f32 0.03125, %v2234_v59 }
 0x39f   : > { %v5317_v48 = vpop.eup %3508  ;;  %2893 = vst.msk [vmem:[%s5300_s10 + $0x18] sm:$0xff] %vm429_vm0, %v2861_v1  ;;  %v2858_v44 = vmul.f32 %v3507_v31, %v5278_v58  ;;  %v5323_v55 = vadd.f32 %v2450_v18, %v4879_v46  ;;  %3528 = vrsqrt.f32 %v2319_v20  ;;  %v2766_v58 = vadd.f32 %v3491_v63, %v2734_v32  ;;  %v2735_v63 = vld [vmem:[%s5248_s24 + $0x28] sm:$0xff] }
 0x3a0   : > { %v3511_v3 = vpop.eup %3510  ;;  %3530 = vtanh.f32 %v2800_v37  ;;  %2928 = vst.msk [vmem:[%s5263_s27 + $0x30] sm:$0xff] %vm429_vm0, %v2800_v37  ;;  %v2801_v27 = vmul.f32 %v5317_v48, %v2769_v23  ;;  %v3135_v29 = vmul.f32 -1.442695, %v2485_v62  ;;  %v2228_v17 = vpop.xlane.xlu0 %2227  ;;  %v2293_v46 = vmul.f32 0.03125, %v2237_v50 }
 0x3a1   : > { %v3513_v43 = vpop.eup %3512  ;;  %2890 = vst.msk [vmem:[%s5300_s10] sm:$0xff] %vm429_vm0, %v2858_v44  ;;  %v2612_v40 = vadd.f32 1.0, %v3511_v3  ;;  %v3132_v0 = vmul.f32 -1.442695, %v5323_v55  ;;  %v2290_v22 = vmul.f32 0.03125, %v2228_v17  ;;  %v2767_v18 = vadd.f32 %v5292_v2, %v2735_v63 }
 0x3a2   : > { %v5330_v39 = vpop.eup %3514  ;;  %v2859_v35 = vmul.f32 %v3513_v43, %v5284_v42  ;;  %3532 = vtanh.f32 %v2801_v27  ;;  %2929 = vst.msk [vmem:[%s5263_s27 + $0x38] sm:$0xff] %vm429_vm0, %v2801_v27  ;;  %v2324_v56 = vadd.f32 1e-05, %v2292_v49  ;;  %v2740_v42 = vld [vmem:[%s5248_s24 + $0x50] sm:$0xff]  ;;  %v2325_v41 = vadd.f32 1e-05, %v2293_v46 }
 0x3a3   : > { %v3517_v4 = vpop.eup %3516  ;;  %v2798_v7 = vmul.f32 %v5330_v39, %v2766_v58  ;;  %3534 = vrcp.f32 %v2612_v40  ;;  %v2322_v59 = vadd.f32 1e-05, %v2290_v22 }
 0x3a4   : > { %v3519_v21 = vpop.eup %3518  ;;  %2891 = vst.msk [vmem:[%s5300_s10 + $0x8] sm:$0xff] %vm429_vm0, %v2859_v35  ;;  %3536 = vpow2.f32 %v3135_v29  ;;  %v2772_v32 = vadd.f32 %v3517_v4, %v2740_v42 }
 0x3a5   : > { %v3521_v20 = vpop.eup %3520  ;;  %3538 = vtanh.f32 %v2798_v7  ;;  %2926 = vst.msk [vmem:[%s5263_s27 + $0x20] sm:$0xff] %vm429_vm0, %v2798_v7  ;;  %v2379_v57 = vmul.f32 %v3519_v21, %v5078_v12  ;;  %v2231_v21 = vpop.xlane.xlu1 %2230 }
 0x3a6   : > { %v3523_v19 = vpop.eup %3522  ;;  %3540 = vpow2.f32 %v3132_v0  ;;  %v2384_v9 = vmul.f32 %v3521_v20, %v5088_v47 }
 0x3a7   : > { %v3525_v1 = vpop.eup %3524  ;;  %3542 = vtanh.f32 %v2485_v62  ;;  %v2415_v31 = vmul.f32 %v5210_v10, %v2379_v57  ;;  %v2385_v37 = vmul.f32 %v3523_v19, %v5091_v11  ;;  %v2291_v19 = vmul.f32 0.03125, %v2231_v21 }
 0x3a8   : > { %v5348_v23 = vpop.eup %3526  ;;  %v2420_v12 = vmul.f32 %v5210_v10, %v2384_v9  ;;  %v2382_v50 = vmul.f32 %v3525_v1, %v5096_v30  ;;  %3544 = vrsqrt.f32 %v2324_v56 }
 0x3a9   : > { %v3529_v44 = vpop.eup %3528  ;;  %v2799_v47 = vmul.f32 %v5348_v23, %v2767_v18  ;;  %v2451_v3 = vadd.f32 %v5216_v61, %v2415_v31  ;;  %v2421_v2 = vmul.f32 %v5210_v10, %v2385_v37  ;;  %3546 = vrsqrt.f32 %v2325_v41 }
 0x3aa   : > { %v3531_v62 = vpop.eup %3530  ;;  %v2456_v11 = vadd.f32 %v5216_v61, %v2420_v12  ;;  %v2418_v27 = vmul.f32 %v5210_v10, %v2382_v50  ;;  %v2383_v29 = vmul.f32 %v3529_v44, %v5102_v24  ;;  %3548 = vrsqrt.f32 %v2322_v59  ;;  %v2741_v50 = vld [vmem:[%s5248_s24 + $0x58] sm:$0xff] }
 0x3ab   : > { %v2864_v30 = vmul.f32 %v3531_v62, %v5308_v53  ;;  %3550 = vtanh.f32 %v2799_v47  ;;  %2927 = vst.msk [vmem:[%s5263_s27 + $0x28] sm:$0xff] %vm429_vm0, %v2799_v47  ;;  %v2483_v49 = vadd.f32 %v2451_v3, %v4887_v33  ;;  %v2457_v17 = vadd.f32 %v5216_v61, %v2421_v2 }
 0x3ac   : > { %v3533_v43 = vpop.eup %3532  ;;  %3552 = vtanh.f32 %v5323_v55  ;;  %v2488_v58 = vadd.f32 %v2456_v11, %v4898_v6  ;;  %v2454_v40 = vadd.f32 %v5216_v61, %v2418_v27  ;;  %v2419_v24 = vmul.f32 %v5210_v10, %v2383_v29  ;;  %v2738_v11 = vld [vmem:[%s5248_s24 + $0x40] sm:$0xff] }
 0x3ad   : > { %v5367_v46 = vpop.eup %3534  ;;  %2896 = vst.msk [vmem:[%s5300_s10 + $0x30] sm:$0xff] %vm429_vm0, %v2864_v30  ;;  %v2865_v53 = vmul.f32 %v3533_v43, %v5317_v48  ;;  %v3133_v35 = vmul.f32 -1.442695, %v2483_v49  ;;  %3554 = vtanh.f32 %v2483_v49  ;;  %v2489_v33 = vadd.f32 %v2457_v17, %v4906_v28 }
 0x3ae   : > { %v3537_v0 = vpop.eup %3536  ;;  %v2804_v55 = vmul.f32 %v5367_v46, %v2772_v32  ;;  %v3138_v22 = vmul.f32 -1.442695, %v2488_v58  ;;  %3556 = vtanh.f32 %v2488_v58  ;;  %v2486_v6 = vadd.f32 %v2454_v40, %v4903_v26 }
 0x3af   : > { %v3539_v4 = vpop.eup %3538  ;;  %2897 = vst.msk [vmem:[%s5300_s10 + $0x38] sm:$0xff] %vm429_vm0, %v2865_v53  ;;  %v2613_v7 = vadd.f32 1.0, %v3537_v0  ;;  %3558 = vpow2.f32 %v3133_v35  ;;  %v2455_v48 = vadd.f32 %v5216_v61, %v2419_v24  ;;  %v3139_v28 = vmul.f32 -1.442695, %v2489_v33 }
 0x3b0   : > { %v3541_v63 = vpop.eup %3540  ;;  %v2862_v56 = vmul.f32 %v3539_v4, %v5330_v39  ;;  %3560 = vtanh.f32 %v2804_v55  ;;  %2932 = vst.msk [vmem:[%s5263_s27 + $0x50] sm:$0xff] %vm429_vm0, %v2804_v55  ;;  %v3136_v41 = vmul.f32 -1.442695, %v2486_v6  ;;  %v2323_v44 = vadd.f32 1e-05, %v2291_v19 }
 0x3b1   : > { %v3543_v20 = vpop.eup %3542  ;;  %3562 = vrcp.f32 %v2613_v7  ;;  %v2610_v42 = vadd.f32 1.0, %v3541_v63  ;;  %v2487_v26 = vadd.f32 %v2455_v48, %v4911_v15  ;;  %v2249_v7 = vpop.xlane.xlu1 %2248 }
 0x3b2   : > { %v3545_v57 = vpop.eup %3544  ;;  %2894 = vst.msk [vmem:[%s5300_s10 + $0x20] sm:$0xff] %vm429_vm0, %v2862_v56  ;;  %3564 = vpow2.f32 %v3138_v22 }
 0x3b3   : > { %v3547_v9 = vpop.eup %3546  ;;  %3566 = vrcp.f32 %v2610_v42  ;;  %v2388_v39 = vmul.f32 %v3545_v57, %v5112_v51  ;;  %v3137_v1 = vmul.f32 -1.442695, %v2487_v26  ;;  %v2297_v57 = vmul.f32 0.03125, %v2249_v7 }
 0x3b4   : > { %v3549_v59 = vpop.eup %3548  ;;  %3568 = vpow2.f32 %v3139_v28  ;;  %v2389_v18 = vmul.f32 %v3547_v9, %v5115_v8 }
 0x3b5   : > { %v3551_v31 = vpop.eup %3550  ;;  %3570 = vtanh.f32 %v2489_v33  ;;  %v2424_v15 = vmul.f32 %v5210_v10, %v2388_v39  ;;  %v2386_v37 = vmul.f32 %v3549_v59, %v5120_v13 }
 0x3b6   : > { %v3553_v32 = vpop.eup %3552  ;;  %v2863_v12 = vmul.f32 %v3551_v31, %v5348_v23  ;;  %3572 = vpow2.f32 %v3136_v41  ;;  %v2425_v51 = vmul.f32 %v5210_v10, %v2389_v18  ;;  %v2773_v23 = vadd.f32 %v3543_v20, %v2741_v50  ;;  %v2739_v20 = vld [vmem:[%s5248_s24 + $0x48] sm:$0xff]  ;;  %v2243_v31 = vpop.xlane.xlu1 %2242 }
 0x3b7   : > { %v3555_v47 = vpop.eup %3554  ;;  %3574 = vtanh.f32 %v2486_v6  ;;  %v2460_v8 = vadd.f32 %v5216_v61, %v2424_v15  ;;  %v2422_v3 = vmul.f32 %v5210_v10, %v2386_v37  ;;  %v2770_v35 = vadd.f32 %v3553_v32, %v2738_v11 }
 0x3b8   : > { %v5393_v2 = vpop.eup %3556  ;;  %2895 = vst.msk [vmem:[%s5300_s10 + $0x28] sm:$0xff] %vm429_vm0, %v2863_v12  ;;  %3576 = vpow2.f32 %v3137_v1  ;;  %v2461_v13 = vadd.f32 %v5216_v61, %v2425_v51  ;;  %v2771_v59 = vadd.f32 %v3555_v47, %v2739_v20  ;;  %v2744_v1 = vld [vmem:[%s5248_s24 + $0x70] sm:$0xff]  ;;  %v2745_v12 = vld [vmem:[%s5248_s24 + $0x78] sm:$0xff]  ;;  %v2329_v51 = vadd.f32 1e-05, %v2297_v57 }
 0x3b9   : > { %v3559_v62 = vpop.eup %3558  ;;  %3578 = vtanh.f32 %v2487_v26  ;;  %v2492_v27 = vadd.f32 %v2460_v8, %v4922_v5  ;;  %v2458_v17 = vadd.f32 %v5216_v61, %v2422_v3  ;;  %v2776_v47 = vadd.f32 %v5393_v2, %v2744_v1 }
 0x3ba   : > { %v3561_v29 = vpop.eup %3560  ;;  %v2611_v30 = vadd.f32 1.0, %v3559_v62  ;;  %v2493_v49 = vadd.f32 %v2461_v13, %v4930_v54  ;;  %3580 = vrsqrt.f32 %v2323_v44  ;;  %v2246_v54 = vpop.xlane.xlu0 %2245  ;;  %v2742_v62 = vld [vmem:[%s5248_s24 + $0x60] sm:$0xff] }
 0x3bb   : > { %v3563_v43 = vpop.eup %3562  ;;  %v2868_v58 = vmul.f32 %v3561_v29, %v5367_v46  ;;  %v3142_v40 = vmul.f32 -1.442695, %v2492_v27  ;;  %3582 = vtanh.f32 %v2492_v27  ;;  %v2490_v22 = vadd.f32 %v2458_v17, %v4927_v38  ;;  %v2743_v17 = vld [vmem:[%s5248_s24 + $0x68] sm:$0xff] }
 0x3bc   : > { %v3565_v24 = vpop.eup %3564  ;;  %v2805_v53 = vmul.f32 %v3563_v43, %v2773_v23  ;;  %3584 = vrcp.f32 %v2611_v30  ;;  %v3143_v55 = vmul.f32 -1.442695, %v2493_v49  ;;  %v2296_v21 = vmul.f32 0.03125, %v2246_v54 }
 0x3bd   : > { %v5403_v33 = vpop.eup %3566  ;;  %2900 = vst.msk [vmem:[%s5300_s10 + $0x50] sm:$0xff] %vm429_vm0, %v2868_v58  ;;  %v2616_v5 = vadd.f32 1.0, %v3565_v24  ;;  %3586 = vpow2.f32 %v3142_v40  ;;  %v3140_v42 = vmul.f32 -1.442695, %v2490_v22 }
 0x3be   : > { %v3569_v0 = vpop.eup %3568  ;;  %3588 = vtanh.f32 %v2805_v53  ;;  %2933 = vst.msk [vmem:[%s5263_s27 + $0x58] sm:$0xff] %vm429_vm0, %v2805_v53  ;;  %v2802_v46 = vmul.f32 %v5403_v33, %v2770_v35  ;;  %v2328_v19 = vadd.f32 1e-05, %v2296_v21  ;;  %v2240_v9 = vpop.xlane.xlu0 %2239 }
 0x3bf   : > { %v3571_v6 = vpop.eup %3570  ;;  %3590 = vrcp.f32 %v2616_v5  ;;  %v2617_v4 = vadd.f32 1.0, %v3569_v0  ;;  %v2261_v11 = vpop.xlane.xlu1 %2260  ;;  %v2294_v35 = vmul.f32 0.03125, %v2240_v9  ;;  %v2295_v0 = vmul.f32 0.03125, %v2243_v31 }
 0x3c0   : > { %v3573_v48 = vpop.eup %3572  ;;  %3592 = vtanh.f32 %v2802_v46  ;;  %2930 = vst.msk [vmem:[%s5263_s27 + $0x40] sm:$0xff] %vm429_vm0, %v2802_v46  ;;  %v2777_v2 = vadd.f32 %v3571_v6, %v2745_v12  ;;  %v2301_v20 = vmul.f32 0.03125, %v2261_v11 }
 0x3c1   : > { %v3575_v63 = vpop.eup %3574  ;;  %3594 = vrcp.f32 %v2617_v4  ;;  %v2614_v56 = vadd.f32 1.0, %v3573_v48 }
 0x3c2   : > { %v3577_v28 = vpop.eup %3576  ;;  %3596 = vpow2.f32 %v3143_v55  ;;  %v2774_v53 = vadd.f32 %v3575_v63, %v2742_v62  ;;  %v2333_v12 = vadd.f32 1e-05, %v2301_v20 }
 0x3c3   : > { %v3579_v26 = vpop.eup %3578  ;;  %3598 = vrcp.f32 %v2614_v56  ;;  %v2615_v38 = vadd.f32 1.0, %v3577_v28  ;;  %v2255_v48 = vpop.xlane.xlu1 %2254  ;;  %v2748_v56 = vld [vmem:[%s5248_s24 + $0x90] sm:$0xff]  ;;  %v2326_v28 = vadd.f32 1e-05, %v2294_v35 }
 0x3c4   : > { %v3581_v41 = vpop.eup %3580  ;;  %3600 = vtanh.f32 %v2493_v49  ;;  %v2299_v9 = vmul.f32 0.03125, %v2255_v48 }
 0x3c5   : > { %v5414_v39 = vpop.eup %3582  ;;  %3602 = vrcp.f32 %v2615_v38  ;;  %v2387_v18 = vmul.f32 %v3581_v41, %v5126_v52  ;;  %v2258_v52 = vpop.xlane.xlu0 %2257 }
 0x3c6   : > { %v5418_v15 = vpop.eup %3584  ;;  %3604 = vpow2.f32 %v3140_v42  ;;  %v2300_v6 = vmul.f32 0.03125, %v2258_v52  ;;  %v2780_v1 = vadd.f32 %v5414_v39, %v2748_v56 }
 0x3c7   : > { %v3587_v37 = vpop.eup %3586  ;;  %v2803_v32 = vmul.f32 %v5418_v15, %v2771_v59  ;;  %3606 = vtanh.f32 %v2490_v22  ;;  %v2423_v50 = vmul.f32 %v5210_v10, %v2387_v18  ;;  %v2775_v22 = vadd.f32 %v3579_v26, %v2743_v17 }
 0x3c8   : > { %v3589_v44 = vpop.eup %3588  ;;  %v2620_v8 = vadd.f32 1.0, %v3587_v37  ;;  %3608 = vrsqrt.f32 %v2328_v19  ;;  %v2327_v26 = vadd.f32 1e-05, %v2295_v0  ;;  %v2332_v19 = vadd.f32 1e-05, %v2300_v6 }
 0x3c9   : > { %v5424_v3 = vpop.eup %3590  ;;  %v2869_v13 = vmul.f32 %v3589_v44, %v3563_v43  ;;  %3610 = vtanh.f32 %v2803_v32  ;;  %2931 = vst.msk [vmem:[%s5263_s27 + $0x48] sm:$0xff] %vm429_vm0, %v2803_v32  ;;  %v2459_v23 = vadd.f32 %v5216_v61, %v2423_v50  ;;  %v5786_v43 = vld [vmem:[#allocation15_spill] sm:$0xff]  ;;  %v2252_v4 = vpop.xlane.xlu0 %2251  ;;  %v2749_v44 = vld [vmem:[%s5248_s24 + $0x98] sm:$0xff] }
 0x3ca   : > { %v3593_v27 = vpop.eup %3592  ;;  %v2808_v29 = vmul.f32 %v5424_v3, %v2776_v47  ;;  %3612 = vrcp.f32 %v2620_v8  ;;  %v2298_v57 = vmul.f32 0.03125, %v2252_v4 }
 0x3cb   : > { %v5431_v30 = vpop.eup %3594  ;;  %2901 = vst.msk [vmem:[%s5300_s10 + $0x58] sm:$0xff] %vm429_vm0, %v2869_v13  ;;  %v2866_v49 = vmul.f32 %v3593_v27, %v5403_v33  ;;  %v2491_v58 = vadd.f32 %v2459_v23, %v5786_v43  ;;  %3614 = vrsqrt.f32 %v2329_v51 }
 0x3cc   : > { %v3597_v40 = vpop.eup %3596  ;;  %3616 = vtanh.f32 %v2808_v29  ;;  %2936 = vst.msk [vmem:[%s5263_s27 + $0x70] sm:$0xff] %vm429_vm0, %v2808_v29  ;;  %v2809_v24 = vmul.f32 %v5431_v30, %v2777_v2  ;;  %v2330_v39 = vadd.f32 1e-05, %v2298_v57  ;;  %v2746_v29 = vld [vmem:[%s5248_s24 + $0x80] sm:$0xff]  ;;  %v2747_v57 = vld [vmem:[%s5248_s24 + $0x88] sm:$0xff] }
 0x3cd   : > { %v5441_v5 = vpop.eup %3598  ;;  %2898 = vst.msk [vmem:[%s5300_s10 + $0x40] sm:$0xff] %vm429_vm0, %v2866_v49  ;;  %v2621_v54 = vadd.f32 1.0, %v3597_v40  ;;  %v3141_v33 = vmul.f32 -1.442695, %v2491_v58  ;;  %3618 = vtanh.f32 %v2491_v58  ;;  %v2264_v31 = vpop.xlane.xlu0 %2263 }
 0x3ce   : > { %v3601_v46 = vpop.eup %3600  ;;  %3620 = vtanh.f32 %v2809_v24  ;;  %2937 = vst.msk [vmem:[%s5263_s27 + $0x78] sm:$0xff] %vm429_vm0, %v2809_v24  ;;  %v2806_v55 = vmul.f32 %v5441_v5, %v2774_v53  ;;  %v2302_v17 = vmul.f32 0.03125, %v2264_v31 }
 0x3cf   : > { %v5448_v7 = vpop.eup %3602  ;;  %3622 = vrcp.f32 %v2621_v54  ;;  %v2267_v8 = vpop.xlane.xlu1 %2266  ;;  %v2781_v27 = vadd.f32 %v3601_v46, %v2749_v44 }
 0x3d0   : > { %v3605_v21 = vpop.eup %3604  ;;  %3624 = vtanh.f32 %v2806_v55  ;;  %2934 = vst.msk [vmem:[%s5263_s27 + $0x60] sm:$0xff] %vm429_vm0, %v2806_v55  ;;  %v2807_v63 = vmul.f32 %v5448_v7, %v2775_v22  ;;  %v2303_v54 = vmul.f32 0.03125, %v2267_v8  ;;  %v2334_v22 = vadd.f32 1e-05, %v2302_v17  ;;  %v5789_v8 = vld [vmem:[#allocation16_spill] sm:$0xff] }
 0x3d1   : > { %v3607_v42 = vpop.eup %3606  ;;  %v2618_v38 = vadd.f32 1.0, %v3605_v21  ;;  %3626 = vpow2.f32 %v3141_v33  ;;  %v2270_v43 = vpop.xlane.xlu0 %2269 }
 0x3d2   : > { %v3609_v41 = vpop.eup %3608  ;;  %3628 = vtanh.f32 %v2807_v63  ;;  %2935 = vst.msk [vmem:[%s5263_s27 + $0x68] sm:$0xff] %vm429_vm0, %v2807_v63  ;;  %v2778_v35 = vadd.f32 %v3607_v42, %v2746_v29 }
 0x3d3   : > { %v3611_v59 = vpop.eup %3610  ;;  %3630 = vrcp.f32 %v2618_v38  ;;  %v2392_v18 = vmul.f32 %v3609_v41, %v5136_v60  ;;  %v5505_v41 = vld [vmem:[%s5638_s3 + $0x1] ss:$0 sm:$0xff] }
 0x3d4   : > { %v5458_v37 = vpop.eup %3612  ;;  %v2867_v32 = vmul.f32 %v3611_v59, %v5418_v15  ;;  %3632 = vrsqrt.f32 %v2326_v28  ;;  %v2331_v15 = vadd.f32 1e-05, %v2299_v9  ;;  %v2335_v28 = vadd.f32 1e-05, %v2303_v54 }
 0x3d5   : > { %v3615_v50 = vpop.eup %3614  ;;  %v2812_v51 = vmul.f32 %v5458_v37, %v2780_v1  ;;  %v2428_v47 = vmul.f32 %v5210_v10, %v2392_v18  ;;  %3634 = vrsqrt.f32 %v2327_v26 }
 0x3d6   : > { %v3617_v52 = vpop.eup %3616  ;;  %2899 = vst.msk [vmem:[%s5300_s10 + $0x48] sm:$0xff] %vm429_vm0, %v2867_v32  ;;  %v2393_v60 = vmul.f32 %v3615_v50, %v5139_v36  ;;  %3636 = vrsqrt.f32 %v2332_v19 }
 0x3d7   : > { %v5467_v13 = vpop.eup %3618  ;;  %v2872_v62 = vmul.f32 %v3617_v52, %v5424_v3  ;;  %3638 = vtanh.f32 %v2812_v51  ;;  %2940 = vst.msk [vmem:[%s5263_s27 + $0x90] sm:$0xff] %vm429_vm0, %v2812_v51  ;;  %v2464_v23 = vadd.f32 %v5216_v61, %v2428_v47 }
 0x3d8   : > { %v3621_v11 = vpop.eup %3620  ;;  %v2429_v2 = vmul.f32 %v5210_v10, %v2393_v60  ;;  %3640 = vrsqrt.f32 %v2333_v12  ;;  %v5514_v12 = vld [vmem:[%s5639_s4 + $0x1] ss:$0 sm:$0xff] }
 0x3d9   : > { %v5475_v49 = vpop.eup %3622  ;;  %2904 = vst.msk [vmem:[%s5300_s10 + $0x70] sm:$0xff] %vm429_vm0, %v2872_v62  ;;  %v2873_v36 = vmul.f32 %v3621_v11, %v5431_v30  ;;  %v2496_v3 = vadd.f32 %v2464_v23, %v4946_v45  ;;  %3642 = vrsqrt.f32 %v2330_v39  ;;  %v2273_v45 = vpop.xlane.xlu1 %2272  ;;  %v5790_v62 = vld [vmem:[#allocation17_spill] sm:$0xff] }
 0x3da   : > { %v3625_v58 = vpop.eup %3624  ;;  %v2813_v40 = vmul.f32 %v5475_v49, %v2781_v27  ;;  %v2465_v24 = vadd.f32 %v5216_v61, %v2429_v2  ;;  %3644 = vrsqrt.f32 %v2331_v15  ;;  %v2304_v61 = vmul.f32 0.03125, %v2270_v43 }
 0x3db   : > { %v3627_v10 = vpop.eup %3626  ;;  %2905 = vst.msk [vmem:[%s5300_s10 + $0x78] sm:$0xff] %vm429_vm0, %v2873_v36  ;;  %v2870_v53 = vmul.f32 %v3625_v58, %v5441_v5  ;;  %v3146_v30 = vmul.f32 -1.442695, %v2496_v3  ;;  %v2305_v21 = vmul.f32 0.03125, %v2273_v45  ;;  %v5792_v36 = vld [vmem:[#allocation18_spill] sm:$0xff] }
 0x3dc   : > { %v3629_v33 = vpop.eup %3628  ;;  %3646 = vtanh.f32 %v2813_v40  ;;  %2941 = vst.msk [vmem:[%s5263_s27 + $0x98] sm:$0xff] %vm429_vm0, %v2813_v40  ;;  %v2619_v0 = vadd.f32 1.0, %v3627_v10  ;;  %v2497_v46 = vadd.f32 %v2465_v24, %v4954_v34  ;;  %v5787_v34 = vld [vmem:[#allocation5_spill] sm:$0xff]  ;;  %v2336_v38 = vadd.f32 1e-05, %v2304_v61 }
 0x3dd   : > { %v5489_v55 = vpop.eup %3630  ;;  %2902 = vst.msk [vmem:[%s5300_s10 + $0x60] sm:$0xff] %vm429_vm0, %v2870_v53  ;;  %v2871_v5 = vmul.f32 %v3629_v33, %v5448_v7  ;;  %3648 = vpow2.f32 %v3146_v30  ;;  %v5788_v7 = vld [vmem:[#allocation6_spill] sm:$0xff]  ;;  %v2337_v31 = vadd.f32 1e-05, %v2305_v21 }
 0x3de   : > { %v3633_v6 = vpop.eup %3632  ;;  %v2810_v4 = vmul.f32 %v5489_v55, %v2778_v35  ;;  %3650 = vrcp.f32 %v2619_v0  ;;  %v3147_v48 = vmul.f32 -1.442695, %v2497_v46  ;;  %v5793_v35 = vld [vmem:[#allocation20_spill] sm:$0xff]  ;;  %v5794_v0 = vld [vmem:[#allocation19_spill] sm:$0xff] }
 0x3df   : > { %v3635_v63 = vpop.eup %3634  ;;  %2903 = vst.msk [vmem:[%s5300_s10 + $0x68] sm:$0xff] %vm429_vm0, %v2871_v5  ;;  %v2390_v56 = vmul.f32 %v3633_v6, %v5787_v34  ;;  %v5796_v34 = vld [vmem:[#allocation21_spill] sm:$0xff] }
 0x3e0   : > { %v3637_v20 = vpop.eup %3636  ;;  %3652 = vtanh.f32 %v2810_v4  ;;  %2938 = vst.msk [vmem:[%s5263_s27 + $0x80] sm:$0xff] %vm429_vm0, %v2810_v4  ;;  %v2391_v42 = vmul.f32 %v3635_v63, %v5788_v7 }
 0x3e1   : > { %v3639_v26 = vpop.eup %3638  ;;  %3654 = vpow2.f32 %v3147_v48  ;;  %v2426_v19 = vmul.f32 %v5505_v41, %v2390_v56  ;;  %v2396_v9 = vmul.f32 %v3637_v20, %v5160_v16  ;;  %v5795_v48 = vld [vmem:[#allocation8_spill] sm:$0xff] }
 0x3e2   : > { %v3641_v59 = vpop.eup %3640  ;;  %v2876_v1 = vmul.f32 %v3639_v26, %v5458_v37  ;;  %v2427_v18 = vmul.f32 %v5505_v41, %v2391_v42  ;;  %3656 = vrsqrt.f32 %v2334_v22  ;;  %v2779_v37 = vadd.f32 %v5467_v13, %v2747_v57  ;;  %v5791_v13 = vld [vmem:[#allocation7_spill] sm:$0xff] }
 0x3e3   : > { %v3643_v32 = vpop.eup %3642  ;;  %v2462_v50 = vadd.f32 %v5514_v12, %v2426_v19  ;;  %v2432_v51 = vmul.f32 %v5505_v41, %v2396_v9  ;;  %v2397_v44 = vmul.f32 %v3641_v59, %v5163_v14  ;;  %3658 = vrsqrt.f32 %v2335_v28  ;;  %v5797_v28 = vld [vmem:[#allocation9_spill] sm:$0xff]  ;;  %v2752_v19 = vld [vmem:[%s5248_s24 + $0xb0] sm:$0xff] }
 0x3e4   : > { %v3645_v16 = vpop.eup %3644  ;;  %2908 = vst.msk [vmem:[%s5300_s10 + $0x90] sm:$0xff] %vm429_vm0, %v2876_v1  ;;  %v2463_v47 = vadd.f32 %v5514_v12, %v2427_v18  ;;  %v2394_v39 = vmul.f32 %v3643_v32, %v5168_v25  ;;  %3660 = vrsqrt.f32 %v2336_v38  ;;  %v5798_v38 = vld [vmem:[#allocation10_spill] sm:$0xff] }
 0x3e5   : > { %3662 = vtanh.f32 %v2496_v3  ;;  %v2494_v52 = vadd.f32 %v2462_v50, %v5789_v8  ;;  %v2468_v60 = vadd.f32 %v5514_v12, %v2432_v51  ;;  %v2433_v15 = vmul.f32 %v5505_v41, %v2397_v44 }
 0x3e6   : > { %v3647_v14 = vpop.eup %3646  ;;  %3664 = vtanh.f32 %v2497_v46  ;;  %v2495_v23 = vadd.f32 %v2463_v47, %v5790_v62  ;;  %v2430_v11 = vmul.f32 %v5505_v41, %v2394_v39  ;;  %v2395_v27 = vmul.f32 %v3645_v16, %v5791_v13  ;;  %v5799_v16 = vld [vmem:[#allocation22_spill] sm:$0xff]  ;;  %v2753_v39 = vld [vmem:[%s5248_s24 + $0xb8] sm:$0xff]  ;;  %v5801_v13 = vld [vmem:[#allocation3_spill] sm:$0xff] }
 0x3e7   : > { %v3649_v29 = vpop.eup %3648  ;;  %v2877_v25 = vmul.f32 %v3647_v14, %v5475_v49  ;;  %v3144_v2 = vmul.f32 -1.442695, %v2494_v52  ;;  %v2500_v3 = vadd.f32 %v2468_v60, %v5792_v36  ;;  %3666 = vrsqrt.f32 %v2337_v31 }
 0x3e8   : > { %v5532_v17 = vpop.eup %3650  ;;  %v2624_v43 = vadd.f32 1.0, %v3649_v29  ;;  %3668 = vtanh.f32 %v2494_v52  ;;  %v3145_v58 = vmul.f32 -1.442695, %v2495_v23  ;;  %v2469_v40 = vadd.f32 %v5514_v12, %v2433_v15  ;;  %v5800_v52 = vld [vmem:[#allocation11_spill] sm:$0xff] }
 0x3e9   : > { %2909 = vst.msk [vmem:[%s5300_s10 + $0x98] sm:$0xff] %vm429_vm0, %v2877_v25  ;;  %v2811_v24 = vmul.f32 %v5532_v17, %v2779_v37  ;;  %3670 = vpow2.f32 %v3144_v2  ;;  %v3150_v10 = vmul.f32 -1.442695, %v2500_v3  ;;  %v2466_v49 = vadd.f32 %v5514_v12, %v2430_v11 }
 0x3ea   : > { %v3653_v53 = vpop.eup %3652  ;;  %3672 = vrcp.f32 %v2624_v43  ;;  %v2501_v30 = vadd.f32 %v2469_v40, %v5793_v35  ;;  %v2431_v54 = vmul.f32 %v5505_v41, %v2395_v27 }
 0x3eb   : > { %v3655_v45 = vpop.eup %3654  ;;  %v2874_v33 = vmul.f32 %v3653_v53, %v5489_v55  ;;  %3674 = vtanh.f32 %v2811_v24  ;;  %2939 = vst.msk [vmem:[%s5263_s27 + $0x88] sm:$0xff] %vm429_vm0, %v2811_v24  ;;  %v2498_v46 = vadd.f32 %v2466_v49, %v5794_v0  ;;  %v5802_v49 = vld [vmem:[#allocation2_spill] sm:$0xff] }
 0x3ec   : > { %v3657_v61 = vpop.eup %3656  ;;  %v2625_v5 = vadd.f32 1.0, %v3655_v45  ;;  %3676 = vpow2.f32 %v3145_v58  ;;  %v3151_v22 = vmul.f32 -1.442695, %v2501_v30  ;;  %v2467_v6 = vadd.f32 %v5514_v12, %v2431_v54  ;;  %v2750_v45 = vld [vmem:[%s5248_s24 + $0xa0] sm:$0xff] }
 0x3ed   : > { %v3659_v4 = vpop.eup %3658  ;;  %2906 = vst.msk [vmem:[%s5300_s10 + $0x80] sm:$0xff] %vm429_vm0, %v2874_v33  ;;  %3678 = vpow2.f32 %v3150_v10  ;;  %v2398_v21 = vmul.f32 %v3657_v61, %v5795_v48  ;;  %v3148_v55 = vmul.f32 -1.442695, %v2498_v46 }
 0x3ee   : > { %v3661_v63 = vpop.eup %3660  ;;  %3680 = vrcp.f32 %v2625_v5  ;;  %v2499_v56 = vadd.f32 %v2467_v6, %v5796_v34  ;;  %v2399_v20 = vmul.f32 %v3659_v4, %v5797_v28  ;;  %v2751_v6 = vld [vmem:[%s5248_s24 + $0xa8] sm:$0xff] }
 0x3ef   : > { %v3663_v7 = vpop.eup %3662  ;;  %3682 = vtanh.f32 %v2495_v23  ;;  %v2434_v42 = vmul.f32 %v5505_v41, %v2398_v21  ;;  %v2400_v26 = vmul.f32 %v3661_v63, %v5798_v38  ;;  %v2756_v21 = vld [vmem:[%s5248_s24 + $0xd0] sm:$0xff]  ;;  %v2757_v38 = vld [vmem:[%s5248_s24 + $0xd8] sm:$0xff] }
 0x3f0   : > { %v3665_v57 = vpop.eup %3664  ;;  %3684 = vpow2.f32 %v3151_v22  ;;  %v3149_v9 = vmul.f32 -1.442695, %v2499_v56  ;;  %v2435_v59 = vmul.f32 %v5505_v41, %v2399_v20  ;;  %v2784_v44 = vadd.f32 %v3663_v7, %v2752_v19  ;;  %v5803_v63 = vld [vmem:[#allocation4_spill] sm:$0xff] }
 0x3f1   : > { %v3667_v1 = vpop.eup %3666  ;;  %3686 = vtanh.f32 %v2500_v3  ;;  %v2470_v18 = vadd.f32 %v5514_v12, %v2434_v42  ;;  %v2436_v50 = vmul.f32 %v5505_v41, %v2400_v26  ;;  %v2785_v2 = vadd.f32 %v3665_v57, %v2753_v39 }
 0x3f2   : > { %v3669_v31 = vpop.eup %3668  ;;  %3688 = vpow2.f32 %v3148_v55  ;;  %v2471_v32 = vadd.f32 %v5514_v12, %v2435_v59  ;;  %v2401_v60 = vmul.f32 %v3667_v1, %v5800_v52 }
 0x3f3   : > { %v3671_v51 = vpop.eup %3670  ;;  %3690 = vtanh.f32 %v2501_v30  ;;  %v2502_v37 = vadd.f32 %v2470_v18, %v5799_v16  ;;  %v2472_v29 = vadd.f32 %v5514_v12, %v2436_v50  ;;  %v2782_v22 = vadd.f32 %v3669_v31, %v2750_v45  ;;  %v2754_v18 = vld [vmem:[%s5248_s24 + $0xc0] sm:$0xff] }
 0x3f4   : > { %v3673_v47 = vpop.eup %3672  ;;  %v2622_v8 = vadd.f32 1.0, %v3671_v51  ;;  %3692 = vpow2.f32 %v3149_v9  ;;  %v2503_v27 = vadd.f32 %v2471_v32, %v5801_v13 }
 0x3f5   : > { %v3675_v15 = vpop.eup %3674  ;;  %v2816_v14 = vmul.f32 %v3673_v47, %v2784_v44  ;;  %3694 = vtanh.f32 %v2498_v46  ;;  %v3152_v62 = vmul.f32 -1.442695, %v2502_v37  ;;  %v2504_v53 = vadd.f32 %v2472_v29, %v5802_v49  ;;  %v2755_v44 = vld [vmem:[%s5248_s24 + $0xc8] sm:$0xff] }
 0x3f6   : > { %v3677_v23 = vpop.eup %3676  ;;  %v2875_v11 = vmul.f32 %v3675_v15, %v5532_v17  ;;  %3696 = vrcp.f32 %v2622_v8  ;;  %v2437_v17 = vmul.f32 %v5505_v41, %v2401_v60  ;;  %v3153_v10 = vmul.f32 -1.442695, %v2503_v27 }
 0x3f7   : > { %v3679_v25 = vpop.eup %3678  ;;  %3698 = vtanh.f32 %v2816_v14  ;;  %2944 = vst.msk [vmem:[%s5263_s27 + $0xb0] sm:$0xff] %vm429_vm0, %v2816_v14  ;;  %v2623_v36 = vadd.f32 1.0, %v3677_v23  ;;  %v3154_v61 = vmul.f32 -1.442695, %v2504_v53 }
 0x3f8   : > { %v3681_v3 = vpop.eup %3680  ;;  %2907 = vst.msk [vmem:[%s5300_s10 + $0x88] sm:$0xff] %vm429_vm0, %v2875_v11  ;;  %v2628_v43 = vadd.f32 1.0, %v3679_v25  ;;  %3700 = vpow2.f32 %v3152_v62  ;;  %v2473_v41 = vadd.f32 %v5514_v12, %v2437_v17  ;;  %v2758_v62 = vld [vmem:[%s5248_s24 + $0xe0] sm:$0xff] }
 0x3f9   : > { %v3683_v58 = vpop.eup %3682  ;;  %v2817_v40 = vmul.f32 %v3681_v3, %v2785_v2  ;;  %3702 = vrcp.f32 %v2623_v36 }
 0x3fa   : > { %v3685_v24 = vpop.eup %3684  ;;  %3704 = vrcp.f32 %v2628_v43  ;;  %v5577_v55 = vadd.f32 %v2473_v41, %v5803_v63  ;;  %v2783_v20 = vadd.f32 %v3683_v58, %v2751_v6  ;;  %v2760_v41 = vld [vmem:[%s5248_s24 + $0xf0] sm:$0xff] }
 0x3fb   : > { %v3687_v35 = vpop.eup %3686  ;;  %3706 = vtanh.f32 %v2817_v40  ;;  %2945 = vst.msk [vmem:[%s5263_s27 + $0xb8] sm:$0xff] %vm429_vm0, %v2817_v40  ;;  %v2629_v30 = vadd.f32 1.0, %v3685_v24  ;;  %v2759_v40 = vld [vmem:[%s5248_s24 + $0xe8] sm:$0xff] }
 0x3fc   : > { %v3689_v54 = vpop.eup %3688  ;;  %3708 = vtanh.f32 %v2499_v56  ;;  %v2788_v42 = vadd.f32 %v3687_v35, %v2756_v21  ;;  %v3155_v9 = vmul.f32 -1.442695, %v5577_v55  ;;  %v2761_v21 = vld [vmem:[%s5248_s24 + $0xf8] sm:$0xff] }
 0x3fd   : > { %v3691_v33 = vpop.eup %3690  ;;  %3710 = vrcp.f32 %v2629_v30  ;;  %v2626_v0 = vadd.f32 1.0, %v3689_v54 }
 0x3fe   : > { %v3693_v46 = vpop.eup %3692  ;;  %3712 = vpow2.f32 %v3153_v10  ;;  %v2789_v50 = vadd.f32 %v3691_v33, %v2757_v38 }
 0x3ff   : > { %v3695_v5 = vpop.eup %3694  ;;  %3714 = vrcp.f32 %v2626_v0  ;;  %v2627_v4 = vadd.f32 1.0, %v3693_v46 }
 0x400   : > { %v3697_v48 = vpop.eup %3696  ;;  %3716 = vtanh.f32 %v2502_v37 }
 0x401   : > { %v3699_v12 = vpop.eup %3698  ;;  %v2814_v34 = vmul.f32 %v3697_v48, %v2782_v22  ;;  %3718 = vrcp.f32 %v2627_v4 }
 0x402   : > { %v3701_v56 = vpop.eup %3700  ;;  %v2880_v28 = vmul.f32 %v3699_v12, %v3673_v47  ;;  %3720 = vpow2.f32 %v3154_v61  ;;  %v2786_v47 = vadd.f32 %v3695_v5, %v2754_v18 }
 0x403   : > { %v3703_v7 = vpop.eup %3702  ;;  %3722 = vtanh.f32 %v2814_v34  ;;  %2942 = vst.msk [vmem:[%s5263_s27 + $0xa0] sm:$0xff] %vm429_vm0, %v2814_v34  ;;  %v2630_v26 = vadd.f32 1.0, %v3701_v56 }
 0x404   : > { %v3705_v57 = vpop.eup %3704  ;;  %2912 = vst.msk [vmem:[%s5300_s10 + $0xb0] sm:$0xff] %vm429_vm0, %v2880_v28  ;;  %v2815_v19 = vmul.f32 %v3703_v7, %v2783_v20  ;;  %3724 = vtanh.f32 %v2503_v27 }
 0x405   : > { %v3707_v59 = vpop.eup %3706  ;;  %v2820_v1 = vmul.f32 %v3705_v57, %v2788_v42  ;;  %3726 = vrcp.f32 %v2630_v26 }
 0x406   : > { %v3709_v31 = vpop.eup %3708  ;;  %v2881_v32 = vmul.f32 %v3707_v59, %v3681_v3  ;;  %3728 = vtanh.f32 %v2815_v19  ;;  %2943 = vst.msk [vmem:[%s5263_s27 + $0xa8] sm:$0xff] %vm429_vm0, %v2815_v19 }
 0x407   : > { %v3711_v51 = vpop.eup %3710  ;;  %3730 = vtanh.f32 %v2820_v1  ;;  %2948 = vst.msk [vmem:[%s5263_s27 + $0xd0] sm:$0xff] %vm429_vm0, %v2820_v1  ;;  %v2787_v15 = vadd.f32 %v3709_v31, %v2755_v44 }
 0x408   : > { %v3713_v16 = vpop.eup %3712  ;;  %2913 = vst.msk [vmem:[%s5300_s10 + $0xb8] sm:$0xff] %vm429_vm0, %v2881_v32  ;;  %v2821_v37 = vmul.f32 %v3711_v51, %v2789_v50  ;;  %3732 = vpow2.f32 %v3155_v9 }
 0x409   : > { %v3715_v39 = vpop.eup %3714  ;;  %v2631_v8 = vadd.f32 1.0, %v3713_v16  ;;  %3734 = vtanh.f32 %v2504_v53 }
 0x40a   : > { %v3717_v52 = vpop.eup %3716  ;;  %3736 = vtanh.f32 %v2821_v37  ;;  %2949 = vst.msk [vmem:[%s5263_s27 + $0xd8] sm:$0xff] %vm429_vm0, %v2821_v37  ;;  %v2818_v60 = vmul.f32 %v3715_v39, %v2786_v47 }
 0x40b   : > { %v3719_v14 = vpop.eup %3718  ;;  %3738 = vrcp.f32 %v2631_v8  ;;  %v2790_v2 = vadd.f32 %v3717_v52, %v2758_v62 }
 0x40c   : > { %v3721_v23 = vpop.eup %3720  ;;  %3740 = vtanh.f32 %v2818_v60  ;;  %2946 = vst.msk [vmem:[%s5263_s27 + $0xc0] sm:$0xff] %vm429_vm0, %v2818_v60  ;;  %v2819_v11 = vmul.f32 %v3719_v14, %v2787_v15 }
 0x40d   : > { %v3723_v13 = vpop.eup %3722  ;;  %v2632_v27 = vadd.f32 1.0, %v3721_v23 }
 0x40e   : > { %v3725_v29 = vpop.eup %3724  ;;  %v2878_v25 = vmul.f32 %v3723_v13, %v3697_v48  ;;  %3742 = vtanh.f32 %v2819_v11  ;;  %2947 = vst.msk [vmem:[%s5263_s27 + $0xc8] sm:$0xff] %vm429_vm0, %v2819_v11 }
 0x40f   : > { %v3727_v36 = vpop.eup %3726  ;;  %3744 = vrcp.f32 %v2632_v27  ;;  %v2791_v30 = vadd.f32 %v3725_v29, %v2759_v40 }
 0x410   : > { %v3729_v3 = vpop.eup %3728  ;;  %2910 = vst.msk [vmem:[%s5300_s10 + $0xa0] sm:$0xff] %vm429_vm0, %v2878_v25  ;;  %v2822_v43 = vmul.f32 %v3727_v36, %v2790_v2  ;;  %3746 = vtanh.f32 %v5577_v55 }
 0x411   : > { %v3731_v17 = vpop.eup %3730  ;;  %v2879_v58 = vmul.f32 %v3729_v3, %v3703_v7 }
 0x412   : > { %v3733_v24 = vpop.eup %3732  ;;  %v2884_v10 = vmul.f32 %v3731_v17, %v3705_v57  ;;  %3748 = vtanh.f32 %v2822_v43  ;;  %2950 = vst.msk [vmem:[%s5263_s27 + $0xe0] sm:$0xff] %vm429_vm0, %v2822_v43 }
 0x413   : > { %v3735_v49 = vpop.eup %3734  ;;  %2911 = vst.msk [vmem:[%s5300_s10 + $0xa8] sm:$0xff] %vm429_vm0, %v2879_v58  ;;  %v2633_v53 = vadd.f32 1.0, %v3733_v24 }
 0x414   : > { %v3737_v35 = vpop.eup %3736  ;;  %2916 = vst.msk [vmem:[%s5300_s10 + $0xd0] sm:$0xff] %vm429_vm0, %v2884_v10  ;;  %v2792_v5 = vadd.f32 %v3735_v49, %v2760_v41 }
 0x415   : > { %v3739_v54 = vpop.eup %3738  ;;  %v2885_v45 = vmul.f32 %v3737_v35, %v3711_v51  ;;  %3750 = vrcp.f32 %v2633_v53 }
 0x416   : > { %v3741_v33 = vpop.eup %3740  ;;  %v2823_v0 = vmul.f32 %v3739_v54, %v2791_v30 }
 0x417   : > { %2917 = vst.msk [vmem:[%s5300_s10 + $0xd8] sm:$0xff] %vm429_vm0, %v2885_v45  ;;  %v2882_v46 = vmul.f32 %v3741_v33, %v3715_v39 }
 0x418   : > { %v3743_v61 = vpop.eup %3742  ;;  %3752 = vtanh.f32 %v2823_v0  ;;  %2951 = vst.msk [vmem:[%s5263_s27 + $0xe8] sm:$0xff] %vm429_vm0, %v2823_v0 }
 0x419   : > { %v3745_v22 = vpop.eup %3744  ;;  %2914 = vst.msk [vmem:[%s5300_s10 + $0xc0] sm:$0xff] %vm429_vm0, %v2882_v46  ;;  %v2883_v6 = vmul.f32 %v3743_v61, %v3719_v14 }
 0x41a   : > { %v2824_v4 = vmul.f32 %v3745_v22, %v2792_v5  ;;  %v3747_v48 = vpop.eup %3746 }
 0x41b   : > { %2915 = vst.msk [vmem:[%s5300_s10 + $0xc8] sm:$0xff] %vm429_vm0, %v2883_v6  ;;  %v2793_v12 = vadd.f32 %v3747_v48, %v2761_v21 }
 0x41c   : > { %v3749_v63 = vpop.eup %3748  ;;  %3754 = vtanh.f32 %v2824_v4  ;;  %2952 = vst.msk [vmem:[%s5263_s27 + $0xf0] sm:$0xff] %vm429_vm0, %v2824_v4 }
 0x41d   : > { %v2886_v55 = vmul.f32 %v3749_v63, %v3727_v36 }
 0x41f   : > { %v3751_v34 = vpop.eup %3750  ;;  %2918 = vst.msk [vmem:[%s5300_s10 + $0xe0] sm:$0xff] %vm429_vm0, %v2886_v55 }
 0x420   : > { %v2825_v56 = vmul.f32 %v3751_v34, %v2793_v12 }
 0x422   : > { %v3753_v28 = vpop.eup %3752  ;;  %3756 = vtanh.f32 %v2825_v56  ;;  %2953 = vst.msk [vmem:[%s5263_s27 + $0xf8] sm:$0xff] %vm429_vm0, %v2825_v56 }
 0x423   : > { %v2887_v20 = vmul.f32 %v3753_v28, %v3739_v54 }
 0x425   : > { %2919 = vst.msk [vmem:[%s5300_s10 + $0xe8] sm:$0xff] %vm429_vm0, %v2887_v20 }
 0x426   : > { %v3755_v7 = vpop.eup %3754 }
 0x427   : > { %v2888_v42 = vmul.f32 %v3755_v7, %v3745_v22 }
 0x429   : > { %2920 = vst.msk [vmem:[%s5300_s10 + $0xf0] sm:$0xff] %vm429_vm0, %v2888_v42 }
 0x42c   : > { %v3757_v38 = vpop.eup %3756 }
 0x42d   : > { %v2889_v26 = vmul.f32 %v3757_v38, %v3751_v34 }
 0x42f   : > { %2921 = vst.msk [vmem:[%s5300_s10 + $0xf8] sm:$0xff] %vm429_vm0, %v2889_v26 }
 0x430 PF: > { %s20_s30 = sadd.s32 1, %s3800_s30  }
 0x431   : > { %p17_p4 = scmp.ge.s32.totalorder %s20_s30, 4  }
 0x433   :  { %19 = sbr.rel (!%p17_p4) target bundleno = 1 (0x1), region = 100 }

// kernel: downsample_forward.5
= control target key start
LH: loop header
LB: loop body
LE: loop exit
PB: predicated region body
PF: predicated region fallthrough
CT: control target
= control target key end

     0   :  { %s796_s15 = smov 0   ;;  %s945_s0 = inlined_call_operand.vmem [shape: f32[16,2,8,64], index: 0, kind: input, shape index: {}]   ;;  %s946_s1 = inlined_call_operand.vmem [shape: f32[1,128], index: 1, kind: input, shape index: {}]   ;;  %s947_s2 = inlined_call_operand.vmem [shape: f32[1,128], index: 2, kind: input, shape index: {}]   ;;  %s948_s3 = inlined_call_operand.vmem [shape: bf16[128,64], index: 3, kind: input, shape index: {}]   ;;  %s949_s4 = inlined_call_operand.vmem [shape: f32[128,64], index: 4, kind: output, shape index: {}]  }
   0x1 LB: > { %s652_s16 = sadd.s32 4294967295, %s767_s15   ;;  %p656_p0 = scmp.ge.s32.totalorder %s767_s15, 1  ;;  %s767_s15 = sphi %s796_s15, %s14_s15  }
   0x2   : > { %p164_p1 = scmp.lt.s32.totalorder %s767_s15, 3 }
   0x4   : > { %p165_p2 = pnand %p656_p0, %p164_p1 }
   0x5   : > { %s657_s17 = sshll.u32 (!%p165_p2), %s652_s16, 3  ;;  %s769_s22 = smov (!%p165_p2), 32   ;;  %vm327_vm0 = vcmask (!%p165_p2), 261120   ;;  %vm336_vm1 = vcmask (!%p165_p2), 523264   ;;  %vm345_vm2 = vcmask (!%p165_p2), 785408  }
   0x6   : > { %168 = sbr.rel (%p165_p2) target bundleno = 711 (0x2c7), region = 36  ;;  %p192_p3 = scmp.lt.s32.totalorder (!%p165_p2), %s657_s17, 15 }
   0x7   : > { %s770_s23 = smov (!%p165_p2), 64  }
   0xd   : > { %s951_s17 = smov (!%p192_p3, %s657_s17), 15 }
   0xe   : > { %s674_s18 = sshll.u32 %s951_s17, 4  ;;  %s661_s20 = sshll.u32 %s951_s17, 3 }
   0xf   : > { %s810_s21 = scalar_lea.vmem %s945_s0, %s674_s18 }
  0x10   : > { %v232_v0 = vld [vmem:[%s810_s21 + $0x48] sm:$0xff]  ;;  %v234_v2 = vld [vmem:[%s810_s21 + $0x58] sm:$0xff]  ;;  %v225_v8 = vld [vmem:[%s810_s21 + $0x10] sm:$0xff] }
  0x11   : > { %v224_v1 = vld [vmem:[%s810_s21 + $0x8] sm:$0xff]  ;;  %255 = vrot.lane.b32.xlu1 %v232_v0, %s769_s22  ;;  %v226_v3 = vld [vmem:[%s810_s21 + $0x18] sm:$0xff]  ;;  %v223_v9 = vld [vmem:[%s810_s21] sm:$0xff] }
  0x12   : > { %247 = vrot.lane.b32.xlu0 %v224_v1, %s769_s22  ;;  %v230_v4 = vld [vmem:[%s810_s21 + $0x38] sm:$0xff]  ;;  %v228_v5 = vld [vmem:[%s810_s21 + $0x28] sm:$0xff]  ;;  %v233_v10 = vld [vmem:[%s810_s21 + $0x50] sm:$0xff] }
  0x13   : > { %v238_v6 = vld [vmem:[%s810_s21 + $0x78] sm:$0xff]  ;;  %v236_v7 = vld [vmem:[%s810_s21 + $0x68] sm:$0xff]  ;;  %v231_v11 = vld [vmem:[%s810_s21 + $0x40] sm:$0xff] }
  0x14   : > { %v825_v12 = vld [vmem:[%s810_s21 + $0x30] sm:$0xff]  ;;  %v227_v13 = vld [vmem:[%s810_s21 + $0x20] sm:$0xff] }
  0x15   : > { %257 = vrot.lane.b32.xlu1 %v234_v2, %s769_s22  ;;  %v830_v14 = vld [vmem:[%s810_s21 + $0x70] sm:$0xff]  ;;  %v235_v15 = vld [vmem:[%s810_s21 + $0x60] sm:$0xff] }
  0x16   : > { %249 = vrot.lane.b32.xlu0 %v226_v3, %s769_s22 }
  0x19   : > { %253 = vrot.lane.b32.xlu1 %v230_v4, %s769_s22 }
  0x1a   : > { %251 = vrot.lane.b32.xlu0 %v228_v5, %s769_s22 }
  0x1d   : > { %261 = vrot.lane.b32.xlu1 %v238_v6, %s769_s22 }
  0x1e   : > { %259 = vrot.lane.b32.xlu0 %v236_v7, %s769_s22 }
  0x21   : > { %281 = vrot.lane.b32.xlu1 %v225_v8, %s769_s22 }
  0x22   : > { %279 = vrot.lane.b32.xlu0 %v223_v9, %s769_s22 }
  0x25   : > { %289 = vrot.lane.b32.xlu1 %v233_v10, %s769_s22 }
  0x26   : > { %287 = vrot.lane.b32.xlu0 %v231_v11, %s769_s22 }
  0x29   : > { %285 = vrot.lane.b32.xlu1 %v825_v12, %s769_s22 }
  0x2a   : > { %283 = vrot.lane.b32.xlu0 %v227_v13, %s769_s22 }
  0x2d   : > { %293 = vrot.lane.b32.xlu1 %v830_v14, %s769_s22 }
  0x2e   : > { %291 = vrot.lane.b32.xlu0 %v235_v15, %s769_s22 }
  0x31   : > { %305 = vrot.lane.b32.xlu1 %v226_v3, %s770_s23 }
  0x32   : > { %303 = vrot.lane.b32.xlu0 %v224_v1, %s770_s23 }
  0x35   : > { %313 = vrot.lane.b32.xlu1 %v234_v2, %s770_s23 }
  0x36   : > { %311 = vrot.lane.b32.xlu0 %v232_v0, %s770_s23 }
  0x39   : > { %309 = vrot.lane.b32.xlu1 %v230_v4, %s770_s23 }
  0x3a   : > { %307 = vrot.lane.b32.xlu0 %v228_v5, %s770_s23 }
  0x3d   : > { %317 = vrot.lane.b32.xlu1 %v238_v6, %s770_s23 }
  0x3e   : > { %315 = vrot.lane.b32.xlu0 %v236_v7, %s770_s23  ;;  %s202_s23 = scalar_lea.vmem %s949_s4, %s661_s20 }
  0x83   : > { %v256_v16 = vpop.permute.xlu1 %255 }
  0x84   : > { %v248_v17 = vpop.permute.xlu0 %247  ;;  %v332_v40 = vsel %vm327_vm0, %v231_v11, %v256_v16 }
  0x85   : > { %v328_v32 = vsel %vm327_vm0, %v223_v9, %v248_v17 }
  0x87   : > { %v258_v18 = vpop.permute.xlu1 %257 }
  0x88   : > { %v250_v19 = vpop.permute.xlu0 %249  ;;  %v333_v45 = vsel %vm327_vm0, %v233_v10, %v258_v18 }
  0x89   : > { %v329_v33 = vsel %vm327_vm0, %v225_v8, %v250_v19 }
  0x8b   : > { %v254_v20 = vpop.permute.xlu1 %253 }
  0x8c   : > { %v252_v21 = vpop.permute.xlu0 %251  ;;  %v331_v53 = vsel %vm327_vm0, %v825_v12, %v254_v20 }
  0x8d   : > { %v330_v46 = vsel %vm327_vm0, %v227_v13, %v252_v21 }
  0x8f   : > { %v262_v22 = vpop.permute.xlu1 %261 }
  0x90   : > { %v260_v23 = vpop.permute.xlu0 %259  ;;  %v335_v61 = vsel %vm327_vm0, %v830_v14, %v262_v22 }
  0x91   : > { %v334_v54 = vsel %vm327_vm0, %v235_v15, %v260_v23 }
  0x93   : > { %v282_v24 = vpop.permute.xlu1 %281 }
  0x94   : > { %v280_v25 = vpop.permute.xlu0 %279  ;;  %v338_v34 = vsel %vm336_vm1, %v329_v33, %v282_v24  ;;  %v738_v33 = vld [vmem:[%s948_s3 + $0x8] sm:$0xff]  }
  0x95   : > { %v337_v35 = vsel %vm336_vm1, %v328_v32, %v280_v25  ;;  %v737_v32 = vld [vmem:[%s948_s3] sm:$0xff]  }
  0x96   : > { %687 = vmatprep.subr.bf16.mxu0 %v737_v32  ;;  %711 = vmatprep.subr.bf16.mxu1 %v737_v32 }
  0x97   : > { %v290_v26 = vpop.permute.xlu1 %289  ;;  %688 = vmatpush3.bf16.msra.mxu0 %v737_v32  ;;  %719 = vmatpush3.bf16.msra.mxu1 %v737_v32 }
  0x98   : > { %v288_v27 = vpop.permute.xlu0 %287  ;;  %v342_v47 = vsel %vm336_vm1, %v333_v45, %v290_v26  ;;  %689 = vmatprep.subr.bf16.mxu0 %v738_v33  ;;  %712 = vmatprep.subr.bf16.mxu1 %v738_v33 }
  0x99   : > { %v341_v41 = vsel %vm336_vm1, %v332_v40, %v288_v27 }
  0x9b   : > { %v286_v28 = vpop.permute.xlu1 %285  ;;  %690 = vmatpush3.bf16.msra.mxu0 %v738_v33  ;;  %720 = vmatpush3.bf16.msra.mxu1 %v738_v33 }
  0x9c   : > { %v284_v29 = vpop.permute.xlu0 %283  ;;  %v340_v55 = vsel %vm336_vm1, %v331_v53, %v286_v28 }
  0x9d   : > { %v339_v48 = vsel %vm336_vm1, %v330_v46, %v284_v29 }
  0x9f   : > { %v294_v30 = vpop.permute.xlu1 %293 }
  0xa0   : > { %v292_v31 = vpop.permute.xlu0 %291  ;;  %v344_v62 = vsel %vm336_vm1, %v335_v61, %v294_v30 }
  0xa1   : > { %v343_v56 = vsel %vm336_vm1, %v334_v54, %v292_v31 }
  0xa3   : > { %v306_v36 = vpop.permute.xlu1 %305 }
  0xa4   : > { %v304_v37 = vpop.permute.xlu0 %303  ;;  %v347_v38 = vsel %vm345_vm2, %v338_v34, %v306_v36  ;;  %v739_v34 = vld [vmem:[%s948_s3 + $0x10] sm:$0xff]   ;;  %v741_v36 = vld [vmem:[%s948_s3 + $0x20] sm:$0xff]  }
  0xa5   : > { %v346_v39 = vsel %vm345_vm2, %v337_v35, %v304_v37  ;;  %356 = vadd.xlane.f32.xlu1 %v347_v38  ;;  %691 = vmatprep.subr.bf16.mxu0 %v739_v34  ;;  %v740_v35 = vld [vmem:[%s948_s3 + $0x18] sm:$0xff]   ;;  %v742_v37 = vld [vmem:[%s948_s3 + $0x28] sm:$0xff]  }
  0xa6   : > { %354 = vadd.xlane.f32.xlu0 %v346_v39  ;;  %713 = vmatprep.subr.bf16.mxu1 %v739_v34 }
  0xa7   : > { %v314_v42 = vpop.permute.xlu1 %313  ;;  %692 = vmatpush3.bf16.msra.mxu0 %v739_v34  ;;  %721 = vmatpush3.bf16.msra.mxu1 %v739_v34 }
  0xa8   : > { %v312_v43 = vpop.permute.xlu0 %311  ;;  %v351_v52 = vsel %vm345_vm2, %v342_v47, %v314_v42  ;;  %693 = vmatprep.subr.bf16.mxu0 %v740_v35  ;;  %714 = vmatprep.subr.bf16.mxu1 %v740_v35 }
  0xa9   : > { %v350_v44 = vsel %vm345_vm2, %v341_v41, %v312_v43 }
  0xaa   : > { %362 = vadd.xlane.f32.xlu0 %v350_v44 }
  0xab   : > { %v310_v49 = vpop.permute.xlu1 %309  ;;  %694 = vmatpush3.bf16.msra.mxu0 %v740_v35  ;;  %722 = vmatpush3.bf16.msra.mxu1 %v740_v35 }
  0xac   : > { %v308_v50 = vpop.permute.xlu0 %307  ;;  %v349_v59 = vsel %vm345_vm2, %v340_v55, %v310_v49  ;;  %695 = vmatprep.subr.bf16.mxu0 %v741_v36  ;;  %715 = vmatprep.subr.bf16.mxu1 %v741_v36 }
  0xad   : > { %v348_v51 = vsel %vm345_vm2, %v339_v48, %v308_v50 }
  0xae   : > { %358 = vadd.xlane.f32.xlu1 %v348_v51  ;;  %364 = vadd.xlane.f32.xlu0 %v351_v52 }
  0xaf   : > { %v318_v60 = vpop.permute.xlu1 %317  ;;  %696 = vmatpush3.bf16.msra.mxu0 %v741_v36  ;;  %723 = vmatpush3.bf16.msra.mxu1 %v741_v36 }
  0xb0   : > { %v316_v57 = vpop.permute.xlu0 %315  ;;  %v353_v63 = vsel %vm345_vm2, %v344_v62, %v318_v60  ;;  %697 = vmatprep.subr.bf16.mxu0 %v742_v37  ;;  %716 = vmatprep.subr.bf16.mxu1 %v742_v37  ;;  %v662_v62 = vld [vmem:[%s946_s1] ss:$0 sm:$0xff] }
  0xb1   : > { %v352_v58 = vsel %vm345_vm2, %v343_v56, %v316_v57 }
  0xb2   : > { %366 = vadd.xlane.f32.xlu1 %v352_v58  ;;  %360 = vadd.xlane.f32.xlu0 %v349_v59 }
  0xb3   : > { %698 = vmatpush3.bf16.msra.mxu0 %v742_v37  ;;  %724 = vmatpush3.bf16.msra.mxu1 %v742_v37 }
  0xb6   : > { %368 = vadd.xlane.f32.xlu0 %v353_v63 }
 0x132   : > { %v357_v0 = vpop.xlane.xlu1 %356 }
 0x133   : > { %v355_v1 = vpop.xlane.xlu0 %354  ;;  %v372_v2 = vmul.f32 0.0078125, %v357_v0 }
 0x134   : > { %v371_v3 = vmul.f32 0.0078125, %v355_v1 }
 0x135   : > { %v860_v4 = vsub.f32 %v347_v38, %v372_v2  ;;  %v743_v38 = vld [vmem:[%s948_s3 + $0x30] sm:$0xff]  }
 0x136   : > { %v862_v5 = vsub.f32 %v346_v39, %v371_v3  ;;  %699 = vmatprep.subr.bf16.mxu0 %v743_v38  ;;  %717 = vmatprep.subr.bf16.mxu1 %v743_v38  ;;  %v744_v39 = vld [vmem:[%s948_s3 + $0x38] sm:$0xff]   ;;  %v663_v3 = vld [vmem:[%s947_s2] ss:$0 sm:$0xff] }
 0x137   : > { %v363_v6 = vpop.xlane.xlu0 %362  ;;  %v388_v8 = vmul.f32 %v860_v4, %v860_v4  ;;  %700 = vmatpush3.bf16.msra.mxu0 %v743_v38  ;;  %725 = vmatpush3.bf16.msra.mxu1 %v743_v38 }
 0x138   : > { %v375_v7 = vmul.f32 0.0078125, %v363_v6  ;;  %v387_v9 = vmul.f32 %v862_v5, %v862_v5  ;;  %701 = vmatprep.subr.bf16.mxu0 %v744_v39  ;;  %718 = vmatprep.subr.bf16.mxu1 %v744_v39 }
 0x139   : > { %397 = vadd.xlane.f32.xlu0 %v388_v8 }
 0x13a   : > { %v868_v10 = vsub.f32 %v350_v44, %v375_v7  ;;  %395 = vadd.xlane.f32.xlu1 %v387_v9 }
 0x13b   : > { %v359_v11 = vpop.xlane.xlu1 %358  ;;  %v365_v12 = vpop.xlane.xlu0 %364  ;;  %702 = vmatpush3.bf16.msra.mxu0 %v744_v39  ;;  %726 = vmatpush3.bf16.msra.mxu1 %v744_v39 }
 0x13c   : > { %v373_v13 = vmul.f32 0.0078125, %v359_v11  ;;  %v376_v14 = vmul.f32 0.0078125, %v365_v12  ;;  %v391_v15 = vmul.f32 %v868_v10, %v868_v10 }
 0x13e   : > { %v872_v16 = vsub.f32 %v348_v51, %v373_v13  ;;  %v874_v17 = vsub.f32 %v351_v52, %v376_v14  ;;  %403 = vadd.xlane.f32.xlu1 %v391_v15 }
 0x13f   : > { %v367_v18 = vpop.xlane.xlu1 %366  ;;  %v361_v19 = vpop.xlane.xlu0 %360 }
 0x140   : > { %v377_v20 = vmul.f32 0.0078125, %v367_v18  ;;  %v374_v21 = vmul.f32 0.0078125, %v361_v19  ;;  %v389_v22 = vmul.f32 %v872_v16, %v872_v16  ;;  %v392_v23 = vmul.f32 %v874_v17, %v874_v17 }
 0x142   : > { %v880_v24 = vsub.f32 %v352_v58, %v377_v20  ;;  %v882_v25 = vsub.f32 %v349_v59, %v374_v21  ;;  %399 = vadd.xlane.f32.xlu1 %v389_v22  ;;  %405 = vadd.xlane.f32.xlu0 %v392_v23 }
 0x143   : > { %v369_v26 = vpop.xlane.xlu0 %368 }
 0x144   : > { %v378_v27 = vmul.f32 0.0078125, %v369_v26  ;;  %v393_v28 = vmul.f32 %v880_v24, %v880_v24  ;;  %v390_v29 = vmul.f32 %v882_v25, %v882_v25 }
 0x146   : > { %v888_v30 = vsub.f32 %v353_v63, %v378_v27  ;;  %407 = vadd.xlane.f32.xlu1 %v393_v28  ;;  %401 = vadd.xlane.f32.xlu0 %v390_v29 }
 0x148   : > { %v394_v31 = vmul.f32 %v888_v30, %v888_v30 }
 0x14a   : > { %409 = vadd.xlane.f32.xlu0 %v394_v31 }
 0x1c6   : > { %v398_v41 = vpop.xlane.xlu0 %397 }
 0x1c7   : > { %v396_v40 = vpop.xlane.xlu1 %395  ;;  %v412_v43 = vmul.f32 0.0078125, %v398_v41 }
 0x1c8   : > { %v411_v42 = vmul.f32 0.0078125, %v396_v40 }
 0x1c9   : > { %v420_v45 = vadd.f32 1e-05, %v412_v43 }
 0x1ca   : > { %v419_v44 = vadd.f32 1e-05, %v411_v42 }
 0x1cb   : > { %v404_v46 = vpop.xlane.xlu1 %403 }
 0x1cc   : > { %745 = vrsqrt.f32 %v419_v44  ;;  %v415_v47 = vmul.f32 0.0078125, %v404_v46 }
 0x1cd   : > { %747 = vrsqrt.f32 %v420_v45 }
 0x1ce   : > { %v423_v48 = vadd.f32 1e-05, %v415_v47 }
 0x1cf   : > { %v400_v49 = vpop.xlane.xlu1 %399  ;;  %v406_v50 = vpop.xlane.xlu0 %405 }
 0x1d0   : > { %749 = vrsqrt.f32 %v423_v48  ;;  %v413_v51 = vmul.f32 0.0078125, %v400_v49  ;;  %v416_v52 = vmul.f32 0.0078125, %v406_v50 }
 0x1d2   : > { %v421_v53 = vadd.f32 1e-05, %v413_v51  ;;  %v424_v54 = vadd.f32 1e-05, %v416_v52 }
 0x1d3   : > { %v408_v55 = vpop.xlane.xlu1 %407  ;;  %v402_v56 = vpop.xlane.xlu0 %401 }
 0x1d4   : > { %751 = vrsqrt.f32 %v421_v53  ;;  %v417_v57 = vmul.f32 0.0078125, %v408_v55  ;;  %v414_v58 = vmul.f32 0.0078125, %v402_v56 }
 0x1d5   : > { %753 = vrsqrt.f32 %v424_v54 }
 0x1d6   : > { %v746_v59 = vpop.eup %745  ;;  %v425_v60 = vadd.f32 1e-05, %v417_v57  ;;  %v422_v61 = vadd.f32 1e-05, %v414_v58 }
 0x1d7   : > { %v748_v63 = vpop.eup %747  ;;  %v410_v0 = vpop.xlane.xlu0 %409  ;;  %v435_v1 = vmul.f32 %v746_v59, %v862_v5 }
 0x1d8   : > { %755 = vrsqrt.f32 %v425_v60  ;;  %v418_v2 = vmul.f32 0.0078125, %v410_v0  ;;  %v436_v6 = vmul.f32 %v748_v63, %v860_v4 }
 0x1d9   : > { %757 = vrsqrt.f32 %v422_v61  ;;  %v449_v7 = vmul.f32 %v662_v62, %v435_v1 }
 0x1da   : > { %v750_v8 = vpop.eup %749  ;;  %v426_v9 = vadd.f32 1e-05, %v418_v2  ;;  %v450_v11 = vmul.f32 %v662_v62, %v436_v6 }
 0x1db   : > { %v463_v12 = vadd.f32 %v663_v3, %v449_v7  ;;  %v439_v14 = vmul.f32 %v750_v8, %v868_v10 }
 0x1dc   : > { %759 = vrsqrt.f32 %v426_v9  ;;  %v464_v13 = vadd.f32 %v663_v3, %v450_v11 }
 0x1dd   : > { %v453_v20 = vmul.f32 %v662_v62, %v439_v14 }
 0x1de   : > { %v752_v15 = vpop.eup %751  ;;  %v471_v5 = vpack.c.bf16 %v464_v13, %v463_v12 }
 0x1df   : > { %v754_v18 = vpop.eup %753  ;;  %v437_v21 = vmul.f32 %v752_v15, %v872_v16  ;;  %v467_v27 = vadd.f32 %v663_v3, %v453_v20 }
 0x1e0   : > { %703 = vmatprep.mubr.bf16.mxu0 %v471_v5  ;;  %v440_v19 = vmul.f32 %v754_v18, %v874_v17 }
 0x1e1   : > { %v451_v31 = vmul.f32 %v662_v62, %v437_v21 }
 0x1e2   : > { %v756_v4 = vpop.eup %755  ;;  %v454_v22 = vmul.f32 %v662_v62, %v440_v19 }
 0x1e3   : > { %v758_v23 = vpop.eup %757  ;;  %v441_v26 = vmul.f32 %v756_v4, %v880_v24  ;;  %v465_v35 = vadd.f32 %v663_v3, %v451_v31 }
 0x1e4   : > { %v468_v28 = vadd.f32 %v663_v3, %v454_v22  ;;  %v438_v29 = vmul.f32 %v758_v23, %v882_v25 }
 0x1e5   : > { %v455_v17 = vmul.f32 %v662_v62, %v441_v26 }
 0x1e6   : > { %v760_v10 = vpop.eup %759  ;;  %v473_v32 = vpack.c.bf16 %v468_v28, %v467_v27  ;;  %v452_v33 = vmul.f32 %v662_v62, %v438_v29 }
 0x1e7   : > { %v442_v34 = vmul.f32 %v760_v10, %v888_v30  ;;  %v469_v38 = vadd.f32 %v663_v3, %v455_v17 }
 0x1e8   : > { %707 = vmatprep.mubr.bf16.mxu1 %v473_v32  ;;  %v466_v16 = vadd.f32 %v663_v3, %v452_v33 }
 0x1e9   : > { %v456_v36 = vmul.f32 %v662_v62, %v442_v34 }
 0x1ea   : > { %v472_v37 = vpack.c.bf16 %v466_v16, %v465_v35 }
 0x1eb   : > { %v470_v39 = vadd.f32 %v663_v3, %v456_v36 }
 0x1ec   : > { %704 = vmatmul.mubr.bf16.vlgmr.msra.gmra.mrb[0].mxu0 %v472_v37 }
 0x1ed   : > { %v474_v24 = vpack.c.bf16 %v470_v39, %v469_v38 }
 0x1ef   : > { %708 = vmatmul.mubr.bf16.vlgmr.msra.gmra.mrb[0].mxu1 %v474_v24 }
 0x2bf   : > { %v705_v25 = vpop.f32.mrb[0].mxu0 }
 0x2c0   : > { %590 = vst.msk [vmem:[%s202_s23 + $0x10] sm:$0xff] %vm336_vm1, %v705_v25  ;;  %v557_v30 = vpop.f32.mrb[1].mxu0 }
 0x2c1   : > { %588 = vst.msk [vmem:[%s202_s23] sm:$0xff] %vm336_vm1, %v557_v30  ;;  %v706_v40 = vpop.f32.mrb[2].mxu0 }
 0x2c2   : > { %591 = vst.msk [vmem:[%s202_s23 + $0x18] sm:$0xff] %vm336_vm1, %v706_v40  ;;  %v560_v41 = vpop.f32.mrb[3].mxu0  ;;  %v709_v42 = vpop.f32.mrb[0].mxu1 }
 0x2c3   : > { %589 = vst.msk [vmem:[%s202_s23 + $0x8] sm:$0xff] %vm336_vm1, %v560_v41  ;;  %594 = vst.msk [vmem:[%s202_s23 + $0x30] sm:$0xff] %vm336_vm1, %v709_v42  ;;  %v573_v43 = vpop.f32.mrb[1].mxu1 }
 0x2c4   : > { %592 = vst.msk [vmem:[%s202_s23 + $0x20] sm:$0xff] %vm336_vm1, %v573_v43  ;;  %v710_v44 = vpop.f32.mrb[2].mxu1 }
 0x2c5   : > { %595 = vst.msk [vmem:[%s202_s23 + $0x38] sm:$0xff] %vm336_vm1, %v710_v44  ;;  %v576_v45 = vpop.f32.mrb[3].mxu1 }
 0x2c6   : > { %593 = vst.msk [vmem:[%s202_s23 + $0x28] sm:$0xff] %vm336_vm1, %v576_v45 }
 0x2c7 PF: > { %s14_s15 = sadd.s32 1, %s767_s15  }
 0x2c8   : > { %p11_p4 = scmp.ge.s32.totalorder %s14_s15, 4  }
 0x2ca   :  { %13 = sbr.rel (!%p11_p4) target bundleno = 1 (0x1), region = 66 }

// kernel: downsample_forward.7
= control target key start
LH: loop header
LB: loop body
LE: loop exit
PB: predicated region body
PF: predicated region fallthrough
CT: control target
= control target key end

     0   :  { %9 = vsyncpa [#allocation3], 0  ;;  %s1374_s0 = inlined_call_operand.vmem [shape: f32[8,2,4,128], index: 0, kind: input, shape index: {}]   ;;  %s1375_s1 = inlined_call_operand.vmem [shape: f32[1,256], index: 1, kind: input, shape index: {}]   ;;  %s1376_s2 = inlined_call_operand.vmem [shape: f32[1,256], index: 2, kind: input, shape index: {}]   ;;  %s1377_s3 = inlined_call_operand.vmem [shape: bf16[256,128], index: 3, kind: input, shape index: {}]   ;;  %s1378_s4 = inlined_call_operand.hbm [shape: f32[8,4,128], index: 4, kind: output, shape index: {}]  }
   0x1   :  { %11 = vsyncpa [#allocation3 + $0x1], 0  ;;  %s1032_s15 = smov 0   ;;  %s1034_s16 = smov 0  }
   0x2   :  { %s1036_s17 = smov 0   ;;  %s1038_s18 = smov 0  }
   0x3 LB: > { %s1053_s19 = sadd.s32 4294967295, %s1002_s18   ;;  %s753_s20 = sadd.s32 4294967294, %s1002_s18   ;;  %s1002_s18 = sphi %s1038_s18, %s1384_s18   ;;  %s998_s17 = sphi %s1036_s17, %s1383_s17   ;;  %s994_s16 = sphi %s1034_s16, %s1382_s16   ;;  %s990_s15 = sphi %s1032_s15, %s1381_s15  }
   0x4   : > { %s1057_s21 = sadd.s32 1, %s1002_s18   ;;  %s113_s22 = sadd.s32 1, %s998_s17 }
   0x5   : > { %s110_s23 = ssub.s32 %s1002_s18, %s1057_s21  ;;  %p123_p0 = scmp.ne.s32.totalorder %s998_s17, %s994_s16 }
   0x6   : > { %p111_p1 = scmp.eq.s32.totalorder %s110_s23, 0  ;;  %p124_p2 = scmp.eq.s32.totalorder %s1053_s19, 1 }
   0x7   : > { %p129_p3 = scmp.ne.s32.totalorder %s994_s16, %s990_s15  ;;  %p130_p4 = scmp.eq.s32.totalorder %s753_s20, 1 }
   0x8   : > { %s1068_s24 = scalar_select %p111_p1, %s998_s17, %s113_s22  }
   0x9   : > { %p1070_p5 = por %p124_p2, %p123_p0  ;;  %p1074_p6 = por %p130_p4, %p129_p3 }
   0xa   : > { %p756_p7 = scmp.ge.s32.totalorder %s1002_s18, 1  ;;  %p167_p8 = scmp.lt.s32.totalorder %s1002_s18, 3 }
   0xc   : > { %p168_p9 = pnand %p756_p7, %p167_p8 }
   0xd   : > { %s758_s27 = sshll.u32 (!%p168_p9), %s1053_s19, 2  ;;  %s1004_s6 = smov (!%p168_p9), 64   ;;  %vm253_vm0 = vcmask (!%p168_p9), 523264   ;;  %vm256_vm1 = vcmask (!%p168_p9), 1043456   ;;  %v1111_v36 = vld [vmem:[%s1377_s3 + $0x40] sm:$0xff] (!%p168_p9)   ;;  %v1121_v38 = vld [vmem:[%s1377_s3 + $0x48] sm:$0xff] (!%p168_p9)  }
   0xe   : > { %171 = sbr.rel (%p168_p9) target bundleno = 728 (0x2d8), region = 36  ;;  %p195_p10 = scmp.lt.s32.totalorder (!%p168_p9), %s758_s27, 7  ;;  %v1116_v37 = vld [vmem:[%s1377_s3] sm:$0xff] (!%p168_p9)   ;;  %787 = vmatprep.subr.bf16.mxu0 (!%p168_p9), %v1111_v36  ;;  %809 = vmatprep.subr.bf16.mxu1 (!%p168_p9), %v1111_v36  ;;  %v1130_v39 = vld [vmem:[%s1377_s3 + $0x8] sm:$0xff] (!%p168_p9)   ;;  %v1137_v40 = vld [vmem:[%s1377_s3 + $0x50] sm:$0xff] (!%p168_p9)  }
   0xf   : > { %788 = vmatpush3.bf16.msra.mxu0 (!%p168_p9), %v1116_v37  ;;  %810 = vmatpush3.bf16.msra.mxu1 (!%p168_p9), %v1116_v37  ;;  %s191_s11 = sand.u32 (!%p168_p9), 1, %s994_s16   ;;  %s786_s20 = sshll.u32 (!%p168_p9), %s1053_s19, 8 }
  0x10   : > { %789 = vmatprep.subr.bf16.mxu0 (!%p168_p9), %v1121_v38  ;;  %811 = vmatprep.subr.bf16.mxu1 (!%p168_p9), %v1121_v38  ;;  %s757_s12 = sshll.u32 (!%p168_p9), %s191_s11, 4  ;;  %s1331_s19 = scalar_lea.sflag (!%p168_p9), [#allocation3], %s191_s11 }
  0x11   : > { %s193_s13 = scalar_lea.vmem (!%p168_p9), [#allocation2], %s757_s12  ;;  %s1005_s29 = smov (!%p168_p9), [#allocation2]  }
  0x12   : > { %s691_s14 = sshll.u32 (!%p168_p9), %s193_s13, 4  ;;  %s944_s30 = sshll.u32 (!%p168_p9), %s1005_s29, 4  ;;  %s1322_s14 = int_to_ptr.vmem [resolvable:$true] %s691_s14  ;;  %s945_s30 = int_to_ptr.vmem [resolvable:$false] %s944_s30 }
  0x13   : > { %790 = vmatpush3.bf16.msra.mxu0 (!%p168_p9), %v1130_v39  ;;  %812 = vmatpush3.bf16.msra.mxu1 (!%p168_p9), %v1130_v39  ;;  %p947_p0 = scmp.lt.s32.totalorder (!%p168_p9), %s1322_s14, %s945_s30 }
  0x14   : > { %791 = vmatprep.subr.bf16.mxu0 (!%p168_p9), %v1137_v40  ;;  %813 = vmatprep.subr.bf16.mxu1 (!%p168_p9), %v1137_v40 }
  0x15   : > { %s1386_s27 = smov (!%p195_p10, %s758_s27), 7 }
  0x16   : > { %s785_s28 = sshll.u32 %s1386_s27, 3  ;;  %s1327_s27 = scalar_lea.hbm %s1378_s4, %s786_s20 }
  0x17   : > { %s199_s5 = scalar_lea.vmem %s1374_s0, %s785_s28  ;;  %s940_s28 = scalar_lea.vmem %s1322_s14, 256 }
  0x18   : > { %v240_v0 = vld [vmem:[%s199_s5 + $0xc] sm:$0xf]  ;;  %v238_v1 = vld [vmem:[%s199_s5 + $0x4] sm:$0xf]  ;;  %v239_v2 = vld [vmem:[%s199_s5 + $0x8] sm:$0xf]  ;;  %p941_p11 = scmp.ne.s32.totalorder %s1322_s14, %s940_s28 }
  0x19   : > { %444 = vrot.lane.b32.xlu1 %v240_v0, %s1004_s6  ;;  %246 = vrot.lane.b32.xlu0 %v238_v1, %s1004_s6  ;;  %v237_v3 = vld [vmem:[%s199_s5] sm:$0xf]  ;;  %v241_v4 = vld [vmem:[%s199_s5 + $0x10] sm:$0xf] }
  0x1a   : > { %v242_v5 = vld [vmem:[%s199_s5 + $0x14] sm:$0xf]  ;;  %v243_v6 = vld [vmem:[%s199_s5 + $0x18] sm:$0xf]  ;;  %v244_v7 = vld [vmem:[%s199_s5 + $0x1c] sm:$0xf]  ;;  %p942_p12 = pnand %p941_p11, %p1070_p5 }
  0x1b   : > { %s946_s5 = scalar_lea.vmem %s945_s30, 512 }
  0x1c   : > { %p943_p13 = pneg %p942_p12  ;;  %p948_p1 = scmp.lt.s32.totalorder %s946_s5, %s940_s28 }
  0x1d   : > { %448 = vrot.lane.b32.xlu1 %v239_v2, %s1004_s6  ;;  %250 = vrot.lane.b32.xlu0 %v237_v3, %s1004_s6 }
  0x1e   : > { %p949_p2 = por %p948_p1, %p947_p0 }
  0x20   : > { %p950_p3 = pnand %p949_p2, %p943_p13 }
  0x21   : > { %526 = vrot.lane.b32.xlu1 %v241_v4, %s1004_s6  ;;  %522 = vrot.lane.b32.xlu0 %v242_v5, %s1004_s6 }
  0x25   : > { %604 = vrot.lane.b32.xlu1 %v243_v6, %s1004_s6  ;;  %600 = vrot.lane.b32.xlu0 %v244_v7, %s1004_s6 }
  0x8b   : > { %v445_v8 = vpop.permute.xlu1 %444  ;;  %v247_v9 = vpop.permute.xlu0 %246 }
  0x8c   : > { %v451_v10 = vsel %vm253_vm0, %v239_v2, %v445_v8  ;;  %v254_v11 = vsel %vm253_vm0, %v237_v3, %v247_v9 }
  0x8d   : > { %v453_v16 = vsel %vm256_vm1, %v451_v10, 0.0  ;;  %v257_v18 = vsel %vm256_vm1, %v254_v11, 0.0 }
  0x8f   : > { %v449_v12 = vpop.permute.xlu1 %448  ;;  %v251_v13 = vpop.permute.xlu0 %250 }
  0x90   : > { %v452_v14 = vsel %vm253_vm0, %v449_v12, %v240_v0  ;;  %v255_v15 = vsel %vm253_vm0, %v251_v13, %v238_v1  ;;  %v1186_v13 = vld [vmem:[%s1377_s3 + $0x10] sm:$0xff]  }
  0x91   : > { %v454_v17 = vsel %vm256_vm1, %v452_v14, 0.0  ;;  %v258_v19 = vsel %vm256_vm1, %v255_v15, 0.0  ;;  %792 = vmatpush3.bf16.msra.mxu0 %v1186_v13  ;;  %814 = vmatpush3.bf16.msra.mxu1 %v1186_v13 }
  0x92   : > { %v455_v20 = vadd.f32 %v454_v17, %v453_v16  ;;  %v259_v21 = vadd.f32 %v258_v19, %v257_v18  ;;  %v1207_v16 = vld [vmem:[%s1377_s3 + $0x60] sm:$0xff]   ;;  %v1221_v18 = vld [vmem:[%s1377_s3 + $0x68] sm:$0xff]  }
  0x93   : > { %v527_v22 = vpop.permute.xlu1 %526  ;;  %v523_v23 = vpop.permute.xlu0 %522  ;;  %v1212_v17 = vld [vmem:[%s1377_s3 + $0x20] sm:$0xff]   ;;  %v1226_v19 = vld [vmem:[%s1377_s3 + $0x28] sm:$0xff]  }
  0x94   : > { %v530_v24 = vsel %vm253_vm0, %v527_v22, %v242_v5  ;;  %v529_v25 = vsel %vm253_vm0, %v241_v4, %v523_v23  ;;  %456 = vadd.xlane.f32.xlu1 %v455_v20  ;;  %260 = vadd.xlane.f32.xlu0 %v259_v21  ;;  %v1235_v20 = vld [vmem:[%s1377_s3 + $0x70] sm:$0xff]   ;;  %v1249_v22 = vld [vmem:[%s1377_s3 + $0x78] sm:$0xff]  }
  0x95   : > { %v531_v26 = vsel %vm256_vm1, %v529_v25, 0.0  ;;  %v532_v27 = vsel %vm256_vm1, %v530_v24, 0.0  ;;  %v1240_v21 = vld [vmem:[%s1377_s3 + $0x30] sm:$0xff]   ;;  %v1254_v23 = vld [vmem:[%s1377_s3 + $0x38] sm:$0xff]  }
  0x96   : > { %v533_v28 = vadd.f32 %v532_v27, %v531_v26 }
  0x97   : > { %v605_v29 = vpop.permute.xlu1 %604  ;;  %v601_v30 = vpop.permute.xlu0 %600 }
  0x98   : > { %v608_v31 = vsel %vm253_vm0, %v605_v29, %v244_v7  ;;  %v607_v32 = vsel %vm253_vm0, %v243_v6, %v601_v30  ;;  %534 = vadd.xlane.f32.xlu0 %v533_v28  ;;  %v279_v28 = vlaneseq }
  0x99   : > { %v609_v33 = vsel %vm256_vm1, %v607_v32, 0.0  ;;  %v610_v34 = vsel %vm256_vm1, %v608_v31, 0.0 }
  0x9a   : > { %v611_v35 = vadd.f32 %v610_v34, %v609_v33  ;;  %v280_v33 = vshrl.u32 %v279_v28, 7 }
  0x9c   : > { %612 = vadd.xlane.f32.xlu0 %v611_v35 }
 0x121   : > { %v457_v41 = vpop.xlane.xlu1 %456  ;;  %v261_v42 = vpop.xlane.xlu0 %260 }
 0x122   : > { %v458_v43 = vmul.f32 0.00390625, %v457_v41  ;;  %v263_v44 = vmul.f32 0.00390625, %v261_v42  ;;  %v281_v42 = vsub.s32 0, %v280_v33 }
 0x124   : > { %v1143_v45 = vsub.f32 %v451_v10, %v458_v43  ;;  %v1145_v46 = vsub.f32 %v452_v14, %v458_v43  ;;  %v1147_v47 = vsub.f32 %v254_v11, %v263_v44  ;;  %v1149_v48 = vsub.f32 %v255_v15, %v263_v44  ;;  %v1193_v14 = vld [vmem:[%s1377_s3 + $0x58] sm:$0xff]  }
 0x125   : > { %v535_v49 = vpop.xlane.xlu0 %534  ;;  %v1198_v15 = vld [vmem:[%s1377_s3 + $0x18] sm:$0xff]   ;;  %793 = vmatprep.subr.bf16.mxu0 %v1193_v14  ;;  %815 = vmatprep.subr.bf16.mxu1 %v1193_v14  ;;  %v285_v43 = vsub.s32 1, %v280_v33 }
 0x126   : > { %v536_v50 = vmul.f32 0.00390625, %v535_v49  ;;  %v461_v51 = vmul.f32 %v1143_v45, %v1143_v45  ;;  %v462_v52 = vmul.f32 %v1145_v46, %v1145_v46  ;;  %v266_v53 = vmul.f32 %v1147_v47, %v1147_v47  ;;  %794 = vmatpush3.bf16.msra.mxu0 %v1198_v15  ;;  %816 = vmatpush3.bf16.msra.mxu1 %v1198_v15  ;;  %v204_v49 = vld [vmem:[%s1376_s2] sm:$0x3] }
 0x127   : > { %v267_v54 = vmul.f32 %v1149_v48, %v1149_v48  ;;  %795 = vmatprep.subr.bf16.mxu0 %v1207_v16  ;;  %817 = vmatprep.subr.bf16.mxu1 %v1207_v16 }
 0x128   : > { %v1159_v55 = vsub.f32 %v529_v25, %v536_v50  ;;  %v1161_v56 = vsub.f32 %v530_v24, %v536_v50  ;;  %v463_v57 = vsel %vm256_vm1, %v461_v51, 0.0  ;;  %v464_v58 = vsel %vm256_vm1, %v462_v52, 0.0 }
 0x129   : > { %v613_v59 = vpop.xlane.xlu0 %612  ;;  %v465_v60 = vadd.f32 %v464_v58, %v463_v57  ;;  %v268_v61 = vsel %vm256_vm1, %v266_v53, 0.0  ;;  %v269_v62 = vsel %vm256_vm1, %v267_v54, 0.0  ;;  %v1270_v54 = vrot.slane %v204_v49, %v281_v42 }
 0x12a   : > { %v614_v63 = vmul.f32 0.00390625, %v613_v59  ;;  %v270_v0 = vadd.f32 %v269_v62, %v268_v61  ;;  %v539_v1 = vmul.f32 %v1159_v55, %v1159_v55  ;;  %v540_v2 = vmul.f32 %v1161_v56, %v1161_v56  ;;  %796 = vmatpush3.bf16.msra.mxu0 %v1212_v17  ;;  %818 = vmatpush3.bf16.msra.mxu1 %v1212_v17 }
 0x12b   : > { %466 = vadd.xlane.f32.xlu0 %v465_v60  ;;  %797 = vmatprep.subr.bf16.mxu0 %v1221_v18  ;;  %v299_v57 = vrot.slane %v204_v49, %v285_v43 }
 0x12c   : > { %v1171_v3 = vsub.f32 %v607_v32, %v614_v63  ;;  %v1173_v4 = vsub.f32 %v608_v31, %v614_v63  ;;  %271 = vadd.xlane.f32.xlu1 %v270_v0  ;;  %v541_v5 = vsel %vm256_vm1, %v539_v1, 0.0  ;;  %v542_v6 = vsel %vm256_vm1, %v540_v2, 0.0  ;;  %819 = vmatprep.subr.bf16.mxu1 %v1221_v18 }
 0x12d   : > { %v543_v7 = vadd.f32 %v542_v6, %v541_v5 }
 0x12e   : > { %v617_v8 = vmul.f32 %v1171_v3, %v1171_v3  ;;  %v618_v9 = vmul.f32 %v1173_v4, %v1173_v4  ;;  %798 = vmatpush3.bf16.msra.mxu0 %v1226_v19  ;;  %820 = vmatpush3.bf16.msra.mxu1 %v1226_v19 }
 0x12f   : > { %799 = vmatprep.subr.bf16.mxu0 %v1235_v20  ;;  %821 = vmatprep.subr.bf16.mxu1 %v1235_v20 }
 0x130   : > { %544 = vadd.xlane.f32.xlu1 %v543_v7  ;;  %v619_v10 = vsel %vm256_vm1, %v617_v8, 0.0  ;;  %v620_v11 = vsel %vm256_vm1, %v618_v9, 0.0 }
 0x131   : > { %v621_v12 = vadd.f32 %v620_v11, %v619_v10 }
 0x132   : > { %800 = vmatpush3.bf16.msra.mxu0 %v1240_v21  ;;  %822 = vmatpush3.bf16.msra.mxu1 %v1240_v21 }
 0x133   : > { %622 = vadd.xlane.f32.xlu0 %v621_v12  ;;  %801 = vmatprep.subr.bf16.mxu0 %v1249_v22 }
 0x134   : > { %823 = vmatprep.subr.bf16.mxu1 %v1249_v22 }
 0x136   : > { %802 = vmatpush3.bf16.msra.mxu0 %v1254_v23  ;;  %824 = vmatpush3.bf16.msra.mxu1 %v1254_v23 }
 0x137   : > { %831 = vmatprep.subr.bf16.mxu0 %v1111_v36  ;;  %853 = vmatprep.subr.bf16.mxu1 %v1111_v36  ;;  %v203_v36 = vld [vmem:[%s1375_s1] sm:$0x3] }
 0x138   : > { %v1268_v50 = vrot.slane %v203_v36, %v281_v42  ;;  %v286_v51 = vrot.slane %v203_v36, %v285_v43 }
 0x1b8   : > { %v467_v24 = vpop.xlane.xlu0 %466 }
 0x1b9   : > { %v272_v25 = vpop.xlane.xlu1 %271  ;;  %v468_v26 = vmul.f32 0.00390625, %v467_v24 }
 0x1ba   : > { %v273_v27 = vmul.f32 0.00390625, %v272_v25 }
 0x1bb   : > { %v469_v29 = vadd.f32 1e-05, %v468_v26 }
 0x1bc   : > { %v274_v30 = vadd.f32 1e-05, %v273_v27 }
 0x1bd   : > { %932 = vrsqrt.f32 %v469_v29  ;;  %v545_v31 = vpop.xlane.xlu1 %544 }
 0x1be   : > { %934 = vrsqrt.f32 %v274_v30  ;;  %v546_v32 = vmul.f32 0.00390625, %v545_v31 }
 0x1c0   : > { %v547_v34 = vadd.f32 1e-05, %v546_v32  ;;  %v623_v35 = vpop.xlane.xlu0 %622 }
 0x1c1   : > { %v624_v41 = vmul.f32 0.00390625, %v623_v35 }
 0x1c2   : > { %936 = vrsqrt.f32 %v547_v34 }
 0x1c3   : > { %v625_v44 = vadd.f32 1e-05, %v624_v41 }
 0x1c5   : > { %938 = vrsqrt.f32 %v625_v44 }
 0x1c7   : > { %v933_v52 = vpop.eup %932 }
 0x1c8   : > { %v935_v53 = vpop.eup %934  ;;  %v472_v58 = vmul.f32 %v933_v52, %v1145_v46  ;;  %v471_v59 = vmul.f32 %v933_v52, %v1143_v45 }
 0x1c9   : > { %v277_v60 = vmul.f32 %v935_v53, %v1149_v48  ;;  %v276_v61 = vmul.f32 %v935_v53, %v1147_v47 }
 0x1ca   : > { %v474_v62 = vmul.f32 %v472_v58, %v286_v51  ;;  %v473_v63 = vmul.f32 %v471_v59, %v1268_v50 }
 0x1cb   : > { %v290_v0 = vmul.f32 %v286_v51, %v277_v60  ;;  %v289_v1 = vmul.f32 %v1268_v50, %v276_v61 }
 0x1cc   : > { %v937_v2 = vpop.eup %936  ;;  %v476_v5 = vadd.f32 %v474_v62, %v299_v57  ;;  %v475_v6 = vadd.f32 %v473_v63, %v1270_v54 }
 0x1cd   : > { %v303_v7 = vadd.f32 %v299_v57, %v290_v0  ;;  %v302_v8 = vadd.f32 %v1270_v54, %v289_v1  ;;  %v550_v46 = vmul.f32 %v937_v2, %v1161_v56 }
 0x1ce   : > { %v478_v45 = vpack.c.bf16 %v476_v5, %v476_v5  ;;  %v477_v9 = vpack.c.bf16 %v475_v6, %v475_v6 }
 0x1cf   : > { %v939_v48 = vpop.eup %938  ;;  %v305_v10 = vpack.c.bf16 %v303_v7, %v303_v7  ;;  %v304_v47 = vpack.c.bf16 %v302_v8, %v302_v8  ;;  %v552_v11 = vmul.f32 %v550_v46, %v286_v51 }
 0x1d0   : > { %511 = vmatprep.mubr.bf16.mxu1 %v478_v45  ;;  %v628_v12 = vmul.f32 %v939_v48, %v1173_v4 }
 0x1d1   : > { %434 = vmatprep.mubr.bf16.mxu0 %v305_v10  ;;  %512 = vmatmul.mubr.bf16.vlgmr.msra.gmra.mrb[0].mxu1 %v477_v9  ;;  %v554_v24 = vadd.f32 %v552_v11, %v299_v57 }
 0x1d2   : > { %435 = vmatmul.mubr.bf16.vlgmr.msra.gmra.mrb[0].mxu0 %v304_v47  ;;  %854 = vmatpush3.bf16.msra.mxu1 %v1116_v37  ;;  %v630_v25 = vmul.f32 %v628_v12, %v286_v51 }
 0x1d3   : > { %832 = vmatpush3.bf16.msra.mxu0 %v1116_v37  ;;  %v556_v26 = vpack.c.bf16 %v554_v24, %v554_v24  ;;  %855 = vmatprep.subr.bf16.mxu1 %v1121_v38  ;;  %v627_v37 = vmul.f32 %v939_v48, %v1171_v3 }
 0x1d4   : > { %833 = vmatprep.subr.bf16.mxu0 %v1121_v38  ;;  %v632_v56 = vadd.f32 %v630_v25, %v299_v57  ;;  %v549_v38 = vmul.f32 %v937_v2, %v1159_v55 }
 0x1d5   : > { %589 = vmatprep.mubr.bf16.mxu0 %v556_v26 }
 0x1d6   : > { %856 = vmatpush3.bf16.msra.mxu1 %v1130_v39  ;;  %v634_v27 = vpack.c.bf16 %v632_v56, %v632_v56 }
 0x1d7   : > { %834 = vmatpush3.bf16.msra.mxu0 %v1130_v39  ;;  %857 = vmatprep.subr.bf16.mxu1 %v1137_v40  ;;  %v629_v39 = vmul.f32 %v627_v37, %v1268_v50 }
 0x1d8   : > { %835 = vmatprep.subr.bf16.mxu0 %v1137_v40  ;;  %667 = vmatprep.mubr.bf16.mxu1 %v634_v27  ;;  %v551_v40 = vmul.f32 %v549_v38, %v1268_v50 }
 0x1d9   : > { %v631_v55 = vadd.f32 %v629_v39, %v1270_v54 }
 0x1da   : > { %858 = vmatpush3.bf16.msra.mxu1 %v1186_v13  ;;  %v553_v3 = vadd.f32 %v551_v40, %v1270_v54 }
 0x1db   : > { %836 = vmatpush3.bf16.msra.mxu0 %v1186_v13  ;;  %859 = vmatprep.subr.bf16.mxu1 %v1193_v14  ;;  %v633_v4 = vpack.c.bf16 %v631_v55, %v631_v55 }
 0x1dc   : > { %837 = vmatprep.subr.bf16.mxu0 %v1193_v14  ;;  %v555_v13 = vpack.c.bf16 %v553_v3, %v553_v3 }
 0x1de   : > { %860 = vmatpush3.bf16.msra.mxu1 %v1198_v15 }
 0x1df   : > { %838 = vmatpush3.bf16.msra.mxu0 %v1198_v15  ;;  %861 = vmatprep.subr.bf16.mxu1 %v1207_v16 }
 0x1e0   : > { %839 = vmatprep.subr.bf16.mxu0 %v1207_v16 }
 0x1e2   : > { %862 = vmatpush3.bf16.msra.mxu1 %v1212_v17 }
 0x1e3   : > { %840 = vmatpush3.bf16.msra.mxu0 %v1212_v17  ;;  %863 = vmatprep.subr.bf16.mxu1 %v1221_v18 }
 0x1e4   : > { %841 = vmatprep.subr.bf16.mxu0 %v1221_v18 }
 0x1e6   : > { %864 = vmatpush3.bf16.msra.mxu1 %v1226_v19 }
 0x1e7   : > { %842 = vmatpush3.bf16.msra.mxu0 %v1226_v19  ;;  %865 = vmatprep.subr.bf16.mxu1 %v1235_v20 }
 0x1e8   : > { %843 = vmatprep.subr.bf16.mxu0 %v1235_v20 }
 0x1ea   : > { %866 = vmatpush3.bf16.msra.mxu1 %v1240_v21 }
 0x1eb   : > { %844 = vmatpush3.bf16.msra.mxu0 %v1240_v21  ;;  %867 = vmatprep.subr.bf16.mxu1 %v1249_v22 }
 0x1ec   : > { %845 = vmatprep.subr.bf16.mxu0 %v1249_v22 }
 0x1ee   : > { %868 = vmatpush3.bf16.msra.mxu1 %v1254_v23 }
 0x1ef   : > { %846 = vmatpush3.bf16.msra.mxu0 %v1254_v23 }
 0x1f1   : > { %668 = vmatmul.mubr.bf16.vlgmr.msra.gmra.mrb[4].mxu1 %v633_v4 }
 0x1f2   : > { %590 = vmatmul.mubr.bf16.vlgmr.msra.gmra.mrb[4].mxu0 %v555_v13 }
 0x2a4   : > { %v825_v14 = vpop.f32.mrb[0].mxu1 }
 0x2a5   : > { %v803_v15 = vpop.f32.mrb[0].mxu0  ;;  %v826_v16 = vpop.f32.mrb[1].mxu1 }
 0x2a6   : > { %v804_v17 = vpop.f32.mrb[1].mxu0  ;;  %v827_v18 = vadd.f32 %v826_v16, %v825_v14  ;;  %v828_v19 = vpop.f32.mrb[2].mxu1 }
 0x2a7   : > { %v805_v20 = vadd.f32 %v804_v17, %v803_v15  ;;  %v806_v21 = vpop.f32.mrb[2].mxu0  ;;  %v829_v22 = vpop.f32.mrb[3].mxu1 }
 0x2a8   : > { %777 = vst [vmem:[%s193_s13 + $0x4] sm:$0xf] %v827_v18  ;;  %v807_v23 = vpop.f32.mrb[3].mxu0 }
 0x2a9   : > { %442 = vst [vmem:[%s193_s13] sm:$0xf] %v805_v20 }
 0x2c4   : > { %v869_v28 = vpop.f32.mrb[4].mxu1 }
 0x2c5   : > { %v847_v29 = vpop.f32.mrb[4].mxu0  ;;  %v870_v30 = vpop.f32.mrb[5].mxu1 }
 0x2c6   : > { %v848_v31 = vpop.f32.mrb[5].mxu0  ;;  %v871_v32 = vadd.f32 %v870_v30, %v869_v28  ;;  %v872_v33 = vpop.f32.mrb[6].mxu1 }
 0x2c7   : > { %v849_v34 = vadd.f32 %v848_v31, %v847_v29  ;;  %v850_v35 = vpop.f32.mrb[6].mxu0  ;;  %v873_v41 = vpop.f32.mrb[7].mxu1 }
 0x2c8   : > { %779 = vst [vmem:[%s193_s13 + $0xc] sm:$0xf] %v871_v32  ;;  %v851_v42 = vpop.f32.mrb[7].mxu0 }
 0x2c9   : > { %778 = vst [vmem:[%s193_s13 + $0x8] sm:$0xf] %v849_v34 }
 0x2ca   : > { %953 = shalt.err (!%p950_p3)
}
 0x2cb   : > { %s954_s7 = scalar_lea.hbm %s1327_s27, 256  ;;  %s958_s10 = scalar_lea.hbm %s1378_s4, 512 }
 0x2cc   : > { %p955_p4 = scmp.ne.s32.totalorder %s1327_s27, %s954_s7  ;;  %p959_p9 = scmp.lt.u32.totalorder %s1327_s27, %s1378_s4 }
 0x2cd   : > { %p960_p10 = scmp.lt.u32.totalorder %s958_s10, %s954_s7  ;;  %p962_p12 = scmp.lt.u32.totalorder %s954_s7, %s1327_s27 }
 0x2ce   : > { %p956_p7 = pnand %p955_p4, %p1070_p5 }
 0x2cf   : > { %p961_p11 = por %p960_p10, %p959_p9 }
 0x2d0   : > { %p957_p8 = pneg %p956_p7 }
 0x2d1   : > { %p963_p13 = por %p962_p12, %p961_p11 }
 0x2d3   : > { %p964_p0 = pnand %p963_p13, %p957_p8 }
 0x2d5   : > { %967 = shalt.err (!%p964_p0)
}
 0x2d6   : > { %s1006_s13 = smov 4  }
 0x2d7   : > { %875 = dma.vmem_to_hbm [thread:$0]  (%p1070_p5), %s1322_s14, 256, %s1327_s27, %s1331_s19, %s1004_s6, %s1004_s6, %s1006_s13  }
 0x2d8 PF: > { %p881_p1 = scmp.ge.s32.totalorder %s1002_s18, 2  ;;  %s706_s20 = sand.u32 1, %s990_s15  }
 0x2d9   : > { %s707_s22 = scalar_lea.sflag [#allocation3], %s706_s20 }
 0x2da   : > { %p878_p2 = pnand %p881_p1, %p1074_p6 }
 0x2dc   : > { %985 = dma.done.wait (!%p878_p2), %s707_s22, 256  }
 0x2dd   : > { %987 = vsyncadd (!%p878_p2), %s707_s22, 4294967040  ;;  %p14_p3 = scmp.ge.s32.totalorder %s1057_s21, 4   ;;  %s1381_s15 = smov %s994_s16 }
 0x2de   : > { %s1382_s16 = smov %s998_s17  ;;  %s1383_s17 = smov %s1068_s24 }
 0x2df   : > { %s1384_s18 = smov %s1057_s21  ;;  %16 = sbr.rel (!%p14_p3) target bundleno = 3 (0x3), region = 74 }
 0x2e6   :  { %712 = vsyncpa [#allocation3], 1 }
 0x2e7   :  { %714 = vsyncpa [#allocation3 + $0x1], 1 }

</bundles_post_ra>
